<compile_context>
chip_gen: v5e
topology: v5e:2x2
jax: 0.10.0
libtpu: 0.0.40
codegen_flags: <defaults>
</compile_context>

<pallas_src>
import functools
import math

import numpy as np
import jax
import jax.numpy as jnp
from jax import lax
from jax.experimental import pallas as pl
from jax.experimental.pallas import tpu as pltpu


# ------------------------------ fused ResBlock kernel --------------------------

def _resblock_kernel(xpl_ref, w1_ref, b1_ref, w2_ref, b2_ref, ws_ref, o_ref,
                     im1_ref, im2_ref, y2p_ref, *, gk_col, gk_row, neg_slope):
    """Fused ResBlock for one image.

    xpl_ref : (4, Ho+1, Wo+1, Cin) bf16  parity planes of the zero-padded input:
              plane a*2+b == xpad[a::2, b::2, :]
    w1_ref  : (9*Cin, Cin)  bf16  conv1 weights, K rows ordered (kh*3+kw)*Cin+ci
    b1_ref  : (1, Cin)  f32
    w2_ref  : (9*Cin, Cout) bf16  conv2 weights, same K ordering
    b2_ref  : (1, Cout) f32
    ws_ref  : (Cin, Cout) bf16    1x1 stride-2 skip weight, pre-scaled by 1/sqrt(2)
    o_ref   : (Ho, Wo, Cout) bf16 output block
    im1_ref : (Ho*Wo, 9*Cin) bf16 scratch: conv1 im2col LHS (reused per parity)
    im2_ref : (Ho, Wo, 9*Cin) bf16 scratch: conv2 im2col LHS
    y2p_ref : (Ho+2, Wo+2, Cout) f32 scratch: reflect-padded conv2 output
    """
    _, Hp1, Wp1, Cin = xpl_ref.shape
    Ho, Wo, Cout = o_ref.shape
    M = Ho * Wo
    c0g, c1g, c2g = gk_col          # unscaled Gaussian taps (column pass)
    r0g, r1g, r2g = gk_row          # Gaussian taps * 1/sqrt(2) (row pass)

    b1 = b1_ref[...]
    b2 = b2_ref[...]

    # ---- conv1 (3x3, s1, p1) + bias + LeakyReLU: one K=9*Cin matmul per output
    # parity plane; results scattered straight into the conv2 im2col tap slots.
    for p in range(2):
        for q in range(2):
            # Build the (M, 9*Cin) im2col LHS for this parity from the padded
            # input parity planes (every tap window is a contiguous slice).
            for kh in range(3):
                a, ui = (p + kh) % 2, (p + kh) // 2
                for kw in range(3):
                    b_, vi = (q + kw) % 2, (q + kw) // 2
                    t = kh * 3 + kw
                    win = xpl_ref[a * 2 + b_, ui:ui + Ho, vi:vi + Wo, :]
                    im1_ref[:, t * Cin:(t + 1) * Cin] = win.reshape(M, Cin)

            acc = jnp.dot(im1_ref[...], w1_ref[...],
                          preferred_element_type=jnp.float32)
            acc = acc + b1
            acc = jnp.where(acc > 0, acc, neg_slope * acc)
            res = acc.astype(im2_ref.dtype).reshape(Ho, Wo, Cin)

            # conv2 tap (kh,kw) reads conv1 plane ((kh+1)%2, (kw+1)%2) shifted by
            # (-1 if kh==0 else 0, -1 if kw==0 else 0); out-of-range -> zero pad.
            khs = (1,) if p == 0 else (0, 2)
            kws = (1,) if q == 0 else (0, 2)
            for kh in khs:
                for kw in kws:
                    t = kh * 3 + kw
                    c0, c1 = t * Cin, (t + 1) * Cin
                    dh = -1 if kh == 0 else 0
                    dw = -1 if kw == 0 else 0
                    if dh == 0 and dw == 0:
                        im2_ref[:, :, c0:c1] = res
                    elif dh == -1 and dw == 0:
                        im2_ref[1:Ho, :, c0:c1] = res[:Ho - 1]
                        im2_ref[0:1, :, c0:c1] = jnp.zeros((1, Wo, Cin), res.dtype)
                    elif dh == 0 and dw == -1:
                        im2_ref[:, 1:Wo, c0:c1] = res[:, :Wo - 1]
                        im2_ref[:, 0:1, c0:c1] = jnp.zeros((Ho, 1, Cin), res.dtype)
                    else:
                        im2_ref[1:Ho, 1:Wo, c0:c1] = res[:Ho - 1, :Wo - 1]
                        im2_ref[0:1, :, c0:c1] = jnp.zeros((1, Wo, Cin), res.dtype)
                        im2_ref[1:Ho, 0:1, c0:c1] = jnp.zeros((Ho - 1, 1, Cin),
                                                              res.dtype)

    # ---- conv2 (3x3, s2, p1): single K=9*Cin matmul + bias (LeakyReLU after blur).
    z = jnp.dot(im2_ref[...].reshape(M, 9 * Cin), w2_ref[...],
                preferred_element_type=jnp.float32)
    z = (z + b2).reshape(Ho, Wo, Cout)

    # ---- skip: 1x1 stride-2 conv; x[::2, ::2] is input parity plane (1,1).
    # Weight already carries the 1/sqrt(2) residual scale.
    xs = xpl_ref[3, 0:Ho, 0:Wo, :].reshape(M, Cin)
    skip = jnp.dot(xs, ws_ref[...], preferred_element_type=jnp.float32)
    skip = skip.reshape(Ho, Wo, Cout)

    # ---- GaussianBlur(3x3, sigma=1, reflect border), separable, all in VMEM.
    # Row-pass taps carry 1/sqrt(2) (LeakyReLU is positively homogeneous).
    y2p_ref[1:Ho + 1, 1:Wo + 1, :] = z
    y2p_ref[0:1, 1:Wo + 1, :] = z[1:2]                       # reflect rows (no edge)
    y2p_ref[Ho + 1:Ho + 2, 1:Wo + 1, :] = z[Ho - 2:Ho - 1]
    y2p_ref[:, 0:1, :] = y2p_ref[:, 2:3, :]                  # reflect cols (corners too)
    y2p_ref[:, Wo + 1:Wo + 2, :] = y2p_ref[:, Wo - 1:Wo, :]

    yp = y2p_ref[...]
    tcol = c0g * yp[:, 0:Wo, :] + c1g * yp[:, 1:Wo + 1, :] + c2g * yp[:, 2:Wo + 2, :]
    blur = r0g * tcol[0:Ho] + r1g * tcol[1:Ho + 1] + r2g * tcol[2:Ho + 2]

    # ---- LeakyReLU + residual combine (1/sqrt(2) already folded in) ------------
    x2 = jnp.where(blur > 0, blur, neg_slope * blur)
    o_ref[...] = (x2 + skip).astype(o_ref.dtype)


# --------------------------------- wrapper --------------------------------------

def resblock_forward(x_nchw, params, gk1d):
    """ResBlock forward. x_nchw: (N, Cin, H, W) f32 (PyTorch layout). Returns NCHW bf16."""
    w1, b1, w2, b2, wskip = (params[k] for k in ("w1", "b1", "w2", "b2", "wskip"))
    Cin = w1.shape[0]
    Cout = w2.shape[0]
    N, _, H, W = x_nchw.shape
    assert H % 2 == 0 and W % 2 == 0 and H >= 6 and W >= 6
    Ho, Wo = H // 2, W // 2
    Hp1, Wp1 = Ho + 1, Wo + 1
    M = Ho * Wo
    inv_sqrt2 = 1.0 / math.sqrt(2.0)

    # ---- prologue, bf16 end-to-end (cast before pad / space-to-depth).
    # TODO(synk): fold pad + parity split into the kernel (strided pl.ds reads from a
    # padded NHWC bf16 input) or enable allow_input_fusion so this prologue never
    # round-trips HBM as a separate XLA op.
    x = jnp.transpose(x_nchw, (0, 2, 3, 1)).astype(jnp.bfloat16)  # NCHW -> NHWC, bf16
    xp = jnp.pad(x, ((0, 0), (1, 1), (1, 1), (0, 0)))             # zero pad 1
    xplanes = jnp.stack([xp[:, a::2, b::2, :] for a in (0, 1) for b in (0, 1)],
                        axis=1).reshape(N * 4, Hp1, Wp1, Cin)

    # tap-concatenated weights: one K = 9*Cin matmul per conv (f32 accumulation
    # in the kernel); skip weight pre-scaled by 1/sqrt(2).
    w1c = jnp.transpose(w1, (2, 3, 1, 0)).reshape(9 * Cin, Cin).astype(jnp.bfloat16)
    w2c = jnp.transpose(w2, (2, 3, 1, 0)).reshape(9 * Cin, Cout).astype(jnp.bfloat16)
    wss = (wskip[:, :, 0, 0].T * inv_sqrt2).astype(jnp.bfloat16)  # (Cin, Cout)
    b1r = b1.reshape(1, Cin).astype(jnp.float32)
    b2r = b2.reshape(1, Cout).astype(jnp.float32)

    g = tuple(float(v) for v in gk1d)
    gs = tuple(v * inv_sqrt2 for v in g)                          # 1/sqrt(2) folded

    kern = functools.partial(_resblock_kernel, gk_col=g, gk_row=gs, neg_slope=0.2)

    out_nhwc = pl.pallas_call(
        kern,
        out_shape=jax.ShapeDtypeStruct((N, Ho, Wo, Cout), jnp.bfloat16),
        grid=(N,),
        in_specs=[
            pl.BlockSpec((4, Hp1, Wp1, Cin), lambda n: (n, 0, 0, 0)),   # 4 planes/image
            pl.BlockSpec((9 * Cin, Cin), lambda n: (0, 0)),
            pl.BlockSpec((1, Cin), lambda n: (0, 0)),
            pl.BlockSpec((9 * Cin, Cout), lambda n: (0, 0)),
            pl.BlockSpec((1, Cout), lambda n: (0, 0)),
            pl.BlockSpec((Cin, Cout), lambda n: (0, 0)),
        ],
        out_specs=pl.BlockSpec((None, Ho, Wo, Cout), lambda n: (n, 0, 0, 0)),
        scratch_shapes=[
            pltpu.VMEM((M, 9 * Cin), jnp.bfloat16),           # conv1 im2col LHS
            pltpu.VMEM((Ho, Wo, 9 * Cin), jnp.bfloat16),      # conv2 im2col LHS
            pltpu.VMEM((Ho + 2, Wo + 2, Cout), jnp.float32),  # reflect-padded conv2 out
        ],
        # TODO(synk): for full-size Discriminator activations (512x512, C up to 512)
        # add a 'parallel' row-band grid axis with a 1-output-row halo (input via
        # memory_space=pl.ANY + manual pltpu.make_async_copy, recompute the halo row
        # for the blur) so per-step VMEM stays <= ~28 MiB on v7x (64 MiB/TC) and the
        # pipeline has enough steps to hide HBM latency; on v5e/v6e raise
        # vmem_limit_bytes and run larger bands.  Per-image blocks are right at this
        # test size.
        compiler_params=pltpu.CompilerParams(dimension_semantics=("parallel",)),
    )(xplanes, w1c, b1r, w2c, b2r, wss)

    return jnp.transpose(out_nhwc, (0, 3, 1, 2))                  # NHWC -> NCHW (bf16)


# --------------------------------- helpers --------------------------------------

def gaussian_kernel_1d(sigma=1.0):
    # matches kornia.filters.gaussian_blur2d(kernel_size=(3,3), sigma=(1,1))
    x = np.array([-1.0, 0.0, 1.0])
    g = np.exp(-(x ** 2) / (2.0 * sigma ** 2))
    return (g / g.sum()).astype(np.float32)


def spectral_normalize(w):
    # TODO(synk): PyTorch spectral_norm uses a 1-step power iteration with persistent
    # u/v buffers; here we divide by the exact largest singular value (its fixed point).
    m = np.asarray(w).reshape(w.shape[0], -1)
    sigma = float(np.linalg.svd(m, compute_uv=False)[0])
    return w / jnp.float32(sigma)


# ------------------------------ pure-JAX reference -------------------------------

def ref_forward(x, params, gk1d):
    w1, b1, w2, b2, wskip = (params[k] for k in ("w1", "b1", "w2", "b2", "wskip"))
    dn = ("NCHW", "OIHW", "NCHW")
    leaky = lambda v: jnp.where(v > 0, v, 0.2 * v)
    y = lax.conv_general_dilated(x, w1, (1, 1), ((1, 1), (1, 1)),
                                 dimension_numbers=dn) + b1[None, :, None, None]
    y = leaky(y)
    y = lax.conv_general_dilated(y, w2, (2, 2), ((1, 1), (1, 1)),
                                 dimension_numbers=dn) + b2[None, :, None, None]
    Cout = w2.shape[0]
    yp = jnp.pad(y, ((0, 0), (0, 0), (1, 1), (1, 1)), mode="reflect")
    gk2d = jnp.asarray(np.outer(gk1d, gk1d), jnp.float32)
    gkern = jnp.tile(gk2d[None, None], (Cout, 1, 1, 1))
    blur = lax.conv_general_dilated(yp, gkern, (1, 1), "VALID",
                                    dimension_numbers=dn, feature_group_count=Cout)
    x2 = leaky(blur)
    skip = lax.conv_general_dilated(x, wskip, (2, 2), "VALID", dimension_numbers=dn)
    return (x2 + skip) / jnp.sqrt(2.0)


# ----------------------------------- main ----------------------------------------

if __name__ == "__main__":
    # First ResBlock of the Discriminator (64 -> 128 channels) at a small spatial size.
    N, Cin, Cout, H, W = 2, 64, 128, 16, 16
    key = jax.random.PRNGKey(0)
    k = jax.random.split(key, 6)

    x = jax.random.normal(k[0], (N, Cin, H, W), jnp.float32)        # NCHW like PyTorch

    w1 = spectral_normalize(jax.random.normal(k[1], (Cin, Cin, 3, 3), jnp.float32) * 0.2)
    b1 = jax.random.normal(k[2], (Cin,), jnp.float32) * 0.1
    w2 = spectral_normalize(jax.random.normal(k[3], (Cout, Cin, 3, 3), jnp.float32) * 0.2)
    b2 = jax.random.normal(k[4], (Cout,), jnp.float32) * 0.1
    wskip = spectral_normalize(jax.random.normal(k[5], (Cout, Cin, 1, 1), jnp.float32) * 0.2)

    params = dict(w1=w1, b1=b1, w2=w2, b2=b2, wskip=wskip)
    g1d = gaussian_kernel_1d(1.0)

    out = jax.jit(lambda xx: resblock_forward(xx, params, g1d))(x)
    out = jax.block_until_ready(out)

    ref = ref_forward(x, params, g1d)
    assert out.shape == (N, Cout, H // 2, W // 2), out.shape
    np.testing.assert_allclose(np.asarray(out.astype(jnp.float32)), np.asarray(ref),
                               rtol=5e-2, atol=5e-2)

    print("KERNEL_OK")
</pallas_src>

<mosaic_0001>
module attributes {stable_mosaic.version = 11 : i64} {
  func.func @_resblock_kernel(%arg0: i32, %arg1: memref<4x9x9x64xbf16, #tpu.memory_space<vmem>>, %arg2: memref<576x64xbf16, #tpu.memory_space<vmem>>, %arg3: memref<1x64xf32, #tpu.memory_space<vmem>>, %arg4: memref<576x128xbf16, #tpu.memory_space<vmem>>, %arg5: memref<1x128xf32, #tpu.memory_space<vmem>>, %arg6: memref<64x128xbf16, #tpu.memory_space<vmem>>, %arg7: memref<1x8x8x128xbf16, #tpu.memory_space<vmem>>, %arg8: memref<64x576xbf16, #tpu.memory_space<vmem>>, %arg9: memref<8x8x576xbf16, #tpu.memory_space<vmem>>, %arg10: memref<10x10x128xf32, #tpu.memory_space<vmem>>) attributes {dimension_semantics = [#tpu.dimension_semantics<parallel>], iteration_bounds = array<i64: 2>, scalar_prefetch = 0 : i64, scratch_operands = 3 : i64, tpu.core_type = #tpu.core_type<tc>, window_params = [{transform_indices = @transform_0, window_bounds = array<i64: 4, 9, 9, 64>}, {pipeline_mode = #tpu.pipeline_mode<synchronous>, transform_indices = @transform_1, window_bounds = array<i64: 576, 64>}, {pipeline_mode = #tpu.pipeline_mode<synchronous>, transform_indices = @transform_2, window_bounds = array<i64: 1, 64>}, {pipeline_mode = #tpu.pipeline_mode<synchronous>, transform_indices = @transform_3, window_bounds = array<i64: 576, 128>}, {pipeline_mode = #tpu.pipeline_mode<synchronous>, transform_indices = @transform_4, window_bounds = array<i64: 1, 128>}, {pipeline_mode = #tpu.pipeline_mode<synchronous>, transform_indices = @transform_5, window_bounds = array<i64: 64, 128>}, {transform_indices = @transform_6, window_bounds = array<i64: 1, 8, 8, 128>}]} {
    %c0 = arith.constant 0 : index
    %c0_0 = arith.constant 0 : index
    %0 = vector.load %arg3[%c0, %c0_0] : memref<1x64xf32, #tpu.memory_space<vmem>>, vector<1x64xf32>
    %c0_1 = arith.constant 0 : index
    %c0_2 = arith.constant 0 : index
    %1 = vector.load %arg5[%c0_1, %c0_2] : memref<1x128xf32, #tpu.memory_space<vmem>>, vector<1x128xf32>
    %c0_3 = arith.constant 0 : index
    %c0_4 = arith.constant 0 : index
    %c0_5 = arith.constant 0 : index
    %c0_6 = arith.constant 0 : index
    %2 = vector.load %arg1[%c0_3, %c0_4, %c0_5, %c0_6] : memref<4x9x9x64xbf16, #tpu.memory_space<vmem>>, vector<1x8x8x64xbf16>
    %3 = vector.shape_cast %2 : vector<1x8x8x64xbf16> to vector<8x8x64xbf16>
    %4 = vector.shape_cast %3 : vector<8x8x64xbf16> to vector<64x64xbf16>
    %c0_7 = arith.constant 0 : index
    %c0_8 = arith.constant 0 : index
    %5 = vector.load %arg8[%c0_7, %c0_8] : memref<64x576xbf16, #tpu.memory_space<vmem>>, vector<64x64xbf16>
    tpu.vector_store %arg8[%c0_7, %c0_8], %4 {strides = array<i32>} : memref<64x576xbf16, #tpu.memory_space<vmem>>, vector<64x64xbf16>,
    %c1 = arith.constant 1 : index
    %c0_9 = arith.constant 0 : index
    %c0_10 = arith.constant 0 : index
    %c0_11 = arith.constant 0 : index
    %6 = vector.load %arg1[%c1, %c0_9, %c0_10, %c0_11] : memref<4x9x9x64xbf16, #tpu.memory_space<vmem>>, vector<1x8x8x64xbf16>
    %7 = vector.shape_cast %6 : vector<1x8x8x64xbf16> to vector<8x8x64xbf16>
    %8 = vector.shape_cast %7 : vector<8x8x64xbf16> to vector<64x64xbf16>
    %c0_12 = arith.constant 0 : index
    %c64 = arith.constant 64 : index
    %9 = vector.load %arg8[%c0_12, %c64] : memref<64x576xbf16, #tpu.memory_space<vmem>>, vector<64x64xbf16>
    tpu.vector_store %arg8[%c0_12, %c64], %8 {strides = array<i32>} : memref<64x576xbf16, #tpu.memory_space<vmem>>, vector<64x64xbf16>,
    %c0_13 = arith.constant 0 : index
    %c0_14 = arith.constant 0 : index
    %c1_15 = arith.constant 1 : index
    %c0_16 = arith.constant 0 : index
    %10 = vector.load %arg1[%c0_13, %c0_14, %c1_15, %c0_16] : memref<4x9x9x64xbf16, #tpu.memory_space<vmem>>, vector<1x8x8x64xbf16>
    %11 = vector.shape_cast %10 : vector<1x8x8x64xbf16> to vector<8x8x64xbf16>
    %12 = vector.shape_cast %11 : vector<8x8x64xbf16> to vector<64x64xbf16>
    %c0_17 = arith.constant 0 : index
    %c128 = arith.constant 128 : index
    %13 = vector.load %arg8[%c0_17, %c128] : memref<64x576xbf16, #tpu.memory_space<vmem>>, vector<64x64xbf16>
    tpu.vector_store %arg8[%c0_17, %c128], %12 {strides = array<i32>} : memref<64x576xbf16, #tpu.memory_space<vmem>>, vector<64x64xbf16>,
    %c2 = arith.constant 2 : index
    %c0_18 = arith.constant 0 : index
    %c0_19 = arith.constant 0 : index
    %c0_20 = arith.constant 0 : index
    %14 = vector.load %arg1[%c2, %c0_18, %c0_19, %c0_20] : memref<4x9x9x64xbf16, #tpu.memory_space<vmem>>, vector<1x8x8x64xbf16>
    %15 = vector.shape_cast %14 : vector<1x8x8x64xbf16> to vector<8x8x64xbf16>
    %16 = vector.shape_cast %15 : vector<8x8x64xbf16> to vector<64x64xbf16>
    %c0_21 = arith.constant 0 : index
    %c192 = arith.constant 192 : index
    %17 = vector.load %arg8[%c0_21, %c192] : memref<64x576xbf16, #tpu.memory_space<vmem>>, vector<64x64xbf16>
    tpu.vector_store %arg8[%c0_21, %c192], %16 {strides = array<i32>} : memref<64x576xbf16, #tpu.memory_space<vmem>>, vector<64x64xbf16>,
    %c3 = arith.constant 3 : index
    %c0_22 = arith.constant 0 : index
    %c0_23 = arith.constant 0 : index
    %c0_24 = arith.constant 0 : index
    %18 = vector.load %arg1[%c3, %c0_22, %c0_23, %c0_24] : memref<4x9x9x64xbf16, #tpu.memory_space<vmem>>, vector<1x8x8x64xbf16>
    %19 = vector.shape_cast %18 : vector<1x8x8x64xbf16> to vector<8x8x64xbf16>
    %20 = vector.shape_cast %19 : vector<8x8x64xbf16> to vector<64x64xbf16>
    %c0_25 = arith.constant 0 : index
    %c256 = arith.constant 256 : index
    %21 = vector.load %arg8[%c0_25, %c256] : memref<64x576xbf16, #tpu.memory_space<vmem>>, vector<64x64xbf16>
    tpu.vector_store %arg8[%c0_25, %c256], %20 {strides = array<i32>} : memref<64x576xbf16, #tpu.memory_space<vmem>>, vector<64x64xbf16>,
    %c2_26 = arith.constant 2 : index
    %c0_27 = arith.constant 0 : index
    %c1_28 = arith.constant 1 : index
    %c0_29 = arith.constant 0 : index
    %22 = vector.load %arg1[%c2_26, %c0_27, %c1_28, %c0_29] : memref<4x9x9x64xbf16, #tpu.memory_space<vmem>>, vector<1x8x8x64xbf16>
    %23 = vector.shape_cast %22 : vector<1x8x8x64xbf16> to vector<8x8x64xbf16>
    %24 = vector.shape_cast %23 : vector<8x8x64xbf16> to vector<64x64xbf16>
    %c0_30 = arith.constant 0 : index
    %c320 = arith.constant 320 : index
    %25 = vector.load %arg8[%c0_30, %c320] : memref<64x576xbf16, #tpu.memory_space<vmem>>, vector<64x64xbf16>
    tpu.vector_store %arg8[%c0_30, %c320], %24 {strides = array<i32>} : memref<64x576xbf16, #tpu.memory_space<vmem>>, vector<64x64xbf16>,
    %c0_31 = arith.constant 0 : index
    %c1_32 = arith.constant 1 : index
    %c0_33 = arith.constant 0 : index
    %c0_34 = arith.constant 0 : index
    %26 = vector.load %arg1[%c0_31, %c1_32, %c0_33, %c0_34] : memref<4x9x9x64xbf16, #tpu.memory_space<vmem>>, vector<1x8x8x64xbf16>
    %27 = vector.shape_cast %26 : vector<1x8x8x64xbf16> to vector<8x8x64xbf16>
    %28 = vector.shape_cast %27 : vector<8x8x64xbf16> to vector<64x64xbf16>
    %c0_35 = arith.constant 0 : index
    %c384 = arith.constant 384 : index
    %29 = vector.load %arg8[%c0_35, %c384] : memref<64x576xbf16, #tpu.memory_space<vmem>>, vector<64x64xbf16>
    tpu.vector_store %arg8[%c0_35, %c384], %28 {strides = array<i32>} : memref<64x576xbf16, #tpu.memory_space<vmem>>, vector<64x64xbf16>,
    %c1_36 = arith.constant 1 : index
    %c1_37 = arith.constant 1 : index
    %c0_38 = arith.constant 0 : index
    %c0_39 = arith.constant 0 : index
    %30 = vector.load %arg1[%c1_36, %c1_37, %c0_38, %c0_39] : memref<4x9x9x64xbf16, #tpu.memory_space<vmem>>, vector<1x8x8x64xbf16>
    %31 = vector.shape_cast %30 : vector<1x8x8x64xbf16> to vector<8x8x64xbf16>
    %32 = vector.shape_cast %31 : vector<8x8x64xbf16> to vector<64x64xbf16>
    %c0_40 = arith.constant 0 : index
    %c448 = arith.constant 448 : index
    %33 = vector.load %arg8[%c0_40, %c448] : memref<64x576xbf16, #tpu.memory_space<vmem>>, vector<64x64xbf16>
    tpu.vector_store %arg8[%c0_40, %c448], %32 {strides = array<i32>} : memref<64x576xbf16, #tpu.memory_space<vmem>>, vector<64x64xbf16>,
    %c0_41 = arith.constant 0 : index
    %c1_42 = arith.constant 1 : index
    %c1_43 = arith.constant 1 : index
    %c0_44 = arith.constant 0 : index
    %34 = vector.load %arg1[%c0_41, %c1_42, %c1_43, %c0_44] : memref<4x9x9x64xbf16, #tpu.memory_space<vmem>>, vector<1x8x8x64xbf16>
    %35 = vector.shape_cast %34 : vector<1x8x8x64xbf16> to vector<8x8x64xbf16>
    %36 = vector.shape_cast %35 : vector<8x8x64xbf16> to vector<64x64xbf16>
    %c0_45 = arith.constant 0 : index
    %c512 = arith.constant 512 : index
    %37 = vector.load %arg8[%c0_45, %c512] : memref<64x576xbf16, #tpu.memory_space<vmem>>, vector<64x64xbf16>
    tpu.vector_store %arg8[%c0_45, %c512], %36 {strides = array<i32>} : memref<64x576xbf16, #tpu.memory_space<vmem>>, vector<64x64xbf16>,
    %c0_46 = arith.constant 0 : index
    %c0_47 = arith.constant 0 : index
    %38 = vector.load %arg8[%c0_46, %c0_47] : memref<64x576xbf16, #tpu.memory_space<vmem>>, vector<64x576xbf16>
    %c0_48 = arith.constant 0 : index
    %c0_49 = arith.constant 0 : index
    %39 = vector.load %arg2[%c0_48, %c0_49] : memref<576x64xbf16, #tpu.memory_space<vmem>>, vector<576x64xbf16>
    %cst = arith.constant dense<0.000000e+00> : vector<64x64xf32>
    %40 = tpu.matmul %38, %39, %cst {dimension_numbers = #tpu.dot_dimension_numbers<[1], [0], [0], [1], [0, 0, 1, 1], [], []>} : vector<64x576xbf16>, vector<576x64xbf16>, vector<64x64xf32> -> vector<64x64xf32>
    %41 = vector.broadcast %0 : vector<1x64xf32> to vector<64x64xf32>
    %42 = arith.addf %40, %41 : vector<64x64xf32>
    %cst_50 = arith.constant 0.000000e+00 : f32
    %43 = vector.broadcast %cst_50 : f32 to vector<64x64xf32>
    %44 = arith.cmpf ogt, %42, %43 : vector<64x64xf32>
    %cst_51 = arith.constant 2.000000e-01 : f32
    %45 = vector.broadcast %cst_51 : f32 to vector<64x64xf32>
    %46 = arith.mulf %45, %42 : vector<64x64xf32>
    %47 = arith.select %44, %42, %46 : vector<64x64xi1>, vector<64x64xf32>
    %48 = arith.truncf %47 : vector<64x64xf32> to vector<64x64xbf16>
    %49 = vector.shape_cast %48 : vector<64x64xbf16> to vector<8x8x64xbf16>
    %c0_52 = arith.constant 0 : index
    %c0_53 = arith.constant 0 : index
    %c256_54 = arith.constant 256 : index
    %50 = vector.load %arg9[%c0_52, %c0_53, %c256_54] : memref<8x8x576xbf16, #tpu.memory_space<vmem>>, vector<8x8x64xbf16>
    tpu.vector_store %arg9[%c0_52, %c0_53, %c256_54], %49 {strides = array<i32>} : memref<8x8x576xbf16, #tpu.memory_space<vmem>>, vector<8x8x64xbf16>,
    %c1_55 = arith.constant 1 : index
    %c0_56 = arith.constant 0 : index
    %c0_57 = arith.constant 0 : index
    %c0_58 = arith.constant 0 : index
    %51 = vector.load %arg1[%c1_55, %c0_56, %c0_57, %c0_58] : memref<4x9x9x64xbf16, #tpu.memory_space<vmem>>, vector<1x8x8x64xbf16>
    %52 = vector.shape_cast %51 : vector<1x8x8x64xbf16> to vector<8x8x64xbf16>
    %53 = vector.shape_cast %52 : vector<8x8x64xbf16> to vector<64x64xbf16>
    %c0_59 = arith.constant 0 : index
    %c0_60 = arith.constant 0 : index
    %54 = vector.load %arg8[%c0_59, %c0_60] : memref<64x576xbf16, #tpu.memory_space<vmem>>, vector<64x64xbf16>
    tpu.vector_store %arg8[%c0_59, %c0_60], %53 {strides = array<i32>} : memref<64x576xbf16, #tpu.memory_space<vmem>>, vector<64x64xbf16>,
    %c0_61 = arith.constant 0 : index
    %c0_62 = arith.constant 0 : index
    %c1_63 = arith.constant 1 : index
    %c0_64 = arith.constant 0 : index
    %55 = vector.load %arg1[%c0_61, %c0_62, %c1_63, %c0_64] : memref<4x9x9x64xbf16, #tpu.memory_space<vmem>>, vector<1x8x8x64xbf16>
    %56 = vector.shape_cast %55 : vector<1x8x8x64xbf16> to vector<8x8x64xbf16>
    %57 = vector.shape_cast %56 : vector<8x8x64xbf16> to vector<64x64xbf16>
    %c0_65 = arith.constant 0 : index
    %c64_66 = arith.constant 64 : index
    %58 = vector.load %arg8[%c0_65, %c64_66] : memref<64x576xbf16, #tpu.memory_space<vmem>>, vector<64x64xbf16>
    tpu.vector_store %arg8[%c0_65, %c64_66], %57 {strides = array<i32>} : memref<64x576xbf16, #tpu.memory_space<vmem>>, vector<64x64xbf16>,
    %c1_67 = arith.constant 1 : index
    %c0_68 = arith.constant 0 : index
    %c1_69 = arith.constant 1 : index
    %c0_70 = arith.constant 0 : index
    %59 = vector.load %arg1[%c1_67, %c0_68, %c1_69, %c0_70] : memref<4x9x9x64xbf16, #tpu.memory_space<vmem>>, vector<1x8x8x64xbf16>
    %60 = vector.shape_cast %59 : vector<1x8x8x64xbf16> to vector<8x8x64xbf16>
    %61 = vector.shape_cast %60 : vector<8x8x64xbf16> to vector<64x64xbf16>
    %c0_71 = arith.constant 0 : index
    %c128_72 = arith.constant 128 : index
    %62 = vector.load %arg8[%c0_71, %c128_72] : memref<64x576xbf16, #tpu.memory_space<vmem>>, vector<64x64xbf16>
    tpu.vector_store %arg8[%c0_71, %c128_72], %61 {strides = array<i32>} : memref<64x576xbf16, #tpu.memory_space<vmem>>, vector<64x64xbf16>,
    %c3_73 = arith.constant 3 : index
    %c0_74 = arith.constant 0 : index
    %c0_75 = arith.constant 0 : index
    %c0_76 = arith.constant 0 : index
    %63 = vector.load %arg1[%c3_73, %c0_74, %c0_75, %c0_76] : memref<4x9x9x64xbf16, #tpu.memory_space<vmem>>, vector<1x8x8x64xbf16>
    %64 = vector.shape_cast %63 : vector<1x8x8x64xbf16> to vector<8x8x64xbf16>
    %65 = vector.shape_cast %64 : vector<8x8x64xbf16> to vector<64x64xbf16>
    %c0_77 = arith.constant 0 : index
    %c192_78 = arith.constant 192 : index
    %66 = vector.load %arg8[%c0_77, %c192_78] : memref<64x576xbf16, #tpu.memory_space<vmem>>, vector<64x64xbf16>
    tpu.vector_store %arg8[%c0_77, %c192_78], %65 {strides = array<i32>} : memref<64x576xbf16, #tpu.memory_space<vmem>>, vector<64x64xbf16>,
    %c2_79 = arith.constant 2 : index
    %c0_80 = arith.constant 0 : index
    %c1_81 = arith.constant 1 : index
    %c0_82 = arith.constant 0 : index
    %67 = vector.load %arg1[%c2_79, %c0_80, %c1_81, %c0_82] : memref<4x9x9x64xbf16, #tpu.memory_space<vmem>>, vector<1x8x8x64xbf16>
    %68 = vector.shape_cast %67 : vector<1x8x8x64xbf16> to vector<8x8x64xbf16>
    %69 = vector.shape_cast %68 : vector<8x8x64xbf16> to vector<64x64xbf16>
    %c0_83 = arith.constant 0 : index
    %c256_84 = arith.constant 256 : index
    %70 = vector.load %arg8[%c0_83, %c256_84] : memref<64x576xbf16, #tpu.memory_space<vmem>>, vector<64x64xbf16>
    tpu.vector_store %arg8[%c0_83, %c256_84], %69 {strides = array<i32>} : memref<64x576xbf16, #tpu.memory_space<vmem>>, vector<64x64xbf16>,
    %c3_85 = arith.constant 3 : index
    %c0_86 = arith.constant 0 : index
    %c1_87 = arith.constant 1 : index
    %c0_88 = arith.constant 0 : index
    %71 = vector.load %arg1[%c3_85, %c0_86, %c1_87, %c0_88] : memref<4x9x9x64xbf16, #tpu.memory_space<vmem>>, vector<1x8x8x64xbf16>
    %72 = vector.shape_cast %71 : vector<1x8x8x64xbf16> to vector<8x8x64xbf16>
    %73 = vector.shape_cast %72 : vector<8x8x64xbf16> to vector<64x64xbf16>
    %c0_89 = arith.constant 0 : index
    %c320_90 = arith.constant 320 : index
    %74 = vector.load %arg8[%c0_89, %c320_90] : memref<64x576xbf16, #tpu.memory_space<vmem>>, vector<64x64xbf16>
    tpu.vector_store %arg8[%c0_89, %c320_90], %73 {strides = array<i32>} : memref<64x576xbf16, #tpu.memory_space<vmem>>, vector<64x64xbf16>,
    %c1_91 = arith.constant 1 : index
    %c1_92 = arith.constant 1 : index
    %c0_93 = arith.constant 0 : index
    %c0_94 = arith.constant 0 : index
    %75 = vector.load %arg1[%c1_91, %c1_92, %c0_93, %c0_94] : memref<4x9x9x64xbf16, #tpu.memory_space<vmem>>, vector<1x8x8x64xbf16>
    %76 = vector.shape_cast %75 : vector<1x8x8x64xbf16> to vector<8x8x64xbf16>
    %77 = vector.shape_cast %76 : vector<8x8x64xbf16> to vector<64x64xbf16>
    %c0_95 = arith.constant 0 : index
    %c384_96 = arith.constant 384 : index
    %78 = vector.load %arg8[%c0_95, %c384_96] : memref<64x576xbf16, #tpu.memory_space<vmem>>, vector<64x64xbf16>
    tpu.vector_store %arg8[%c0_95, %c384_96], %77 {strides = array<i32>} : memref<64x576xbf16, #tpu.memory_space<vmem>>, vector<64x64xbf16>,
    %c0_97 = arith.constant 0 : index
    %c1_98 = arith.constant 1 : index
    %c1_99 = arith.constant 1 : index
    %c0_100 = arith.constant 0 : index
    %79 = vector.load %arg1[%c0_97, %c1_98, %c1_99, %c0_100] : memref<4x9x9x64xbf16, #tpu.memory_space<vmem>>, vector<1x8x8x64xbf16>
    %80 = vector.shape_cast %79 : vector<1x8x8x64xbf16> to vector<8x8x64xbf16>
    %81 = vector.shape_cast %80 : vector<8x8x64xbf16> to vector<64x64xbf16>
    %c0_101 = arith.constant 0 : index
    %c448_102 = arith.constant 448 : index
    %82 = vector.load %arg8[%c0_101, %c448_102] : memref<64x576xbf16, #tpu.memory_space<vmem>>, vector<64x64xbf16>
    tpu.vector_store %arg8[%c0_101, %c448_102], %81 {strides = array<i32>} : memref<64x576xbf16, #tpu.memory_space<vmem>>, vector<64x64xbf16>,
    %c1_103 = arith.constant 1 : index
    %c1_104 = arith.constant 1 : index
    %c1_105 = arith.constant 1 : index
    %c0_106 = arith.constant 0 : index
    %83 = vector.load %arg1[%c1_103, %c1_104, %c1_105, %c0_106] : memref<4x9x9x64xbf16, #tpu.memory_space<vmem>>, vector<1x8x8x64xbf16>
    %84 = vector.shape_cast %83 : vector<1x8x8x64xbf16> to vector<8x8x64xbf16>
    %85 = vector.shape_cast %84 : vector<8x8x64xbf16> to vector<64x64xbf16>
    %c0_107 = arith.constant 0 : index
    %c512_108 = arith.constant 512 : index
    %86 = vector.load %arg8[%c0_107, %c512_108] : memref<64x576xbf16, #tpu.memory_space<vmem>>, vector<64x64xbf16>
    tpu.vector_store %arg8[%c0_107, %c512_108], %85 {strides = array<i32>} : memref<64x576xbf16, #tpu.memory_space<vmem>>, vector<64x64xbf16>,
    %c0_109 = arith.constant 0 : index
    %c0_110 = arith.constant 0 : index
    %87 = vector.load %arg8[%c0_109, %c0_110] : memref<64x576xbf16, #tpu.memory_space<vmem>>, vector<64x576xbf16>
    %c0_111 = arith.constant 0 : index
    %c0_112 = arith.constant 0 : index
    %88 = vector.load %arg2[%c0_111, %c0_112] : memref<576x64xbf16, #tpu.memory_space<vmem>>, vector<576x64xbf16>
    %cst_113 = arith.constant dense<0.000000e+00> : vector<64x64xf32>
    %89 = tpu.matmul %87, %88, %cst_113 {dimension_numbers = #tpu.dot_dimension_numbers<[1], [0], [0], [1], [0, 0, 1, 1], [], []>} : vector<64x576xbf16>, vector<576x64xbf16>, vector<64x64xf32> -> vector<64x64xf32>
    %90 = vector.broadcast %0 : vector<1x64xf32> to vector<64x64xf32>
    %91 = arith.addf %89, %90 : vector<64x64xf32>
    %cst_114 = arith.constant 0.000000e+00 : f32
    %92 = vector.broadcast %cst_114 : f32 to vector<64x64xf32>
    %93 = arith.cmpf ogt, %91, %92 : vector<64x64xf32>
    %cst_115 = arith.constant 2.000000e-01 : f32
    %94 = vector.broadcast %cst_115 : f32 to vector<64x64xf32>
    %95 = arith.mulf %94, %91 : vector<64x64xf32>
    %96 = arith.select %93, %91, %95 : vector<64x64xi1>, vector<64x64xf32>
    %97 = arith.truncf %96 : vector<64x64xf32> to vector<64x64xbf16>
    %98 = vector.shape_cast %97 : vector<64x64xbf16> to vector<8x8x64xbf16>
    %99 = vector.extract_strided_slice %98 {offsets = [0, 0, 0], sizes = [8, 7, 64], strides = [1, 1, 1]} : vector<8x8x64xbf16> to vector<8x7x64xbf16>
    %c0_116 = arith.constant 0 : index
    %c1_117 = arith.constant 1 : index
    %c192_118 = arith.constant 192 : index
    %100 = vector.load %arg9[%c0_116, %c1_117, %c192_118] : memref<8x8x576xbf16, #tpu.memory_space<vmem>>, vector<8x7x64xbf16>
    tpu.vector_store %arg9[%c0_116, %c1_117, %c192_118], %99 {strides = array<i32>} : memref<8x8x576xbf16, #tpu.memory_space<vmem>>, vector<8x7x64xbf16>,
    %cst_119 = arith.constant 0.000000e+00 : bf16
    %101 = vector.broadcast %cst_119 : bf16 to vector<8x1x64xbf16>
    %c0_120 = arith.constant 0 : index
    %c0_121 = arith.constant 0 : index
    %c192_122 = arith.constant 192 : index
    %102 = vector.load %arg9[%c0_120, %c0_121, %c192_122] : memref<8x8x576xbf16, #tpu.memory_space<vmem>>, vector<8x1x64xbf16>
    tpu.vector_store %arg9[%c0_120, %c0_121, %c192_122], %101 {strides = array<i32>} : memref<8x8x576xbf16, #tpu.memory_space<vmem>>, vector<8x1x64xbf16>,
    %c0_123 = arith.constant 0 : index
    %c0_124 = arith.constant 0 : index
    %c320_125 = arith.constant 320 : index
    %103 = vector.load %arg9[%c0_123, %c0_124, %c320_125] : memref<8x8x576xbf16, #tpu.memory_space<vmem>>, vector<8x8x64xbf16>
    tpu.vector_store %arg9[%c0_123, %c0_124, %c320_125], %98 {strides = array<i32>} : memref<8x8x576xbf16, #tpu.memory_space<vmem>>, vector<8x8x64xbf16>,
    %c2_126 = arith.constant 2 : index
    %c0_127 = arith.constant 0 : index
    %c0_128 = arith.constant 0 : index
    %c0_129 = arith.constant 0 : index
    %104 = vector.load %arg1[%c2_126, %c0_127, %c0_128, %c0_129] : memref<4x9x9x64xbf16, #tpu.memory_space<vmem>>, vector<1x8x8x64xbf16>
    %105 = vector.shape_cast %104 : vector<1x8x8x64xbf16> to vector<8x8x64xbf16>
    %106 = vector.shape_cast %105 : vector<8x8x64xbf16> to vector<64x64xbf16>
    %c0_130 = arith.constant 0 : index
    %c0_131 = arith.constant 0 : index
    %107 = vector.load %arg8[%c0_130, %c0_131] : memref<64x576xbf16, #tpu.memory_space<vmem>>, vector<64x64xbf16>
    tpu.vector_store %arg8[%c0_130, %c0_131], %106 {strides = array<i32>} : memref<64x576xbf16, #tpu.memory_space<vmem>>, vector<64x64xbf16>,
    %c3_132 = arith.constant 3 : index
    %c0_133 = arith.constant 0 : index
    %c0_134 = arith.constant 0 : index
    %c0_135 = arith.constant 0 : index
    %108 = vector.load %arg1[%c3_132, %c0_133, %c0_134, %c0_135] : memref<4x9x9x64xbf16, #tpu.memory_space<vmem>>, vector<1x8x8x64xbf16>
    %109 = vector.shape_cast %108 : vector<1x8x8x64xbf16> to vector<8x8x64xbf16>
    %110 = vector.shape_cast %109 : vector<8x8x64xbf16> to vector<64x64xbf16>
    %c0_136 = arith.constant 0 : index
    %c64_137 = arith.constant 64 : index
    %111 = vector.load %arg8[%c0_136, %c64_137] : memref<64x576xbf16, #tpu.memory_space<vmem>>, vector<64x64xbf16>
    tpu.vector_store %arg8[%c0_136, %c64_137], %110 {strides = array<i32>} : memref<64x576xbf16, #tpu.memory_space<vmem>>, vector<64x64xbf16>,
    %c2_138 = arith.constant 2 : index
    %c0_139 = arith.constant 0 : index
    %c1_140 = arith.constant 1 : index
    %c0_141 = arith.constant 0 : index
    %112 = vector.load %arg1[%c2_138, %c0_139, %c1_140, %c0_141] : memref<4x9x9x64xbf16, #tpu.memory_space<vmem>>, vector<1x8x8x64xbf16>
    %113 = vector.shape_cast %112 : vector<1x8x8x64xbf16> to vector<8x8x64xbf16>
    %114 = vector.shape_cast %113 : vector<8x8x64xbf16> to vector<64x64xbf16>
    %c0_142 = arith.constant 0 : index
    %c128_143 = arith.constant 128 : index
    %115 = vector.load %arg8[%c0_142, %c128_143] : memref<64x576xbf16, #tpu.memory_space<vmem>>, vector<64x64xbf16>
    tpu.vector_store %arg8[%c0_142, %c128_143], %114 {strides = array<i32>} : memref<64x576xbf16, #tpu.memory_space<vmem>>, vector<64x64xbf16>,
    %c0_144 = arith.constant 0 : index
    %c1_145 = arith.constant 1 : index
    %c0_146 = arith.constant 0 : index
    %c0_147 = arith.constant 0 : index
    %116 = vector.load %arg1[%c0_144, %c1_145, %c0_146, %c0_147] : memref<4x9x9x64xbf16, #tpu.memory_space<vmem>>, vector<1x8x8x64xbf16>
    %117 = vector.shape_cast %116 : vector<1x8x8x64xbf16> to vector<8x8x64xbf16>
    %118 = vector.shape_cast %117 : vector<8x8x64xbf16> to vector<64x64xbf16>
    %c0_148 = arith.constant 0 : index
    %c192_149 = arith.constant 192 : index
    %119 = vector.load %arg8[%c0_148, %c192_149] : memref<64x576xbf16, #tpu.memory_space<vmem>>, vector<64x64xbf16>
    tpu.vector_store %arg8[%c0_148, %c192_149], %118 {strides = array<i32>} : memref<64x576xbf16, #tpu.memory_space<vmem>>, vector<64x64xbf16>,
    %c1_150 = arith.constant 1 : index
    %c1_151 = arith.constant 1 : index
    %c0_152 = arith.constant 0 : index
    %c0_153 = arith.constant 0 : index
    %120 = vector.load %arg1[%c1_150, %c1_151, %c0_152, %c0_153] : memref<4x9x9x64xbf16, #tpu.memory_space<vmem>>, vector<1x8x8x64xbf16>
    %121 = vector.shape_cast %120 : vector<1x8x8x64xbf16> to vector<8x8x64xbf16>
    %122 = vector.shape_cast %121 : vector<8x8x64xbf16> to vector<64x64xbf16>
    %c0_154 = arith.constant 0 : index
    %c256_155 = arith.constant 256 : index
    %123 = vector.load %arg8[%c0_154, %c256_155] : memref<64x576xbf16, #tpu.memory_space<vmem>>, vector<64x64xbf16>
    tpu.vector_store %arg8[%c0_154, %c256_155], %122 {strides = array<i32>} : memref<64x576xbf16, #tpu.memory_space<vmem>>, vector<64x64xbf16>,
    %c0_156 = arith.constant 0 : index
    %c1_157 = arith.constant 1 : index
    %c1_158 = arith.constant 1 : index
    %c0_159 = arith.constant 0 : index
    %124 = vector.load %arg1[%c0_156, %c1_157, %c1_158, %c0_159] : memref<4x9x9x64xbf16, #tpu.memory_space<vmem>>, vector<1x8x8x64xbf16>
    %125 = vector.shape_cast %124 : vector<1x8x8x64xbf16> to vector<8x8x64xbf16>
    %126 = vector.shape_cast %125 : vector<8x8x64xbf16> to vector<64x64xbf16>
    %c0_160 = arith.constant 0 : index
    %c320_161 = arith.constant 320 : index
    %127 = vector.load %arg8[%c0_160, %c320_161] : memref<64x576xbf16, #tpu.memory_space<vmem>>, vector<64x64xbf16>
    tpu.vector_store %arg8[%c0_160, %c320_161], %126 {strides = array<i32>} : memref<64x576xbf16, #tpu.memory_space<vmem>>, vector<64x64xbf16>,
    %c2_162 = arith.constant 2 : index
    %c1_163 = arith.constant 1 : index
    %c0_164 = arith.constant 0 : index
    %c0_165 = arith.constant 0 : index
    %128 = vector.load %arg1[%c2_162, %c1_163, %c0_164, %c0_165] : memref<4x9x9x64xbf16, #tpu.memory_space<vmem>>, vector<1x8x8x64xbf16>
    %129 = vector.shape_cast %128 : vector<1x8x8x64xbf16> to vector<8x8x64xbf16>
    %130 = vector.shape_cast %129 : vector<8x8x64xbf16> to vector<64x64xbf16>
    %c0_166 = arith.constant 0 : index
    %c384_167 = arith.constant 384 : index
    %131 = vector.load %arg8[%c0_166, %c384_167] : memref<64x576xbf16, #tpu.memory_space<vmem>>, vector<64x64xbf16>
    tpu.vector_store %arg8[%c0_166, %c384_167], %130 {strides = array<i32>} : memref<64x576xbf16, #tpu.memory_space<vmem>>, vector<64x64xbf16>,
    %c3_168 = arith.constant 3 : index
    %c1_169 = arith.constant 1 : index
    %c0_170 = arith.constant 0 : index
    %c0_171 = arith.constant 0 : index
    %132 = vector.load %arg1[%c3_168, %c1_169, %c0_170, %c0_171] : memref<4x9x9x64xbf16, #tpu.memory_space<vmem>>, vector<1x8x8x64xbf16>
    %133 = vector.shape_cast %132 : vector<1x8x8x64xbf16> to vector<8x8x64xbf16>
    %134 = vector.shape_cast %133 : vector<8x8x64xbf16> to vector<64x64xbf16>
    %c0_172 = arith.constant 0 : index
    %c448_173 = arith.constant 448 : index
    %135 = vector.load %arg8[%c0_172, %c448_173] : memref<64x576xbf16, #tpu.memory_space<vmem>>, vector<64x64xbf16>
    tpu.vector_store %arg8[%c0_172, %c448_173], %134 {strides = array<i32>} : memref<64x576xbf16, #tpu.memory_space<vmem>>, vector<64x64xbf16>,
    %c2_174 = arith.constant 2 : index
    %c1_175 = arith.constant 1 : index
    %c1_176 = arith.constant 1 : index
    %c0_177 = arith.constant 0 : index
    %136 = vector.load %arg1[%c2_174, %c1_175, %c1_176, %c0_177] : memref<4x9x9x64xbf16, #tpu.memory_space<vmem>>, vector<1x8x8x64xbf16>
    %137 = vector.shape_cast %136 : vector<1x8x8x64xbf16> to vector<8x8x64xbf16>
    %138 = vector.shape_cast %137 : vector<8x8x64xbf16> to vector<64x64xbf16>
    %c0_178 = arith.constant 0 : index
    %c512_179 = arith.constant 512 : index
    %139 = vector.load %arg8[%c0_178, %c512_179] : memref<64x576xbf16, #tpu.memory_space<vmem>>, vector<64x64xbf16>
    tpu.vector_store %arg8[%c0_178, %c512_179], %138 {strides = array<i32>} : memref<64x576xbf16, #tpu.memory_space<vmem>>, vector<64x64xbf16>,
    %c0_180 = arith.constant 0 : index
    %c0_181 = arith.constant 0 : index
    %140 = vector.load %arg8[%c0_180, %c0_181] : memref<64x576xbf16, #tpu.memory_space<vmem>>, vector<64x576xbf16>
    %c0_182 = arith.constant 0 : index
    %c0_183 = arith.constant 0 : index
    %141 = vector.load %arg2[%c0_182, %c0_183] : memref<576x64xbf16, #tpu.memory_space<vmem>>, vector<576x64xbf16>
    %cst_184 = arith.constant dense<0.000000e+00> : vector<64x64xf32>
    %142 = tpu.matmul %140, %141, %cst_184 {dimension_numbers = #tpu.dot_dimension_numbers<[1], [0], [0], [1], [0, 0, 1, 1], [], []>} : vector<64x576xbf16>, vector<576x64xbf16>, vector<64x64xf32> -> vector<64x64xf32>
    %143 = vector.broadcast %0 : vector<1x64xf32> to vector<64x64xf32>
    %144 = arith.addf %142, %143 : vector<64x64xf32>
    %cst_185 = arith.constant 0.000000e+00 : f32
    %145 = vector.broadcast %cst_185 : f32 to vector<64x64xf32>
    %146 = arith.cmpf ogt, %144, %145 : vector<64x64xf32>
    %cst_186 = arith.constant 2.000000e-01 : f32
    %147 = vector.broadcast %cst_186 : f32 to vector<64x64xf32>
    %148 = arith.mulf %147, %144 : vector<64x64xf32>
    %149 = arith.select %146, %144, %148 : vector<64x64xi1>, vector<64x64xf32>
    %150 = arith.truncf %149 : vector<64x64xf32> to vector<64x64xbf16>
    %151 = vector.shape_cast %150 : vector<64x64xbf16> to vector<8x8x64xbf16>
    %152 = vector.extract_strided_slice %151 {offsets = [0, 0, 0], sizes = [7, 8, 64], strides = [1, 1, 1]} : vector<8x8x64xbf16> to vector<7x8x64xbf16>
    %c1_187 = arith.constant 1 : index
    %c0_188 = arith.constant 0 : index
    %c64_189 = arith.constant 64 : index
    %153 = vector.load %arg9[%c1_187, %c0_188, %c64_189] : memref<8x8x576xbf16, #tpu.memory_space<vmem>>, vector<7x8x64xbf16>
    tpu.vector_store %arg9[%c1_187, %c0_188, %c64_189], %152 {strides = array<i32>} : memref<8x8x576xbf16, #tpu.memory_space<vmem>>, vector<7x8x64xbf16>,
    %cst_190 = arith.constant 0.000000e+00 : bf16
    %154 = vector.broadcast %cst_190 : bf16 to vector<1x8x64xbf16>
    %c0_191 = arith.constant 0 : index
    %c0_192 = arith.constant 0 : index
    %c64_193 = arith.constant 64 : index
    %155 = vector.load %arg9[%c0_191, %c0_192, %c64_193] : memref<8x8x576xbf16, #tpu.memory_space<vmem>>, vector<1x8x64xbf16>
    tpu.vector_store %arg9[%c0_191, %c0_192, %c64_193], %154 {strides = array<i32>} : memref<8x8x576xbf16, #tpu.memory_space<vmem>>, vector<1x8x64xbf16>,
    %c0_194 = arith.constant 0 : index
    %c0_195 = arith.constant 0 : index
    %c448_196 = arith.constant 448 : index
    %156 = vector.load %arg9[%c0_194, %c0_195, %c448_196] : memref<8x8x576xbf16, #tpu.memory_space<vmem>>, vector<8x8x64xbf16>
    tpu.vector_store %arg9[%c0_194, %c0_195, %c448_196], %151 {strides = array<i32>} : memref<8x8x576xbf16, #tpu.memory_space<vmem>>, vector<8x8x64xbf16>,
    %c3_197 = arith.constant 3 : index
    %c0_198 = arith.constant 0 : index
    %c0_199 = arith.constant 0 : index
    %c0_200 = arith.constant 0 : index
    %157 = vector.load %arg1[%c3_197, %c0_198, %c0_199, %c0_200] : memref<4x9x9x64xbf16, #tpu.memory_space<vmem>>, vector<1x8x8x64xbf16>
    %158 = vector.shape_cast %157 : vector<1x8x8x64xbf16> to vector<8x8x64xbf16>
    %159 = vector.shape_cast %158 : vector<8x8x64xbf16> to vector<64x64xbf16>
    %c0_201 = arith.constant 0 : index
    %c0_202 = arith.constant 0 : index
    %160 = vector.load %arg8[%c0_201, %c0_202] : memref<64x576xbf16, #tpu.memory_space<vmem>>, vector<64x64xbf16>
    tpu.vector_store %arg8[%c0_201, %c0_202], %159 {strides = array<i32>} : memref<64x576xbf16, #tpu.memory_space<vmem>>, vector<64x64xbf16>,
    %c2_203 = arith.constant 2 : index
    %c0_204 = arith.constant 0 : index
    %c1_205 = arith.constant 1 : index
    %c0_206 = arith.constant 0 : index
    %161 = vector.load %arg1[%c2_203, %c0_204, %c1_205, %c0_206] : memref<4x9x9x64xbf16, #tpu.memory_space<vmem>>, vector<1x8x8x64xbf16>
    %162 = vector.shape_cast %161 : vector<1x8x8x64xbf16> to vector<8x8x64xbf16>
    %163 = vector.shape_cast %162 : vector<8x8x64xbf16> to vector<64x64xbf16>
    %c0_207 = arith.constant 0 : index
    %c64_208 = arith.constant 64 : index
    %164 = vector.load %arg8[%c0_207, %c64_208] : memref<64x576xbf16, #tpu.memory_space<vmem>>, vector<64x64xbf16>
    tpu.vector_store %arg8[%c0_207, %c64_208], %163 {strides = array<i32>} : memref<64x576xbf16, #tpu.memory_space<vmem>>, vector<64x64xbf16>,
    %c3_209 = arith.constant 3 : index
    %c0_210 = arith.constant 0 : index
    %c1_211 = arith.constant 1 : index
    %c0_212 = arith.constant 0 : index
    %165 = vector.load %arg1[%c3_209, %c0_210, %c1_211, %c0_212] : memref<4x9x9x64xbf16, #tpu.memory_space<vmem>>, vector<1x8x8x64xbf16>
    %166 = vector.shape_cast %165 : vector<1x8x8x64xbf16> to vector<8x8x64xbf16>
    %167 = vector.shape_cast %166 : vector<8x8x64xbf16> to vector<64x64xbf16>
    %c0_213 = arith.constant 0 : index
    %c128_214 = arith.constant 128 : index
    %168 = vector.load %arg8[%c0_213, %c128_214] : memref<64x576xbf16, #tpu.memory_space<vmem>>, vector<64x64xbf16>
    tpu.vector_store %arg8[%c0_213, %c128_214], %167 {strides = array<i32>} : memref<64x576xbf16, #tpu.memory_space<vmem>>, vector<64x64xbf16>,
    %c1_215 = arith.constant 1 : index
    %c1_216 = arith.constant 1 : index
    %c0_217 = arith.constant 0 : index
    %c0_218 = arith.constant 0 : index
    %169 = vector.load %arg1[%c1_215, %c1_216, %c0_217, %c0_218] : memref<4x9x9x64xbf16, #tpu.memory_space<vmem>>, vector<1x8x8x64xbf16>
    %170 = vector.shape_cast %169 : vector<1x8x8x64xbf16> to vector<8x8x64xbf16>
    %171 = vector.shape_cast %170 : vector<8x8x64xbf16> to vector<64x64xbf16>
    %c0_219 = arith.constant 0 : index
    %c192_220 = arith.constant 192 : index
    %172 = vector.load %arg8[%c0_219, %c192_220] : memref<64x576xbf16, #tpu.memory_space<vmem>>, vector<64x64xbf16>
    tpu.vector_store %arg8[%c0_219, %c192_220], %171 {strides = array<i32>} : memref<64x576xbf16, #tpu.memory_space<vmem>>, vector<64x64xbf16>,
    %c0_221 = arith.constant 0 : index
    %c1_222 = arith.constant 1 : index
    %c1_223 = arith.constant 1 : index
    %c0_224 = arith.constant 0 : index
    %173 = vector.load %arg1[%c0_221, %c1_222, %c1_223, %c0_224] : memref<4x9x9x64xbf16, #tpu.memory_space<vmem>>, vector<1x8x8x64xbf16>
    %174 = vector.shape_cast %173 : vector<1x8x8x64xbf16> to vector<8x8x64xbf16>
    %175 = vector.shape_cast %174 : vector<8x8x64xbf16> to vector<64x64xbf16>
    %c0_225 = arith.constant 0 : index
    %c256_226 = arith.constant 256 : index
    %176 = vector.load %arg8[%c0_225, %c256_226] : memref<64x576xbf16, #tpu.memory_space<vmem>>, vector<64x64xbf16>
    tpu.vector_store %arg8[%c0_225, %c256_226], %175 {strides = array<i32>} : memref<64x576xbf16, #tpu.memory_space<vmem>>, vector<64x64xbf16>,
    %c1_227 = arith.constant 1 : index
    %c1_228 = arith.constant 1 : index
    %c1_229 = arith.constant 1 : index
    %c0_230 = arith.constant 0 : index
    %177 = vector.load %arg1[%c1_227, %c1_228, %c1_229, %c0_230] : memref<4x9x9x64xbf16, #tpu.memory_space<vmem>>, vector<1x8x8x64xbf16>
    %178 = vector.shape_cast %177 : vector<1x8x8x64xbf16> to vector<8x8x64xbf16>
    %179 = vector.shape_cast %178 : vector<8x8x64xbf16> to vector<64x64xbf16>
    %c0_231 = arith.constant 0 : index
    %c320_232 = arith.constant 320 : index
    %180 = vector.load %arg8[%c0_231, %c320_232] : memref<64x576xbf16, #tpu.memory_space<vmem>>, vector<64x64xbf16>
    tpu.vector_store %arg8[%c0_231, %c320_232], %179 {strides = array<i32>} : memref<64x576xbf16, #tpu.memory_space<vmem>>, vector<64x64xbf16>,
    %c3_233 = arith.constant 3 : index
    %c1_234 = arith.constant 1 : index
    %c0_235 = arith.constant 0 : index
    %c0_236 = arith.constant 0 : index
    %181 = vector.load %arg1[%c3_233, %c1_234, %c0_235, %c0_236] : memref<4x9x9x64xbf16, #tpu.memory_space<vmem>>, vector<1x8x8x64xbf16>
    %182 = vector.shape_cast %181 : vector<1x8x8x64xbf16> to vector<8x8x64xbf16>
    %183 = vector.shape_cast %182 : vector<8x8x64xbf16> to vector<64x64xbf16>
    %c0_237 = arith.constant 0 : index
    %c384_238 = arith.constant 384 : index
    %184 = vector.load %arg8[%c0_237, %c384_238] : memref<64x576xbf16, #tpu.memory_space<vmem>>, vector<64x64xbf16>
    tpu.vector_store %arg8[%c0_237, %c384_238], %183 {strides = array<i32>} : memref<64x576xbf16, #tpu.memory_space<vmem>>, vector<64x64xbf16>,
    %c2_239 = arith.constant 2 : index
    %c1_240 = arith.constant 1 : index
    %c1_241 = arith.constant 1 : index
    %c0_242 = arith.constant 0 : index
    %185 = vector.load %arg1[%c2_239, %c1_240, %c1_241, %c0_242] : memref<4x9x9x64xbf16, #tpu.memory_space<vmem>>, vector<1x8x8x64xbf16>
    %186 = vector.shape_cast %185 : vector<1x8x8x64xbf16> to vector<8x8x64xbf16>
    %187 = vector.shape_cast %186 : vector<8x8x64xbf16> to vector<64x64xbf16>
    %c0_243 = arith.constant 0 : index
    %c448_244 = arith.constant 448 : index
    %188 = vector.load %arg8[%c0_243, %c448_244] : memref<64x576xbf16, #tpu.memory_space<vmem>>, vector<64x64xbf16>
    tpu.vector_store %arg8[%c0_243, %c448_244], %187 {strides = array<i32>} : memref<64x576xbf16, #tpu.memory_space<vmem>>, vector<64x64xbf16>,
    %c3_245 = arith.constant 3 : index
    %c1_246 = arith.constant 1 : index
    %c1_247 = arith.constant 1 : index
    %c0_248 = arith.constant 0 : index
    %189 = vector.load %arg1[%c3_245, %c1_246, %c1_247, %c0_248] : memref<4x9x9x64xbf16, #tpu.memory_space<vmem>>, vector<1x8x8x64xbf16>
    %190 = vector.shape_cast %189 : vector<1x8x8x64xbf16> to vector<8x8x64xbf16>
    %191 = vector.shape_cast %190 : vector<8x8x64xbf16> to vector<64x64xbf16>
    %c0_249 = arith.constant 0 : index
    %c512_250 = arith.constant 512 : index
    %192 = vector.load %arg8[%c0_249, %c512_250] : memref<64x576xbf16, #tpu.memory_space<vmem>>, vector<64x64xbf16>
    tpu.vector_store %arg8[%c0_249, %c512_250], %191 {strides = array<i32>} : memref<64x576xbf16, #tpu.memory_space<vmem>>, vector<64x64xbf16>,
    %c0_251 = arith.constant 0 : index
    %c0_252 = arith.constant 0 : index
    %193 = vector.load %arg8[%c0_251, %c0_252] : memref<64x576xbf16, #tpu.memory_space<vmem>>, vector<64x576xbf16>
    %c0_253 = arith.constant 0 : index
    %c0_254 = arith.constant 0 : index
    %194 = vector.load %arg2[%c0_253, %c0_254] : memref<576x64xbf16, #tpu.memory_space<vmem>>, vector<576x64xbf16>
    %cst_255 = arith.constant dense<0.000000e+00> : vector<64x64xf32>
    %195 = tpu.matmul %193, %194, %cst_255 {dimension_numbers = #tpu.dot_dimension_numbers<[1], [0], [0], [1], [0, 0, 1, 1], [], []>} : vector<64x576xbf16>, vector<576x64xbf16>, vector<64x64xf32> -> vector<64x64xf32>
    %196 = vector.broadcast %0 : vector<1x64xf32> to vector<64x64xf32>
    %197 = arith.addf %195, %196 : vector<64x64xf32>
    %cst_256 = arith.constant 0.000000e+00 : f32
    %198 = vector.broadcast %cst_256 : f32 to vector<64x64xf32>
    %199 = arith.cmpf ogt, %197, %198 : vector<64x64xf32>
    %cst_257 = arith.constant 2.000000e-01 : f32
    %200 = vector.broadcast %cst_257 : f32 to vector<64x64xf32>
    %201 = arith.mulf %200, %197 : vector<64x64xf32>
    %202 = arith.select %199, %197, %201 : vector<64x64xi1>, vector<64x64xf32>
    %203 = arith.truncf %202 : vector<64x64xf32> to vector<64x64xbf16>
    %204 = vector.shape_cast %203 : vector<64x64xbf16> to vector<8x8x64xbf16>
    %205 = vector.extract_strided_slice %204 {offsets = [0, 0, 0], sizes = [7, 7, 64], strides = [1, 1, 1]} : vector<8x8x64xbf16> to vector<7x7x64xbf16>
    %c1_258 = arith.constant 1 : index
    %c1_259 = arith.constant 1 : index
    %c0_260 = arith.constant 0 : index
    %206 = vector.load %arg9[%c1_258, %c1_259, %c0_260] : memref<8x8x576xbf16, #tpu.memory_space<vmem>>, vector<7x7x64xbf16>
    tpu.vector_store %arg9[%c1_258, %c1_259, %c0_260], %205 {strides = array<i32>} : memref<8x8x576xbf16, #tpu.memory_space<vmem>>, vector<7x7x64xbf16>,
    %cst_261 = arith.constant 0.000000e+00 : bf16
    %207 = vector.broadcast %cst_261 : bf16 to vector<1x8x64xbf16>
    %c0_262 = arith.constant 0 : index
    %c0_263 = arith.constant 0 : index
    %c0_264 = arith.constant 0 : index
    %208 = vector.load %arg9[%c0_262, %c0_263, %c0_264] : memref<8x8x576xbf16, #tpu.memory_space<vmem>>, vector<1x8x64xbf16>
    tpu.vector_store %arg9[%c0_262, %c0_263, %c0_264], %207 {strides = array<i32>} : memref<8x8x576xbf16, #tpu.memory_space<vmem>>, vector<1x8x64xbf16>,
    %cst_265 = arith.constant 0.000000e+00 : bf16
    %209 = vector.broadcast %cst_265 : bf16 to vector<7x1x64xbf16>
    %c1_266 = arith.constant 1 : index
    %c0_267 = arith.constant 0 : index
    %c0_268 = arith.constant 0 : index
    %210 = vector.load %arg9[%c1_266, %c0_267, %c0_268] : memref<8x8x576xbf16, #tpu.memory_space<vmem>>, vector<7x1x64xbf16>
    tpu.vector_store %arg9[%c1_266, %c0_267, %c0_268], %209 {strides = array<i32>} : memref<8x8x576xbf16, #tpu.memory_space<vmem>>, vector<7x1x64xbf16>,
    %211 = vector.extract_strided_slice %204 {offsets = [0, 0, 0], sizes = [7, 8, 64], strides = [1, 1, 1]} : vector<8x8x64xbf16> to vector<7x8x64xbf16>
    %c1_269 = arith.constant 1 : index
    %c0_270 = arith.constant 0 : index
    %c128_271 = arith.constant 128 : index
    %212 = vector.load %arg9[%c1_269, %c0_270, %c128_271] : memref<8x8x576xbf16, #tpu.memory_space<vmem>>, vector<7x8x64xbf16>
    tpu.vector_store %arg9[%c1_269, %c0_270, %c128_271], %211 {strides = array<i32>} : memref<8x8x576xbf16, #tpu.memory_space<vmem>>, vector<7x8x64xbf16>,
    %cst_272 = arith.constant 0.000000e+00 : bf16
    %213 = vector.broadcast %cst_272 : bf16 to vector<1x8x64xbf16>
    %c0_273 = arith.constant 0 : index
    %c0_274 = arith.constant 0 : index
    %c128_275 = arith.constant 128 : index
    %214 = vector.load %arg9[%c0_273, %c0_274, %c128_275] : memref<8x8x576xbf16, #tpu.memory_space<vmem>>, vector<1x8x64xbf16>
    tpu.vector_store %arg9[%c0_273, %c0_274, %c128_275], %213 {strides = array<i32>} : memref<8x8x576xbf16, #tpu.memory_space<vmem>>, vector<1x8x64xbf16>,
    %215 = vector.extract_strided_slice %204 {offsets = [0, 0, 0], sizes = [8, 7, 64], strides = [1, 1, 1]} : vector<8x8x64xbf16> to vector<8x7x64xbf16>
    %c0_276 = arith.constant 0 : index
    %c1_277 = arith.constant 1 : index
    %c384_278 = arith.constant 384 : index
    %216 = vector.load %arg9[%c0_276, %c1_277, %c384_278] : memref<8x8x576xbf16, #tpu.memory_space<vmem>>, vector<8x7x64xbf16>
    tpu.vector_store %arg9[%c0_276, %c1_277, %c384_278], %215 {strides = array<i32>} : memref<8x8x576xbf16, #tpu.memory_space<vmem>>, vector<8x7x64xbf16>,
    %cst_279 = arith.constant 0.000000e+00 : bf16
    %217 = vector.broadcast %cst_279 : bf16 to vector<8x1x64xbf16>
    %c0_280 = arith.constant 0 : index
    %c0_281 = arith.constant 0 : index
    %c384_282 = arith.constant 384 : index
    %218 = vector.load %arg9[%c0_280, %c0_281, %c384_282] : memref<8x8x576xbf16, #tpu.memory_space<vmem>>, vector<8x1x64xbf16>
    tpu.vector_store %arg9[%c0_280, %c0_281, %c384_282], %217 {strides = array<i32>} : memref<8x8x576xbf16, #tpu.memory_space<vmem>>, vector<8x1x64xbf16>,
    %c0_283 = arith.constant 0 : index
    %c0_284 = arith.constant 0 : index
    %c512_285 = arith.constant 512 : index
    %219 = vector.load %arg9[%c0_283, %c0_284, %c512_285] : memref<8x8x576xbf16, #tpu.memory_space<vmem>>, vector<8x8x64xbf16>
    tpu.vector_store %arg9[%c0_283, %c0_284, %c512_285], %204 {strides = array<i32>} : memref<8x8x576xbf16, #tpu.memory_space<vmem>>, vector<8x8x64xbf16>,
    %c0_286 = arith.constant 0 : index
    %c0_287 = arith.constant 0 : index
    %c0_288 = arith.constant 0 : index
    %220 = vector.load %arg9[%c0_286, %c0_287, %c0_288] : memref<8x8x576xbf16, #tpu.memory_space<vmem>>, vector<8x8x576xbf16>
    %221 = vector.shape_cast %220 : vector<8x8x576xbf16> to vector<64x576xbf16>
    %c0_289 = arith.constant 0 : index
    %c0_290 = arith.constant 0 : index
    %222 = vector.load %arg4[%c0_289, %c0_290] : memref<576x128xbf16, #tpu.memory_space<vmem>>, vector<576x128xbf16>
    %cst_291 = arith.constant dense<0.000000e+00> : vector<64x128xf32>
    %223 = tpu.matmul %221, %222, %cst_291 {dimension_numbers = #tpu.dot_dimension_numbers<[1], [0], [0], [1], [0, 0, 1, 1], [], []>} : vector<64x576xbf16>, vector<576x128xbf16>, vector<64x128xf32> -> vector<64x128xf32>
    %224 = vector.broadcast %1 : vector<1x128xf32> to vector<64x128xf32>
    %225 = arith.addf %223, %224 : vector<64x128xf32>
    %226 = vector.shape_cast %225 : vector<64x128xf32> to vector<8x8x128xf32>
    %c3_292 = arith.constant 3 : index
    %c0_293 = arith.constant 0 : index
    %c0_294 = arith.constant 0 : index
    %c0_295 = arith.constant 0 : index
    %227 = vector.load %arg1[%c3_292, %c0_293, %c0_294, %c0_295] : memref<4x9x9x64xbf16, #tpu.memory_space<vmem>>, vector<1x8x8x64xbf16>
    %228 = vector.shape_cast %227 : vector<1x8x8x64xbf16> to vector<8x8x64xbf16>
    %229 = vector.shape_cast %228 : vector<8x8x64xbf16> to vector<64x64xbf16>
    %c0_296 = arith.constant 0 : index
    %c0_297 = arith.constant 0 : index
    %230 = vector.load %arg6[%c0_296, %c0_297] : memref<64x128xbf16, #tpu.memory_space<vmem>>, vector<64x128xbf16>
    %cst_298 = arith.constant dense<0.000000e+00> : vector<64x128xf32>
    %231 = tpu.matmul %229, %230, %cst_298 {dimension_numbers = #tpu.dot_dimension_numbers<[1], [0], [0], [1], [0, 0, 1, 1], [], []>} : vector<64x64xbf16>, vector<64x128xbf16>, vector<64x128xf32> -> vector<64x128xf32>
    %232 = vector.shape_cast %231 : vector<64x128xf32> to vector<8x8x128xf32>
    %c1_299 = arith.constant 1 : index
    %c1_300 = arith.constant 1 : index
    %c0_301 = arith.constant 0 : index
    %233 = vector.load %arg10[%c1_299, %c1_300, %c0_301] : memref<10x10x128xf32, #tpu.memory_space<vmem>>, vector<8x8x128xf32>
    tpu.vector_store %arg10[%c1_299, %c1_300, %c0_301], %226 {strides = array<i32>} : memref<10x10x128xf32, #tpu.memory_space<vmem>>, vector<8x8x128xf32>,
    %234 = vector.extract_strided_slice %226 {offsets = [1, 0, 0], sizes = [1, 8, 128], strides = [1, 1, 1]} : vector<8x8x128xf32> to vector<1x8x128xf32>
    %c0_302 = arith.constant 0 : index
    %c1_303 = arith.constant 1 : index
    %c0_304 = arith.constant 0 : index
    %235 = vector.load %arg10[%c0_302, %c1_303, %c0_304] : memref<10x10x128xf32, #tpu.memory_space<vmem>>, vector<1x8x128xf32>
    tpu.vector_store %arg10[%c0_302, %c1_303, %c0_304], %234 {strides = array<i32>} : memref<10x10x128xf32, #tpu.memory_space<vmem>>, vector<1x8x128xf32>,
    %236 = vector.extract_strided_slice %226 {offsets = [6, 0, 0], sizes = [1, 8, 128], strides = [1, 1, 1]} : vector<8x8x128xf32> to vector<1x8x128xf32>
    %c9 = arith.constant 9 : index
    %c1_305 = arith.constant 1 : index
    %c0_306 = arith.constant 0 : index
    %237 = vector.load %arg10[%c9, %c1_305, %c0_306] : memref<10x10x128xf32, #tpu.memory_space<vmem>>, vector<1x8x128xf32>
    tpu.vector_store %arg10[%c9, %c1_305, %c0_306], %236 {strides = array<i32>} : memref<10x10x128xf32, #tpu.memory_space<vmem>>, vector<1x8x128xf32>,
    %c0_307 = arith.constant 0 : index
    %c2_308 = arith.constant 2 : index
    %c0_309 = arith.constant 0 : index
    %238 = vector.load %arg10[%c0_307, %c2_308, %c0_309] : memref<10x10x128xf32, #tpu.memory_space<vmem>>, vector<10x1x128xf32>
    %c0_310 = arith.constant 0 : index
    %c0_311 = arith.constant 0 : index
    %c0_312 = arith.constant 0 : index
    %239 = vector.load %arg10[%c0_310, %c0_311, %c0_312] : memref<10x10x128xf32, #tpu.memory_space<vmem>>, vector<10x1x128xf32>
    tpu.vector_store %arg10[%c0_310, %c0_311, %c0_312], %238 {strides = array<i32>} : memref<10x10x128xf32, #tpu.memory_space<vmem>>, vector<10x1x128xf32>,
    %c0_313 = arith.constant 0 : index
    %c7 = arith.constant 7 : index
    %c0_314 = arith.constant 0 : index
    %240 = vector.load %arg10[%c0_313, %c7, %c0_314] : memref<10x10x128xf32, #tpu.memory_space<vmem>>, vector<10x1x128xf32>
    %c0_315 = arith.constant 0 : index
    %c9_316 = arith.constant 9 : index
    %c0_317 = arith.constant 0 : index
    %241 = vector.load %arg10[%c0_315, %c9_316, %c0_317] : memref<10x10x128xf32, #tpu.memory_space<vmem>>, vector<10x1x128xf32>
    tpu.vector_store %arg10[%c0_315, %c9_316, %c0_317], %240 {strides = array<i32>} : memref<10x10x128xf32, #tpu.memory_space<vmem>>, vector<10x1x128xf32>,
    %c0_318 = arith.constant 0 : index
    %c0_319 = arith.constant 0 : index
    %c0_320 = arith.constant 0 : index
    %242 = vector.load %arg10[%c0_318, %c0_319, %c0_320] : memref<10x10x128xf32, #tpu.memory_space<vmem>>, vector<10x10x128xf32>
    %243 = vector.extract_strided_slice %242 {offsets = [0, 0, 0], sizes = [10, 8, 128], strides = [1, 1, 1]} : vector<10x10x128xf32> to vector<10x8x128xf32>
    %cst_321 = arith.constant 0.274068624 : f32
    %244 = vector.broadcast %cst_321 : f32 to vector<10x8x128xf32>
    %245 = arith.mulf %244, %243 : vector<10x8x128xf32>
    %246 = vector.extract_strided_slice %242 {offsets = [0, 1, 0], sizes = [10, 8, 128], strides = [1, 1, 1]} : vector<10x10x128xf32> to vector<10x8x128xf32>
    %cst_322 = arith.constant 0.451862752 : f32
    %247 = vector.broadcast %cst_322 : f32 to vector<10x8x128xf32>
    %248 = arith.mulf %247, %246 : vector<10x8x128xf32>
    %249 = arith.addf %245, %248 : vector<10x8x128xf32>
    %250 = vector.extract_strided_slice %242 {offsets = [0, 2, 0], sizes = [10, 8, 128], strides = [1, 1, 1]} : vector<10x10x128xf32> to vector<10x8x128xf32>
    %cst_323 = arith.constant 0.274068624 : f32
    %251 = vector.broadcast %cst_323 : f32 to vector<10x8x128xf32>
    %252 = arith.mulf %251, %250 : vector<10x8x128xf32>
    %253 = arith.addf %249, %252 : vector<10x8x128xf32>
    %254 = vector.extract_strided_slice %253 {offsets = [0, 0, 0], sizes = [8, 8, 128], strides = [1, 1, 1]} : vector<10x8x128xf32> to vector<8x8x128xf32>
    %cst_324 = arith.constant 0.193795785 : f32
    %255 = vector.broadcast %cst_324 : f32 to vector<8x8x128xf32>
    %256 = arith.mulf %255, %254 : vector<8x8x128xf32>
    %257 = vector.extract_strided_slice %253 {offsets = [1, 0, 0], sizes = [8, 8, 128], strides = [1, 1, 1]} : vector<10x8x128xf32> to vector<8x8x128xf32>
    %cst_325 = arith.constant 0.319515228 : f32
    %258 = vector.broadcast %cst_325 : f32 to vector<8x8x128xf32>
    %259 = arith.mulf %258, %257 : vector<8x8x128xf32>
    %260 = arith.addf %256, %259 : vector<8x8x128xf32>
    %261 = vector.extract_strided_slice %253 {offsets = [2, 0, 0], sizes = [8, 8, 128], strides = [1, 1, 1]} : vector<10x8x128xf32> to vector<8x8x128xf32>
    %cst_326 = arith.constant 0.193795785 : f32
    %262 = vector.broadcast %cst_326 : f32 to vector<8x8x128xf32>
    %263 = arith.mulf %262, %261 : vector<8x8x128xf32>
    %264 = arith.addf %260, %263 : vector<8x8x128xf32>
    %cst_327 = arith.constant 0.000000e+00 : f32
    %265 = vector.broadcast %cst_327 : f32 to vector<8x8x128xf32>
    %266 = arith.cmpf ogt, %264, %265 : vector<8x8x128xf32>
    %cst_328 = arith.constant 2.000000e-01 : f32
    %267 = vector.broadcast %cst_328 : f32 to vector<8x8x128xf32>
    %268 = arith.mulf %267, %264 : vector<8x8x128xf32>
    %269 = arith.select %266, %264, %268 : vector<8x8x128xi1>, vector<8x8x128xf32>
    %270 = arith.addf %269, %232 : vector<8x8x128xf32>
    %271 = arith.truncf %270 : vector<8x8x128xf32> to vector<8x8x128xbf16>
    %c0_329 = arith.constant 0 : index
    %c0_330 = arith.constant 0 : index
    %c0_331 = arith.constant 0 : index
    %c0_332 = arith.constant 0 : index
    %272 = vector.load %arg7[%c0_329, %c0_330, %c0_331, %c0_332] : memref<1x8x8x128xbf16, #tpu.memory_space<vmem>>, vector<1x8x8x128xbf16>
    %273 = vector.shape_cast %272 : vector<1x8x8x128xbf16> to vector<8x8x128xbf16>
    %274 = vector.shape_cast %271 : vector<8x8x128xbf16> to vector<1x8x8x128xbf16>
    tpu.vector_store %arg7[%c0_329, %c0_330, %c0_331, %c0_332], %274 {strides = array<i32>} : memref<1x8x8x128xbf16, #tpu.memory_space<vmem>>, vector<1x8x8x128xbf16>,
    return
  }
  func.func @transform_0(%arg0: i32) -> (i32, i32, i32, i32) {
    %c0_i32 = arith.constant 0 : i32
    %c0_i32_0 = arith.constant 0 : i32
    %c0_i32_1 = arith.constant 0 : i32
    %c0_i32_2 = arith.constant 0 : i32
    return %arg0, %c0_i32, %c0_i32_0, %c0_i32_1 : i32, i32, i32, i32
  }
  func.func @transform_1(%arg0: i32) -> (i32, i32) {
    %c0_i32 = arith.constant 0 : i32
    %c0_i32_0 = arith.constant 0 : i32
    %c0_i32_1 = arith.constant 0 : i32
    return %c0_i32, %c0_i32_0 : i32, i32
  }
  func.func @transform_2(%arg0: i32) -> (i32, i32) {
    %c0_i32 = arith.constant 0 : i32
    %c0_i32_0 = arith.constant 0 : i32
    %c0_i32_1 = arith.constant 0 : i32
    return %c0_i32, %c0_i32_0 : i32, i32
  }
  func.func @transform_3(%arg0: i32) -> (i32, i32) {
    %c0_i32 = arith.constant 0 : i32
    %c0_i32_0 = arith.constant 0 : i32
    %c0_i32_1 = arith.constant 0 : i32
    return %c0_i32, %c0_i32_0 : i32, i32
  }
  func.func @transform_4(%arg0: i32) -> (i32, i32) {
    %c0_i32 = arith.constant 0 : i32
    %c0_i32_0 = arith.constant 0 : i32
    %c0_i32_1 = arith.constant 0 : i32
    return %c0_i32, %c0_i32_0 : i32, i32
  }
  func.func @transform_5(%arg0: i32) -> (i32, i32) {
    %c0_i32 = arith.constant 0 : i32
    %c0_i32_0 = arith.constant 0 : i32
    %c0_i32_1 = arith.constant 0 : i32
    return %c0_i32, %c0_i32_0 : i32, i32
  }
  func.func @transform_6(%arg0: i32) -> (i32, i32, i32, i32) {
    %c0_i32 = arith.constant 0 : i32
    %c0_i32_0 = arith.constant 0 : i32
    %c0_i32_1 = arith.constant 0 : i32
    %c0_i32_2 = arith.constant 0 : i32
    return %arg0, %c0_i32, %c0_i32_0, %c0_i32_1 : i32, i32, i32, i32
  }
}

</mosaic_0001>

<bundles_post_ra>
// kernel: _lambda_.1
= control target key start
LH: loop header
LB: loop body
LE: loop exit
PB: predicated region body
PF: predicated region fallthrough
CT: control target
= control target key end

     0   :  { %11 = vsyncpa [#allocation6], 0  ;;  %s12378_s0 = inlined_call_operand.vmem [shape: bf16[8,9,9,64], index: 0, kind: input, shape index: {}]   ;;  %s12379_s1 = inlined_call_operand.vmem [shape: bf16[576,64], index: 1, kind: input, shape index: {}]   ;;  %s12380_s2 = inlined_call_operand.vmem [shape: f32[1,64], index: 2, kind: input, shape index: {}]   ;;  %s12381_s3 = inlined_call_operand.vmem [shape: bf16[576,128], index: 3, kind: input, shape index: {}]   ;;  %s12382_s4 = inlined_call_operand.vmem [shape: f32[1,128], index: 4, kind: input, shape index: {}]   ;;  %s12383_s5 = inlined_call_operand.vmem [shape: bf16[64,128], index: 5, kind: input, shape index: {}]   ;;  %s12384_s6 = inlined_call_operand.hbm [shape: bf16[2,8,8,128], index: 6, kind: output, shape index: {}]  }
   0x1   :  { %13 = vsyncpa [#allocation6 + $0x1], 0  ;;  %s9501_s21 = smov 0   ;;  %s9503_s22 = smov 0  }
   0x2   :  { %s9505_s23 = smov 0   ;;  %s9507_s24 = smov 0  }
   0x3 LB: > { %s9522_s25 = sadd.s32 4294967295, %s9461_s24   ;;  %s7435_s26 = sadd.s32 4294967294, %s9461_s24   ;;  %s9461_s24 = sphi %s9507_s24, %s12410_s24   ;;  %s9457_s23 = sphi %s9505_s23, %s12409_s23   ;;  %s9453_s22 = sphi %s9503_s22, %s12408_s22   ;;  %s9449_s21 = sphi %s9501_s21, %s12407_s21  }
   0x4   : > { %s9526_s27 = sadd.s32 1, %s9461_s24   ;;  %s157_s28 = sadd.s32 1, %s9457_s23 }
   0x5   : > { %s154_s29 = ssub.s32 %s9461_s24, %s9526_s27  ;;  %p167_p0 = scmp.ne.s32.totalorder %s9457_s23, %s9453_s22 }
   0x6   : > { %p155_p1 = scmp.eq.s32.totalorder %s154_s29, 0  ;;  %p168_p2 = scmp.eq.s32.totalorder %s9522_s25, 1 }
   0x7   : > { %p173_p3 = scmp.ne.s32.totalorder %s9453_s22, %s9449_s21  ;;  %p174_p4 = scmp.eq.s32.totalorder %s7435_s26, 1 }
   0x8   : > { %s9537_s30 = scalar_select %p155_p1, %s9457_s23, %s157_s28  }
   0x9   : > { %p9539_p5 = por %p168_p2, %p167_p0  ;;  %p9543_p6 = por %p174_p4, %p173_p3 }
   0xa   : > { %p7438_p7 = scmp.ge.s32.totalorder %s9461_s24, 1  ;;  %p217_p8 = scmp.lt.s32.totalorder %s9461_s24, 3 }
   0xc   : > { %p218_p9 = pnand %p7438_p7, %p217_p8 }
   0xe   : > { %221 = sbr.rel (%p218_p9) target bundleno = 1066 (0x42a), region = 44 }
  0x13   : > { %s7440_s9 = sshll.u32 %s9522_s25, 2  ;;  %s9463_s14 = smov 64   ;;  %vm341_vm0 = vsmask.f32 3328  ;;  %vm342_vm1 = vsmask.f32 7440 }
  0x14   : > { %p249_p10 = scmp.lt.s32.totalorder %s7440_s9, 7  ;;  %vm9582_vm2 = vmor %vm341_vm0, %vm342_vm1  ;;  %vm266_vm3 = vcmask 519168   ;;  %vm316_vm4 = vcmask 1043968   ;;  %vm1323_vm5 = vcmask 523264   ;;  %s9311_s18 = sshll.u32 %s9522_s25, 5 }
  0x15   : > { %s7369_s26 = scalar_lea.hbm %s12384_s6, %s9311_s18  ;;  %s9419_s15 = scalar_lea.hbm %s12384_s6, 64 }
  0x16   : > { %s12412_s9 = smov (!%p249_p10, %s7440_s9), 7  ;;  %s7372_s29 = sshll.u32 %s7369_s26, 4  ;;  %s7373_s29 = int_to_ptr.hbm [resolvable:$true] %s7372_s29 }
  0x17   : > { %s9351_s10 = smul.u32 72, %s12412_s9  ;;  %s9413_s9 = sshra.s32 %s7373_s29, 4  ;;  %s9414_s9 = int_to_ptr.hbm [resolvable:$true] %s9413_s9 }
  0x18   : > { %p9420_p0 = scmp.lt.s32.totalorder %s9414_s9, %s12384_s6 }
  0x19   : > { %s9553_s13 = scalar_lea.vmem %s12378_s0, %s9351_s10  ;;  %s9415_s10 = scalar_lea.hbm %s9414_s9, 32 }
  0x1a   : > { %v7454_v0 = vld [vmem:[%s9553_s13 + $0xb0] sm:$0xf]  ;;  %v7446_v1 = vld [vmem:[%s9553_s13 + $0x68] sm:$0xf]  ;;  %v7448_v2 = vld [vmem:[%s9553_s13 + $0x78] sm:$0xf]  ;;  %p9416_p11 = scmp.ne.s32.totalorder %s9414_s9, %s9415_s10  ;;  %p9421_p1 = scmp.lt.s32.totalorder %s9419_s15, %s9415_s10 }
  0x1b   : > { %497 = vrot.lane.b32.xlu1 %v7454_v0, %s9463_s14  ;;  %300 = vrot.lane.b32.xlu0 %v7446_v1, %s9463_s14  ;;  %v7468_v3 = vld [vmem:[%s9553_s13 + $0x98] sm:$0xf]  ;;  %v7447_v5 = vld [vmem:[%s9553_s13 + $0x70] sm:$0xf] }
  0x1c   : > { %304 = vrot.lane.b32.xlu2 %v7448_v2, %s9463_s14  ;;  %v7455_v4 = vld [vmem:[%s9553_s13 + $0xb8] sm:$0xf]  ;;  %v569_v6 = vshrl.u32 %v7468_v3, 16  ;;  %v572_v7 = vshll.u32 %v7468_v3, 16  ;;  %v7449_v8 = vld [vmem:[%s9553_s13 + $0x80] sm:$0xf]  ;;  %p9417_p12 = pnand %p9416_p11, %p9539_p5  ;;  %p9422_p2 = por %p9421_p1, %p9420_p0 }
  0x1d   : > { %v7469_v9 = vld [vmem:[%s9553_s13 + $0x9c] sm:$0x1]  ;;  %v7466_v10 = vld [vmem:[%s9553_s13 + $0x90] sm:$0xf]  ;;  %v7472_v13 = vld [vmem:[%s9553_s13 + $0xa8] sm:$0xf] }
  0x1e   : > { %v571_v11 = vrot.slane %v569_v6, 4  ;;  %v574_v12 = vrot.slane %v572_v7, 5  ;;  %v7467_v14 = vld [vmem:[%s9553_s13 + $0x94] sm:$0x1]  ;;  %v7470_v15 = vld [vmem:[%s9553_s13 + $0xa0] sm:$0xf]  ;;  %p9418_p13 = pneg %p9417_p12 }
  0x1f   : > { %v555_v16 = vshrl.u32 %v7466_v10, 16  ;;  %v558_v17 = vshll.u32 %v7466_v10, 16  ;;  %v564_v18 = vshll.u32 %v7467_v14, 16  ;;  %v7457_v19 = vld [vmem:[%s9553_s13 + $0xc8] sm:$0xf]  ;;  %v578_v20 = vshll.u32 %v7469_v9, 16 }
  0x20   : > { %v597_v21 = vshrl.u32 %v7472_v13, 16  ;;  %v600_v22 = vshll.u32 %v7472_v13, 16  ;;  %v7456_v24 = vld [vmem:[%s9553_s13 + $0xc0] sm:$0xf]  ;;  %v575_v25 = vor.u32 %v574_v12, %v571_v11  ;;  %v583_v26 = vshrl.u32 %v7470_v15, 16  ;;  %p9423_p3 = pnand %p9422_p2, %p9418_p13 }
  0x21   : > { %v557_v23 = vrot.slane %v555_v16, 4  ;;  %v586_v27 = vshll.u32 %v7470_v15, 16  ;;  %v560_v28 = vrot.slane %v558_v17, 5  ;;  %v7473_v29 = vld [vmem:[%s9553_s13 + $0xac] sm:$0x1]  ;;  %v566_v31 = vrot.slane %v564_v18, 5 }
  0x22   : > { %v580_v32 = vrot.slane %v578_v20, 5  ;;  %v599_v33 = vrot.slane %v597_v21, 4  ;;  %v602_v34 = vrot.slane %v600_v22, 5  ;;  %v7471_v35 = vld [vmem:[%s9553_s13 + $0xa4] sm:$0x1]  ;;  %v576_v36 = vrot.slane %v575_v25, 4 }
  0x23   : > { %499 = vrot.lane.b32.xlu1 %v7455_v4, %s9463_s14  ;;  %302 = vrot.lane.b32.xlu0 %v7447_v5, %s9463_s14  ;;  %v561_v30 = vor.u32 %v560_v28, %v557_v23  ;;  %v585_v37 = vrot.slane %v583_v26, 4  ;;  %v588_v38 = vrot.slane %v586_v27, 5  ;;  %v7474_v39 = vld [vmem:[%s9553_s13 + $0xb0] sm:$0xf]  ;;  %v606_v43 = vshll.u32 %v7473_v29, 16 }
  0x24   : > { %306 = vrot.lane.b32.xlu2 %v7449_v8, %s9463_s14  ;;  %v592_v44 = vshll.u32 %v7471_v35, 16  ;;  %v611_v45 = vshrl.u32 %v7474_v39, 16  ;;  %v614_v46 = vshll.u32 %v7474_v39, 16  ;;  %v7490_v47 = vld [vmem:[%s9553_s13 + $0x50] sm:$0xf]  ;;  %v581_v48 = vsel %vm9582_vm2, %v576_v36, %v580_v32 }
  0x25   : > { %v562_v40 = vrot.slane %v561_v30, 4  ;;  %v603_v49 = vor.u32 %v602_v34, %v599_v33  ;;  %v589_v50 = vor.u32 %v588_v38, %v585_v37  ;;  %v7476_v51 = vld [vmem:[%s9553_s13 + $0xb8] sm:$0xf]  ;;  %v608_v52 = vrot.slane %v606_v43, 5  ;;  %v7475_v54 = vld [vmem:[%s9553_s13 + $0xb4] sm:$0x1] }
  0x26   : > { %v594_v53 = vrot.slane %v592_v44, 5  ;;  %v613_v55 = vrot.slane %v611_v45, 4  ;;  %v616_v56 = vrot.slane %v614_v46, 5  ;;  %v7491_v59 = vld [vmem:[%s9553_s13 + $0x58] sm:$0xf]  ;;  %v625_v60 = vshrl.u32 %v7476_v51, 16 }
  0x27   : > { %v567_v42 = vsel %vm9582_vm2, %v562_v40, %v566_v31  ;;  %v604_v57 = vrot.slane %v603_v49, 4  ;;  %v590_v58 = vrot.slane %v589_v50, 4  ;;  %v628_v61 = vshll.u32 %v7476_v51, 16  ;;  %v7477_v4 = vld [vmem:[%s9553_s13 + $0xbc] sm:$0x1] }
  0x28   : > { %v617_v62 = vor.u32 %v616_v56, %v613_v55  ;;  %v620_v63 = vshll.u32 %v7475_v54, 16  ;;  %v627_v2 = vrot.slane %v625_v60, 4  ;;  %v7492_v7 = vld [vmem:[%s9553_s13 + $0x60] sm:$0xf]  ;;  %v634_v9 = vshll.u32 %v7477_v4, 16 }
  0x29   : > { %v609_v0 = vsel %vm9582_vm2, %v604_v57, %v608_v52  ;;  %v595_v1 = vsel %vm9582_vm2, %v590_v58, %v594_v53  ;;  %v630_v3 = vrot.slane %v628_v61, 5  ;;  %v7493_v11 = vld [vmem:[%s9553_s13 + $0x68] sm:$0xf]  ;;  %v7478_v16 = vld [vmem:[%s9553_s13 + $0xc0] sm:$0xf] }
  0x2a   : > { %v618_v5 = vrot.slane %v617_v62, 4  ;;  %v622_v6 = vrot.slane %v620_v63, 5  ;;  %v636_v13 = vrot.slane %v634_v9, 5  ;;  %v7480_v15 = vld [vmem:[%s9553_s13 + $0xc8] sm:$0xf]  ;;  %v639_v21 = vshrl.u32 %v7478_v16, 16 }
  0x2b   : > { %503 = vrot.lane.b32.xlu1 %v7457_v19, %s9463_s14  ;;  %501 = vrot.lane.b32.xlu0 %v7456_v24, %s9463_s14  ;;  %v631_v8 = vor.u32 %v630_v3, %v627_v2  ;;  %v7443_v17 = vld [vmem:[%s9553_s13 + $0x50] sm:$0xf]  ;;  %v7442_v18 = vld [vmem:[%s9553_s13 + $0x48] sm:$0xf]  ;;  %v653_v19 = vshrl.u32 %v7480_v15, 16  ;;  %v656_v20 = vshll.u32 %v7480_v15, 16 }
  0x2c   : > { %666 = vrot.lane.b32.xlu2 %v567_v42, %s9463_s14  ;;  %v623_v10 = vsel %vm9582_vm2, %v618_v5, %v622_v6  ;;  %v642_v22 = vshll.u32 %v7478_v16, 16  ;;  %v641_v25 = vrot.slane %v639_v21, 4  ;;  %v7494_v27 = vld [vmem:[%s9553_s13 + $0x70] sm:$0xf]  ;;  %v7481_v28 = vld [vmem:[%s9553_s13 + $0xcc] sm:$0x1] }
  0x2d   : > { %v632_v12 = vrot.slane %v631_v8, 4  ;;  %v655_v23 = vrot.slane %v653_v19, 4  ;;  %v658_v24 = vrot.slane %v656_v20, 5  ;;  %v7479_v29 = vld [vmem:[%s9553_s13 + $0xc4] sm:$0x1]  ;;  %v662_v33 = vshll.u32 %v7481_v28, 16 }
  0x2e   : > { %v644_v26 = vrot.slane %v642_v22, 5  ;;  %v7450_v30 = vld [vmem:[%s9553_s13 + $0x90] sm:$0xf]  ;;  %v7495_v31 = vld [vmem:[%s9553_s13 + $0x78] sm:$0xf]  ;;  %v648_v35 = vshll.u32 %v7479_v29, 16 }
  0x2f   : > { %v637_v14 = vsel %vm9582_vm2, %v632_v12, %v636_v13  ;;  %v659_v32 = vor.u32 %v658_v24, %v655_v23  ;;  %v664_v37 = vrot.slane %v662_v33, 5  ;;  %v7451_v40 = vld [vmem:[%s9553_s13 + $0x98] sm:$0xf]  ;;  %v1539_v45 = vld [vmem:[%s9553_s13 + $0x8] sm:$0xf] }
  0x30   : > { %v645_v34 = vor.u32 %v644_v26, %v641_v25  ;;  %v650_v39 = vrot.slane %v648_v35, 5  ;;  %v7790_v44 = vld [vmem:[%s9553_s13 + $0xd8] sm:$0xf]  ;;  %v1537_v46 = vld [vmem:[%s9553_s13] sm:$0xf]  ;;  %v1568_v53 = vshrl.u32 %v1539_v45, 16 }
  0x31   : > { %v660_v36 = vrot.slane %v659_v32, 4  ;;  %v7444_v49 = vld [vmem:[%s9553_s13 + $0x58] sm:$0xf]  ;;  %v2050_v50 = vshrl.u32 %v7790_v44, 16  ;;  %v2053_v51 = vshll.u32 %v7790_v44, 16  ;;  %v1571_v54 = vshll.u32 %v1539_v45, 16 }
  0x32   : > { %v646_v38 = vrot.slane %v645_v34, 4  ;;  %v7794_v52 = vld [vmem:[%s9553_s13 + $0xe8] sm:$0xf]  ;;  %v1554_v55 = vshrl.u32 %v1537_v46, 16  ;;  %v1557_v56 = vshll.u32 %v1537_v46, 16 }
  0x33   : > { %732 = vrot.lane.b32.xlu1 %v7490_v47, %s9463_s14  ;;  %668 = vrot.lane.b32.xlu0 %v581_v48, %s9463_s14  ;;  %v665_v42 = vsel %vm9582_vm2, %v660_v36, %v664_v37  ;;  %v9050_v47 = vld [vmem:[%s12379_s1 + $0x38] sm:$0xff]  ;;  %v7496_v57 = vld [vmem:[%s9553_s13 + $0x80] sm:$0xf]  ;;  %v2078_v58 = vshrl.u32 %v7794_v52, 16  ;;  %v2052_v62 = vrot.slane %v2050_v50, 4  ;;  %v2055_v63 = vrot.slane %v2053_v51, 5 }
  0x34   : > { %734 = vrot.lane.b32.xlu2 %v7491_v59, %s9463_s14  ;;  %v651_v43 = vsel %vm9582_vm2, %v646_v38, %v650_v39  ;;  %v9058_v48 = vld [vmem:[%s12379_s1 + $0x78] sm:$0xff]  ;;  %9335 = vmatpush.bf16.msra.mxu2 %v9050_v47  ;;  %v2081_v59 = vshll.u32 %v7794_v52, 16  ;;  %v7445_v60 = vld [vmem:[%s9553_s13 + $0x60] sm:$0xf]  ;;  %v1573_v2 = vrot.slane %v1571_v54, 5  ;;  %v1556_v5 = vrot.slane %v1554_v55, 4 }
  0x35   : > { %9343 = vmatpush.bf16.msra.mxu3 %v9058_v48  ;;  %1336 = vmatpush.bf16.msra.mxu0 %v9050_v47  ;;  %v7791_v61 = vld [vmem:[%s9553_s13 + $0xdc] sm:$0x1]  ;;  %v7792_v3 = vld [vmem:[%s9553_s13 + $0xe0] sm:$0xf]  ;;  %v1538_v4 = vld [vmem:[%s9553_s13 + $0x4] sm:$0x1]  ;;  %v2056_v16 = vor.u32 %v2055_v63, %v2052_v62 }
  0x36   : > { %1365 = vmatpush.bf16.msra.mxu1 %v9058_v48  ;;  %v1559_v6 = vrot.slane %v1557_v56, 5  ;;  %v2080_v8 = vrot.slane %v2078_v58, 4  ;;  %v2083_v9 = vrot.slane %v2081_v59, 5  ;;  %v7497_v12 = vld [vmem:[%s9553_s13 + $0x88] sm:$0xf]  ;;  %v2064_v13 = vshrl.u32 %v7792_v3, 16 }
  0x37   : > { %v1543_v15 = vld [vmem:[%s9553_s13 + $0x18] sm:$0xf]  ;;  %v9048_v19 = vld [vmem:[%s12379_s1 + $0x28] sm:$0xff]  ;;  %v1563_v23 = vshll.u32 %v1538_v4, 16  ;;  %v7452_v29 = vld [vmem:[%s9553_s13 + $0xa0] sm:$0xf] }
  0x38   : > { %v9056_v20 = vld [vmem:[%s12379_s1 + $0x68] sm:$0xff]  ;;  %v1560_v22 = vor.u32 %v1559_v6, %v1556_v5  ;;  %v2084_v26 = vor.u32 %v2083_v9, %v2080_v8  ;;  %v1599_v28 = vshll.u32 %v1543_v15, 16  ;;  %v9676_v33 = vrot.slane %v2056_v16, 4  ;;  %v1541_v36 = vld [vmem:[%s9553_s13 + $0x10] sm:$0xf]  ;;  %v9047_v47 = vld [vmem:[%s12379_s1 + $0x20] sm:$0xff] }
  0x39   : > { %v7453_v25 = vld [vmem:[%s9553_s13 + $0xa8] sm:$0xf]  ;;  %v9685_v39 = vrot.slane %v1563_v23, 5  ;;  %v9055_v48 = vld [vmem:[%s12379_s1 + $0x60] sm:$0xff]  ;;  %v1544_v50 = vld [vmem:[%s9553_s13 + $0x1c] sm:$0x1] }
  0x3a   : > { %v9683_v38 = vrot.slane %v1560_v22, 4  ;;  %v1601_v46 = vrot.slane %v1599_v28, 5  ;;  %v1582_v51 = vshrl.u32 %v1541_v36, 16  ;;  %v333_v52 = vld [vmem:[%s9553_s13 + $0x20] sm:$0xf]  ;;  %v1585_v54 = vshll.u32 %v1541_v36, 16 }
  0x3b   : > { %672 = vrot.lane.b32.xlu1 %v609_v0, %s9463_s14  ;;  %670 = vrot.lane.b32.xlu0 %v595_v1, %s9463_s14  ;;  %v1540_v0 = vld [vmem:[%s9553_s13 + $0xc] sm:$0x1]  ;;  %v1570_v1 = vrot.slane %v1568_v53, 4  ;;  %v1542_v53 = vld [vmem:[%s9553_s13 + $0x14] sm:$0x1]  ;;  %v401_v56 = vshrl.u32 %v333_v52, 16 }
  0x3c   : > { %736 = vrot.lane.b32.xlu2 %v7492_v7, %s9463_s14  ;;  %v7795_v7 = vld [vmem:[%s9553_s13 + $0xec] sm:$0x1]  ;;  %v334_v55 = vld [vmem:[%s9553_s13 + $0x24] sm:$0x1]  ;;  %v7758_v58 = vld [vmem:[%s9553_s13 + $0x68] sm:$0xf] }
  0x3d   : > { %v1574_v21 = vor.u32 %v1573_v2, %v1570_v1  ;;  %v2087_v24 = vshll.u32 %v7795_v7, 16  ;;  %v404_v59 = vshll.u32 %v333_v52, 16  ;;  %v403_v1 = vrot.slane %v401_v56, 4  ;;  %v9046_v5 = vld [vmem:[%s12379_s1 + $0x18] sm:$0xff]  ;;  %v264_v36 = vld [vmem:[%s9553_s13 + $0x30] sm:$0xf] }
  0x3e   : > { %v9054_v6 = vld [vmem:[%s12379_s1 + $0x58] sm:$0xff]  ;;  %v9719_v8 = vrot.slane %v1582_v51, 4  ;;  %v1591_v9 = vshll.u32 %v1542_v53, 16  ;;  %273 = vst.msk [vmem:[#allocation2 + $0x78] sm:$0xf] %vm266_vm3, %v264_v36 }
  0x3f   : > { %v9681_v37 = vrot.slane %v1574_v21, 4  ;;  %v406_v4 = vrot.slane %v404_v59, 5  ;;  %v7798_v7 = vld [vmem:[%s9553_s13 + $0xf8] sm:$0xf]  ;;  %v7796_v52 = vld [vmem:[%s9553_s13 + $0xf0] sm:$0xf] }
  0x40   : > { %v2106_v21 = vshrl.u32 %v7798_v7, 16  ;;  %v9737_v28 = vrot.slane %v1591_v9, 5  ;;  %v263_v56 = vld [vmem:[%s9553_s13 + $0x28] sm:$0xf]  ;;  %v1548_v9 = vld [vmem:[%s9553_s13 + $0x2c] sm:$0x1] }
  0x41   : > { %272 = vst.msk [vmem:[#allocation2 + $0x64] sm:$0xf] %vm266_vm3, %v263_v56  ;;  %v9052_v59 = vld [vmem:[%s12379_s1 + $0x48] sm:$0xff] }
  0x43   : > { %674 = vrot.lane.b32.xlu1 %v623_v10, %s9463_s14  ;;  %738 = vrot.lane.b32.xlu0 %v7493_v11, %s9463_s14  ;;  %v9049_v10 = vld [vmem:[%s12379_s1 + $0x30] sm:$0xff] }
  0x44   : > { %676 = vrot.lane.b32.xlu2 %v637_v14, %s9463_s14  ;;  %v9057_v11 = vld [vmem:[%s12379_s1 + $0x70] sm:$0xff]  ;;  %v2067_v14 = vshll.u32 %v7792_v3, 16  ;;  %9336 = vmatpush.bf16.msra.mxu2 %v9049_v10 }
  0x45   : > { %9344 = vmatpush.bf16.msra.mxu3 %v9057_v11  ;;  %1337 = vmatpush.bf16.msra.mxu0 %v9049_v10  ;;  %v1770_v10 = vshrl.u32 %v7758_v58, 16 }
  0x46   : > { %1366 = vmatpush.bf16.msra.mxu1 %v9057_v11  ;;  %v2069_v32 = vrot.slane %v2067_v14, 5  ;;  %v1773_v11 = vshll.u32 %v7758_v58, 16  ;;  %v7768_v58 = vld [vmem:[%s9553_s13 + $0xe8] sm:$0xf] }
  0x48   : > { %9337 = vmatpush.bf16.msra.mxu2 %v9048_v19 }
  0x49   : > { %9345 = vmatpush.bf16.msra.mxu3 %v9056_v20  ;;  %1338 = vmatpush.bf16.msra.mxu0 %v9048_v19 }
  0x4a   : > { %1367 = vmatpush.bf16.msra.mxu1 %v9056_v20  ;;  %v1587_v20 = vrot.slane %v1585_v54, 5  ;;  %v7761_v54 = vld [vmem:[%s9553_s13 + $0x74] sm:$0x1] }
  0x4b   : > { %294 = vrot.lane.b32.xlu1 %v7443_v17, %s9463_s14  ;;  %292 = vrot.lane.b32.xlu0 %v7442_v18, %s9463_s14  ;;  %v2059_v17 = vshll.u32 %v7791_v61, 16  ;;  %v1577_v18 = vshll.u32 %v1540_v0, 16  ;;  %v262_v61 = vld [vmem:[%s9553_s13 + $0x20] sm:$0xf]  ;;  %v1605_v0 = vshll.u32 %v1544_v50, 16 }
  0x4c   : > { %740 = vrot.lane.b32.xlu2 %v7494_v27, %s9463_s14  ;;  %v1596_v27 = vshrl.u32 %v1543_v15, 16  ;;  %9338 = vmatpush.bf16.msra.mxu2 %v9047_v47  ;;  %271 = vst.msk [vmem:[#allocation2 + $0x50] sm:$0xf] %vm266_vm3, %v262_v61  ;;  %v336_v15 = vld [vmem:[%s9553_s13 + $0x2c] sm:$0x1]  ;;  %v1588_v50 = vor.u32 %v1587_v20, %v9719_v8 }
  0x4d   : > { %v2061_v34 = vrot.slane %v2059_v17, 5  ;;  %v9678_v35 = vrot.slane %v1577_v18, 5  ;;  %9346 = vmatpush.bf16.msra.mxu3 %v9055_v48  ;;  %1339 = vmatpush.bf16.msra.mxu0 %v9047_v47  ;;  %v9727_v19 = vrot.slane %v1605_v0, 5  ;;  %v7760_v47 = vld [vmem:[%s9553_s13 + $0x70] sm:$0xf]  ;;  %v2095_v0 = vshll.u32 %v7796_v52, 16 }
  0x4e   : > { %v1598_v45 = vrot.slane %v1596_v27, 4  ;;  %1368 = vmatpush.bf16.msra.mxu1 %v9055_v48  ;;  %v1787_v51 = vshll.u32 %v7760_v47, 16 }
  0x4f   : > { %v2062_v2 = vsel %vm9582_vm2, %v9676_v33, %v2061_v34  ;;  %v9742_v33 = vrot.slane %v1773_v11, 5  ;;  %v2097_v8 = vrot.slane %v2095_v0, 5 }
  0x50   : > { %v1602_v63 = vor.u32 %v1601_v46, %v1598_v45  ;;  %9339 = vmatpush.bf16.msra.mxu2 %v9046_v5  ;;  %v9753_v46 = vrot.slane %v2106_v21, 4 }
  0x51   : > { %9347 = vmatpush.bf16.msra.mxu3 %v9054_v6  ;;  %1340 = vmatpush.bf16.msra.mxu0 %v9046_v5 }
  0x52   : > { %v9725_v18 = vrot.slane %v1602_v63, 4  ;;  %1369 = vmatpush.bf16.msra.mxu1 %v9054_v6  ;;  %v2092_v63 = vshrl.u32 %v7796_v52, 16 }
  0x53   : > { %489 = vrot.lane.b32.xlu1 %v7450_v30, %s9463_s14  ;;  %742 = vrot.lane.b32.xlu0 %v7495_v31, %s9463_s14  ;;  %v7793_v30 = vld [vmem:[%s9553_s13 + $0xe4] sm:$0x1]  ;;  %v2066_v31 = vrot.slane %v2064_v13, 4  ;;  %v407_v13 = vor.u32 %v406_v4, %v403_v1  ;;  %v9780_v1 = vrot.slane %v1588_v50, 4  ;;  %v1547_v4 = vld [vmem:[%s9553_s13 + $0x28] sm:$0xf] }
  0x54   : > { %491 = vrot.lane.b32.xlu2 %v7451_v40, %s9463_s14  ;;  %v7766_v40 = vld [vmem:[%s9553_s13 + $0xd8] sm:$0xf]  ;;  %v2073_v44 = vshll.u32 %v7793_v30, 16  ;;  %v424_v30 = vshll.u32 %v336_v15, 16  ;;  %v1624_v20 = vshrl.u32 %v1547_v4, 16  ;;  %v1627_v21 = vshll.u32 %v1547_v4, 16 }
  0x55   : > { %v408_v23 = vrot.slane %v407_v13, 4  ;;  %v1793_v13 = vshll.u32 %v7761_v54, 16  ;;  %v7775_v4 = vld [vmem:[%s9553_s13 + $0x94] sm:$0x1] }
  0x56   : > { %v2075_v62 = vrot.slane %v2073_v44, 5  ;;  %v1580_v44 = vsel %vm9582_vm2, %v9681_v37, %v9678_v35  ;;  %v426_v48 = vrot.slane %v424_v30, 5  ;;  %v7799_v35 = vld [vmem:[%s9553_s13 + $0xfc] sm:$0x1]  ;;  %v1784_v37 = vshrl.u32 %v7760_v47, 16 }
  0x57   : > { %v2115_v6 = vshll.u32 %v7799_v35, 16  ;;  %v339_v35 = vld [vmem:[%s9553_s13 + $0x38] sm:$0xf] }
  0x58   : > { %v443_v54 = vshrl.u32 %v339_v35, 16  ;;  %v446_v56 = vshll.u32 %v339_v35, 16 }
  0x59   : > { %v9808_v30 = vrot.slane %v2115_v6, 5 }
  0x5a   : > { %v448_v0 = vrot.slane %v446_v56, 5 }
  0x5b   : > { %680 = vrot.lane.b32.xlu1 %v665_v42, %s9463_s14  ;;  %678 = vrot.lane.b32.xlu0 %v651_v43, %s9463_s14  ;;  %v9688_v42 = vrot.slane %v2087_v24, 5  ;;  %v9692_v43 = vrot.slane %v2084_v26, 4  ;;  %v9045_v24 = vld [vmem:[%s12379_s1 + $0x10] sm:$0xff] }
  0x5c   : > { %296 = vrot.lane.b32.xlu2 %v7444_v49, %s9463_s14  ;;  %v2070_v49 = vor.u32 %v2069_v32, %v2066_v31  ;;  %v7759_v31 = vld [vmem:[%s9553_s13 + $0x6c] sm:$0x1]  ;;  %v9740_v32 = vrot.slane %v1770_v10, 4  ;;  %9340 = vmatpush.bf16.msra.mxu2 %v9045_v24  ;;  %v7769_v10 = vld [vmem:[%s9553_s13 + $0xf0] sm:$0xf] }
  0x5d   : > { %1341 = vmatpush.bf16.msra.mxu0 %v9045_v24 }
  0x5e   : > { %v2071_v3 = vrot.slane %v2070_v49, 4  ;;  %v1566_v49 = vsel %vm9582_vm2, %v9683_v38, %v9685_v39  ;;  %v1786_v38 = vrot.slane %v1784_v37, 4  ;;  %v9044_v39 = vld [vmem:[%s12379_s1 + $0x8] sm:$0xff]  ;;  %v9074_v37 = vld [vmem:[%s12379_s1 + $0xf8] sm:$0xff] }
  0x60   : > { %v2076_v22 = vsel %vm9582_vm2, %v2071_v3, %v2075_v62  ;;  %v7797_v62 = vld [vmem:[%s9553_s13 + $0xf4] sm:$0x1]  ;;  %9341 = vmatpush.bf16.msra.mxu2 %v9044_v39 }
  0x61   : > { %v2101_v3 = vshll.u32 %v7797_v62, 16  ;;  %1342 = vmatpush.bf16.msra.mxu0 %v9044_v39  ;;  %v1608_v39 = vsel %vm9582_vm2, %v9725_v18, %v9727_v19  ;;  %v9073_v62 = vld [vmem:[%s12379_s1 + $0xf0] sm:$0xff] }
  0x63   : > { %744 = vrot.lane.b32.xlu1 %v7496_v57, %s9463_s14  ;;  %298 = vrot.lane.b32.xlu0 %v7445_v60, %s9463_s14  ;;  %v7767_v57 = vld [vmem:[%s9553_s13 + $0xe0] sm:$0xf]  ;;  %v410_v60 = vshll.u32 %v334_v55, 16 }
  0x64   : > { %746 = vrot.lane.b32.xlu2 %v7497_v12, %s9463_s14  ;;  %v335_v12 = vld [vmem:[%s9553_s13 + $0x28] sm:$0xf] }
  0x65   : > { %v412_v14 = vrot.slane %v410_v60, 5  ;;  %v415_v16 = vshrl.u32 %v335_v12, 16  ;;  %v418_v17 = vshll.u32 %v335_v12, 16  ;;  %v1789_v60 = vrot.slane %v1787_v51, 5  ;;  %v7748_v12 = vld [vmem:[%s9553_s13 + $0x78] sm:$0xf] }
  0x66   : > { %v7749_v51 = vld [vmem:[%s9553_s13 + $0x80] sm:$0xf] }
  0x67   : > { %v417_v26 = vrot.slane %v415_v16, 4  ;;  %v420_v27 = vrot.slane %v418_v17, 5  ;;  %v413_v34 = vsel %vm9582_vm2, %v408_v23, %v412_v14  ;;  %v265_v14 = vld [vmem:[%s9553_s13 + $0x38] sm:$0xf]  ;;  %v1790_v15 = vor.u32 %v1789_v60, %v1786_v38  ;;  %v9065_v38 = vld [vmem:[%s12379_s1 + $0xb0] sm:$0xff] }
  0x68   : > { %468 = vst.msk [vmem:[#allocation2 + $0x54] sm:$0xf] %vm266_vm3, %v413_v34  ;;  %v2090_v23 = vsel %vm9582_vm2, %v9692_v43, %v9688_v42  ;;  %v9043_v42 = vld [vmem:[%s12379_s1] sm:$0xff] }
  0x69   : > { %274 = vst.msk [vmem:[#allocation2 + $0x8c] sm:$0xf] %vm266_vm3, %v265_v14  ;;  %v9051_v43 = vld [vmem:[%s12379_s1 + $0x40] sm:$0xff]  ;;  %v9821_v36 = vrot.slane %v1790_v15, 4  ;;  %9342 = vmatpush.bf16.msra.mxu2 %v9043_v42  ;;  %1343 = vmatpush.bf16.msra.mxu0 %v9043_v42 }
  0x6a   : > { %v7764_v34 = vld [vmem:[%s9553_s13 + $0x80] sm:$0xf] }
  0x6b   : > { %495 = vrot.lane.b32.xlu1 %v7453_v25, %s9463_s14  ;;  %493 = vrot.lane.b32.xlu0 %v7452_v29, %s9463_s14  ;;  %v9053_v25 = vld [vmem:[%s12379_s1 + $0x50] sm:$0xff]  ;;  %v2109_v29 = vshll.u32 %v7798_v7, 16  ;;  %v2094_v7 = vrot.slane %v2092_v63, 4  ;;  %v1812_v50 = vshrl.u32 %v7764_v34, 16  ;;  %v1815_v52 = vshll.u32 %v7764_v34, 16 }
  0x6c   : > { %1857 = vrot.lane.b32.xlu2 %v7766_v40, %s9463_s14  ;;  %9348 = vmatpush.bf16.msra.mxu3 %v9053_v25  ;;  %v421_v40 = vor.u32 %v420_v27, %v417_v26  ;;  %v1633_v26 = vshll.u32 %v1548_v9, 16  ;;  %v9869_v63 = vld [vmem:[%s9553_s13 + $0x84] sm:$0x1]  ;;  %v337_v9 = vld [vmem:[%s9553_s13 + $0x30] sm:$0xf] }
  0x6d   : > { %1370 = vmatpush.bf16.msra.mxu1 %v9053_v25  ;;  %v2111_v53 = vrot.slane %v2109_v29, 5  ;;  %v2098_v17 = vor.u32 %v2097_v8, %v2094_v7  ;;  %v2103_v25 = vrot.slane %v2101_v3, 5  ;;  %v7774_v3 = vld [vmem:[%s9553_s13 + $0x90] sm:$0xf]  ;;  %v429_v14 = vshrl.u32 %v337_v9, 16 }
  0x6e   : > { %v422_v55 = vrot.slane %v421_v40, 4  ;;  %v9823_v40 = vrot.slane %v1624_v20, 4  ;;  %v1906_v7 = vshrl.u32 %v7774_v3, 16  ;;  %v1909_v8 = vshll.u32 %v7774_v3, 16 }
  0x6f   : > { %v2112_v5 = vor.u32 %v2111_v53, %v9753_v46  ;;  %v9066_v46 = vld [vmem:[%s12379_s1 + $0xb8] sm:$0xff]  ;;  %v432_v15 = vshll.u32 %v337_v9, 16 }
  0x70   : > { %v427_v61 = vsel %vm9582_vm2, %v422_v55, %v426_v48  ;;  %9349 = vmatpush.bf16.msra.mxu3 %v9052_v59  ;;  %v9835_v48 = vrot.slane %v1633_v26, 5  ;;  %v340_v53 = vld [vmem:[%s9553_s13 + $0x3c] sm:$0x1]  ;;  %1394 = vmatpush.bf16.msrb.mxu2 %v9066_v46  ;;  %v1908_v20 = vrot.slane %v1906_v7, 4 }
  0x71   : > { %469 = vst.msk [vmem:[#allocation2 + $0x68] sm:$0xf] %vm266_vm3, %v427_v61  ;;  %1371 = vmatpush.bf16.msra.mxu1 %v9052_v59  ;;  %v9806_v29 = vrot.slane %v2112_v5, 4  ;;  %v1594_v59 = vsel %vm9582_vm2, %v9780_v1, %v9737_v28  ;;  %v445_v61 = vrot.slane %v443_v54, 4  ;;  %v9871_v28 = vrot.slane %v1812_v50, 4 }
  0x72   : > { %v9873_v1 = vrot.slane %v1815_v52, 5  ;;  %v434_v42 = vrot.slane %v432_v15, 5  ;;  %v7770_v50 = vld [vmem:[%s9553_s13 + $0xf8] sm:$0xf] }
  0x73   : > { %2161 = vrot.lane.b32.xlu1 %v2062_v2, %s9463_s14  ;;  %1859 = vrot.lane.b32.xlu0 %v7767_v57, %s9463_s14  ;;  %v1779_v57 = vshll.u32 %v7759_v31, 16  ;;  %v1776_v2 = vor.u32 %v9742_v33, %v9740_v32  ;;  %v2099_v31 = vrot.slane %v2098_v17, 4  ;;  %v9810_v32 = vrot.slane %v1793_v13, 5  ;;  %v338_v13 = vld [vmem:[%s9553_s13 + $0x34] sm:$0x1] }
  0x74   : > { %2163 = vrot.lane.b32.xlu2 %v2076_v22, %s9463_s14  ;;  %v1545_v22 = vld [vmem:[%s9553_s13 + $0x20] sm:$0xf]  ;;  %9350 = vmatpush.bf16.msra.mxu3 %v9051_v43  ;;  %v449_v6 = vor.u32 %v448_v0, %v445_v61  ;;  %v2118_v35 = vsel %vm9582_vm2, %v9806_v29, %v9808_v30  ;;  %v1818_v56 = vor.u32 %v9873_v1, %v9871_v28  ;;  %v7482_v0 = vld [vmem:[%s9553_s13 + $0x8] sm:$0xf] }
  0x75   : > { %v9789_v11 = vrot.slane %v1779_v57, 5  ;;  %v9803_v27 = vrot.slane %v1776_v2, 4  ;;  %v1610_v33 = vshrl.u32 %v1545_v22, 16  ;;  %v2104_v47 = vsel %vm9582_vm2, %v2099_v31, %v2103_v25  ;;  %1372 = vmatpush.bf16.msra.mxu1 %v9051_v43  ;;  %1395 = vmatpush.bf16.msrb.mxu2 %v9065_v38  ;;  %v7763_v43 = vld [vmem:[%s9553_s13 + $0x7c] sm:$0x1]  ;;  %v9072_v1 = vld [vmem:[%s12379_s1 + $0xe8] sm:$0xff] }
  0x76   : > { %v305_v45 = vpop.permute.xlu2 %304  ;;  %v452_v57 = vshll.u32 %v340_v53, 16  ;;  %v450_v17 = vrot.slane %v449_v6, 4  ;;  %v1821_v31 = vshll.u32 %v9869_v63, 16  ;;  %v7802_v53 = vld [vmem:[%s9553_s13 + $0x108] sm:$0xf]  ;;  %v1807_v30 = vshll.u32 %v7763_v43, 16 }
  0x77   : > { %323 = vst.msk [vmem:[#allocation2 + $0x78] sm:$0xf] %vm316_vm4, %v305_v45  ;;  %v9828_v45 = vld [vmem:[%s9553_s13 + $0x24] sm:$0x1]  ;;  %v9843_v55 = vrot.slane %v1610_v33, 4  ;;  %v431_v33 = vrot.slane %v429_v14, 4  ;;  %v1782_v61 = vsel %vm9582_vm2, %v9803_v27, %v9789_v11 }
  0x78   : > { %1423 = vmatpush.bf16.msrb.mxu3 %v9074_v37  ;;  %v1619_v19 = vshll.u32 %v9828_v45, 16  ;;  %v454_v2 = vrot.slane %v452_v57, 5  ;;  %v7803_v38 = vld [vmem:[%s9553_s13 + $0x10c] sm:$0x1]  ;;  %v9928_v6 = vrot.slane %v1818_v56, 4  ;;  %v9930_v7 = vrot.slane %v1821_v31, 5 }
  0x79   : > { %v435_v37 = vor.u32 %v434_v42, %v431_v33  ;;  %v2143_v3 = vshll.u32 %v7803_v38, 16  ;;  %707 = vst.msk [vmem:[#allocation2 + $0xc] sm:$0xf] %vm266_vm3, %v7482_v0  ;;  %v7800_v31 = vld [vmem:[%s9553_s13 + $0x100] sm:$0xf] }
  0x7a   : > { %v9071_v33 = vld [vmem:[%s12379_s1 + $0xe0] sm:$0xff]  ;;  %v9967_v42 = vld [vmem:[%s9553_s13 + $0x9c] sm:$0x1] }
  0x7b   : > { %1667 = vrot.lane.b32.xlu1 %v1580_v44, %s9463_s14  ;;  %1665 = vrot.lane.b32.xlu0 %v1566_v49, %s9463_s14  ;;  %v9825_v44 = vrot.slane %v1627_v21, 5  ;;  %v1613_v49 = vshll.u32 %v1545_v22, 16  ;;  %v1911_v21 = vrot.slane %v1909_v8, 5  ;;  %v438_v22 = vshll.u32 %v338_v13, 16  ;;  %v7801_v43 = vld [vmem:[%s9553_s13 + $0x104] sm:$0x1] }
  0x7c   : > { %1861 = vrot.lane.b32.xlu2 %v7768_v58, %s9463_s14  ;;  %v7458_v58 = vld [vmem:[%s9553_s13 + $0xd8] sm:$0xf]  ;;  %1424 = vmatpush.bf16.msrb.mxu3 %v9073_v62  ;;  %v436_v29 = vrot.slane %v435_v37, 4  ;;  %v7746_v62 = vld [vmem:[%s9553_s13 + $0x68] sm:$0xf]  ;;  %v9937_v13 = vrot.slane %v1807_v30, 5 }
  0x7d   : > { %530 = vst.msk [vmem:[#allocation2 + $0x8] sm:$0xf] %vm266_vm3, %v7458_v58  ;;  %v9865_v18 = vrot.slane %v1613_v49, 5  ;;  %v1912_v46 = vor.u32 %v1911_v21, %v1908_v20  ;;  %v9945_v15 = vrot.slane %v2143_v3, 5  ;;  %v1929_v38 = vshll.u32 %v9967_v42, 16 }
  0x7e   : > { %v307_v16 = vpop.permute.xlu2 %306  ;;  %v9800_v24 = vld [vmem:[#allocation2 + $0x78] sm:$0xf]  ;;  %v1550_v3 = vld [vmem:[%s9553_s13 + $0x34] sm:$0x1] }
  0x7f   : > { %324 = vst.msk [vmem:[#allocation2 + $0x8c] sm:$0xf] %vm316_vm4, %v307_v16  ;;  %v9064_v16 = vld [vmem:[%s12379_s1 + $0xa8] sm:$0xff]  ;;  %v1616_v54 = vor.u32 %v9865_v18, %v9843_v55  ;;  %v1913_v57 = vrot.slane %v1912_v46, 4  ;;  %v2129_v46 = vshll.u32 %v7801_v43, 16 }
  0x80   : > { %1535 = vst.msk [vmem:[#allocation2 + $0x78] sm:$0xf] %vm266_vm3, %v7748_v12  ;;  %v1915_v12 = vshll.u32 %v7775_v4, 16  ;;  %1396 = vmatpush.bf16.msrb.mxu2 %v9064_v16  ;;  %1425 = vmatpush.bf16.msrb.mxu3 %v9072_v1  ;;  %v7776_v16 = vld [vmem:[%s9553_s13 + $0x98] sm:$0xf] }
  0x81   : > { %v1617_v4 = vrot.slane %v1616_v54, 4 }
  0x83   : > { %2165 = vrot.lane.b32.xlu1 %v2090_v23, %s9463_s14  ;;  %1863 = vrot.lane.b32.xlu0 %v7769_v10, %s9463_s14  ;;  %v1630_v10 = vor.u32 %v9825_v44, %v9823_v40  ;;  %v7762_v23 = vld [vmem:[%s9553_s13 + $0x78] sm:$0xf]  ;;  %v7771_v40 = vld [vmem:[%s9553_s13 + $0x100] sm:$0xf]  ;;  %v455_v44 = vsel %vm9582_vm2, %v450_v17, %v454_v2 }
  0x84   : > { %2167 = vrot.lane.b32.xlu2 %v2104_v47, %s9463_s14  ;;  %v1798_v34 = vshrl.u32 %v7762_v23, 16  ;;  %v1917_v47 = vrot.slane %v1915_v12, 5  ;;  %v1801_v49 = vshll.u32 %v7762_v23, 16  ;;  %471 = vst.msk [vmem:[#allocation2 + $0x90] sm:$0xf] %vm266_vm3, %v455_v44  ;;  %v9063_v17 = vld [vmem:[%s12379_s1 + $0xa0] sm:$0xff]  ;;  %1426 = vmatpush.bf16.msrb.mxu3 %v9071_v33 }
  0x85   : > { %v1631_v55 = vrot.slane %v1630_v10, 4  ;;  %v7459_v23 = vld [vmem:[%s9553_s13 + $0xe0] sm:$0xf]  ;;  %1397 = vmatpush.bf16.msrb.mxu2 %v9063_v17  ;;  %v2123_v44 = vshll.u32 %v7800_v31, 16  ;;  %v7781_v17 = vld [vmem:[%s9553_s13 + $0xac] sm:$0x1] }
  0x86   : > { %v9857_v60 = vld [vmem:[#allocation2 + $0x88] sm:$0xf0]  ;;  %v667_v5 = vpop.permute.xlu2 %666  ;;  %v1800_v52 = vrot.slane %v1798_v34, 4  ;;  %v1803_v58 = vrot.slane %v1801_v49, 5  ;;  %v1918_v18 = vsel %vm9582_vm2, %v1913_v57, %v1917_v47  ;;  %v1796_v47 = vsel %vm9582_vm2, %v9821_v36, %v9810_v32  ;;  %v7747_v49 = vld [vmem:[%s9553_s13 + $0x70] sm:$0xf] }
  0x87   : > { %1536 = vst.msk [vmem:[#allocation2 + $0x8c] sm:$0xf] %vm266_vm3, %v7749_v51  ;;  %v440_v51 = vrot.slane %v438_v22, 5  ;;  %v1636_v20 = vsel %vm9582_vm2, %v1631_v55, %v9835_v48  ;;  %v2125_v54 = vrot.slane %v2123_v44, 5  ;;  %v1549_v57 = vld [vmem:[%s9553_s13 + $0x30] sm:$0xf] }
  0x88   : > { %690 = vst.msk [vmem:[#allocation2 + $0x8] sm:$0xf] %vm316_vm4, %v667_v5  ;;  %v1804_v28 = vor.u32 %v1803_v58, %v1800_v52  ;;  %v1621_v5 = vrot.slane %v1619_v19, 5  ;;  %v7483_v19 = vld [vmem:[%s9553_s13 + $0x10] sm:$0xf]  ;;  %v2131_v32 = vrot.slane %v2129_v46, 5 }
  0x89   : > { %v441_v11 = vsel %vm9582_vm2, %v436_v29, %v440_v51  ;;  %708 = vst.msk [vmem:[#allocation2 + $0x20] sm:$0xf] %vm266_vm3, %v7483_v19  ;;  %v7807_v58 = vld [vmem:[%s9553_s13 + $0x58] sm:$0xf]  ;;  %v1638_v29 = vshrl.u32 %v1549_v57, 16  ;;  %v1824_v19 = vsel %vm9582_vm2, %v9928_v6, %v9930_v7 }
  0x8a   : > { %470 = vst.msk [vmem:[#allocation2 + $0x7c] sm:$0xf] %vm266_vm3, %v441_v11  ;;  %v9935_v12 = vrot.slane %v1804_v28, 4  ;;  %v1622_v21 = vsel %vm9582_vm2, %v1617_v4, %v1621_v5  ;;  %v7484_v44 = vld [vmem:[%s9553_s13 + $0x18] sm:$0xf] }
  0x8b   : > { %1671 = vrot.lane.b32.xlu1 %v1608_v39, %s9463_s14  ;;  %1669 = vrot.lane.b32.xlu0 %v1594_v59, %s9463_s14  ;;  %v2134_v39 = vshrl.u32 %v7802_v53, 16  ;;  %v2137_v59 = vshll.u32 %v7802_v53, 16  ;;  %531 = vst.msk [vmem:[#allocation2 + $0x1c] sm:$0xf] %vm266_vm3, %v7459_v23  ;;  %v1640_v4 = vrot.slane %v1638_v29, 4  ;;  %v9061_v29 = vld [vmem:[%s12379_s1 + $0x90] sm:$0xff] }
  0x8c   : > { %1865 = vrot.lane.b32.xlu2 %v7770_v50, %s9463_s14  ;;  %v1551_v50 = vld [vmem:[%s9553_s13 + $0x38] sm:$0xf]  ;;  %709 = vst.msk [vmem:[#allocation2 + $0x34] sm:$0xf] %vm266_vm3, %v7484_v44 }
  0x8d   : > { %v498_v25 = vpop.permute.xlu1 %497  ;;  %v301_v26 = vpop.permute.xlu0 %300  ;;  %v2136_v27 = vrot.slane %v2134_v39, 4  ;;  %v2139_v2 = vrot.slane %v2137_v59, 5  ;;  %v1652_v56 = vshrl.u32 %v1551_v50, 16  ;;  %v1655_v36 = vshll.u32 %v1551_v50, 16  ;;  %v7773_v39 = vld [vmem:[%s9553_s13 + $0x110] sm:$0xf] }
  0x8e   : > { %517 = vst.msk [vmem:[#allocation2 + $0x54] sm:$0xf] %vm316_vm4, %v498_v25  ;;  %v1920_v25 = vshrl.u32 %v7776_v16, 16  ;;  %v735_v48 = vpop.permute.xlu2 %734 }
  0x8f   : > { %321 = vst.msk [vmem:[#allocation2 + $0x50] sm:$0xf] %vm316_vm4, %v301_v26  ;;  %v9915_v63 = vld [vmem:[#allocation2 + $0x8] sm:$0xf]  ;;  %v2140_v14 = vor.u32 %v2139_v2, %v2136_v27  ;;  %v1923_v26 = vshll.u32 %v7776_v16, 16  ;;  %v1657_v0 = vrot.slane %v1655_v36, 5 }
  0x90   : > { %2025 = vst.msk [vmem:[#allocation2 + $0x8] sm:$0xf] %vm266_vm3, %v1918_v18  ;;  %v9973_v34 = vrot.slane %v1920_v25, 4  ;;  %v7780_v16 = vld [vmem:[%s9553_s13 + $0xa8] sm:$0xf]  ;;  %v10026_v25 = vrot.slane %v1929_v38, 5 }
  0x91   : > { %v9957_v22 = vrot.slane %v2140_v14, 4  ;;  %757 = vst.msk [vmem:[#allocation2 + $0x20] sm:$0xf] %vm316_vm4, %v735_v48  ;;  %v1925_v52 = vrot.slane %v1923_v26, 5  ;;  %v7461_v14 = vld [vmem:[%s9553_s13 + $0xf0] sm:$0xf] }
  0x92   : > { %533 = vst.msk [vmem:[#allocation2 + $0x44] sm:$0xf] %vm266_vm3, %v7461_v14  ;;  %v1951_v33 = vshll.u32 %v7780_v16, 16 }
  0x93   : > { %2169 = vrot.lane.b32.xlu1 %v2118_v35, %s9463_s14  ;;  %1867 = vrot.lane.b32.xlu0 %v7771_v40, %s9463_s14  ;;  %v2120_v40 = vshrl.u32 %v7800_v31, 16  ;;  %v1552_v35 = vld [vmem:[%s9553_s13 + $0x3c] sm:$0x1]  ;;  %v2146_v28 = vsel %vm9582_vm2, %v9957_v22, %v9945_v15  ;;  %v1926_v27 = vor.u32 %v1925_v52, %v9973_v34 }
  0x94   : > { %v1661_v1 = vshll.u32 %v1552_v35, 16  ;;  %v1953_v34 = vrot.slane %v1951_v33, 5 }
  0x95   : > { %v9933_v8 = vld [vmem:[#allocation2 + $0x54] sm:$0xf]  ;;  %v500_v9 = vpop.permute.xlu1 %499  ;;  %v303_v10 = vpop.permute.xlu0 %302  ;;  %v2122_v53 = vrot.slane %v2120_v40, 4  ;;  %v10024_v23 = vrot.slane %v1926_v27, 4  ;;  %v1957_v40 = vshll.u32 %v7781_v17, 16  ;;  %v7577_v17 = vor.u32 %v9857_v60, %v9800_v24  ;;  %v9068_v60 = vld [vmem:[%s12379_s1 + $0xc8] sm:$0xff] }
  0x96   : > { %1837 = vst.msk [vmem:[#allocation2 + $0x54] sm:$0xf] %vm266_vm3, %v1782_v61  ;;  %v9941_v45 = vld [vmem:[#allocation2 + $0x50] sm:$0xf]  ;;  %v1654_v61 = vrot.slane %v1652_v56, 4  ;;  %v1663_v7 = vrot.slane %v1661_v1, 5 }
  0x97   : > { %1533 = vst.msk [vmem:[#allocation2 + $0x50] sm:$0xf] %vm266_vm3, %v7746_v62  ;;  %v2126_v59 = vor.u32 %v2125_v54, %v2122_v53  ;;  %v1641_v62 = vshll.u32 %v1549_v57, 16  ;;  %v737_v53 = vpop.permute.xlu2 %736  ;;  %v9070_v56 = vld [vmem:[%s12379_s1 + $0xd8] sm:$0xff]  ;;  %v7772_v57 = vld [vmem:[%s9553_s13 + $0x108] sm:$0xf]  ;;  %v1932_v1 = vsel %vm9582_vm2, %v10024_v23, %v10026_v25 }
  0x98   : > { %518 = vst.msk [vmem:[#allocation2 + $0x68] sm:$0xf] %vm316_vm4, %v500_v9  ;;  %v9999_v5 = vld [vmem:[#allocation2 + $0x1c] sm:$0xf0]  ;;  %v10049_v38 = vrot.slane %v1957_v40, 5  ;;  %1427 = vmatpush.bf16.msrb.mxu3 %v9070_v56 }
  0x99   : > { %322 = vst.msk [vmem:[#allocation2 + $0x64] sm:$0xf] %vm316_vm4, %v303_v10  ;;  %v2127_v2 = vrot.slane %v2126_v59, 4  ;;  %v1643_v9 = vrot.slane %v1641_v62, 5  ;;  %v1647_v10 = vshll.u32 %v1550_v3, 16  ;;  %v9069_v59 = vld [vmem:[%s12379_s1 + $0xd0] sm:$0xff] }
  0x9a   : > { %2202 = vst.msk [vmem:[#allocation2 + $0x20] sm:$0xf] %vm266_vm3, %v7807_v58  ;;  %v7806_v58 = vld [vmem:[%s9553_s13 + $0x50] sm:$0xf]  ;;  %v7463_v24 = vld [vmem:[%s9553_s13 + $0x100] sm:$0xf] }
  0x9b   : > { %1675 = vrot.lane.b32.xlu1 %v1636_v20, %s9463_s14  ;;  %1673 = vrot.lane.b32.xlu0 %v1622_v21, %s9463_s14  ;;  %v2132_v15 = vsel %vm9582_vm2, %v2127_v2, %v2131_v32  ;;  %v1644_v20 = vor.u32 %v1643_v9, %v1640_v4  ;;  %v1649_v31 = vrot.slane %v1647_v10, 5  ;;  %758 = vst.msk [vmem:[#allocation2 + $0x34] sm:$0xf] %vm316_vm4, %v737_v53  ;;  %v7462_v4 = vld [vmem:[%s9553_s13 + $0xf8] sm:$0xf]  ;;  %v9067_v40 = vld [vmem:[%s12379_s1 + $0xc0] sm:$0xff] }
  0x9c   : > { %2171 = vrot.lane.b32.xlu2 %v2132_v15, %s9463_s14  ;;  %1428 = vmatpush.bf16.msrb.mxu3 %v9069_v59  ;;  %534 = vst.msk [vmem:[#allocation2 + $0x58] sm:$0xf] %vm266_vm3, %v7462_v4  ;;  %v7485_v53 = vld [vmem:[%s9553_s13 + $0x20] sm:$0xf] }
  0x9d   : > { %v504_v37 = vpop.permute.xlu1 %503  ;;  %v502_v51 = vpop.permute.xlu0 %501  ;;  %v1645_v42 = vrot.slane %v1644_v20, 4  ;;  %535 = vst.msk [vmem:[#allocation2 + $0x6c] sm:$0xf] %vm266_vm3, %v7463_v24 }
  0x9e   : > { %520 = vst.msk [vmem:[#allocation2 + $0x90] sm:$0xf] %vm316_vm4, %v504_v37  ;;  %v7779_v37 = vld [vmem:[%s9553_s13 + $0xa4] sm:$0x1] }
  0x9f   : > { %v7558_v30 = vld [vmem:[#allocation2 + $0x64] sm:$0xf0]  ;;  %519 = vst.msk [vmem:[#allocation2 + $0x7c] sm:$0xf] %vm316_vm4, %v502_v51  ;;  %v1650_v50 = vsel %vm9582_vm2, %v1645_v42, %v1649_v31  ;;  %v1943_v54 = vshll.u32 %v7779_v37, 16  ;;  %v677_v33 = vpop.permute.xlu2 %676 }
  0xa0   : > { %1838 = vst.msk [vmem:[#allocation2 + $0x68] sm:$0xf] %vm266_vm3, %v1796_v47  ;;  %v9035_v55 = vld [vmem:[#allocation2 + $0x60] sm:$0xf0]  ;;  %v7561_v18 = vor.u32 %v9933_v8, %v7558_v30  ;;  %v1658_v8 = vor.u32 %v1657_v0, %v1654_v61  ;;  %v7460_v47 = vld [vmem:[%s9553_s13 + $0xe8] sm:$0xf]  ;;  %1429 = vmatpush.bf16.msrb.mxu3 %v9068_v60 }
  0xa1   : > { %1534 = vst.msk [vmem:[#allocation2 + $0x64] sm:$0xf] %vm266_vm3, %v7747_v49  ;;  %v7557_v11 = vor.u32 %v9035_v55, %v9941_v45  ;;  %v1810_v45 = vsel %vm9582_vm2, %v9935_v12, %v9937_v13  ;;  %v1948_v12 = vshrl.u32 %v7780_v16, 16  ;;  %v9062_v13 = vld [vmem:[%s12379_s1 + $0x98] sm:$0xff]  ;;  %v7778_v49 = vld [vmem:[%s9553_s13 + $0xa0] sm:$0xf] }
  0xa2   : > { %1383 = vmatmul.bf16.vlgmr.msra.gmra.mxu3 %v7561_v18  ;;  %v1659_v6 = vrot.slane %v1658_v8, 4  ;;  %1398 = vmatpush.bf16.msrb.mxu2 %v9062_v13  ;;  %v1934_v51 = vshrl.u32 %v7778_v49, 16  ;;  %v1937_v52 = vshll.u32 %v7778_v49, 16  ;;  %532 = vst.msk [vmem:[#allocation2 + $0x30] sm:$0xf] %vm266_vm3, %v7460_v47  ;;  %v1945_v55 = vrot.slane %v1943_v54, 5 }
  0xa3   : > { %1354 = vmatmul.bf16.vlgmr.msra.gmra.mxu2 %v7557_v11  ;;  %2173 = vrot.lane.b32.xlu1 %v2146_v28, %s9463_s14  ;;  %v1950_v43 = vrot.slane %v1948_v12, 4  ;;  %v7815_v18 = vld [vmem:[%s9553_s13 + $0xc] sm:$0x1]  ;;  %v7808_v11 = vld [vmem:[%s9553_s13 + $0x60] sm:$0xf] }
  0xa4   : > { %1871 = vrot.lane.b32.xlu0 %v7773_v39, %s9463_s14  ;;  %v1664_v46 = vsel %vm9582_vm2, %v1659_v6, %v1663_v7  ;;  %v1936_v32 = vrot.slane %v1934_v51, 4  ;;  %v1939_v36 = vrot.slane %v1937_v52, 5  ;;  %v7814_v39 = vld [vmem:[%s9553_s13 + $0x8] sm:$0xf]  ;;  %1869 = vrot.lane.b32.xlu2 %v7772_v57, %s9463_s14  ;;  %v2235_v3 = vshll.u32 %v7815_v18, 16  ;;  %v9114_v52 = vld [vmem:[%s12379_s1 + $0x78] sm:$0xff] }
  0xa5   : > { %v10022_v21 = vld [vmem:[#allocation2 + $0x8c] sm:$0xf0]  ;;  %v733_v22 = vpop.permute.xlu1 %732  ;;  %v669_v26 = vpop.permute.xlu0 %668  ;;  %v1954_v35 = vor.u32 %v1953_v34, %v1950_v43  ;;  %v2226_v28 = vshrl.u32 %v7814_v39, 16  ;;  %v2229_v0 = vshll.u32 %v7814_v39, 16  ;;  %v9060_v8 = vld [vmem:[%s12379_s1 + $0x88] sm:$0xff]  ;;  %1430 = vmatpush.bf16.msrb.mxu3 %v9067_v40 }
  0xa6   : > { %1840 = vst.msk [vmem:[#allocation2 + $0x90] sm:$0xf] %vm266_vm3, %v1824_v19  ;;  %v10029_v48 = vld [vmem:[#allocation2 + $0x7c] sm:$0xf]  ;;  %v1940_v62 = vor.u32 %v1939_v36, %v1936_v32  ;;  %1399 = vmatpush.bf16.msrb.mxu2 %v9061_v29  ;;  %v8083_v19 = vld [vmem:[%s9553_s13 + $0xe0] sm:$0xf] }
  0xa7   : > { %1839 = vst.msk [vmem:[#allocation2 + $0x7c] sm:$0xf] %vm266_vm3, %v1810_v45  ;;  %v1955_v30 = vrot.slane %v1954_v35, 4  ;;  %v7581_v2 = vor.u32 %v10029_v48, %v10022_v21  ;;  %v2228_v14 = vrot.slane %v2226_v28, 4  ;;  %v2231_v15 = vrot.slane %v2229_v0, 5  ;;  %v9059_v48 = vld [vmem:[%s12379_s1 + $0x80] sm:$0xff] }
  0xa8   : > { %756 = vst.msk [vmem:[#allocation2 + $0xc] sm:$0xf] %vm316_vm4, %v733_v22  ;;  %v1941_v10 = vrot.slane %v1940_v62, 4  ;;  %v2237_v16 = vrot.slane %v2235_v3, 5  ;;  %v7782_v6 = vld [vmem:[%s9553_s13 + $0xb0] sm:$0xf] }
  0xa9   : > { %691 = vst.msk [vmem:[#allocation2 + $0x1c] sm:$0xf] %vm316_vm4, %v669_v26  ;;  %v7783_v7 = vld [vmem:[%s9553_s13 + $0xb4] sm:$0x1]  ;;  %v2232_v12 = vor.u32 %v2231_v15, %v2228_v14  ;;  %v1962_v13 = vshrl.u32 %v7782_v6, 16  ;;  %v1965_v21 = vshll.u32 %v7782_v6, 16  ;;  %v1960_v22 = vsel %vm9582_vm2, %v1955_v30, %v10049_v38 }
  0xaa   : > { %1400 = vmatpush.bf16.msrb.mxu2 %v9060_v8  ;;  %v10087_v20 = vld [vmem:[#allocation2 + $0x34] sm:$0xf]  ;;  %v1946_v23 = vsel %vm9582_vm2, %v1941_v10, %v1945_v55  ;;  %v1971_v43 = vshll.u32 %v7783_v7, 16  ;;  %v7784_v34 = vld [vmem:[%s9553_s13 + $0xb8] sm:$0xf]  ;;  %v9112_v40 = vld [vmem:[%s12379_s1 + $0x68] sm:$0xff] }
  0xab   : > { %1679 = vrot.lane.b32.xlu1 %v1664_v46, %s9463_s14  ;;  %2203 = vst.msk [vmem:[#allocation2 + $0x34] sm:$0xf] %vm266_vm3, %v7808_v11  ;;  %v2233_v25 = vrot.slane %v2232_v12, 4  ;;  %v1964_v26 = vrot.slane %v1962_v13, 4  ;;  %v1967_v31 = vrot.slane %v1965_v21, 5  ;;  %v1976_v35 = vshrl.u32 %v7784_v34, 16 }
  0xac   : > { %1677 = vrot.lane.b32.xlu0 %v1650_v50, %s9463_s14  ;;  %v7785_v49 = vld [vmem:[%s9553_s13 + $0xbc] sm:$0x1]  ;;  %v1979_v37 = vshll.u32 %v7784_v34, 16  ;;  %v1973_v56 = vrot.slane %v1971_v43, 5  ;;  %695 = vst.msk [vmem:[#allocation2 + $0x6c] sm:$0xf] %vm316_vm4, %v677_v33 }
  0xad   : > { %v673_v61 = vpop.permute.xlu1 %672  ;;  %v671_v27 = vpop.permute.xlu0 %670  ;;  %v2238_v46 = vsel %vm9582_vm2, %v2233_v25, %v2237_v16  ;;  %v1968_v47 = vor.u32 %v1967_v31, %v1964_v26  ;;  %v1985_v51 = vshll.u32 %v7785_v49, 16  ;;  %v1978_v57 = vrot.slane %v1976_v35, 4  ;;  %710 = vst.msk [vmem:[#allocation2 + $0x48] sm:$0xf] %vm266_vm3, %v7485_v53  ;;  %v7804_v36 = vld [vmem:[%s9553_s13 + $0x110] sm:$0xf] }
  0xae   : > { %693 = vst.msk [vmem:[#allocation2 + $0x44] sm:$0xf] %vm316_vm4, %v673_v61  ;;  %1401 = vmatpush.bf16.msrb.mxu2 %v9059_v48  ;;  %v7805_v30 = vld [vmem:[%s9553_s13 + $0x114] sm:$0x1]  ;;  %v2148_v39 = vshrl.u32 %v7804_v36, 16  ;;  %v2151_v59 = vshll.u32 %v7804_v36, 16 }
  0xaf   : > { %v10075_v9 = vld [vmem:[#allocation2 + $0xc] sm:$0xf]  ;;  %692 = vst.msk [vmem:[#allocation2 + $0x30] sm:$0xf] %vm316_vm4, %v671_v27  ;;  %v1969_v54 = vrot.slane %v1968_v47, 4  ;;  %v1987_v38 = vrot.slane %v1985_v51, 5 }
  0xb0   : > { %2201 = vst.msk [vmem:[#allocation2 + $0xc] sm:$0xf] %vm266_vm3, %v7806_v58  ;;  %v10080_v45 = vld [vmem:[#allocation2 + $0x18] sm:$0xf0]  ;;  %v1981_v58 = vrot.slane %v1979_v37, 5  ;;  %v2157_v61 = vshll.u32 %v7805_v30, 16  ;;  %v7529_v16 = vor.u32 %v10075_v9, %v9999_v5 }
  0xb1   : > { %2026 = vst.msk [vmem:[#allocation2 + $0x1c] sm:$0xf] %vm266_vm3, %v1932_v1  ;;  %v8107_v62 = vld [vmem:[%s9553_s13 + $0x10] sm:$0xf]  ;;  %v8106_v55 = vld [vmem:[%s9553_s13 + $0x8] sm:$0xf]  ;;  %v1974_v18 = vsel %vm9582_vm2, %v1969_v54, %v1973_v56  ;;  %v7525_v6 = vor.u32 %v10080_v45, %v9915_v63 }
  0xb2   : > { %1388 = vmatmul.bf16.gmra.mxu3 %v7581_v2  ;;  %2966 = vmatpush.bf16.msra.mxu2 %v9114_v52  ;;  %v1982_v29 = vor.u32 %v1981_v58, %v1978_v57  ;;  %v2150_v0 = vrot.slane %v2148_v39, 4  ;;  %v2153_v1 = vrot.slane %v2151_v59, 5  ;;  %v7486_v11 = vld [vmem:[%s9553_s13 + $0x28] sm:$0xf]  ;;  %v741_v2 = vpop.permute.xlu2 %740  ;;  %v9113_v3 = vld [vmem:[%s12379_s1 + $0x70] sm:$0xff]  ;;  %v2159_v14 = vrot.slane %v2157_v61, 5 }
  0xb3   : > { %1359 = vmatmul.bf16.gmra.mxu2 %v7577_v17  ;;  %2337 = vrot.lane.b32.xlu1 %v2238_v46, %s9463_s14  ;;  %v7809_v27 = vld [vmem:[%s9553_s13 + $0x68] sm:$0xf]  ;;  %711 = vst.msk [vmem:[#allocation2 + $0x5c] sm:$0xf] %vm266_vm3, %v7486_v11  ;;  %v258_v12 = vld [vmem:[%s9553_s13] sm:$0xf] }
  0xb4   : > { %3322 = vrot.lane.b32.xlu0 %v8083_v19, %s9463_s14  ;;  %v1983_v28 = vrot.slane %v1982_v29, 4  ;;  %v2154_v10 = vor.u32 %v2153_v1, %v2150_v0  ;;  %760 = vst.msk [vmem:[#allocation2 + $0x5c] sm:$0xf] %vm316_vm4, %v741_v2  ;;  %v10147_v19 = vld [vmem:[#allocation2 + $0x68] sm:$0xf0] }
  0xb5   : > { %v10105_v42 = vld [vmem:[#allocation2 + $0x40] sm:$0xf0]  ;;  %v675_v50 = vpop.permute.xlu1 %674  ;;  %v739_v32 = vpop.permute.xlu0 %738  ;;  %v259_v15 = vld [vmem:[%s9553_s13 + $0x8] sm:$0xf]  ;;  %v7810_v9 = vld [vmem:[%s9553_s13 + $0x70] sm:$0xf] }
  0xb6   : > { %2028 = vst.msk [vmem:[#allocation2 + $0x44] sm:$0xf] %vm266_vm3, %v1960_v22  ;;  %v10112_v44 = vld [vmem:[#allocation2 + $0x30] sm:$0xf]  ;;  %v1988_v8 = vsel %vm9582_vm2, %v1983_v28, %v1987_v38  ;;  %2967 = vmatpush.bf16.msra.mxu2 %v9113_v3  ;;  %v2155_v17 = vrot.slane %v2154_v10, 4 }
  0xb7   : > { %2027 = vst.msk [vmem:[#allocation2 + $0x30] sm:$0xf] %vm266_vm3, %v1946_v23  ;;  %v7818_v21 = vld [vmem:[%s9553_s13 + $0x18] sm:$0xf]  ;;  %v7819_v63 = vld [vmem:[%s9553_s13 + $0x1c] sm:$0x1] }
  0xb8   : > { %694 = vst.msk [vmem:[#allocation2 + $0x58] sm:$0xf] %vm316_vm4, %v675_v50  ;;  %v2160_v5 = vsel %vm9582_vm2, %v2155_v17, %v2159_v14  ;;  %v2254_v45 = vshrl.u32 %v7818_v21, 16  ;;  %v2257_v22 = vshll.u32 %v7818_v21, 16  ;;  %v2263_v60 = vshll.u32 %v7819_v63, 16 }
  0xb9   : > { %759 = vst.msk [vmem:[#allocation2 + $0x48] sm:$0xf] %vm316_vm4, %v739_v32  ;;  %2175 = vrot.lane.b32.xlu2 %v2160_v5, %s9463_s14  ;;  %v8085_v23 = vld [vmem:[%s9553_s13 + $0xf0] sm:$0xf]  ;;  %v8082_v48 = vld [vmem:[%s9553_s13 + $0xd8] sm:$0xf] }
  0xba   : > { %2030 = vst.msk [vmem:[#allocation2 + $0x6c] sm:$0xf] %vm266_vm3, %v1988_v8  ;;  %v2256_v26 = vrot.slane %v2254_v45, 4  ;;  %v2259_v31 = vrot.slane %v2257_v22, 5  ;;  %v7743_v33 = vld [vmem:[%s9553_s13 + $0x50] sm:$0xf]  ;;  %2968 = vmatpush.bf16.msra.mxu2 %v9112_v40  ;;  %v492_v0 = vpop.permute.xlu2 %491 }
  0xbb   : > { %3514 = vrot.lane.b32.xlu1 %v8107_v62, %s9463_s14  ;;  %268 = vst.msk [vmem:[#allocation2 + $0x14] sm:$0xf] %vm266_vm3, %v259_v15  ;;  %v10169_v25 = vld [vmem:[#allocation2 + $0x5c] sm:$0xf]  ;;  %v2265_v43 = vrot.slane %v2263_v60, 5 }
  0xbc   : > { %3512 = vrot.lane.b32.xlu0 %v8106_v55, %s9463_s14  ;;  %267 = vst.msk [vmem:[#allocation2] sm:$0xf] %vm266_vm3, %v258_v12  ;;  %v327_v34 = vld [vmem:[%s9553_s13 + $0x8] sm:$0xf]  ;;  %v2260_v46 = vor.u32 %v2259_v31, %v2256_v26  ;;  %v328_v47 = vld [vmem:[%s9553_s13 + $0xc] sm:$0x1] }
  0xbd   : > { %v295_v13 = vpop.permute.xlu1 %294  ;;  %v293_v24 = vpop.permute.xlu0 %292  ;;  %2205 = vst.msk [vmem:[#allocation2 + $0x5c] sm:$0xf] %vm266_vm3, %v7810_v9  ;;  %v359_v49 = vshrl.u32 %v327_v34, 16  ;;  %v362_v50 = vshll.u32 %v327_v34, 16  ;;  %v7752_v35 = vld [vmem:[%s9553_s13 + $0x50] sm:$0xf] }
  0xbe   : > { %318 = vst.msk [vmem:[#allocation2 + $0x14] sm:$0xf] %vm316_vm4, %v295_v13  ;;  %v7742_v37 = vld [vmem:[%s9553_s13 + $0x48] sm:$0xf]  ;;  %v368_v51 = vshll.u32 %v328_v47, 16  ;;  %v1728_v53 = vshrl.u32 %v7752_v35, 16 }
  0xbf   : > { %v10140_v4 = vld [vmem:[#allocation2 + $0x58] sm:$0xf]  ;;  %317 = vst.msk [vmem:[#allocation2] sm:$0xf] %vm316_vm4, %v293_v24  ;;  %v7753_v52 = vld [vmem:[%s9553_s13 + $0x54] sm:$0x1] }
  0xc0   : > { %2029 = vst.msk [vmem:[#allocation2 + $0x58] sm:$0xf] %vm266_vm3, %v1974_v18  ;;  %v10155_v7 = vld [vmem:[#allocation2 + $0x44] sm:$0xf0]  ;;  %v1731_v54 = vshll.u32 %v7752_v35, 16  ;;  %v2261_v56 = vrot.slane %v2260_v46, 4 }
  0xc1   : > { %2204 = vst.msk [vmem:[#allocation2 + $0x48] sm:$0xf] %vm266_vm3, %v7809_v27  ;;  %v361_v57 = vrot.slane %v359_v49, 4  ;;  %v364_v58 = vrot.slane %v362_v50, 5  ;;  %v325_v38 = vld [vmem:[%s9553_s13] sm:$0xf]  ;;  %3320 = vrot.lane.b32.xlu2 %v8082_v48, %s9463_s14  ;;  %v7549_v12 = vor.u32 %v10087_v20, %v10155_v7  ;;  %v7545_v7 = vor.u32 %v10105_v42, %v10112_v44 }
  0xc2   : > { %1431 = vmatmul.bf16.vlgmr.msrb.gmra.mxu3 %v7529_v16  ;;  %v1730_v36 = vrot.slane %v1728_v53, 4  ;;  %v1733_v29 = vrot.slane %v1731_v54, 5  ;;  %v1737_v30 = vshll.u32 %v7753_v52, 16  ;;  %v345_v39 = vshrl.u32 %v325_v38, 16  ;;  %v326_v55 = vld [vmem:[%s9553_s13 + $0x4] sm:$0x1] }
  0xc3   : > { %1402 = vmatmul.bf16.vlgmr.msrb.gmra.mxu2 %v7525_v6  ;;  %v2266_v59 = vsel %vm9582_vm2, %v2261_v56, %v2265_v43  ;;  %v365_v61 = vor.u32 %v364_v58, %v361_v57  ;;  %v370_v62 = vrot.slane %v368_v51, 5  ;;  %v348_v18 = vshll.u32 %v325_v38, 16  ;;  %v7750_v27 = vld [vmem:[%s9553_s13 + $0x48] sm:$0xf]  ;;  %v7751_v10 = vld [vmem:[%s9553_s13 + $0x4c] sm:$0x1]  ;;  %v297_v57 = vpop.permute.xlu2 %296 }
  0xc4   : > { %3326 = vrot.lane.b32.xlu0 %v8085_v23, %s9463_s14  ;;  %2341 = vrot.lane.b32.xlu1 %v2266_v59, %s9463_s14  ;;  %v347_v1 = vrot.slane %v345_v39, 4  ;;  %v354_v11 = vshll.u32 %v326_v55, 16  ;;  %v1734_v3 = vor.u32 %v1733_v29, %v1730_v36  ;;  %v10194_v15 = vrot.slane %v1737_v30, 5  ;;  %v7487_v6 = vld [vmem:[%s9553_s13 + $0x30] sm:$0xf]  ;;  %v9106_v45 = vld [vmem:[%s12379_s1 + $0x38] sm:$0xff] }
  0xc5   : > { %v9025_v32 = vld [vmem:[#allocation2 + $0x10] sm:$0xf0]  ;;  %v366_v2 = vrot.slane %v365_v61, 4  ;;  %v350_v8 = vrot.slane %v348_v18, 5  ;;  %v1714_v16 = vshrl.u32 %v7750_v27, 16  ;;  %v1717_v17 = vshll.u32 %v7750_v27, 16  ;;  %v490_v63 = vpop.permute.xlu1 %489  ;;  %v743_v26 = vpop.permute.xlu0 %742  ;;  %2937 = vmatpush.bf16.msrb.mxu1 %v9106_v45 }
  0xc6   : > { %1530 = vst.msk [vmem:[#allocation2 + $0x14] sm:$0xf] %vm266_vm3, %v7743_v33  ;;  %v7516_v28 = vld [vmem:[#allocation2] sm:$0xf]  ;;  %v356_v13 = vrot.slane %v354_v11, 5  ;;  %v1723_v21 = vshll.u32 %v7751_v10, 16 }
  0xc7   : > { %1529 = vst.msk [vmem:[#allocation2] sm:$0xf] %vm266_vm3, %v7742_v37  ;;  %v7517_v14 = vor.u32 %v9025_v32, %v7516_v28  ;;  %v371_v5 = vsel %vm9582_vm2, %v366_v2, %v370_v62  ;;  %v351_v9 = vor.u32 %v350_v8, %v347_v1  ;;  %v1716_v22 = vrot.slane %v1714_v16, 4  ;;  %v7816_v20 = vld [vmem:[%s9553_s13 + $0x10] sm:$0xf]  ;;  %v9111_v42 = vld [vmem:[%s12379_s1 + $0x60] sm:$0xff] }
  0xc8   : > { %712 = vst.msk [vmem:[#allocation2 + $0x70] sm:$0xf] %vm266_vm3, %v7487_v6  ;;  %v1719_v24 = vrot.slane %v1717_v17, 5  ;;  %v1735_v60 = vrot.slane %v1734_v3, 4  ;;  %v7817_v31 = vld [vmem:[%s9553_s13 + $0x14] sm:$0x1]  ;;  %2969 = vmatpush.bf16.msra.mxu2 %v9111_v42 }
  0xc9   : > { %1344 = vmatmul.bf16.vlgmr.msra.gmra.mxu0 %v7517_v14  ;;  %465 = vst.msk [vmem:[#allocation2 + $0x18] sm:$0xf] %vm266_vm3, %v371_v5  ;;  %v352_v23 = vrot.slane %v351_v9, 4  ;;  %v2240_v48 = vshrl.u32 %v7816_v20, 16  ;;  %v2243_v43 = vshll.u32 %v7816_v20, 16  ;;  %v2249_v34 = vshll.u32 %v7817_v31, 16 }
  0xca   : > { %514 = vst.msk [vmem:[#allocation2 + $0x18] sm:$0xf] %vm316_vm4, %v492_v0  ;;  %v1720_v33 = vor.u32 %v1719_v24, %v1716_v22  ;;  %v1725_v40 = vrot.slane %v1723_v21, 5  ;;  %v8109_v46 = vld [vmem:[%s9553_s13 + $0x20] sm:$0xf]  ;;  %v1740_v54 = vsel %vm9582_vm2, %v1735_v60, %v10194_v15  ;;  %v9105_v30 = vld [vmem:[%s12379_s1 + $0x30] sm:$0xff]  ;;  %v7565_v22 = vor.u32 %v10147_v19, %v10140_v4 }
  0xcb   : > { %761 = vst.msk [vmem:[#allocation2 + $0x70] sm:$0xf] %vm316_vm4, %v743_v26  ;;  %v357_v44 = vsel %vm9582_vm2, %v352_v23, %v356_v13  ;;  %v8108_v47 = vld [vmem:[%s9553_s13 + $0x18] sm:$0xf]  ;;  %v2242_v50 = vrot.slane %v2240_v48, 4  ;;  %v2245_v35 = vrot.slane %v2243_v43, 5  ;;  %2938 = vmatpush.bf16.msrb.mxu1 %v9105_v30  ;;  %v747_v48 = vpop.permute.xlu2 %746 }
  0xcc   : > { %464 = vst.msk [vmem:[#allocation2 + $0x4] sm:$0xf] %vm266_vm3, %v357_v44  ;;  %v1721_v49 = vrot.slane %v1720_v33, 4  ;;  %v2251_v37 = vrot.slane %v2249_v34, 5  ;;  %3518 = vrot.lane.b32.xlu1 %v8109_v46, %s9463_s14  ;;  %3516 = vrot.lane.b32.xlu0 %v8108_v47, %s9463_s14  ;;  %v7811_v51 = vld [vmem:[%s9553_s13 + $0x78] sm:$0xf] }
  0xcd   : > { %513 = vst.msk [vmem:[#allocation2 + $0x4] sm:$0xf] %vm316_vm4, %v490_v63  ;;  %v260_v52 = vld [vmem:[%s9553_s13 + $0x10] sm:$0xf]  ;;  %v2246_v56 = vor.u32 %v2245_v35, %v2242_v50  ;;  %v7788_v58 = vld [vmem:[%s9553_s13 + $0xc8] sm:$0xf]  ;;  %v681_v18 = vpop.permute.xlu1 %680  ;;  %v679_v6 = vpop.permute.xlu0 %678 }
  0xce   : > { %v7465_v53 = vld [vmem:[%s9553_s13 + $0x110] sm:$0xf]  ;;  %269 = vst.msk [vmem:[#allocation2 + $0x28] sm:$0xf] %vm266_vm3, %v260_v52  ;;  %v7789_v38 = vld [vmem:[%s9553_s13 + $0xcc] sm:$0x1]  ;;  %v1726_v28 = vsel %vm9582_vm2, %v1721_v49, %v1725_v40 }
  0xcf   : > { %319 = vst.msk [vmem:[#allocation2 + $0x28] sm:$0xf] %vm316_vm4, %v297_v57  ;;  %v2004_v32 = vshrl.u32 %v7788_v58, 16  ;;  %v2007_v36 = vshll.u32 %v7788_v58, 16  ;;  %v2013_v29 = vshll.u32 %v7789_v38, 16  ;;  %v2247_v59 = vrot.slane %v2246_v56, 4 }
  0xd0   : > { %537 = vst.msk [vmem:[#allocation2 + $0x94] sm:$0xf] %vm266_vm3, %v7465_v53  ;;  %v7744_v1 = vld [vmem:[%s9553_s13 + $0x58] sm:$0xf]  ;;  %v7464_v27 = vld [vmem:[%s9553_s13 + $0x108] sm:$0xf] }
  0xd1   : > { %v7518_v39 = vld [vmem:[#allocation2 + $0x14] sm:$0xf0]  ;;  %v2006_v62 = vrot.slane %v2004_v32, 4  ;;  %v2009_v55 = vrot.slane %v2007_v36, 5  ;;  %v2252_v0 = vsel %vm9582_vm2, %v2247_v59, %v2251_v37  ;;  %v2015_v11 = vrot.slane %v2013_v29, 5  ;;  %v9104_v4 = vld [vmem:[%s12379_s1 + $0x28] sm:$0xff] }
  0xd2   : > { %1436 = vmatmul.bf16.gmra.mxu3 %v7549_v12  ;;  %1834 = vst.msk [vmem:[#allocation2 + $0x18] sm:$0xf] %vm266_vm3, %v1740_v54  ;;  %v7566_v61 = vld [vmem:[#allocation2 + $0x6c] sm:$0xf0]  ;;  %2339 = vrot.lane.b32.xlu2 %v2252_v0, %s9463_s14  ;;  %v7786_v3 = vld [vmem:[%s9553_s13 + $0xc0] sm:$0xf] }
  0xd3   : > { %1407 = vmatmul.bf16.gmra.mxu2 %v7545_v7  ;;  %2206 = vst.msk [vmem:[#allocation2 + $0x70] sm:$0xf] %vm266_vm3, %v7811_v51  ;;  %v2010_v2 = vor.u32 %v2009_v55, %v2006_v62  ;;  %v7787_v8 = vld [vmem:[%s9553_s13 + $0xc4] sm:$0x1]  ;;  %v1990_v14 = vshrl.u32 %v7786_v3, 16  ;;  %v1993_v15 = vshll.u32 %v7786_v3, 16  ;;  %v7569_v24 = vor.u32 %v10169_v25, %v7566_v61  ;;  %2939 = vmatpush.bf16.msrb.mxu1 %v9104_v4 }
  0xd4   : > { %697 = vst.msk [vmem:[#allocation2 + $0x94] sm:$0xf] %vm316_vm4, %v681_v18  ;;  %v9023_v10 = vld [vmem:[#allocation2 + $0x4] sm:$0xf]  ;;  %v1999_v17 = vshll.u32 %v7787_v8, 16  ;;  %v9078_v20 = vld [vmem:[%s12379_s1 + $0x118] sm:$0xff] }
  0xd5   : > { %536 = vst.msk [vmem:[#allocation2 + $0x80] sm:$0xf] %vm266_vm3, %v7464_v27  ;;  %v2011_v16 = vrot.slane %v2010_v2, 4  ;;  %v7521_v12 = vor.u32 %v9023_v10, %v7518_v39  ;;  %v1992_v9 = vrot.slane %v1990_v14, 4  ;;  %v1995_v13 = vrot.slane %v1993_v15, 5  ;;  %1456 = vmatpush.bf16.msrb.mxu0 %v9078_v20  ;;  %v9122_v40 = vld [vmem:[%s12379_s1 + $0xb8] sm:$0xff]  ;;  %v745_v46 = vpop.permute.xlu1 %744  ;;  %v299_v57 = vpop.permute.xlu0 %298 }
  0xd6   : > { %1833 = vst.msk [vmem:[#allocation2 + $0x4] sm:$0xf] %vm266_vm3, %v1726_v28  ;;  %v10251_v5 = vld [vmem:[#allocation2 + $0x28] sm:$0xf]  ;;  %v2001_v63 = vrot.slane %v1999_v17, 5  ;;  %v9077_v47 = vld [vmem:[%s12379_s1 + $0x110] sm:$0xff]  ;;  %2995 = vmatpush.bf16.msra.mxu3 %v9122_v40  ;;  %v1858_v28 = vpop.permute.xlu2 %1857 }
  0xd7   : > { %696 = vst.msk [vmem:[#allocation2 + $0x80] sm:$0xf] %vm316_vm4, %v679_v6  ;;  %v8084_v21 = vld [vmem:[%s9553_s13 + $0xe8] sm:$0xf]  ;;  %1373 = vmatmul.bf16.vlgmr.msra.gmra.mxu1 %v7521_v12  ;;  %v2016_v7 = vsel %vm9582_vm2, %v2011_v16, %v2015_v11  ;;  %v1996_v60 = vor.u32 %v1995_v13, %v1992_v9  ;;  %v7823_v23 = vld [vmem:[%s9553_s13 + $0x2c] sm:$0x1] }
  0xd8   : > { %1531 = vst.msk [vmem:[#allocation2 + $0x28] sm:$0xf] %vm266_vm3, %v7744_v1  ;;  %v7822_v45 = vld [vmem:[%s9553_s13 + $0x28] sm:$0xf]  ;;  %v8087_v33 = vld [vmem:[%s9553_s13 + $0x100] sm:$0xf] }
  0xd9   : > { %v2282_v26 = vshrl.u32 %v7822_v45, 16  ;;  %v2285_v31 = vshll.u32 %v7822_v45, 16  ;;  %v2291_v43 = vshll.u32 %v7823_v23, 16  ;;  %3330 = vrot.lane.b32.xlu0 %v8087_v33, %s9463_s14  ;;  %v7489_v34 = vld [vmem:[%s9553_s13 + $0x40] sm:$0xf]  ;;  %v1997_v25 = vrot.slane %v1996_v60, 4  ;;  %1457 = vmatpush.bf16.msrb.mxu0 %v9077_v47 }
  0xda   : > { %3324 = vrot.lane.b32.xlu2 %v8084_v21, %s9463_s14  ;;  %714 = vst.msk [vmem:[#allocation2 + $0x98] sm:$0xf] %vm266_vm3, %v7489_v34  ;;  %v7488_v37 = vld [vmem:[%s9553_s13 + $0x38] sm:$0xf]  ;;  %v7820_v54 = vld [vmem:[%s9553_s13 + $0x20] sm:$0xf] }
  0xdb   : > { %v10272_v19 = vld [vmem:[#allocation2 + $0x90] sm:$0xf0]  ;;  %v2284_v42 = vrot.slane %v2282_v26, 4  ;;  %v2287_v44 = vrot.slane %v2285_v31, 5  ;;  %v2002_v49 = vsel %vm9582_vm2, %v1997_v25, %v2001_v63  ;;  %v2293_v35 = vrot.slane %v2291_v43, 5  ;;  %v9110_v56 = vld [vmem:[%s12379_s1 + $0x58] sm:$0xff] }
  0xdc   : > { %2032 = vst.msk [vmem:[#allocation2 + $0x94] sm:$0xf] %vm266_vm3, %v2016_v7  ;;  %v261_v52 = vld [vmem:[%s9553_s13 + $0x18] sm:$0xf]  ;;  %v7821_v58 = vld [vmem:[%s9553_s13 + $0x24] sm:$0x1]  ;;  %2970 = vmatpush.bf16.msra.mxu2 %v9110_v56 }
  0xdd   : > { %v2288_v50 = vor.u32 %v2287_v44, %v2284_v42  ;;  %763 = vst.msk [vmem:[#allocation2 + $0x98] sm:$0xf] %vm316_vm4, %v747_v48  ;;  %v2268_v38 = vshrl.u32 %v7820_v54, 16  ;;  %v2271_v32 = vshll.u32 %v7820_v54, 16  ;;  %v7813_v29 = vld [vmem:[%s9553_s13 + $0x88] sm:$0xf]  ;;  %v10323_v21 = vpop.permute.xlu1 %495  ;;  %v10336_v40 = vpop.permute.xlu0 %493 }
  0xde   : > { %v10286_v51 = vld [vmem:[#allocation2 + $0x80] sm:$0xf]  ;;  %713 = vst.msk [vmem:[#allocation2 + $0x84] sm:$0xf] %vm266_vm3, %v7488_v37  ;;  %v2277_v30 = vshll.u32 %v7821_v58, 16  ;;  %v9121_v0 = vld [vmem:[%s12379_s1 + $0xb0] sm:$0xff] }
  0xdf   : > { %2031 = vst.msk [vmem:[#allocation2 + $0x80] sm:$0xf] %vm266_vm3, %v2002_v49  ;;  %v2289_v53 = vrot.slane %v2288_v50, 4  ;;  %v9103_v39 = vld [vmem:[%s12379_s1 + $0x20] sm:$0xff]  ;;  %v2270_v59 = vrot.slane %v2268_v38, 4  ;;  %v2273_v61 = vrot.slane %v2271_v32, 5  ;;  %2996 = vmatpush.bf16.msra.mxu3 %v9121_v0  ;;  %v7585_v20 = vor.u32 %v10272_v19, %v10286_v51 }
  0xe0   : > { %762 = vst.msk [vmem:[#allocation2 + $0x84] sm:$0xf] %vm316_vm4, %v745_v46  ;;  %v8110_v62 = vld [vmem:[%s9553_s13 + $0x28] sm:$0xf]  ;;  %v2279_v55 = vrot.slane %v2277_v30, 5  ;;  %2940 = vmatpush.bf16.msrb.mxu1 %v9103_v39  ;;  %v9109_v16 = vld [vmem:[%s12379_s1 + $0x50] sm:$0xff] }
  0xe1   : > { %v2294_v36 = vsel %vm9582_vm2, %v2289_v53, %v2293_v35  ;;  %270 = vst.msk [vmem:[#allocation2 + $0x3c] sm:$0xf] %vm266_vm3, %v261_v52  ;;  %3520 = vrot.lane.b32.xlu0 %v8110_v62, %s9463_s14  ;;  %v8090_v18 = vld [vmem:[%s9553_s13 + $0x90] sm:$0xf]  ;;  %v7812_v1 = vld [vmem:[%s9553_s13 + $0x80] sm:$0xf]  ;;  %v2274_v11 = vor.u32 %v2273_v61, %v2270_v59  ;;  %2971 = vmatpush.bf16.msra.mxu2 %v9109_v16 }
  0xe2   : > { %1441 = vmatmul.bf16.gmra.mxu3 %v7569_v24  ;;  %2345 = vrot.lane.b32.xlu1 %v2294_v36, %s9463_s14  ;;  %320 = vst.msk [vmem:[#allocation2 + $0x3c] sm:$0xf] %vm316_vm4, %v299_v57  ;;  %v8091_v27 = vld [vmem:[%s9553_s13 + $0x94] sm:$0x1]  ;;  %v3369_v2 = vshrl.u32 %v8090_v18, 16  ;;  %v3372_v3 = vshll.u32 %v8090_v18, 16 }
  0xe3   : > { %1412 = vmatmul.bf16.gmra.mxu2 %v7565_v22  ;;  %1881 = vst.msk [vmem:[#allocation2 + $0x4] sm:$0xf] %vm316_vm4, %v1858_v28  ;;  %v8111_v10 = vld [vmem:[%s9553_s13 + $0x30] sm:$0xf]  ;;  %v3378_v14 = vshll.u32 %v8091_v27, 16  ;;  %v2275_v6 = vrot.slane %v2274_v11, 4 }
  0xe4   : > { %v7586_v8 = vld [vmem:[#allocation2 + $0x94] sm:$0xf0]  ;;  %v7745_v17 = vld [vmem:[%s9553_s13 + $0x60] sm:$0xf]  ;;  %v3371_v12 = vrot.slane %v3369_v2, 4  ;;  %v3374_v9 = vrot.slane %v3372_v3, 5 }
  0xe5   : > { %v331_v15 = vld [vmem:[%s9553_s13 + $0x18] sm:$0xf]  ;;  %2208 = vst.msk [vmem:[#allocation2 + $0x98] sm:$0xf] %vm266_vm3, %v7813_v29  ;;  %v3380_v63 = vrot.slane %v3378_v14, 5  ;;  %v2280_v60 = vsel %vm9582_vm2, %v2275_v6, %v2279_v55  ;;  %v9076_v56 = vld [vmem:[%s12379_s1 + $0x108] sm:$0xff]  ;;  %v2162_v2 = vpop.permute.xlu1 %2161 }
  0xe6   : > { %v387_v13 = vshrl.u32 %v331_v15, 16  ;;  %v332_v45 = vld [vmem:[%s9553_s13 + $0x1c] sm:$0x1]  ;;  %v390_v22 = vshll.u32 %v331_v15, 16  ;;  %v7756_v24 = vld [vmem:[%s9553_s13 + $0x60] sm:$0xf]  ;;  %v3375_v23 = vor.u32 %v3374_v9, %v3371_v12  ;;  %2343 = vrot.lane.b32.xlu2 %v2280_v60, %s9463_s14  ;;  %1458 = vmatpush.bf16.msrb.mxu0 %v9076_v56  ;;  %v2164_v12 = vpop.permute.xlu2 %2163 }
  0xe7   : > { %v9039_v7 = vld [vmem:[#allocation2 + $0x84] sm:$0xf]  ;;  %v396_v31 = vshll.u32 %v332_v45, 16  ;;  %v1756_v43 = vshrl.u32 %v7756_v24, 16  ;;  %v1759_v34 = vshll.u32 %v7756_v24, 16  ;;  %v9102_v28 = vld [vmem:[%s12379_s1 + $0x18] sm:$0xff] }
  0xe8   : > { %v389_v26 = vrot.slane %v387_v13, 4  ;;  %v7757_v33 = vld [vmem:[%s9553_s13 + $0x64] sm:$0x1]  ;;  %2207 = vst.msk [vmem:[#allocation2 + $0x84] sm:$0xf] %vm266_vm3, %v7812_v1  ;;  %v392_v48 = vrot.slane %v390_v22, 5  ;;  %v7589_v46 = vor.u32 %v9039_v7, %v7586_v8  ;;  %2941 = vmatpush.bf16.msrb.mxu1 %v9102_v28  ;;  %v1860_v7 = vpop.permute.xlu0 %1859 }
  0xe9   : > { %v1765_v4 = vshll.u32 %v7757_v33, 16  ;;  %v9030_v25 = vld [vmem:[#allocation2 + $0x38] sm:$0xf0]  ;;  %v3376_v19 = vrot.slane %v3375_v23, 4  ;;  %v398_v42 = vrot.slane %v396_v31, 5  ;;  %v1758_v50 = vrot.slane %v1756_v43, 4 }
  0xea   : > { %3522 = vrot.lane.b32.xlu1 %v8111_v10, %s9463_s14  ;;  %v329_v44 = vld [vmem:[%s9553_s13 + $0x10] sm:$0xf]  ;;  %1532 = vst.msk [vmem:[#allocation2 + $0x3c] sm:$0xf] %vm266_vm3, %v7745_v17  ;;  %v10339_v47 = vld [vmem:[#allocation2 + $0x4] sm:$0xf]  ;;  %v393_v49 = vor.u32 %v392_v48, %v389_v26  ;;  %v7537_v37 = vor.u32 %v9030_v25, %v10251_v5 }
  0xeb   : > { %v1761_v35 = vrot.slane %v1759_v34, 5  ;;  %v3381_v51 = vsel %vm9582_vm2, %v3376_v19, %v3380_v63  ;;  %v330_v52 = vld [vmem:[%s9553_s13 + $0x14] sm:$0x1]  ;;  %v373_v53 = vshrl.u32 %v329_v44, 16  ;;  %v376_v54 = vshll.u32 %v329_v44, 16  ;;  %v9120_v9 = vld [vmem:[%s12379_s1 + $0xa8] sm:$0xff] }
  0xec   : > { %3488 = vst.msk [vmem:[#allocation2 + $0x4] sm:$0xf] %vm266_vm3, %v3381_v51  ;;  %v394_v57 = vrot.slane %v393_v49, 4  ;;  %v382_v38 = vshll.u32 %v330_v52, 16  ;;  %v7754_v5 = vld [vmem:[%s9553_s13 + $0x58] sm:$0xf]  ;;  %1349 = vmatmul.bf16.gmra.mxu0 %v7537_v37  ;;  %2997 = vmatpush.bf16.msra.mxu3 %v9120_v9 }
  0xed   : > { %v1762_v58 = vor.u32 %v1761_v35, %v1758_v50  ;;  %v375_v32 = vrot.slane %v373_v53, 4  ;;  %v378_v36 = vrot.slane %v376_v54, 5  ;;  %v7755_v29 = vld [vmem:[%s9553_s13 + $0x5c] sm:$0x1]  ;;  %v1742_v30 = vshrl.u32 %v7754_v5, 16  ;;  %v9101_v60 = vld [vmem:[%s12379_s1 + $0x10] sm:$0xff] }
  0xee   : > { %v1745_v39 = vshll.u32 %v7754_v5, 16  ;;  %v399_v59 = vsel %vm9582_vm2, %v394_v57, %v398_v42  ;;  %v1767_v61 = vrot.slane %v1765_v4, 5  ;;  %v384_v62 = vrot.slane %v382_v38, 5  ;;  %v8086_v18 = vld [vmem:[%s9553_s13 + $0xf8] sm:$0xf]  ;;  %2942 = vmatpush.bf16.msrb.mxu1 %v9101_v60  ;;  %v9119_v51 = vld [vmem:[%s12379_s1 + $0xa0] sm:$0xff]  ;;  %v1668_v57 = vpop.permute.xlu1 %1667 }
  0xef   : > { %v1751_v55 = vshll.u32 %v7755_v29, 16  ;;  %467 = vst.msk [vmem:[#allocation2 + $0x40] sm:$0xf] %vm266_vm3, %v399_v59  ;;  %v379_v0 = vor.u32 %v378_v36, %v375_v32  ;;  %v1744_v1 = vrot.slane %v1742_v30, 4  ;;  %v7826_v27 = vld [vmem:[%s9553_s13 + $0x38] sm:$0xf]  ;;  %3328 = vrot.lane.b32.xlu2 %v8086_v18, %s9463_s14 }
  0xf0   : > { %v1747_v11 = vrot.slane %v1745_v39, 5  ;;  %v1763_v3 = vrot.slane %v1762_v58, 4  ;;  %516 = vst.msk [vmem:[#allocation2 + $0x40] sm:$0xf] %vm316_vm4, %v10323_v21  ;;  %v7827_v8 = vld [vmem:[%s9553_s13 + $0x3c] sm:$0x1]  ;;  %2998 = vmatpush.bf16.msra.mxu3 %v9119_v51 }
  0xf1   : > { %v2310_v10 = vshrl.u32 %v7826_v27, 16  ;;  %v380_v14 = vrot.slane %v379_v0, 4  ;;  %v2313_v16 = vshll.u32 %v7826_v27, 16  ;;  %v2319_v17 = vshll.u32 %v7827_v8, 16  ;;  %v8089_v6 = vld [vmem:[%s9553_s13 + $0x110] sm:$0xf]  ;;  %v1666_v0 = vpop.permute.xlu0 %1665  ;;  %v1862_v27 = vpop.permute.xlu2 %1861 }
  0xf2   : > { %1446 = vmatmul.bf16.gmra.mxu3 %v7589_v46  ;;  %v1748_v15 = vor.u32 %v1747_v11, %v1744_v1  ;;  %v1753_v13 = vrot.slane %v1751_v55, 5  ;;  %3334 = vrot.lane.b32.xlu0 %v8089_v6, %s9463_s14  ;;  %2186 = vst.msk [vmem:[#allocation2 + $0x1c] sm:$0xf] %vm316_vm4, %v2164_v12  ;;  %v9075_v21 = vld [vmem:[%s12379_s1 + $0x100] sm:$0xff]  ;;  %v8092_v23 = vld [vmem:[%s9553_s13 + $0x98] sm:$0xf]  ;;  %v1768_v31 = vsel %vm9582_vm2, %v1763_v3, %v1767_v61 }
  0xf3   : > { %1417 = vmatmul.bf16.gmra.mxu2 %v7585_v20  ;;  %v2312_v63 = vrot.slane %v2310_v10, 4  ;;  %v385_v45 = vsel %vm9582_vm2, %v380_v14, %v384_v62  ;;  %v2315_v24 = vrot.slane %v2313_v16, 5  ;;  %v2321_v20 = vrot.slane %v2319_v17, 5  ;;  %v8093_v26 = vld [vmem:[%s9553_s13 + $0x9c] sm:$0x1]  ;;  %1459 = vmatpush.bf16.msrb.mxu0 %v9075_v21  ;;  %v9108_v32 = vld [vmem:[%s12379_s1 + $0x48] sm:$0xff] }
  0xf4   : > { %v1749_v22 = vrot.slane %v1748_v15, 4  ;;  %466 = vst.msk [vmem:[#allocation2 + $0x2c] sm:$0xf] %vm266_vm3, %v385_v45  ;;  %v8115_v48 = vld [vmem:[%s9553_s13 + $0x58] sm:$0xf]  ;;  %v3383_v43 = vshrl.u32 %v8092_v23, 16  ;;  %2972 = vmatpush.bf16.msra.mxu2 %v9108_v32 }
  0xf5   : > { %515 = vst.msk [vmem:[#allocation2 + $0x2c] sm:$0xf] %vm316_vm4, %v10336_v40  ;;  %v2316_v33 = vor.u32 %v2315_v24, %v2312_v63  ;;  %v3386_v34 = vshll.u32 %v8092_v23, 16  ;;  %v7824_v4 = vld [vmem:[%s9553_s13 + $0x30] sm:$0xf]  ;;  %v3392_v25 = vshll.u32 %v8093_v26, 16 }
  0xf6   : > { %2185 = vst.msk [vmem:[#allocation2 + $0x8] sm:$0xf] %vm316_vm4, %v2162_v2  ;;  %v7825_v19 = vld [vmem:[%s9553_s13 + $0x34] sm:$0x1]  ;;  %v2296_v42 = vshrl.u32 %v7824_v4, 16  ;;  %v3385_v49 = vrot.slane %v3383_v43, 4  ;;  %v1754_v58 = vsel %vm9582_vm2, %v1749_v22, %v1753_v13 }
  0xf7   : > { %v7538_v44 = vld [vmem:[#allocation2 + $0x3c] sm:$0xf0]  ;;  %v2317_v46 = vrot.slane %v2316_v33, 4  ;;  %v3388_v50 = vrot.slane %v3386_v34, 5  ;;  %v2299_v35 = vshll.u32 %v7824_v4, 16  ;;  %v2305_v37 = vshll.u32 %v7825_v19, 16 }
  0xf8   : > { %1836 = vst.msk [vmem:[#allocation2 + $0x40] sm:$0xf] %vm266_vm3, %v1768_v31  ;;  %v2298_v40 = vrot.slane %v2296_v42, 4  ;;  %v8114_v38 = vld [vmem:[%s9553_s13 + $0x50] sm:$0xf]  ;;  %v3394_v5 = vrot.slane %v3392_v25, 5 }
  0xf9   : > { %v2322_v52 = vsel %vm9582_vm2, %v2317_v46, %v2321_v20  ;;  %v10394_v53 = vld [vmem:[#allocation2 + $0x18] sm:$0xf0]  ;;  %v3389_v54 = vor.u32 %v3388_v50, %v3385_v49  ;;  %1882 = vst.msk [vmem:[#allocation2 + $0x18] sm:$0xf] %vm316_vm4, %v1860_v7  ;;  %v2301_v56 = vrot.slane %v2299_v35, 5  ;;  %v2307_v30 = vrot.slane %v2305_v37, 5 }
  0xfa   : > { %2349 = vrot.lane.b32.xlu1 %v2322_v52, %s9463_s14  ;;  %3553 = vst.msk [vmem:[#allocation2 + $0x1c] sm:$0xf] %vm266_vm3, %v8115_v48  ;;  %v8112_v39 = vld [vmem:[%s9553_s13 + $0x38] sm:$0xf]  ;;  %v9100_v59 = vld [vmem:[%s12379_s1 + $0x8] sm:$0xff] }
  0xfb   : > { %v3390_v36 = vrot.slane %v3389_v54, 4  ;;  %v2302_v29 = vor.u32 %v2301_v56, %v2298_v40  ;;  %3524 = vrot.lane.b32.xlu0 %v8112_v39, %s9463_s14  ;;  %1690 = vst.msk [vmem:[#allocation2 + $0x14] sm:$0xf] %vm316_vm4, %v1668_v57  ;;  %v8113_v28 = vld [vmem:[%s9553_s13 + $0x40] sm:$0xf]  ;;  %2943 = vmatpush.bf16.msrb.mxu1 %v9100_v59  ;;  %v9118_v1 = vld [vmem:[%s12379_s1 + $0x98] sm:$0xff]  ;;  %v2166_v57 = vpop.permute.xlu1 %2165 }
  0xfc   : > { %v9028_v61 = vld [vmem:[#allocation2 + $0x2c] sm:$0xf]  ;;  %v7498_v2 = vld [vmem:[%s9553_s13 + $0x8] sm:$0xf]  ;;  %v8075_v10 = vld [vmem:[%s9553_s13 + $0x98] sm:$0xf]  ;;  %2999 = vmatpush.bf16.msra.mxu3 %v9118_v1 }
  0xfd   : > { %1835 = vst.msk [vmem:[#allocation2 + $0x2c] sm:$0xf] %vm266_vm3, %v1754_v58  ;;  %v10412_v62 = vld [vmem:[#allocation2 + $0x8] sm:$0xf]  ;;  %v7541_v55 = vor.u32 %v9028_v61, %v7538_v44  ;;  %v2303_v18 = vrot.slane %v2302_v29, 4  ;;  %v3395_v11 = vsel %vm9582_vm2, %v3390_v36, %v3394_v5  ;;  %v781_v17 = vshrl.u32 %v7498_v2, 16  ;;  %v2168_v29 = vpop.permute.xlu2 %2167 }
  0xfe   : > { %3552 = vst.msk [vmem:[#allocation2 + $0x8] sm:$0xf] %vm266_vm3, %v8114_v38  ;;  %v7499_v3 = vld [vmem:[%s9553_s13 + $0xc] sm:$0x1]  ;;  %v7500_v14 = vld [vmem:[%s9553_s13 + $0x10] sm:$0xf] }
  0xff   : > { %1378 = vmatmul.bf16.gmra.mxu1 %v7541_v55  ;;  %v2308_v8 = vsel %vm9582_vm2, %v2303_v18, %v2307_v30  ;;  %1883 = vst.msk [vmem:[#allocation2 + $0x2c] sm:$0xf] %vm316_vm4, %v1862_v27  ;;  %v7501_v15 = vld [vmem:[%s9553_s13 + $0x14] sm:$0x1]  ;;  %v784_v6 = vshll.u32 %v7498_v2, 16  ;;  %v790_v12 = vshll.u32 %v7499_v3, 16  ;;  %v1864_v30 = vpop.permute.xlu0 %1863 }
 0x100   : > { %v10429_v16 = vld [vmem:[#allocation2 + $0x14] sm:$0xf0]  ;;  %2347 = vrot.lane.b32.xlu2 %v2308_v8, %s9463_s14  ;;  %1689 = vst.msk [vmem:[#allocation2] sm:$0xf] %vm316_vm4, %v1666_v0  ;;  %v795_v9 = vshrl.u32 %v7500_v14, 16  ;;  %v798_v13 = vshll.u32 %v7500_v14, 16 }
 0x101   : > { %3489 = vst.msk [vmem:[#allocation2 + $0x18] sm:$0xf] %vm266_vm3, %v3395_v11  ;;  %v804_v63 = vshll.u32 %v7501_v15, 16  ;;  %v783_v21 = vrot.slane %v781_v17, 4  ;;  %v786_v45 = vrot.slane %v784_v6, 5  ;;  %v792_v60 = vrot.slane %v790_v12, 5 }
 0x102   : > { %3526 = vrot.lane.b32.xlu1 %v8113_v28, %s9463_s14  ;;  %v7830_v22 = vld [vmem:[%s9553_s13 + $0x50] sm:$0xf]  ;;  %v7831_v24 = vld [vmem:[%s9553_s13 + $0x54] sm:$0x1]  ;;  %v797_v23 = vrot.slane %v795_v9, 4  ;;  %v800_v26 = vrot.slane %v798_v13, 5 }
 0x103   : > { %v10437_v20 = vld [vmem:[#allocation2 + $0x10] sm:$0xf0]  ;;  %v8074_v7 = vld [vmem:[%s9553_s13 + $0x90] sm:$0xf]  ;;  %v806_v31 = vrot.slane %v804_v63, 5  ;;  %v787_v33 = vor.u32 %v786_v45, %v783_v21  ;;  %v2386_v4 = vshrl.u32 %v7830_v22, 16 }
 0x104   : > { %3297 = vst.msk [vmem:[#allocation2 + $0x14] sm:$0xf] %vm266_vm3, %v8075_v10  ;;  %v7832_v48 = vld [vmem:[%s9553_s13 + $0x58] sm:$0xf]  ;;  %v7833_v43 = vld [vmem:[%s9553_s13 + $0x5c] sm:$0x1]  ;;  %v801_v34 = vor.u32 %v800_v26, %v797_v23 }
 0x105   : > { %v2389_v25 = vshll.u32 %v7830_v22, 16  ;;  %v2395_v19 = vshll.u32 %v7831_v24, 16  ;;  %v8088_v42 = vld [vmem:[%s9553_s13 + $0x108] sm:$0xf]  ;;  %v9099_v44 = vld [vmem:[%s12379_s1] sm:$0xff]  ;;  %v788_v46 = vrot.slane %v787_v33, 4 }
 0x106   : > { %v2400_v49 = vshrl.u32 %v7832_v48, 16  ;;  %v2403_v50 = vshll.u32 %v7832_v48, 16  ;;  %v2409_v35 = vshll.u32 %v7833_v43, 16  ;;  %v8406_v40 = vld [vmem:[%s9553_s13 + $0x90] sm:$0xf]  ;;  %v802_v51 = vrot.slane %v801_v34, 4  ;;  %2944 = vmatpush.bf16.msrb.mxu1 %v9099_v44 }
 0x107   : > { %v7848_v37 = vld [vmem:[#allocation2] sm:$0xf]  ;;  %v2388_v52 = vrot.slane %v2386_v4, 4  ;;  %v2391_v54 = vrot.slane %v2389_v25, 5  ;;  %v2397_v56 = vrot.slane %v2395_v19, 5  ;;  %v793_v58 = vsel %vm9582_vm2, %v788_v46, %v792_v60  ;;  %v9117_v36 = vld [vmem:[%s12379_s1 + $0x90] sm:$0xff]  ;;  %v1672_v19 = vpop.permute.xlu1 %1671 }
 0x108   : > { %3296 = vst.msk [vmem:[#allocation2] sm:$0xf] %vm266_vm3, %v8074_v7  ;;  %v2402_v38 = vrot.slane %v2400_v49, 4  ;;  %v2405_v5 = vrot.slane %v2403_v50, 5  ;;  %v2411_v32 = vrot.slane %v2409_v35, 5  ;;  %3332 = vrot.lane.b32.xlu2 %v8088_v42, %s9463_s14  ;;  %v807_v39 = vsel %vm9582_vm2, %v802_v51, %v806_v31  ;;  %3000 = vmatpush.bf16.msra.mxu3 %v9117_v36  ;;  %v9107_v27 = vld [vmem:[%s12379_s1 + $0x40] sm:$0xff]  ;;  %v1866_v49 = vpop.permute.xlu2 %1865  ;;  %v1670_v50 = vpop.permute.xlu0 %1669 }
 0x109   : > { %900 = vst.msk [vmem:[#allocation2 + $0x10] sm:$0xf] %vm266_vm3, %v793_v58  ;;  %v2392_v59 = vor.u32 %v2391_v54, %v2388_v52  ;;  %v8407_v61 = vld [vmem:[%s9553_s13 + $0x94] sm:$0x1]  ;;  %v4613_v55 = vshrl.u32 %v8406_v40, 16  ;;  %v4616_v18 = vshll.u32 %v8406_v40, 16  ;;  %v7849_v11 = vor.u32 %v10437_v20, %v7848_v37  ;;  %2973 = vmatpush.bf16.msra.mxu2 %v9107_v27 }
 0x10a   : > { %901 = vst.msk [vmem:[#allocation2 + $0x24] sm:$0xf] %vm266_vm3, %v807_v39  ;;  %v2406_v28 = vor.u32 %v2405_v5, %v2402_v38  ;;  %v4622_v0 = vshll.u32 %v8407_v61, 16  ;;  %v8124_v1 = vld [vmem:[%s9553_s13 + $0x10] sm:$0xf]  ;;  %v9116_v63 = vld [vmem:[%s12379_s1 + $0x88] sm:$0xff]  ;;  %v7853_v7 = vor.u32 %v10339_v47, %v10429_v16  ;;  %v7857_v58 = vor.u32 %v10394_v53, %v10412_v62 }
 0x10b   : > { %v2393_v2 = vrot.slane %v2392_v59, 4  ;;  %v4615_v3 = vrot.slane %v4613_v55, 4  ;;  %v4618_v8 = vrot.slane %v4616_v18, 5  ;;  %v8125_v10 = vld [vmem:[%s9553_s13 + $0x14] sm:$0x1]  ;;  %v3591_v14 = vshrl.u32 %v8124_v1, 16 }
 0x10c   : > { %v2407_v15 = vrot.slane %v2406_v28, 4  ;;  %v4624_v17 = vrot.slane %v4622_v0, 5  ;;  %v3594_v6 = vshll.u32 %v8124_v1, 16  ;;  %v3600_v12 = vshll.u32 %v8125_v10, 16  ;;  %2188 = vst.msk [vmem:[#allocation2 + $0x44] sm:$0xf] %vm316_vm4, %v2168_v29  ;;  %3001 = vmatpush.bf16.msra.mxu3 %v9116_v63  ;;  %2974 = vmatmul.bf16.vlgmr.msra.gmra.mxu2 %v7853_v7 }
 0x10d   : > { %v4619_v9 = vor.u32 %v4618_v8, %v4615_v3  ;;  %v3593_v13 = vrot.slane %v3591_v14, 4  ;;  %2187 = vst.msk [vmem:[#allocation2 + $0x30] sm:$0xf] %vm316_vm4, %v2166_v57  ;;  %v7828_v21 = vld [vmem:[%s9553_s13 + $0x40] sm:$0xf]  ;;  %v2398_v45 = vsel %vm9582_vm2, %v2393_v2, %v2397_v56  ;;  %v9162_v53 = vld [vmem:[%s12379_s1 + $0x38] sm:$0xff] }
 0x10e   : > { %v2412_v22 = vsel %vm9582_vm2, %v2407_v15, %v2411_v32  ;;  %v3596_v24 = vrot.slane %v3594_v6, 5  ;;  %1884 = vst.msk [vmem:[#allocation2 + $0x40] sm:$0xf] %vm316_vm4, %v1864_v30  ;;  %v7829_v20 = vld [vmem:[%s9553_s13 + $0x44] sm:$0x1]  ;;  %v2324_v23 = vshrl.u32 %v7828_v21, 16  ;;  %4354 = vmatpush.bf16.msrb.mxu2 %v9162_v53 }
 0x10f   : > { %v4620_v60 = vrot.slane %v4619_v9, 4  ;;  %2945 = vmatmul.bf16.vlgmr.msrb.gmra.mxu1 %v7849_v11  ;;  %v2327_v26 = vshll.u32 %v7828_v21, 16  ;;  %v2333_v31 = vshll.u32 %v7829_v20, 16  ;;  %v3602_v43 = vrot.slane %v3600_v12, 5  ;;  %v9115_v34 = vld [vmem:[%s12379_s1 + $0x80] sm:$0xff]  ;;  %v9130_v1 = vld [vmem:[%s12379_s1 + $0xf8] sm:$0xff] }
 0x110   : > { %v7532_v33 = vld [vmem:[#allocation2 + $0x10] sm:$0xf]  ;;  %v3597_v48 = vor.u32 %v3596_v24, %v3593_v13  ;;  %v2326_v16 = vrot.slane %v2324_v23, 4  ;;  %v7502_v35 = vld [vmem:[%s9553_s13 + $0x18] sm:$0xf]  ;;  %3002 = vmatpush.bf16.msra.mxu3 %v9115_v34  ;;  %3024 = vmatpush.bf16.msra.mxu0 %v9130_v1 }
 0x111   : > { %v9027_v4 = vld [vmem:[#allocation2 + $0x20] sm:$0xf0]  ;;  %2505 = vst.msk [vmem:[#allocation2 + $0x10] sm:$0xf] %vm266_vm3, %v2398_v45  ;;  %v4625_v47 = vsel %vm9582_vm2, %v4620_v60, %v4624_v17  ;;  %v2329_v25 = vrot.slane %v2327_v26, 5  ;;  %v2335_v46 = vrot.slane %v2333_v31, 5  ;;  %v2170_v26 = vpop.permute.xlu1 %2169 }
 0x112   : > { %v7533_v42 = vor.u32 %v9027_v4, %v7532_v33  ;;  %2506 = vst.msk [vmem:[#allocation2 + $0x24] sm:$0xf] %vm266_vm3, %v2412_v22  ;;  %4724 = vrot.lane.b32.xlu1 %v4625_v47, %s9463_s14  ;;  %v3598_v44 = vrot.slane %v3597_v48, 4  ;;  %v7503_v37 = vld [vmem:[%s9553_s13 + $0x1c] sm:$0x1]  ;;  %v809_v56 = vshrl.u32 %v7502_v35, 16  ;;  %v2172_v4 = vpop.permute.xlu2 %2171  ;;  %v1868_v47 = vpop.permute.xlu0 %1867 }
 0x113   : > { %v2330_v40 = vor.u32 %v2329_v25, %v2326_v16  ;;  %1885 = vst.msk [vmem:[#allocation2 + $0x54] sm:$0xf] %vm316_vm4, %v1866_v49  ;;  %v7504_v51 = vld [vmem:[%s9553_s13 + $0x20] sm:$0xf]  ;;  %v7505_v54 = vld [vmem:[%s9553_s13 + $0x24] sm:$0x1]  ;;  %3003 = vmatmul.bf16.vlgmr.msra.gmra.mxu3 %v7857_v58 }
 0x114   : > { %7738 = vmatmul.msk.bf16.vlgmr.msrb.gmra.mxu0 %vm1323_vm5, %v7533_v42  ;;  %v3603_v52 = vsel %vm9582_vm2, %v3598_v44, %v3602_v43  ;;  %1692 = vst.msk [vmem:[#allocation2 + $0x3c] sm:$0xf] %vm316_vm4, %v1672_v19  ;;  %v812_v57 = vshll.u32 %v7502_v35, 16  ;;  %v8147_v5 = vld [vmem:[%s9553_s13 + $0xe8] sm:$0xf]  ;;  %v818_v32 = vshll.u32 %v7503_v37, 16 }
 0x115   : > { %3690 = vrot.lane.b32.xlu0 %v3603_v52, %s9463_s14  ;;  %v2331_v38 = vrot.slane %v2330_v40, 4  ;;  %1691 = vst.msk [vmem:[#allocation2 + $0x28] sm:$0xf] %vm316_vm4, %v1670_v50  ;;  %v823_v36 = vshrl.u32 %v7504_v51, 16  ;;  %v826_v29 = vshll.u32 %v7504_v51, 16  ;;  %v811_v30 = vrot.slane %v809_v56, 4 }
 0x116   : > { %v814_v39 = vrot.slane %v812_v57, 5  ;;  %v832_v59 = vshll.u32 %v7505_v54, 16  ;;  %v7834_v61 = vld [vmem:[%s9553_s13 + $0x60] sm:$0xf]  ;;  %v820_v55 = vrot.slane %v818_v32, 5  ;;  %v9134_v9 = vld [vmem:[%s12379_s1 + $0x118] sm:$0xff] }
 0x117   : > { %v2336_v62 = vsel %vm9582_vm2, %v2331_v38, %v2335_v46  ;;  %v825_v18 = vrot.slane %v823_v36, 4  ;;  %v828_v28 = vrot.slane %v826_v29, 5  ;;  %v7835_v0 = vld [vmem:[%s9553_s13 + $0x64] sm:$0x1]  ;;  %v8146_v11 = vld [vmem:[%s9553_s13 + $0xe0] sm:$0xf]  ;;  %3057 = vmatpush.bf16.msra.mxu1 %v9134_v9 }
 0x118   : > { %2351 = vrot.lane.b32.xlu2 %v2336_v62, %s9463_s14  ;;  %v815_v27 = vor.u32 %v814_v39, %v811_v30  ;;  %v834_v2 = vrot.slane %v832_v59, 5  ;;  %v7836_v3 = vld [vmem:[%s9553_s13 + $0x68] sm:$0xf]  ;;  %v7837_v8 = vld [vmem:[%s9553_s13 + $0x6c] sm:$0x1]  ;;  %v2414_v10 = vshrl.u32 %v7834_v61, 16 }
 0x119   : > { %v829_v14 = vor.u32 %v828_v28, %v825_v18  ;;  %v2417_v15 = vshll.u32 %v7834_v61, 16  ;;  %v2423_v17 = vshll.u32 %v7835_v0, 16  ;;  %v2428_v6 = vshrl.u32 %v7836_v3, 16  ;;  %v8122_v12 = vld [vmem:[%s9553_s13 + $0x8] sm:$0xf]  ;;  %v9161_v16 = vld [vmem:[%s12379_s1 + $0x30] sm:$0xff]  ;;  %v1676_v9 = vpop.permute.xlu1 %1675 }
 0x11a   : > { %3756 = vrot.lane.b32.xlu1 %v8147_v5, %s9463_s14  ;;  %v816_v13 = vrot.slane %v815_v27, 4  ;;  %v2416_v63 = vrot.slane %v2414_v10, 4  ;;  %v2431_v21 = vshll.u32 %v7836_v3, 16  ;;  %v2437_v45 = vshll.u32 %v7837_v8, 16  ;;  %v8123_v22 = vld [vmem:[%s9553_s13 + $0xc] sm:$0x1]  ;;  %4355 = vmatpush.bf16.msrb.mxu2 %v9161_v16 }
 0x11b   : > { %v830_v24 = vrot.slane %v829_v14, 4  ;;  %v2419_v20 = vrot.slane %v2417_v15, 5  ;;  %v2425_v7 = vrot.slane %v2423_v17, 5  ;;  %v2430_v60 = vrot.slane %v2428_v6, 4  ;;  %v8410_v23 = vld [vmem:[%s9553_s13 + $0xa0] sm:$0xf] }
 0x11c   : > { %v821_v31 = vsel %vm9582_vm2, %v816_v13, %v820_v55  ;;  %v2433_v33 = vrot.slane %v2431_v21, 5  ;;  %v10525_v48 = vrot.slane %v2437_v45, 5  ;;  %v3577_v43 = vshrl.u32 %v8122_v12, 16  ;;  %v8411_v34 = vld [vmem:[%s9553_s13 + $0xa4] sm:$0x1]  ;;  %v9129_v37 = vld [vmem:[%s12379_s1 + $0xf0] sm:$0xff] }
 0x11d   : > { %3754 = vrot.lane.b32.xlu0 %v8146_v11, %s9463_s14  ;;  %v835_v25 = vsel %vm9582_vm2, %v830_v24, %v834_v2  ;;  %902 = vst.msk [vmem:[#allocation2 + $0x38] sm:$0xf] %vm266_vm3, %v821_v31  ;;  %v2420_v19 = vor.u32 %v2419_v20, %v2416_v63  ;;  %v3580_v42 = vshll.u32 %v8122_v12, 16  ;;  %v3586_v44 = vshll.u32 %v8123_v22, 16  ;;  %v8128_v46 = vld [vmem:[%s9553_s13 + $0x20] sm:$0xf]  ;;  %3025 = vmatpush.bf16.msra.mxu0 %v9129_v37  ;;  %v1870_v24 = vpop.permute.xlu2 %1869  ;;  %v1674_v20 = vpop.permute.xlu0 %1673 }
 0x11e   : > { %903 = vst.msk [vmem:[#allocation2 + $0x4c] sm:$0xf] %vm266_vm3, %v835_v25  ;;  %v2434_v49 = vor.u32 %v2433_v33, %v2430_v60  ;;  %v3579_v50 = vrot.slane %v3577_v43, 4  ;;  %v4641_v35 = vshrl.u32 %v8410_v23, 16  ;;  %v4644_v40 = vshll.u32 %v8410_v23, 16  ;;  %v9160_v13 = vld [vmem:[%s12379_s1 + $0x28] sm:$0xff] }
 0x11f   : > { %v2421_v51 = vrot.slane %v2420_v19, 4  ;;  %v3582_v52 = vrot.slane %v3580_v42, 5  ;;  %v3588_v54 = vrot.slane %v3586_v44, 5  ;;  %v4650_v56 = vshll.u32 %v8411_v34, 16  ;;  %v8129_v57 = vld [vmem:[%s9553_s13 + $0x24] sm:$0x1]  ;;  %4356 = vmatpush.bf16.msrb.mxu2 %v9160_v13 }
 0x120   : > { %v2435_v58 = vrot.slane %v2434_v49, 4  ;;  %v4643_v38 = vrot.slane %v4641_v35, 4  ;;  %v4646_v5 = vrot.slane %v4644_v40, 5  ;;  %v3619_v32 = vshrl.u32 %v8128_v46, 16  ;;  %2190 = vst.msk [vmem:[#allocation2 + $0x6c] sm:$0xf] %vm316_vm4, %v2172_v4 }
 0x121   : > { %v3583_v36 = vor.u32 %v3582_v52, %v3579_v50  ;;  %v4652_v29 = vrot.slane %v4650_v56, 5  ;;  %v3622_v30 = vshll.u32 %v8128_v46, 16  ;;  %2189 = vst.msk [vmem:[#allocation2 + $0x58] sm:$0xf] %vm316_vm4, %v2170_v26  ;;  %v7868_v39 = vld [vmem:[#allocation2 + $0x28] sm:$0xf]  ;;  %v2426_v59 = vsel %vm9582_vm2, %v2421_v51, %v2425_v7 }
 0x122   : > { %v4647_v61 = vor.u32 %v4646_v5, %v4643_v38  ;;  %v3621_v53 = vrot.slane %v3619_v32, 4  ;;  %v3628_v62 = vshll.u32 %v8129_v57, 16  ;;  %1886 = vst.msk [vmem:[#allocation2 + $0x68] sm:$0xf] %vm316_vm4, %v1868_v47  ;;  %v9086_v55 = vld [vmem:[#allocation2 + $0x38] sm:$0xf0]  ;;  %v2440_v18 = vsel %vm9582_vm2, %v2435_v58, %v10525_v48 }
 0x123   : > { %v3584_v28 = vrot.slane %v3583_v36, 4  ;;  %v3624_v0 = vrot.slane %v3622_v30, 5  ;;  %v7869_v1 = vor.u32 %v9086_v55, %v7868_v39  ;;  %v8408_v11 = vld [vmem:[%s9553_s13 + $0x98] sm:$0xf]  ;;  %v8409_v27 = vld [vmem:[%s9553_s13 + $0x9c] sm:$0x1] }
 0x124   : > { %v7552_v2 = vld [vmem:[#allocation2 + $0x38] sm:$0xf]  ;;  %v4648_v3 = vrot.slane %v4647_v61, 4  ;;  %v3630_v8 = vrot.slane %v3628_v62, 5  ;;  %v4627_v10 = vshrl.u32 %v8408_v11, 16  ;;  %v4630_v14 = vshll.u32 %v8408_v11, 16 }
 0x125   : > { %v9032_v15 = vld [vmem:[#allocation2 + $0x48] sm:$0xf0]  ;;  %2507 = vst.msk [vmem:[#allocation2 + $0x38] sm:$0xf] %vm266_vm3, %v2426_v59  ;;  %v3589_v17 = vsel %vm9582_vm2, %v3584_v28, %v3588_v54  ;;  %v3625_v6 = vor.u32 %v3624_v0, %v3621_v53  ;;  %2950 = vmatmul.bf16.gmra.mxu1 %v7869_v1  ;;  %v4636_v12 = vshll.u32 %v8409_v27, 16  ;;  %v9133_v61 = vld [vmem:[%s12379_s1 + $0x110] sm:$0xff] }
 0x126   : > { %v7553_v63 = vor.u32 %v9032_v15, %v7552_v2  ;;  %2508 = vst.msk [vmem:[#allocation2 + $0x4c] sm:$0xf] %vm266_vm3, %v2440_v18  ;;  %3688 = vrot.lane.b32.xlu2 %v3589_v17, %s9463_s14  ;;  %v4653_v21 = vsel %vm9582_vm2, %v4648_v3, %v4652_v29  ;;  %v4629_v45 = vrot.slane %v4627_v10, 4  ;;  %v4632_v22 = vrot.slane %v4630_v14, 5  ;;  %v7506_v26 = vld [vmem:[%s9553_s13 + $0x28] sm:$0xf]  ;;  %3058 = vmatpush.bf16.msra.mxu1 %v9133_v61 }
 0x127   : > { %4728 = vrot.lane.b32.xlu1 %v4653_v21, %s9463_s14  ;;  %v3626_v7 = vrot.slane %v3625_v6, 4  ;;  %v4638_v60 = vrot.slane %v4636_v12, 5  ;;  %1887 = vst.msk [vmem:[#allocation2 + $0x7c] sm:$0xf] %vm316_vm4, %v1870_v24  ;;  %v7507_v31 = vld [vmem:[%s9553_s13 + $0x2c] sm:$0x1] }
 0x128   : > { %7739 = vmatmul.msk.bf16.gmra.mxu0 %vm1323_vm5, %v7553_v63  ;;  %v4633_v23 = vor.u32 %v4632_v22, %v4629_v45  ;;  %1694 = vst.msk [vmem:[#allocation2 + $0x64] sm:$0xf] %vm316_vm4, %v1676_v9  ;;  %v7508_v48 = vld [vmem:[%s9553_s13 + $0x30] sm:$0xf]  ;;  %v7509_v43 = vld [vmem:[%s9553_s13 + $0x34] sm:$0x1]  ;;  %v2174_v45 = vpop.permute.xlu1 %2173 }
 0x129   : > { %v3631_v33 = vsel %vm9582_vm2, %v3626_v7, %v3630_v8  ;;  %1693 = vst.msk [vmem:[#allocation2 + $0x50] sm:$0xf] %vm316_vm4, %v1674_v20  ;;  %v8149_v4 = vld [vmem:[%s9553_s13 + $0xf8] sm:$0xf]  ;;  %v837_v47 = vshrl.u32 %v7506_v26, 16  ;;  %v840_v16 = vshll.u32 %v7506_v26, 16  ;;  %v2176_v26 = vpop.permute.xlu2 %2175 }
 0x12a   : > { %3694 = vrot.lane.b32.xlu0 %v3631_v33, %s9463_s14  ;;  %v4634_v34 = vrot.slane %v4633_v23, 4  ;;  %v846_v25 = vshll.u32 %v7507_v31, 16  ;;  %v7838_v19 = vld [vmem:[%s9553_s13 + $0x70] sm:$0xf]  ;;  %v851_v42 = vshrl.u32 %v7508_v48, 16  ;;  %v854_v44 = vshll.u32 %v7508_v48, 16  ;;  %v1872_v31 = vpop.permute.xlu0 %1871 }
 0x12b   : > { %v860_v46 = vshll.u32 %v7509_v43, 16  ;;  %v7839_v49 = vld [vmem:[%s9553_s13 + $0x74] sm:$0x1]  ;;  %v2442_v50 = vshrl.u32 %v7838_v19, 16  ;;  %v839_v40 = vrot.slane %v837_v47, 4  ;;  %v842_v37 = vrot.slane %v840_v16, 5 }
 0x12c   : > { %v4639_v35 = vsel %vm9582_vm2, %v4634_v34, %v4638_v60  ;;  %v848_v51 = vrot.slane %v846_v25, 5  ;;  %v7840_v52 = vld [vmem:[%s9553_s13 + $0x78] sm:$0xf]  ;;  %v9128_v54 = vld [vmem:[%s12379_s1 + $0xe8] sm:$0xff]  ;;  %v8148_v56 = vld [vmem:[%s9553_s13 + $0xf0] sm:$0xf] }
 0x12d   : > { %v853_v57 = vrot.slane %v851_v42, 4  ;;  %v856_v58 = vrot.slane %v854_v44, 5  ;;  %v862_v38 = vrot.slane %v860_v46, 5  ;;  %v7841_v5 = vld [vmem:[%s9553_s13 + $0x7c] sm:$0x1]  ;;  %v2444_v32 = vrot.slane %v2442_v50, 4  ;;  %3026 = vmatpush.bf16.msra.mxu0 %v9128_v54 }
 0x12e   : > { %4726 = vrot.lane.b32.xlu2 %v4639_v35, %s9463_s14  ;;  %v843_v36 = vor.u32 %v842_v37, %v839_v40  ;;  %v2445_v29 = vshll.u32 %v7838_v19, 16  ;;  %v2451_v30 = vshll.u32 %v7839_v49, 16  ;;  %v2456_v39 = vshrl.u32 %v7840_v52, 16  ;;  %v9084_v59 = vld [vmem:[#allocation2 + $0x2c] sm:$0xf]  ;;  %v9159_v17 = vld [vmem:[%s12379_s1 + $0x20] sm:$0xff] }
 0x12f   : > { %3760 = vrot.lane.b32.xlu1 %v8149_v4, %s9463_s14  ;;  %v857_v53 = vor.u32 %v856_v58, %v853_v57  ;;  %v2459_v62 = vshll.u32 %v7840_v52, 16  ;;  %v2465_v55 = vshll.u32 %v7841_v5, 16  ;;  %v7870_v18 = vld [vmem:[#allocation2 + $0x3c] sm:$0xf0]  ;;  %v7876_v28 = vld [vmem:[#allocation2 + $0x30] sm:$0xf]  ;;  %4357 = vmatpush.bf16.msrb.mxu2 %v9159_v17 }
 0x130   : > { %v844_v0 = vrot.slane %v843_v36, 4  ;;  %v2447_v1 = vrot.slane %v2445_v29, 5  ;;  %v10589_v11 = vrot.slane %v2451_v30, 5  ;;  %v2458_v27 = vrot.slane %v2456_v39, 4  ;;  %v9087_v2 = vld [vmem:[#allocation2 + $0x40] sm:$0xf0] }
 0x131   : > { %v858_v3 = vrot.slane %v857_v53, 4  ;;  %v2461_v8 = vrot.slane %v2459_v62, 5  ;;  %v10591_v10 = vrot.slane %v2465_v55, 5  ;;  %v7873_v14 = vor.u32 %v9084_v59, %v7870_v18  ;;  %v8126_v15 = vld [vmem:[%s9553_s13 + $0x18] sm:$0xf]  ;;  %v9127_v22 = vld [vmem:[%s12379_s1 + $0xe0] sm:$0xff] }
 0x132   : > { %3758 = vrot.lane.b32.xlu0 %v8148_v56, %s9463_s14  ;;  %v849_v6 = vsel %vm9582_vm2, %v844_v0, %v848_v51  ;;  %v2448_v12 = vor.u32 %v2447_v1, %v2444_v32  ;;  %v7877_v9 = vor.u32 %v9087_v2, %v7876_v28  ;;  %v8127_v13 = vld [vmem:[%s9553_s13 + $0x1c] sm:$0x1]  ;;  %v3605_v63 = vshrl.u32 %v8126_v15, 16  ;;  %v8414_v21 = vld [vmem:[%s9553_s13 + $0xb0] sm:$0xf]  ;;  %3027 = vmatpush.bf16.msra.mxu0 %v9127_v22 }
 0x133   : > { %v863_v24 = vsel %vm9582_vm2, %v858_v3, %v862_v38  ;;  %904 = vst.msk [vmem:[#allocation2 + $0x60] sm:$0xf] %vm266_vm3, %v849_v6  ;;  %v2462_v20 = vor.u32 %v2461_v8, %v2458_v27  ;;  %2979 = vmatmul.bf16.gmra.mxu2 %v7873_v14  ;;  %v3608_v7 = vshll.u32 %v8126_v15, 16  ;;  %v3614_v60 = vshll.u32 %v8127_v13, 16  ;;  %v8415_v23 = vld [vmem:[%s9553_s13 + $0xb4] sm:$0x1]  ;;  %v1680_v27 = vpop.permute.xlu1 %1679  ;;  %v3321_v14 = vpop.permute.xlu2 %3320 }
 0x134   : > { %905 = vst.msk [vmem:[#allocation2 + $0x74] sm:$0xf] %vm266_vm3, %v863_v24  ;;  %v2449_v33 = vrot.slane %v2448_v12, 4  ;;  %3008 = vmatmul.bf16.gmra.mxu3 %v7877_v9  ;;  %v3607_v48 = vrot.slane %v3605_v63, 4  ;;  %v4669_v43 = vshrl.u32 %v8414_v21, 16  ;;  %v4672_v34 = vshll.u32 %v8414_v21, 16  ;;  %v1678_v15 = vpop.permute.xlu0 %1677 }
 0x135   : > { %v2463_v4 = vrot.slane %v2462_v20, 4  ;;  %v3610_v47 = vrot.slane %v3608_v7, 5  ;;  %v3616_v16 = vrot.slane %v3614_v60, 5  ;;  %v4678_v25 = vshll.u32 %v8415_v23, 16  ;;  %v8132_v19 = vld [vmem:[%s9553_s13 + $0x30] sm:$0xf] }
 0x136   : > { %v4671_v42 = vrot.slane %v4669_v43, 4  ;;  %v4674_v44 = vrot.slane %v4672_v34, 5  ;;  %v8133_v46 = vld [vmem:[%s9553_s13 + $0x34] sm:$0x1]  ;;  %v3647_v49 = vshrl.u32 %v8132_v19, 16  ;;  %v9158_v50 = vld [vmem:[%s12379_s1 + $0x18] sm:$0xff]  ;;  %v2454_v52 = vsel %vm9582_vm2, %v2449_v33, %v10589_v11 }
 0x137   : > { %v3611_v35 = vor.u32 %v3610_v47, %v3607_v48  ;;  %v4680_v40 = vrot.slane %v4678_v25, 5  ;;  %v3650_v37 = vshll.u32 %v8132_v19, 16  ;;  %2192 = vst.msk [vmem:[#allocation2 + $0x94] sm:$0xf] %vm316_vm4, %v2176_v26  ;;  %v7888_v51 = vld [vmem:[#allocation2 + $0x50] sm:$0xf]  ;;  %4358 = vmatpush.bf16.msrb.mxu2 %v9158_v50  ;;  %v2468_v38 = vsel %vm9582_vm2, %v2463_v4, %v10591_v10 }
 0x138   : > { %v4675_v54 = vor.u32 %v4674_v44, %v4671_v42  ;;  %v3649_v56 = vrot.slane %v3647_v49, 4  ;;  %v3656_v57 = vshll.u32 %v8133_v46, 16  ;;  %2191 = vst.msk [vmem:[#allocation2 + $0x80] sm:$0xf] %vm316_vm4, %v2174_v45  ;;  %v9091_v58 = vld [vmem:[#allocation2 + $0x60] sm:$0xf0] }
 0x139   : > { %v3612_v5 = vrot.slane %v3611_v35, 4  ;;  %v3652_v32 = vrot.slane %v3650_v37, 5  ;;  %1888 = vst.msk [vmem:[#allocation2 + $0x90] sm:$0xf] %vm316_vm4, %v1872_v31  ;;  %v7889_v36 = vor.u32 %v9091_v58, %v7888_v51  ;;  %v8412_v29 = vld [vmem:[%s9553_s13 + $0xa8] sm:$0xf] }
 0x13a   : > { %v7572_v30 = vld [vmem:[#allocation2 + $0x60] sm:$0xf]  ;;  %v4676_v39 = vrot.slane %v4675_v54, 4  ;;  %v3658_v59 = vrot.slane %v3656_v57, 5  ;;  %v8413_v61 = vld [vmem:[%s9553_s13 + $0xac] sm:$0x1] }
 0x13b   : > { %v9037_v53 = vld [vmem:[#allocation2 + $0x70] sm:$0xf0]  ;;  %2509 = vst.msk [vmem:[#allocation2 + $0x60] sm:$0xf] %vm266_vm3, %v2454_v52  ;;  %v3617_v62 = vsel %vm9582_vm2, %v3612_v5, %v3616_v16  ;;  %v3653_v55 = vor.u32 %v3652_v32, %v3649_v56  ;;  %2955 = vmatmul.bf16.gmra.mxu1 %v7889_v36  ;;  %v4655_v18 = vshrl.u32 %v8412_v29, 16  ;;  %v4658_v28 = vshll.u32 %v8412_v29, 16 }
 0x13c   : > { %v7573_v0 = vor.u32 %v9037_v53, %v7572_v30  ;;  %2510 = vst.msk [vmem:[#allocation2 + $0x74] sm:$0xf] %vm266_vm3, %v2468_v38  ;;  %3692 = vrot.lane.b32.xlu2 %v3617_v62, %s9463_s14  ;;  %v4681_v1 = vsel %vm9582_vm2, %v4676_v39, %v4680_v40  ;;  %v4664_v11 = vshll.u32 %v8413_v61, 16  ;;  %v9126_v2 = vld [vmem:[%s12379_s1 + $0xd8] sm:$0xff]  ;;  %v9132_v9 = vld [vmem:[%s12379_s1 + $0x108] sm:$0xff]  ;;  %v9169_v49 = vld [vmem:[%s12379_s1 + $0x70] sm:$0xff] }
 0x13d   : > { %4732 = vrot.lane.b32.xlu1 %v4681_v1, %s9463_s14  ;;  %v3654_v3 = vrot.slane %v3653_v55, 4  ;;  %v4657_v8 = vrot.slane %v4655_v18, 4  ;;  %v4660_v10 = vrot.slane %v4658_v28, 5  ;;  %v9170_v17 = vld [vmem:[%s12379_s1 + $0x78] sm:$0xff]  ;;  %3344 = vst.msk [vmem:[#allocation2] sm:$0xf] %vm316_vm4, %v3321_v14  ;;  %3028 = vmatpush.bf16.msra.mxu0 %v9126_v2  ;;  %v10678_v18 = vpop.permute.xlu2 %2339 }
 0x13e   : > { %7740 = vmatmul.msk.bf16.gmra.mxu0 %vm1323_vm5, %v7573_v0  ;;  %v4666_v6 = vrot.slane %v4664_v11, 5  ;;  %v7510_v12 = vld [vmem:[%s9553_s13 + $0x38] sm:$0xf]  ;;  %1696 = vst.msk [vmem:[#allocation2 + $0x8c] sm:$0xf] %vm316_vm4, %v1680_v27  ;;  %4383 = vmatpush.bf16.msrb.mxu3 %v9170_v17  ;;  %v9125_v52 = vld [vmem:[%s12379_s1 + $0xd0] sm:$0xff] }
 0x13f   : > { %v3659_v13 = vsel %vm9582_vm2, %v3654_v3, %v3658_v59  ;;  %v4661_v63 = vor.u32 %v4660_v10, %v4657_v8  ;;  %v7511_v21 = vld [vmem:[%s9553_s13 + $0x3c] sm:$0x1]  ;;  %v7512_v45 = vld [vmem:[%s9553_s13 + $0x40] sm:$0xf]  ;;  %v8151_v22 = vld [vmem:[%s9553_s13 + $0x108] sm:$0xf]  ;;  %3059 = vmatpush.bf16.msra.mxu1 %v9132_v9  ;;  %v10686_v3 = vpop.permute.xlu1 %2337 }
 0x140   : > { %3698 = vrot.lane.b32.xlu0 %v3659_v13, %s9463_s14  ;;  %1695 = vst.msk [vmem:[#allocation2 + $0x78] sm:$0xf] %vm316_vm4, %v1678_v15  ;;  %v7513_v24 = vld [vmem:[%s9553_s13 + $0x44] sm:$0x1]  ;;  %v865_v20 = vshrl.u32 %v7510_v12, 16  ;;  %v868_v7 = vshll.u32 %v7510_v12, 16 }
 0x141   : > { %v4662_v60 = vrot.slane %v4661_v63, 4  ;;  %v874_v23 = vshll.u32 %v7511_v21, 16  ;;  %v879_v26 = vshrl.u32 %v7512_v45, 16  ;;  %v882_v31 = vshll.u32 %v7512_v45, 16  ;;  %v7842_v33 = vld [vmem:[%s9553_s13 + $0x80] sm:$0xf]  ;;  %3029 = vmatpush.bf16.msra.mxu0 %v9125_v52 }
 0x142   : > { %v867_v48 = vrot.slane %v865_v20, 4  ;;  %v870_v43 = vrot.slane %v868_v7, 5  ;;  %v888_v34 = vshll.u32 %v7513_v24, 16  ;;  %v7843_v4 = vld [vmem:[%s9553_s13 + $0x84] sm:$0x1]  ;;  %v2470_v47 = vshrl.u32 %v7842_v33, 16  ;;  %4384 = vmatpush.bf16.msrb.mxu3 %v9169_v49 }
 0x143   : > { %v4667_v16 = vsel %vm9582_vm2, %v4662_v60, %v4666_v6  ;;  %v8150_v25 = vld [vmem:[%s9553_s13 + $0x100] sm:$0xf]  ;;  %v876_v19 = vrot.slane %v874_v23, 5  ;;  %v881_v42 = vrot.slane %v879_v26, 4  ;;  %v884_v44 = vrot.slane %v882_v31, 5  ;;  %v9157_v5 = vld [vmem:[%s12379_s1 + $0x10] sm:$0xff]  ;;  %v3323_v26 = vpop.permute.xlu0 %3322 }
 0x144   : > { %v7844_v46 = vld [vmem:[%s9553_s13 + $0x88] sm:$0xf]  ;;  %4730 = vrot.lane.b32.xlu2 %v4667_v16, %s9463_s14  ;;  %v871_v50 = vor.u32 %v870_v43, %v867_v48  ;;  %v890_v35 = vrot.slane %v888_v34, 5  ;;  %v7845_v40 = vld [vmem:[%s9553_s13 + $0x8c] sm:$0x1]  ;;  %v2472_v37 = vrot.slane %v2470_v47, 4  ;;  %4359 = vmatpush.bf16.msrb.mxu2 %v9157_v5 }
 0x145   : > { %v2473_v51 = vshll.u32 %v7842_v33, 16  ;;  %3764 = vrot.lane.b32.xlu1 %v8151_v22, %s9463_s14  ;;  %v885_v54 = vor.u32 %v884_v44, %v881_v42  ;;  %v2479_v56 = vshll.u32 %v7843_v4, 16  ;;  %v2484_v57 = vshrl.u32 %v7844_v46, 16  ;;  %v9089_v38 = vld [vmem:[#allocation2 + $0x54] sm:$0xf]  ;;  %v9124_v39 = vld [vmem:[%s12379_s1 + $0xc8] sm:$0xff]  ;;  %v3325_v5 = vpop.permute.xlu2 %3324 }
 0x146   : > { %v2487_v58 = vshll.u32 %v7844_v46, 16  ;;  %v872_v32 = vrot.slane %v871_v50, 4  ;;  %v2493_v29 = vshll.u32 %v7845_v40, 16  ;;  %v7890_v30 = vld [vmem:[#allocation2 + $0x64] sm:$0xf0]  ;;  %3030 = vmatpush.bf16.msra.mxu0 %v9124_v39  ;;  %v9123_v63 = vld [vmem:[%s12379_s1 + $0xc0] sm:$0xff] }
 0x147   : > { %v2475_v36 = vrot.slane %v2473_v51, 5  ;;  %v886_v59 = vrot.slane %v885_v54, 4  ;;  %v10676_v61 = vrot.slane %v2479_v56, 5  ;;  %v2486_v53 = vrot.slane %v2484_v57, 4  ;;  %v7896_v55 = vld [vmem:[#allocation2 + $0x58] sm:$0xf]  ;;  %v10725_v56 = vpop.f32.mrf.mxu3 }
 0x148   : > { %v2489_v62 = vrot.slane %v2487_v58, 5  ;;  %3762 = vrot.lane.b32.xlu0 %v8150_v25, %s9463_s14  ;;  %v877_v28 = vsel %vm9582_vm2, %v872_v32, %v876_v19  ;;  %v10683_v1 = vrot.slane %v2493_v29, 5  ;;  %v7893_v11 = vor.u32 %v9089_v38, %v7890_v30  ;;  %v9092_v27 = vld [vmem:[#allocation2 + $0x68] sm:$0xf0]  ;;  %v8130_v2 = vld [vmem:[%s9553_s13 + $0x28] sm:$0xf]  ;;  %v1355_v30 = vpop.f32.mrf.mxu2 }
 0x149   : > { %v2476_v0 = vor.u32 %v2475_v36, %v2472_v37  ;;  %v9168_v8 = vld [vmem:[%s12379_s1 + $0x68] sm:$0xff]  ;;  %v891_v10 = vsel %vm9582_vm2, %v886_v59, %v890_v35  ;;  %906 = vst.msk [vmem:[#allocation2 + $0x88] sm:$0xf] %vm266_vm3, %v877_v28  ;;  %v7897_v15 = vor.u32 %v9092_v27, %v7896_v55  ;;  %v3633_v6 = vshrl.u32 %v8130_v2, 16  ;;  %v8418_v22 = vld [vmem:[%s9553_s13 + $0xc0] sm:$0xf] }
 0x14a   : > { %v2490_v14 = vor.u32 %v2489_v62, %v2486_v53  ;;  %v8131_v17 = vld [vmem:[%s9553_s13 + $0x2c] sm:$0x1]  ;;  %907 = vst.msk [vmem:[#allocation2 + $0x9c] sm:$0xf] %vm266_vm3, %v891_v10  ;;  %2984 = vmatmul.bf16.gmra.mxu2 %v7893_v11  ;;  %v3636_v9 = vshll.u32 %v8130_v2, 16  ;;  %v4697_v60 = vshrl.u32 %v8418_v22, 16  ;;  %4385 = vmatpush.bf16.msrb.mxu3 %v9168_v8 }
 0x14b   : > { %v2477_v12 = vrot.slane %v2476_v0, 4  ;;  %v3642_v13 = vshll.u32 %v8131_v17, 16  ;;  %3013 = vmatmul.bf16.gmra.mxu3 %v7897_v15  ;;  %v3635_v45 = vrot.slane %v3633_v6, 4  ;;  %v8419_v24 = vld [vmem:[%s9553_s13 + $0xc4] sm:$0x1]  ;;  %v9156_v33 = vld [vmem:[%s12379_s1 + $0x8] sm:$0xff]  ;;  %3031 = vmatpush.bf16.msra.mxu0 %v9123_v63  ;;  %v3513_v17 = vpop.permute.xlu0 %3512 }
 0x14c   : > { %v2491_v21 = vrot.slane %v2490_v14, 4  ;;  %v3638_v7 = vrot.slane %v3636_v9, 5  ;;  %v8136_v23 = vld [vmem:[%s9553_s13 + $0x40] sm:$0xf]  ;;  %v4700_v43 = vshll.u32 %v8418_v22, 16  ;;  %v4706_v34 = vshll.u32 %v8419_v24, 16  ;;  %4360 = vmatpush.bf16.msrb.mxu2 %v9156_v33 }
 0x14d   : > { %v2482_v20 = vsel %vm9582_vm2, %v2477_v12, %v10676_v61  ;;  %v9167_v31 = vld [vmem:[%s12379_s1 + $0x60] sm:$0xff]  ;;  %v3644_v48 = vrot.slane %v3642_v13, 5  ;;  %v3675_v47 = vshrl.u32 %v8136_v23, 16  ;;  %v4699_v25 = vrot.slane %v4697_v60, 4  ;;  %v9166_v51 = vld [vmem:[%s12379_s1 + $0x58] sm:$0xff]  ;;  %v3515_v61 = vpop.permute.xlu1 %3514  ;;  %v9165_v28 = vld [vmem:[%s12379_s1 + $0x50] sm:$0xff] }
 0x14e   : > { %v8137_v4 = vld [vmem:[%s9553_s13 + $0x44] sm:$0x1]  ;;  %v3639_v16 = vor.u32 %v3638_v7, %v3635_v45  ;;  %v3678_v19 = vshll.u32 %v8136_v23, 16  ;;  %v2496_v46 = vsel %vm9582_vm2, %v2491_v21, %v10683_v1  ;;  %v4702_v49 = vrot.slane %v4700_v43, 5  ;;  %4386 = vmatpush.bf16.msrb.mxu3 %v9167_v31  ;;  %v7908_v39 = vld [vmem:[#allocation2 + $0x78] sm:$0xf] }
 0x14f   : > { %v3684_v42 = vshll.u32 %v8137_v4, 16  ;;  %v9131_v44 = vld [vmem:[%s12379_s1 + $0x100] sm:$0xff]  ;;  %v3677_v50 = vrot.slane %v3675_v47, 4  ;;  %v4708_v58 = vrot.slane %v4706_v34, 5  ;;  %v9096_v59 = vld [vmem:[#allocation2 + $0x88] sm:$0xf0]  ;;  %v10770_v43 = vpop.f32.mrf.mxu3  ;;  %v2344_v47 = vpop.permute.xlu2 %2343 }
 0x150   : > { %v7592_v35 = vld [vmem:[#allocation2 + $0x88] sm:$0xf]  ;;  %v3640_v40 = vrot.slane %v3639_v16, 4  ;;  %v3680_v37 = vrot.slane %v3678_v19, 5  ;;  %3060 = vmatpush.bf16.msra.mxu1 %v9131_v44  ;;  %v9155_v52 = vld [vmem:[%s12379_s1] sm:$0xff]  ;;  %v4703_v57 = vor.u32 %v4702_v49, %v4699_v25  ;;  %v7909_v62 = vor.u32 %v9096_v59, %v7908_v39  ;;  %v10774_v25 = vpop.f32.mrf.mxu2 }
 0x151   : > { %v9042_v54 = vld [vmem:[#allocation2 + $0x98] sm:$0xf0]  ;;  %2511 = vst.msk [vmem:[#allocation2 + $0x88] sm:$0xf] %vm266_vm3, %v2482_v20  ;;  %v3686_v38 = vrot.slane %v3684_v42, 5  ;;  %4361 = vmatpush.bf16.msrb.mxu2 %v9155_v52  ;;  %v9164_v63 = vld [vmem:[%s12379_s1 + $0x48] sm:$0xff] }
 0x152   : > { %v7593_v32 = vor.u32 %v9042_v54, %v7592_v35  ;;  %2512 = vst.msk [vmem:[#allocation2 + $0x9c] sm:$0xf] %vm266_vm3, %v2496_v46  ;;  %v3645_v36 = vsel %vm9582_vm2, %v3640_v40, %v3644_v48  ;;  %v3681_v29 = vor.u32 %v3680_v37, %v3677_v50  ;;  %v4704_v53 = vrot.slane %v4703_v57, 4  ;;  %v8416_v55 = vld [vmem:[%s9553_s13 + $0xb8] sm:$0xf]  ;;  %4387 = vmatpush.bf16.msrb.mxu3 %v9166_v51  ;;  %v9163_v46 = vld [vmem:[%s12379_s1 + $0x40] sm:$0xff] }
 0x153   : > { %3696 = vrot.lane.b32.xlu2 %v3645_v36, %s9463_s14  ;;  %2362 = vst.msk [vmem:[#allocation2 + $0x20] sm:$0xf] %vm316_vm4, %v10678_v18  ;;  %v8417_v1 = vld [vmem:[%s9553_s13 + $0xbc] sm:$0x1]  ;;  %v4683_v11 = vshrl.u32 %v8416_v55, 16  ;;  %2960 = vmatmul.bf16.gmra.mxu1 %v7909_v62  ;;  %v4686_v27 = vshll.u32 %v8416_v55, 16  ;;  %v3327_v39 = vpop.permute.xlu0 %3326 }
 0x154   : > { %7741 = vmatmul.msk.bf16.gmra.mxu0 %vm1323_vm5, %v7593_v32  ;;  %v3682_v0 = vrot.slane %v3681_v29, 4  ;;  %2361 = vst.msk [vmem:[#allocation2 + $0xc] sm:$0xf] %vm316_vm4, %v10686_v3  ;;  %v4709_v18 = vsel %vm9582_vm2, %v4704_v53, %v4708_v58  ;;  %v4692_v2 = vshll.u32 %v8417_v1, 16  ;;  %v10750_v3 = vld [vmem:[%s12380_s2] ss:$0 sm:$0xff] }
 0x155   : > { %3345 = vst.msk [vmem:[#allocation2 + $0x14] sm:$0xf] %vm316_vm4, %v3323_v26  ;;  %4736 = vrot.lane.b32.xlu1 %v4709_v18, %s9463_s14  ;;  %v8139_v10 = vld [vmem:[%s9553_s13 + $0xa0] sm:$0xf]  ;;  %v4685_v14 = vrot.slane %v4683_v11, 4  ;;  %v4688_v12 = vrot.slane %v4686_v27, 5  ;;  %v1356_v16 = vadd.f32 %v10750_v3, %v1355_v30  ;;  %v2342_v44 = vpop.permute.xlu1 %2341 }
 0x156   : > { %v3687_v8 = vsel %vm9582_vm2, %v3682_v0, %v3686_v38  ;;  %v8076_v15 = vld [vmem:[%s9553_s13 + $0xa0] sm:$0xf]  ;;  %v8138_v6 = vld [vmem:[%s9553_s13 + $0x98] sm:$0xf]  ;;  %v4694_v9 = vrot.slane %v4692_v2, 5  ;;  %4388 = vmatpush.bf16.msrb.mxu3 %v9165_v28 }
 0x157   : > { %3702 = vrot.lane.b32.xlu0 %v3687_v8, %s9463_s14  ;;  %3298 = vst.msk [vmem:[#allocation2 + $0x28] sm:$0xf] %vm266_vm3, %v8076_v15  ;;  %v9094_v13 = vld [vmem:[#allocation2 + $0x7c] sm:$0xf]  ;;  %v7910_v21 = vld [vmem:[#allocation2 + $0x8c] sm:$0xf0]  ;;  %v4689_v22 = vor.u32 %v4688_v12, %v4685_v14 }
 0x158   : > { %3346 = vst.msk [vmem:[#allocation2 + $0x28] sm:$0xf] %vm316_vm4, %v3325_v5  ;;  %v7916_v45 = vld [vmem:[#allocation2 + $0x80] sm:$0xf]  ;;  %v8153_v24 = vld [vmem:[%s9553_s13 + $0x118] sm:$0xf]  ;;  %v7913_v20 = vor.u32 %v9094_v13, %v7910_v21 }
 0x159   : > { %3537 = vst.msk [vmem:[#allocation2 + $0x18] sm:$0xf] %vm316_vm4, %v3515_v61  ;;  %v9097_v7 = vld [vmem:[#allocation2 + $0x90] sm:$0xf0]  ;;  %v8134_v60 = vld [vmem:[%s9553_s13 + $0x38] sm:$0xf]  ;;  %v10798_v61 = vadd.f32 %v10725_v56, %v1356_v16 }
 0x15a   : > { %v10764_v23 = vld [vmem:[#allocation2 + $0x1c] sm:$0xf0]  ;;  %v8152_v26 = vld [vmem:[%s9553_s13 + $0x110] sm:$0xf]  ;;  %3536 = vst.msk [vmem:[#allocation2 + $0x4] sm:$0xf] %vm316_vm4, %v3513_v17  ;;  %v7917_v31 = vor.u32 %v9097_v7, %v7916_v45  ;;  %2989 = vmatmul.bf16.gmra.mxu2 %v7913_v20  ;;  %4389 = vmatpush.bf16.msrb.mxu3 %v9164_v63  ;;  %v10820_v20 = vpop.f32.mrf.mxu2 }
 0x15b   : > { %v8135_v33 = vld [vmem:[%s9553_s13 + $0x3c] sm:$0x1]  ;;  %3730 = vst.msk [vmem:[#allocation2 + $0x20] sm:$0xf] %vm266_vm3, %v8139_v10  ;;  %v9080_v48 = vld [vmem:[#allocation2 + $0xc] sm:$0xf] }
 0x15c   : > { %v4690_v34 = vrot.slane %v4689_v22, 4  ;;  %v3661_v4 = vshrl.u32 %v8134_v60, 16  ;;  %3729 = vst.msk [vmem:[#allocation2 + $0xc] sm:$0xf] %vm266_vm3, %v8138_v6  ;;  %3018 = vmatmul.bf16.gmra.mxu3 %v7917_v31  ;;  %v3664_v19 = vshll.u32 %v8134_v60, 16  ;;  %v3670_v42 = vshll.u32 %v8135_v33, 16  ;;  %v10814_v22 = vpop.f32.mrf.mxu3 }
 0x15d   : > { %v8488_v35 = vld [vmem:[%s9553_s13 + $0xa0] sm:$0xf]  ;;  %v8489_v40 = vld [vmem:[%s9553_s13 + $0xa4] sm:$0x1]  ;;  %v9190_v37 = vld [vmem:[%s12379_s1 + $0x118] sm:$0xff]  ;;  %3768 = vrot.lane.b32.xlu1 %v8153_v24, %s9463_s14  ;;  %v7861_v58 = vor.u32 %v9080_v48, %v10764_v23 }
 0x15e   : > { %v4695_v49 = vsel %vm9582_vm2, %v4690_v34, %v4694_v9  ;;  %v3663_v50 = vrot.slane %v3661_v4, 4  ;;  %v3666_v51 = vrot.slane %v3664_v19, 5  ;;  %v3672_v52 = vrot.slane %v3670_v42, 5  ;;  %2364 = vst.msk [vmem:[#allocation2 + $0x48] sm:$0xf] %vm316_vm4, %v2344_v47  ;;  %4474 = vmatpush.bf16.msra.mxu2 %v9190_v37  ;;  %v9178_v32 = vld [vmem:[%s12379_s1 + $0xb8] sm:$0xff]  ;;  %4390 = vmatpush.bf16.msrb.mxu3 %v9163_v46 }
 0x15f   : > { %4734 = vrot.lane.b32.xlu2 %v4695_v49, %s9463_s14  ;;  %v5299_v54 = vshrl.u32 %v8488_v35, 16  ;;  %v5302_v57 = vshll.u32 %v8488_v35, 16  ;;  %3766 = vrot.lane.b32.xlu0 %v8152_v26, %s9463_s14  ;;  %v5308_v38 = vshll.u32 %v8489_v40, 16  ;;  %2363 = vst.msk [vmem:[#allocation2 + $0x34] sm:$0xf] %vm316_vm4, %v2342_v44  ;;  %v9186_v55 = vld [vmem:[%s12379_s1 + $0xf8] sm:$0xff] }
 0x160   : > { %v8077_v5 = vld [vmem:[%s9553_s13 + $0xa8] sm:$0xf]  ;;  %v3667_v36 = vor.u32 %v3666_v51, %v3663_v50  ;;  %v7864_v59 = vld [vmem:[#allocation2 + $0x10] sm:$0xf]  ;;  %v9083_v62 = vld [vmem:[#allocation2 + $0x20] sm:$0xf0]  ;;  %4412 = vmatpush.bf16.msrb.mxu0 %v9178_v32  ;;  %4441 = vmatpush.bf16.msrb.mxu1 %v9186_v55  ;;  %v3329_v51 = vpop.permute.xlu2 %3328  ;;  %v10836_v55 = vpop.permute.xlu1 %3518 }
 0x161   : > { %v5301_v29 = vrot.slane %v5299_v54, 4  ;;  %v5304_v30 = vrot.slane %v5302_v57, 5  ;;  %3299 = vst.msk [vmem:[#allocation2 + $0x3c] sm:$0xf] %vm266_vm3, %v8077_v5  ;;  %v8438_v53 = vld [vmem:[%s9553_s13 + $0x50] sm:$0xf]  ;;  %v7865_v11 = vor.u32 %v9083_v62, %v7864_v59 }
 0x162   : > { %3347 = vst.msk [vmem:[#allocation2 + $0x3c] sm:$0xf] %vm316_vm4, %v3327_v39  ;;  %v3668_v28 = vrot.slane %v3667_v36, 4  ;;  %v5310_v1 = vrot.slane %v5308_v38, 5  ;;  %v8154_v18 = vld [vmem:[%s9553_s13 + $0x98] sm:$0xf] }
 0x163   : > { %v5305_v0 = vor.u32 %v5304_v30, %v5301_v29  ;;  %v8155_v27 = vld [vmem:[%s9553_s13 + $0x9c] sm:$0x1]  ;;  %v8156_v2 = vld [vmem:[%s9553_s13 + $0xa0] sm:$0xf]  ;;  %v8157_v56 = vld [vmem:[%s9553_s13 + $0xa4] sm:$0x1]  ;;  %8070 = vmatmul.msk.bf16.vlgmr.msra.gmra.mxu1 %vm1323_vm5, %v7865_v11 }
 0x164   : > { %v3803_v8 = vshrl.u32 %v8154_v18, 16  ;;  %v3806_v10 = vshll.u32 %v8154_v18, 16  ;;  %3032 = vmatmul.bf16.vlgmr.msra.gmra.mxu0 %v7861_v58  ;;  %v3673_v14 = vsel %vm9582_vm2, %v3668_v28, %v3672_v52  ;;  %v3812_v17 = vshll.u32 %v8155_v27, 16  ;;  %v8420_v12 = vld [vmem:[%s9553_s13 + $0xc8] sm:$0xf]  ;;  %v9177_v47 = vld [vmem:[%s12379_s1 + $0xb0] sm:$0xff] }
 0x165   : > { %v5306_v15 = vrot.slane %v5305_v0, 4  ;;  %v3817_v6 = vshrl.u32 %v8156_v2, 16  ;;  %v3820_v63 = vshll.u32 %v8156_v2, 16  ;;  %v3826_v21 = vshll.u32 %v8157_v56, 16  ;;  %v8421_v45 = vld [vmem:[%s9553_s13 + $0xcc] sm:$0x1]  ;;  %4916 = vrot.lane.b32.xlu1 %v8438_v53, %s9463_s14  ;;  %4413 = vmatpush.bf16.msrb.mxu0 %v9177_v47  ;;  %v3517_v47 = vpop.permute.xlu0 %3516 }
 0x166   : > { %v3805_v9 = vrot.slane %v3803_v8, 4  ;;  %v3808_v13 = vrot.slane %v3806_v10, 5  ;;  %v3814_v7 = vrot.slane %v3812_v17, 5  ;;  %v4711_v23 = vshrl.u32 %v8420_v12, 16  ;;  %v8464_v26 = vld [vmem:[%s9553_s13 + $0x58] sm:$0xf] }
 0x167   : > { %3700 = vrot.lane.b32.xlu2 %v3673_v14, %s9463_s14  ;;  %v5311_v24 = vsel %vm9582_vm2, %v5306_v15, %v5310_v1  ;;  %v3819_v60 = vrot.slane %v3817_v6, 4  ;;  %v3822_v33 = vrot.slane %v3820_v63, 5  ;;  %v3828_v48 = vrot.slane %v3826_v21, 5  ;;  %v8465_v4 = vld [vmem:[%s9553_s13 + $0x5c] sm:$0x1]  ;;  %v9185_v28 = vld [vmem:[%s12379_s1 + $0xf0] sm:$0xff]  ;;  %v10855_v63 = vpop.f32.mrf.mxu2 }
 0x168   : > { %5398 = vrot.lane.b32.xlu0 %v5311_v24, %s9463_s14  ;;  %v3809_v31 = vor.u32 %v3808_v13, %v3805_v9  ;;  %v4714_v34 = vshll.u32 %v8420_v12, 16  ;;  %v4713_v16 = vrot.slane %v4711_v23, 4  ;;  %v4720_v19 = vshll.u32 %v8421_v45, 16  ;;  %v8462_v46 = vld [vmem:[%s9553_s13 + $0x50] sm:$0xf]  ;;  %4442 = vmatpush.bf16.msrb.mxu1 %v9185_v28  ;;  %v10850_v12 = vpop.f32.mrf.mxu3 }
 0x169   : > { %v5123_v42 = vshrl.u32 %v8464_v26, 16  ;;  %v5126_v44 = vshll.u32 %v8464_v26, 16  ;;  %v3823_v50 = vor.u32 %v3822_v33, %v3819_v60  ;;  %v5132_v40 = vshll.u32 %v8465_v4, 16  ;;  %v8463_v37 = vld [vmem:[%s9553_s13 + $0x54] sm:$0x1] }
 0x16a   : > { %v3810_v49 = vrot.slane %v3809_v31, 4  ;;  %v4716_v35 = vrot.slane %v4714_v34, 5  ;;  %v4722_v52 = vrot.slane %v4720_v19, 5  ;;  %v5109_v58 = vshrl.u32 %v8462_v46, 16  ;;  %v8078_v38 = vld [vmem:[%s9553_s13 + $0xb0] sm:$0xf] }
 0x16b   : > { %v5125_v54 = vrot.slane %v5123_v42, 4  ;;  %v5128_v57 = vrot.slane %v5126_v44, 5  ;;  %v3824_v32 = vrot.slane %v3823_v50, 4  ;;  %v5134_v29 = vrot.slane %v5132_v40, 5  ;;  %3300 = vst.msk [vmem:[#allocation2 + $0x50] sm:$0xf] %vm266_vm3, %v8078_v38 }
 0x16c   : > { %v3815_v5 = vsel %vm9582_vm2, %v3810_v49, %v3814_v7  ;;  %v4717_v36 = vor.u32 %v4716_v35, %v4713_v16  ;;  %v8096_v30 = vld [vmem:[%s9553_s13 + $0xa8] sm:$0xf]  ;;  %v5111_v59 = vrot.slane %v5109_v58, 4  ;;  %v5112_v53 = vshll.u32 %v8462_v46, 16  ;;  %3348 = vst.msk [vmem:[#allocation2 + $0x50] sm:$0xf] %vm316_vm4, %v3329_v51  ;;  %v2348_v35 = vpop.permute.xlu2 %2347 }
 0x16d   : > { %3922 = vst.msk [vmem:[#allocation2 + $0x10] sm:$0xf] %vm266_vm3, %v3815_v5  ;;  %v5129_v39 = vor.u32 %v5128_v57, %v5125_v54  ;;  %v5118_v62 = vshll.u32 %v8463_v37, 16  ;;  %v3829_v0 = vsel %vm9582_vm2, %v3824_v32, %v3828_v48  ;;  %v8097_v11 = vld [vmem:[%s9553_s13 + $0xac] sm:$0x1]  ;;  %v3411_v18 = vshrl.u32 %v8096_v30, 16 }
 0x16e   : > { %v4718_v1 = vrot.slane %v4717_v36, 4  ;;  %3923 = vst.msk [vmem:[#allocation2 + $0x24] sm:$0xf] %vm266_vm3, %v3829_v0  ;;  %v5114_v2 = vrot.slane %v5112_v53, 5  ;;  %v3414_v8 = vshll.u32 %v8096_v30, 16  ;;  %v3420_v15 = vshll.u32 %v8097_v11, 16 }
 0x16f   : > { %v5130_v27 = vrot.slane %v5129_v39, 4  ;;  %v5120_v56 = vrot.slane %v5118_v62, 5  ;;  %v3413_v14 = vrot.slane %v3411_v18, 4  ;;  %v8094_v17 = vld [vmem:[%s9553_s13 + $0xa0] sm:$0xf]  ;;  %v1361_v58 = vadd.f32 %v10750_v3, %v10820_v20  ;;  %v2346_v62 = vpop.permute.xlu1 %2345 }
 0x170   : > { %v4723_v10 = vsel %vm9582_vm2, %v4718_v1, %v4722_v52  ;;  %v8095_v6 = vld [vmem:[%s9553_s13 + $0xa4] sm:$0x1]  ;;  %v5115_v13 = vor.u32 %v5114_v2, %v5111_v59  ;;  %v3416_v21 = vrot.slane %v3414_v8, 5  ;;  %v3397_v45 = vshrl.u32 %v8094_v17, 16  ;;  %v9085_v24 = vld [vmem:[#allocation2 + $0x34] sm:$0xf] }
 0x171   : > { %4738 = vrot.lane.b32.xlu2 %v4723_v10, %s9463_s14  ;;  %v5135_v9 = vsel %vm9582_vm2, %v5130_v27, %v5134_v29  ;;  %v7878_v7 = vld [vmem:[#allocation2 + $0x44] sm:$0xf0]  ;;  %v3422_v60 = vrot.slane %v3420_v15, 5  ;;  %v3400_v23 = vshll.u32 %v8094_v17, 16  ;;  %v3406_v26 = vshll.u32 %v8095_v6, 16  ;;  %v10886_v15 = vpop.f32.mrf.mxu3  ;;  %v10888_v6 = vpop.f32.mrf.mxu2 }
 0x172   : > { %5222 = vrot.lane.b32.xlu1 %v5135_v9, %s9463_s14  ;;  %v7881_v31 = vor.u32 %v9085_v24, %v7878_v7  ;;  %v8172_v33 = vld [vmem:[#allocation2] sm:$0xf]  ;;  %v5116_v48 = vrot.slane %v5115_v13, 4  ;;  %v3417_v34 = vor.u32 %v3416_v21, %v3413_v14  ;;  %v3399_v4 = vrot.slane %v3397_v45, 4  ;;  %v9137_v16 = vld [vmem:[#allocation2 + $0x10] sm:$0xf0] }
 0x173   : > { %v9135_v19 = vld [vmem:[#allocation2 + $0x4] sm:$0xf]  ;;  %v3402_v42 = vrot.slane %v3400_v23, 5  ;;  %v3408_v44 = vrot.slane %v3406_v26, 5  ;;  %v8173_v46 = vor.u32 %v9137_v16, %v8172_v33  ;;  %v8174_v49 = vld [vmem:[#allocation2 + $0x14] sm:$0xf0] }
 0x174   : > { %v8486_v50 = vld [vmem:[%s9553_s13 + $0x98] sm:$0xf]  ;;  %v5121_v40 = vsel %vm9582_vm2, %v5116_v48, %v5120_v56  ;;  %v3418_v37 = vrot.slane %v3417_v34, 4  ;;  %3037 = vmatmul.bf16.gmra.mxu0 %v7881_v31  ;;  %v8177_v51 = vor.u32 %v9135_v19, %v8174_v49  ;;  %v8487_v52 = vld [vmem:[%s9553_s13 + $0x9c] sm:$0x1]  ;;  %v9189_v14 = vld [vmem:[%s12379_s1 + $0x110] sm:$0xff] }
 0x175   : > { %v5285_v54 = vshrl.u32 %v8486_v50, 16  ;;  %v8440_v57 = vld [vmem:[%s9553_s13 + $0x60] sm:$0xf]  ;;  %5220 = vrot.lane.b32.xlu0 %v5121_v40, %s9463_s14  ;;  %v3403_v38 = vor.u32 %v3402_v42, %v3399_v4  ;;  %4362 = vmatmul.bf16.vlgmr.msrb.gmra.mxu2 %v8173_v46  ;;  %v5288_v5 = vshll.u32 %v8486_v50, 16  ;;  %v5294_v32 = vshll.u32 %v8487_v52, 16  ;;  %v9176_v42 = vld [vmem:[%s12379_s1 + $0xa8] sm:$0xff] }
 0x176   : > { %v8492_v36 = vld [vmem:[%s9553_s13 + $0xb0] sm:$0xf]  ;;  %v8493_v29 = vld [vmem:[%s9553_s13 + $0xb4] sm:$0x1]  ;;  %v3423_v30 = vsel %vm9582_vm2, %v3418_v37, %v3422_v60  ;;  %4391 = vmatmul.bf16.vlgmr.msrb.gmra.mxu3 %v8177_v51  ;;  %2366 = vst.msk [vmem:[#allocation2 + $0x70] sm:$0xf] %vm316_vm4, %v2348_v35  ;;  %4475 = vmatpush.bf16.msra.mxu2 %v9189_v14  ;;  %v3331_v60 = vpop.permute.xlu0 %3330 }
 0x177   : > { %v5287_v39 = vrot.slane %v5285_v54, 4  ;;  %v5327_v59 = vshrl.u32 %v8492_v36, 16  ;;  %v5330_v53 = vshll.u32 %v8492_v36, 16  ;;  %3491 = vst.msk [vmem:[#allocation2 + $0x40] sm:$0xf] %vm266_vm3, %v3423_v30  ;;  %v3404_v20 = vrot.slane %v3403_v38, 4  ;;  %4414 = vmatpush.bf16.msrb.mxu0 %v9176_v42 }
 0x178   : > { %v5290_v28 = vrot.slane %v5288_v5, 5  ;;  %v5296_v0 = vrot.slane %v5294_v32, 5  ;;  %v5336_v1 = vshll.u32 %v8493_v29, 16  ;;  %3539 = vst.msk [vmem:[#allocation2 + $0x40] sm:$0xf] %vm316_vm4, %v10836_v55  ;;  %v10883_v55 = vadd.f32 %v10814_v22, %v1361_v58  ;;  %v9184_v54 = vld [vmem:[%s12379_s1 + $0xe8] sm:$0xff] }
 0x179   : > { %v5329_v11 = vrot.slane %v5327_v59, 4  ;;  %v5332_v18 = vrot.slane %v5330_v53, 5  ;;  %v8079_v27 = vld [vmem:[%s9553_s13 + $0xb8] sm:$0xf]  ;;  %v3409_v2 = vsel %vm9582_vm2, %v3404_v20, %v3408_v44  ;;  %2365 = vst.msk [vmem:[#allocation2 + $0x5c] sm:$0xf] %vm316_vm4, %v2346_v62  ;;  %4443 = vmatpush.bf16.msrb.mxu1 %v9184_v54 }
 0x17a   : > { %v5291_v56 = vor.u32 %v5290_v28, %v5287_v39  ;;  %4920 = vrot.lane.b32.xlu1 %v8440_v57, %s9463_s14  ;;  %v5338_v8 = vrot.slane %v5336_v1, 5  ;;  %v7884_v10 = vld [vmem:[#allocation2 + $0x38] sm:$0xf]  ;;  %3490 = vst.msk [vmem:[#allocation2 + $0x2c] sm:$0xf] %vm266_vm3, %v3409_v2  ;;  %v3333_v1 = vpop.permute.xlu2 %3332 }
 0x17b   : > { %v5333_v17 = vor.u32 %v5332_v18, %v5329_v11  ;;  %v9088_v9 = vld [vmem:[#allocation2 + $0x48] sm:$0xf0]  ;;  %v8158_v13 = vld [vmem:[%s9553_s13 + $0xa8] sm:$0xf]  ;;  %3538 = vst.msk [vmem:[#allocation2 + $0x2c] sm:$0xf] %vm316_vm4, %v3517_v47 }
 0x17c   : > { %v5292_v21 = vrot.slane %v5291_v56, 4  ;;  %v7885_v45 = vor.u32 %v9088_v9, %v7884_v10  ;;  %v8159_v24 = vld [vmem:[%s9553_s13 + $0xac] sm:$0x1]  ;;  %v3831_v7 = vshrl.u32 %v8158_v13, 16  ;;  %3301 = vst.msk [vmem:[#allocation2 + $0x64] sm:$0xf] %vm266_vm3, %v8079_v27  ;;  %v10919_v27 = vpop.f32.mrf.mxu3  ;;  %v10921_v56 = vpop.f32.mrf.mxu2 }
 0x17d   : > { %v5334_v22 = vrot.slane %v5333_v17, 4  ;;  %v8160_v23 = vld [vmem:[%s9553_s13 + $0xb0] sm:$0xf]  ;;  %v3834_v26 = vshll.u32 %v8158_v13, 16  ;;  %3349 = vst.msk [vmem:[#allocation2 + $0x64] sm:$0xf] %vm316_vm4, %v3331_v60  ;;  %v10927_v13 = vpop.permute.xlu1 %3522 }
 0x17e   : > { %v5297_v31 = vsel %vm9582_vm2, %v5292_v21, %v5296_v0  ;;  %8071 = vmatmul.msk.bf16.gmra.mxu1 %vm1323_vm5, %v7885_v45  ;;  %v8161_v33 = vld [vmem:[%s9553_s13 + $0xb4] sm:$0x1]  ;;  %v3833_v48 = vrot.slane %v3831_v7, 4  ;;  %v3840_v34 = vshll.u32 %v8159_v24, 16  ;;  %v3845_v16 = vshrl.u32 %v8160_v23, 16 }
 0x17f   : > { %5396 = vrot.lane.b32.xlu2 %v5297_v31, %s9463_s14  ;;  %v5339_v4 = vsel %vm9582_vm2, %v5334_v22, %v5338_v8  ;;  %v3836_v47 = vrot.slane %v3834_v26, 5  ;;  %v3848_v19 = vshll.u32 %v8160_v23, 16  ;;  %v3854_v46 = vshll.u32 %v8161_v33, 16  ;;  %v8468_v49 = vld [vmem:[%s9553_s13 + $0x68] sm:$0xf]  ;;  %v10934_v23 = vpop.permute.xlu0 %3520 }
 0x180   : > { %5402 = vrot.lane.b32.xlu0 %v5339_v4, %s9463_s14  ;;  %v3842_v44 = vrot.slane %v3840_v34, 5  ;;  %v8469_v50 = vld [vmem:[%s9553_s13 + $0x6c] sm:$0x1]  ;;  %v3847_v40 = vrot.slane %v3845_v16, 4  ;;  %v5151_v51 = vshrl.u32 %v8468_v49, 16  ;;  %v5154_v38 = vshll.u32 %v8468_v49, 16  ;;  %v10937_v34 = vpop.f32.mrf.mxu0 }
 0x181   : > { %v3837_v35 = vor.u32 %v3836_v47, %v3833_v48  ;;  %v3850_v37 = vrot.slane %v3848_v19, 5  ;;  %v8466_v52 = vld [vmem:[%s9553_s13 + $0x60] sm:$0xf]  ;;  %v3856_v57 = vrot.slane %v3854_v46, 5  ;;  %v8439_v58 = vld [vmem:[%s9553_s13 + $0x58] sm:$0xf] }
 0x182   : > { %v5160_v5 = vshll.u32 %v8469_v50, 16  ;;  %v8467_v32 = vld [vmem:[%s9553_s13 + $0x64] sm:$0x1]  ;;  %v5137_v36 = vshrl.u32 %v8466_v52, 16  ;;  %v5153_v39 = vrot.slane %v5151_v51, 4  ;;  %v5140_v59 = vshll.u32 %v8466_v52, 16 }
 0x183   : > { %v3838_v29 = vrot.slane %v3837_v35, 4  ;;  %v3851_v30 = vor.u32 %v3850_v37, %v3847_v40  ;;  %v8080_v53 = vld [vmem:[%s9553_s13 + $0xc0] sm:$0xf]  ;;  %v5156_v62 = vrot.slane %v5154_v38, 5  ;;  %v5146_v0 = vshll.u32 %v8467_v32, 16 }
 0x184   : > { %v5162_v20 = vrot.slane %v5160_v5, 5  ;;  %v5139_v28 = vrot.slane %v5137_v36, 4  ;;  %3302 = vst.msk [vmem:[#allocation2 + $0x78] sm:$0xf] %vm266_vm3, %v8080_v53  ;;  %v5142_v2 = vrot.slane %v5140_v59, 5 }
 0x185   : > { %v3843_v11 = vsel %vm9582_vm2, %v3838_v29, %v3842_v44  ;;  %v3852_v18 = vrot.slane %v3851_v30, 4  ;;  %3350 = vst.msk [vmem:[#allocation2 + $0x78] sm:$0xf] %vm316_vm4, %v3333_v1  ;;  %v8100_v8 = vld [vmem:[%s9553_s13 + $0xb8] sm:$0xf]  ;;  %v5157_v10 = vor.u32 %v5156_v62, %v5153_v39  ;;  %v5148_v14 = vrot.slane %v5146_v0, 5 }
 0x186   : > { %3924 = vst.msk [vmem:[#allocation2 + $0x38] sm:$0xf] %vm266_vm3, %v3843_v11  ;;  %v8101_v17 = vld [vmem:[%s9553_s13 + $0xbc] sm:$0x1]  ;;  %v3439_v9 = vshrl.u32 %v8100_v8, 16  ;;  %v5143_v45 = vor.u32 %v5142_v2, %v5139_v28  ;;  %v3442_v24 = vshll.u32 %v8100_v8, 16  ;;  %v10961_v2 = vpop.f32.mrf.mxu3  ;;  %v10963_v8 = vpop.f32.mrf.mxu2 }
 0x187   : > { %v3857_v21 = vsel %vm9582_vm2, %v3852_v18, %v3856_v57  ;;  %4918 = vrot.lane.b32.xlu2 %v8439_v58, %s9463_s14  ;;  %v3448_v7 = vshll.u32 %v8101_v17, 16  ;;  %v8098_v22 = vld [vmem:[%s9553_s13 + $0xb0] sm:$0xf]  ;;  %v8099_v60 = vld [vmem:[%s9553_s13 + $0xb4] sm:$0x1]  ;;  %v5158_v26 = vrot.slane %v5157_v10, 4 }
 0x188   : > { %3925 = vst.msk [vmem:[#allocation2 + $0x4c] sm:$0xf] %vm266_vm3, %v3857_v21  ;;  %v3441_v31 = vrot.slane %v3439_v9, 4  ;;  %v3425_v33 = vshrl.u32 %v8098_v22, 16  ;;  %v3428_v48 = vshll.u32 %v8098_v22, 16  ;;  %v5144_v4 = vrot.slane %v5143_v45, 4  ;;  %v2350_v21 = vpop.permute.xlu1 %2349  ;;  %v3335_v22 = vpop.permute.xlu0 %3334 }
 0x189   : > { %v3444_v47 = vrot.slane %v3442_v24, 5  ;;  %v3450_v16 = vrot.slane %v3448_v7, 5  ;;  %v3434_v19 = vshll.u32 %v8099_v60, 16  ;;  %v9090_v42 = vld [vmem:[#allocation2 + $0x5c] sm:$0xf]  ;;  %v5163_v44 = vsel %vm9582_vm2, %v5158_v26, %v5162_v20  ;;  %v9175_v58 = vld [vmem:[%s12379_s1 + $0xa0] sm:$0xff] }
 0x18a   : > { %v3427_v46 = vrot.slane %v3425_v33, 4  ;;  %v3430_v49 = vrot.slane %v3428_v48, 5  ;;  %v7898_v50 = vld [vmem:[#allocation2 + $0x6c] sm:$0xf0]  ;;  %v8192_v35 = vld [vmem:[#allocation2 + $0x28] sm:$0xf]  ;;  %5226 = vrot.lane.b32.xlu1 %v5163_v44, %s9463_s14  ;;  %v5149_v40 = vsel %vm9582_vm2, %v5144_v4, %v5148_v14  ;;  %4415 = vmatpush.bf16.msrb.mxu0 %v9175_v58 }
 0x18b   : > { %v3445_v37 = vor.u32 %v3444_v47, %v3441_v31  ;;  %v3436_v51 = vrot.slane %v3434_v19, 5  ;;  %v7901_v52 = vor.u32 %v9090_v42, %v7898_v50  ;;  %v9142_v54 = vld [vmem:[#allocation2 + $0x38] sm:$0xf0]  ;;  %v8400_v57 = vld [vmem:[%s9553_s13 + $0xe8] sm:$0xf]  ;;  %5224 = vrot.lane.b32.xlu0 %v5149_v40, %s9463_s14  ;;  %v9183_v39 = vld [vmem:[%s12379_s1 + $0xe0] sm:$0xff]  ;;  %v10979_v47 = vpop.f32.mrf.mxu0  ;;  %v2352_v19 = vpop.permute.xlu2 %2351 }
 0x18c   : > { %v3431_v38 = vor.u32 %v3430_v49, %v3427_v46  ;;  %v8193_v5 = vor.u32 %v9142_v54, %v8192_v35  ;;  %v8401_v32 = vld [vmem:[%s9553_s13 + $0xf0] sm:$0xf]  ;;  %4590 = vst.msk [vmem:[#allocation2 + $0x28] sm:$0xf] %vm266_vm3, %v8400_v57  ;;  %v9140_v36 = vld [vmem:[#allocation2 + $0x2c] sm:$0xf]  ;;  %4444 = vmatpush.bf16.msrb.mxu1 %v9183_v39  ;;  %v10982_v42 = vpop.f32.mrf.mxu1 }
 0x18d   : > { %v3446_v29 = vrot.slane %v3445_v37, 4  ;;  %3042 = vmatmul.bf16.gmra.mxu0 %v7901_v52  ;;  %4591 = vst.msk [vmem:[#allocation2 + $0x3c] sm:$0xf] %vm266_vm3, %v8401_v32  ;;  %v8194_v30 = vld [vmem:[#allocation2 + $0x3c] sm:$0xf0]  ;;  %v9174_v60 = vld [vmem:[%s12379_s1 + $0x98] sm:$0xff] }
 0x18e   : > { %v3432_v59 = vrot.slane %v3431_v38, 4  ;;  %4367 = vmatmul.bf16.gmra.mxu2 %v8193_v5  ;;  %v8197_v53 = vor.u32 %v9140_v36, %v8194_v30  ;;  %v8426_v62 = vld [vmem:[%s9553_s13 + $0xe8] sm:$0xf]  ;;  %v8427_v20 = vld [vmem:[%s9553_s13 + $0xec] sm:$0x1]  ;;  %v9218_v33 = vld [vmem:[%s12379_s1 + $0x38] sm:$0xff]  ;;  %4416 = vmatpush.bf16.msrb.mxu0 %v9174_v60 }
 0x18f   : > { %v3451_v28 = vsel %vm9582_vm2, %v3446_v29, %v3450_v16  ;;  %v8428_v0 = vld [vmem:[%s9553_s13 + $0xf0] sm:$0xf]  ;;  %v8429_v1 = vld [vmem:[%s9553_s13 + $0xf4] sm:$0x1]  ;;  %v4801_v11 = vshrl.u32 %v8426_v62, 16  ;;  %v4804_v18 = vshll.u32 %v8426_v62, 16  ;;  %5996 = vmatpush.bf16.msra.mxu3 %v9218_v33 }
 0x190   : > { %3493 = vst.msk [vmem:[#allocation2 + $0x68] sm:$0xf] %vm266_vm3, %v3451_v28  ;;  %v3437_v10 = vsel %vm9582_vm2, %v3432_v59, %v3436_v51  ;;  %4396 = vmatmul.bf16.gmra.mxu3 %v8197_v53  ;;  %v4810_v14 = vshll.u32 %v8427_v20, 16  ;;  %v4815_v17 = vshrl.u32 %v8428_v0, 16  ;;  %v4818_v9 = vshll.u32 %v8428_v0, 16  ;;  %v9188_v36 = vld [vmem:[%s12379_s1 + $0x108] sm:$0xff]  ;;  %v11001_v28 = vpop.f32.mrf.mxu3  ;;  %v11003_v0 = vpop.f32.mrf.mxu2 }
 0x191   : > { %3541 = vst.msk [vmem:[#allocation2 + $0x68] sm:$0xf] %vm316_vm4, %v10927_v13  ;;  %v4803_v45 = vrot.slane %v4801_v11, 4  ;;  %v4806_v24 = vrot.slane %v4804_v18, 5  ;;  %v4824_v7 = vshll.u32 %v8429_v1, 16  ;;  %4476 = vmatpush.bf16.msra.mxu2 %v9188_v36  ;;  %v9173_v36 = vld [vmem:[%s12379_s1 + $0x90] sm:$0xff] }
 0x192   : > { %3492 = vst.msk [vmem:[#allocation2 + $0x54] sm:$0xf] %vm266_vm3, %v3437_v10  ;;  %v4817_v26 = vrot.slane %v4815_v17, 4  ;;  %v4820_v31 = vrot.slane %v4818_v9, 5  ;;  %v4812_v48 = vrot.slane %v4810_v14, 5  ;;  %v11006_v10 = vpop.permute.xlu1 %3526  ;;  %4417 = vmatpush.bf16.msrb.mxu0 %v9173_v36 }
 0x193   : > { %3540 = vst.msk [vmem:[#allocation2 + $0x54] sm:$0xf] %vm316_vm4, %v10934_v23  ;;  %v4807_v13 = vor.u32 %v4806_v24, %v4803_v45  ;;  %v4826_v4 = vrot.slane %v4824_v7, 5  ;;  %v8490_v16 = vld [vmem:[%s9553_s13 + $0xa8] sm:$0xf]  ;;  %v11011_v45 = vpop.permute.xlu0 %3524  ;;  %v11013_v24 = vpop.f32.mrf.mxu0 }
 0x194   : > { %v4821_v44 = vor.u32 %v4820_v31, %v4817_v26  ;;  %v8491_v46 = vld [vmem:[%s9553_s13 + $0xac] sm:$0x1]  ;;  %v5313_v49 = vshrl.u32 %v8490_v16, 16  ;;  %v5316_v50 = vshll.u32 %v8490_v16, 16  ;;  %v8442_v35 = vld [vmem:[%s9553_s13 + $0x70] sm:$0xf]  ;;  %v11021_v16 = vpop.f32.mrf.mxu1 }
 0x195   : > { %v4808_v40 = vrot.slane %v4807_v13, 4  ;;  %v5322_v23 = vshll.u32 %v8491_v46, 16  ;;  %4924 = vrot.lane.b32.xlu1 %v8442_v35, %s9463_s14  ;;  %v8496_v37 = vld [vmem:[%s9553_s13 + $0xc0] sm:$0xf]  ;;  %v8497_v51 = vld [vmem:[%s9553_s13 + $0xc4] sm:$0x1] }
 0x196   : > { %v4822_v52 = vrot.slane %v4821_v44, 4  ;;  %v5315_v54 = vrot.slane %v5313_v49, 4  ;;  %v5318_v57 = vrot.slane %v5316_v50, 5  ;;  %v5355_v58 = vshrl.u32 %v8496_v37, 16  ;;  %2368 = vst.msk [vmem:[#allocation2 + $0x98] sm:$0xf] %vm316_vm4, %v2352_v19 }
 0x197   : > { %v4813_v38 = vsel %vm9582_vm2, %v4808_v40, %v4812_v48  ;;  %v5358_v5 = vshll.u32 %v8496_v37, 16  ;;  %v5364_v32 = vshll.u32 %v8497_v51, 16  ;;  %2367 = vst.msk [vmem:[#allocation2 + $0x84] sm:$0xf] %vm316_vm4, %v2350_v21  ;;  %v5324_v39 = vrot.slane %v5322_v23, 5  ;;  %v9182_v50 = vld [vmem:[%s12379_s1 + $0xd8] sm:$0xff] }
 0x198   : > { %v4827_v29 = vsel %vm9582_vm2, %v4822_v52, %v4826_v4  ;;  %4894 = vst.msk [vmem:[#allocation2 + $0x2c] sm:$0xf] %vm266_vm3, %v4813_v38  ;;  %v5319_v30 = vor.u32 %v5318_v57, %v5315_v54  ;;  %v5357_v59 = vrot.slane %v5355_v58, 4  ;;  %v8081_v53 = vld [vmem:[%s9553_s13 + $0xc8] sm:$0xf]  ;;  %v9217_v52 = vld [vmem:[%s12379_s1 + $0x30] sm:$0xff]  ;;  %4445 = vmatpush.bf16.msrb.mxu1 %v9182_v50 }
 0x199   : > { %4895 = vst.msk [vmem:[#allocation2 + $0x40] sm:$0xf] %vm266_vm3, %v4827_v29  ;;  %v5360_v62 = vrot.slane %v5358_v5, 5  ;;  %v7904_v20 = vld [vmem:[#allocation2 + $0x60] sm:$0xf]  ;;  %v5366_v11 = vrot.slane %v5364_v32, 5  ;;  %5997 = vmatpush.bf16.msra.mxu3 %v9217_v52 }
 0x19a   : > { %v5320_v1 = vrot.slane %v5319_v30, 4  ;;  %3303 = vst.msk [vmem:[#allocation2 + $0x8c] sm:$0xf] %vm266_vm3, %v8081_v53  ;;  %v9093_v18 = vld [vmem:[#allocation2 + $0x70] sm:$0xf0] }
 0x19b   : > { %v5361_v14 = vor.u32 %v5360_v62, %v5357_v59  ;;  %3351 = vst.msk [vmem:[#allocation2 + $0x8c] sm:$0xf] %vm316_vm4, %v3335_v22  ;;  %v7905_v17 = vor.u32 %v9093_v18, %v7904_v20  ;;  %v8162_v9 = vld [vmem:[%s9553_s13 + $0xb8] sm:$0xf]  ;;  %v8163_v21 = vld [vmem:[%s9553_s13 + $0xbc] sm:$0x1]  ;;  %v3689_v62 = vpop.permute.xlu2 %3688 }
 0x19c   : > { %v5325_v7 = vsel %vm9582_vm2, %v5320_v1, %v5324_v39  ;;  %v8164_v60 = vld [vmem:[%s9553_s13 + $0xc0] sm:$0xf]  ;;  %v8165_v26 = vld [vmem:[%s9553_s13 + $0xc4] sm:$0x1]  ;;  %v3859_v31 = vshrl.u32 %v8162_v9, 16  ;;  %v3862_v33 = vshll.u32 %v8162_v9, 16 }
 0x19d   : > { %5400 = vrot.lane.b32.xlu2 %v5325_v7, %s9463_s14  ;;  %v5362_v13 = vrot.slane %v5361_v14, 4  ;;  %8072 = vmatmul.msk.bf16.gmra.mxu1 %vm1323_vm5, %v7905_v17  ;;  %v3868_v22 = vshll.u32 %v8163_v21, 16  ;;  %v3873_v48 = vshrl.u32 %v8164_v60, 16  ;;  %v3876_v4 = vshll.u32 %v8164_v60, 16  ;;  %v8472_v49 = vld [vmem:[%s9553_s13 + $0x78] sm:$0xf]  ;;  %v11042_v60 = vpop.f32.mrf.mxu2 }
 0x19e   : > { %v3861_v19 = vrot.slane %v3859_v31, 4  ;;  %v3864_v44 = vrot.slane %v3862_v33, 5  ;;  %v3882_v46 = vshll.u32 %v8165_v26, 16  ;;  %v8473_v51 = vld [vmem:[%s9553_s13 + $0x7c] sm:$0x1]  ;;  %v5179_v38 = vshrl.u32 %v8472_v49, 16  ;;  %v11044_v26 = vpop.f32.mrf.mxu3 }
 0x19f   : > { %v5367_v35 = vsel %vm9582_vm2, %v5362_v13, %v5366_v11  ;;  %v3870_v40 = vrot.slane %v3868_v22, 5  ;;  %v3875_v23 = vrot.slane %v3873_v48, 4  ;;  %v3878_v37 = vrot.slane %v3876_v4, 5  ;;  %v8441_v58 = vld [vmem:[%s9553_s13 + $0x68] sm:$0xf] }
 0x1a0   : > { %5406 = vrot.lane.b32.xlu0 %v5367_v35, %s9463_s14  ;;  %v3865_v54 = vor.u32 %v3864_v44, %v3861_v19  ;;  %v3884_v57 = vrot.slane %v3882_v46, 5  ;;  %v5182_v5 = vshll.u32 %v8472_v49, 16  ;;  %v8470_v32 = vld [vmem:[%s9553_s13 + $0x70] sm:$0xf]  ;;  %v5188_v30 = vshll.u32 %v8473_v51, 16  ;;  %v11050_v19 = vpop.permute.xlu1 %4724 }
 0x1a1   : > { %v3879_v29 = vor.u32 %v3878_v37, %v3875_v23  ;;  %v8471_v39 = vld [vmem:[%s9553_s13 + $0x74] sm:$0x1]  ;;  %v5165_v59 = vshrl.u32 %v8470_v32, 16  ;;  %v5168_v53 = vshll.u32 %v8470_v32, 16  ;;  %v5181_v1 = vrot.slane %v5179_v38, 4  ;;  %v11057_v23 = vpop.permute.xlu0 %3690  ;;  %v11062_v38 = vpop.f32.mrf.mxu1 }
 0x1a2   : > { %v3866_v20 = vrot.slane %v3865_v54, 4  ;;  %v5184_v11 = vrot.slane %v5182_v5, 5  ;;  %v5174_v18 = vshll.u32 %v8471_v39, 16  ;;  %3712 = vst.msk [vmem:[#allocation2 + $0x8] sm:$0xf] %vm316_vm4, %v3689_v62  ;;  %v5190_v17 = vrot.slane %v5188_v30, 5 }
 0x1a3   : > { %v3880_v14 = vrot.slane %v3879_v29, 4  ;;  %v5167_v9 = vrot.slane %v5165_v59, 4  ;;  %v5170_v21 = vrot.slane %v5168_v53, 5  ;;  %v8104_v7 = vld [vmem:[%s9553_s13 + $0xc8] sm:$0xf]  ;;  %v1346_v29 = vadd.f32 %v10750_v3, %v10937_v34 }
 0x1a4   : > { %v3871_v31 = vsel %vm9582_vm2, %v3866_v20, %v3870_v40  ;;  %v5185_v33 = vor.u32 %v5184_v11, %v5181_v1  ;;  %v5176_v13 = vrot.slane %v5174_v18, 5  ;;  %v8105_v22 = vld [vmem:[%s9553_s13 + $0xcc] sm:$0x1]  ;;  %v3467_v48 = vshrl.u32 %v8104_v7, 16  ;;  %v8102_v4 = vld [vmem:[%s9553_s13 + $0xc0] sm:$0xf]  ;;  %v11059_v40 = vpop.f32.mrf.mxu0 }
 0x1a5   : > { %v3885_v44 = vsel %vm9582_vm2, %v3880_v14, %v3884_v57  ;;  %3926 = vst.msk [vmem:[#allocation2 + $0x60] sm:$0xf] %vm266_vm3, %v3871_v31  ;;  %4922 = vrot.lane.b32.xlu2 %v8441_v58, %s9463_s14  ;;  %v5171_v46 = vor.u32 %v5170_v21, %v5167_v9  ;;  %v3470_v49 = vshll.u32 %v8104_v7, 16  ;;  %v3476_v50 = vshll.u32 %v8105_v22, 16  ;;  %v8103_v35 = vld [vmem:[%s9553_s13 + $0xc4] sm:$0x1] }
 0x1a6   : > { %3927 = vst.msk [vmem:[#allocation2 + $0x74] sm:$0xf] %vm266_vm3, %v3885_v44  ;;  %v5186_v37 = vrot.slane %v5185_v33, 4  ;;  %v3469_v51 = vrot.slane %v3467_v48, 4  ;;  %v3453_v52 = vshrl.u32 %v8102_v4, 16  ;;  %v3456_v54 = vshll.u32 %v8102_v4, 16 }
 0x1a7   : > { %v5172_v57 = vrot.slane %v5171_v46, 4  ;;  %v3472_v5 = vrot.slane %v3470_v49, 5  ;;  %v3478_v58 = vrot.slane %v3476_v50, 5  ;;  %v3462_v32 = vshll.u32 %v8103_v35, 16  ;;  %v9095_v36 = vld [vmem:[#allocation2 + $0x84] sm:$0xf]  ;;  %v11084_v46 = vpop.permute.xlu2 %4726 }
 0x1a8   : > { %v5191_v30 = vsel %vm9582_vm2, %v5186_v37, %v5190_v17  ;;  %v3455_v39 = vrot.slane %v3453_v52, 4  ;;  %v3458_v59 = vrot.slane %v3456_v54, 5  ;;  %v7918_v53 = vld [vmem:[#allocation2 + $0x94] sm:$0xf0]  ;;  %v8212_v62 = vld [vmem:[#allocation2 + $0x50] sm:$0xf]  ;;  %v1375_v50 = vadd.f32 %v10982_v42, %v1346_v29 }
 0x1a9   : > { %5230 = vrot.lane.b32.xlu1 %v5191_v30, %s9463_s14  ;;  %v5177_v20 = vsel %vm9582_vm2, %v5172_v57, %v5176_v13  ;;  %v3473_v1 = vor.u32 %v3472_v5, %v3469_v51  ;;  %v3464_v11 = vrot.slane %v3462_v32, 5  ;;  %v7921_v18 = vor.u32 %v9095_v36, %v7918_v53  ;;  %v9147_v14 = vld [vmem:[#allocation2 + $0x60] sm:$0xf0]  ;;  %v8402_v9 = vld [vmem:[%s9553_s13 + $0xf8] sm:$0xf]  ;;  %v9172_v3 = vld [vmem:[%s12379_s1 + $0x88] sm:$0xff]  ;;  %v11094_v57 = vpop.f32.mrf.mxu2  ;;  %v11096_v5 = vpop.f32.mrf.mxu3 }
 0x1aa   : > { %5228 = vrot.lane.b32.xlu0 %v5177_v20, %s9463_s14  ;;  %v3459_v34 = vor.u32 %v3458_v59, %v3455_v39  ;;  %v8213_v17 = vor.u32 %v9147_v14, %v8212_v62  ;;  %v8403_v21 = vld [vmem:[%s9553_s13 + $0x100] sm:$0xf]  ;;  %4592 = vst.msk [vmem:[#allocation2 + $0x50] sm:$0xf] %vm266_vm3, %v8402_v9  ;;  %v9145_v7 = vld [vmem:[#allocation2 + $0x54] sm:$0xf]  ;;  %4418 = vmatpush.bf16.msrb.mxu0 %v9172_v3  ;;  %v11108_v62 = vpop.permute.xlu0 %3754  ;;  %v11114_v9 = vpop.f32.mrf.mxu1 }
 0x1ab   : > { %v3474_v31 = vrot.slane %v3473_v1, 4  ;;  %3047 = vmatmul.bf16.gmra.mxu0 %v7921_v18  ;;  %4593 = vst.msk [vmem:[#allocation2 + $0x64] sm:$0xf] %vm266_vm3, %v8403_v21  ;;  %v8214_v33 = vld [vmem:[#allocation2 + $0x64] sm:$0xf0]  ;;  %v9181_v49 = vld [vmem:[%s12379_s1 + $0xd0] sm:$0xff]  ;;  %v1404_v3 = vadd.f32 %v10888_v6, %v1375_v50 }
 0x1ac   : > { %v9216_v13 = vld [vmem:[%s12379_s1 + $0x28] sm:$0xff]  ;;  %v3460_v22 = vrot.slane %v3459_v34, 4  ;;  %4372 = vmatmul.bf16.gmra.mxu2 %v8213_v17  ;;  %v8217_v48 = vor.u32 %v9145_v7, %v8214_v33  ;;  %v8430_v4 = vld [vmem:[%s9553_s13 + $0xf8] sm:$0xf]  ;;  %v8431_v44 = vld [vmem:[%s9553_s13 + $0xfc] sm:$0x1]  ;;  %4446 = vmatpush.bf16.msrb.mxu1 %v9181_v49  ;;  %v1461_v20 = vpop.f32.mrf.mxu0 }
 0x1ad   : > { %v3479_v35 = vsel %vm9582_vm2, %v3474_v31, %v3478_v58  ;;  %v8432_v37 = vld [vmem:[%s9553_s13 + $0x100] sm:$0xf]  ;;  %v8433_v51 = vld [vmem:[%s9553_s13 + $0x104] sm:$0x1]  ;;  %v4829_v52 = vshrl.u32 %v8430_v4, 16  ;;  %v4832_v54 = vshll.u32 %v8430_v4, 16  ;;  %5998 = vmatpush.bf16.msra.mxu3 %v9216_v13  ;;  %v11101_v58 = vpop.permute.xlu1 %3756 }
 0x1ae   : > { %3495 = vst.msk [vmem:[#allocation2 + $0x90] sm:$0xf] %vm266_vm3, %v3479_v35  ;;  %v3465_v32 = vsel %vm9582_vm2, %v3460_v22, %v3464_v11  ;;  %4401 = vmatmul.bf16.gmra.mxu3 %v8217_v48  ;;  %v4838_v36 = vshll.u32 %v8431_v44, 16  ;;  %v4843_v42 = vshrl.u32 %v8432_v37, 16  ;;  %v4846_v29 = vshll.u32 %v8432_v37, 16  ;;  %v9215_v30 = vld [vmem:[%s12379_s1 + $0x20] sm:$0xff] }
 0x1af   : > { %3543 = vst.msk [vmem:[#allocation2 + $0x90] sm:$0xf] %vm316_vm4, %v11006_v10  ;;  %v4831_v39 = vrot.slane %v4829_v52, 4  ;;  %v4834_v59 = vrot.slane %v4832_v54, 5  ;;  %v4852_v53 = vshll.u32 %v8433_v51, 16  ;;  %v9171_v1 = vld [vmem:[%s12379_s1 + $0x80] sm:$0xff] }
 0x1b0   : > { %3494 = vst.msk [vmem:[#allocation2 + $0x7c] sm:$0xf] %vm266_vm3, %v3465_v32  ;;  %v4840_v11 = vrot.slane %v4838_v36, 5  ;;  %v4845_v18 = vrot.slane %v4843_v42, 4  ;;  %v4848_v14 = vrot.slane %v4846_v29, 5  ;;  %v9180_v10 = vld [vmem:[%s12379_s1 + $0xc8] sm:$0xff]  ;;  %4419 = vmatpush.bf16.msrb.mxu0 %v9171_v1  ;;  %v1433_v36 = vadd.f32 %v10886_v15, %v1404_v3  ;;  %v11143_v1 = vpop.permute.xlu2 %3692 }
 0x1b1   : > { %3542 = vst.msk [vmem:[#allocation2 + $0x7c] sm:$0xf] %vm316_vm4, %v11011_v45  ;;  %v4835_v34 = vor.u32 %v4834_v59, %v4831_v39  ;;  %v4854_v17 = vrot.slane %v4852_v53, 5  ;;  %v8494_v21 = vld [vmem:[%s9553_s13 + $0xb8] sm:$0xf]  ;;  %5999 = vmatpush.bf16.msra.mxu3 %v9215_v30  ;;  %4447 = vmatpush.bf16.msrb.mxu1 %v9180_v10  ;;  %v9187_v42 = vld [vmem:[%s12379_s1 + $0x100] sm:$0xff]  ;;  %v11148_v10 = vpop.f32.mrf.mxu3 }
 0x1b2   : > { %v9214_v7 = vld [vmem:[%s12379_s1 + $0x18] sm:$0xff]  ;;  %v4849_v31 = vor.u32 %v4848_v14, %v4845_v18  ;;  %v5341_v13 = vshrl.u32 %v8494_v21, 16  ;;  %v5344_v22 = vshll.u32 %v8494_v21, 16  ;;  %v8444_v6 = vld [vmem:[%s9553_s13 + $0x80] sm:$0xf]  ;;  %4477 = vmatpush.bf16.msra.mxu2 %v9187_v42  ;;  %v11146_v14 = vpop.f32.mrf.mxu2 }
 0x1b3   : > { %v8495_v33 = vld [vmem:[%s9553_s13 + $0xbc] sm:$0x1]  ;;  %v4836_v48 = vrot.slane %v4835_v34, 4  ;;  %4928 = vrot.lane.b32.xlu1 %v8444_v6, %s9463_s14  ;;  %v8500_v4 = vld [vmem:[%s9553_s13 + $0xd0] sm:$0xf]  ;;  %v11162_v6 = vpop.permute.xlu0 %3694 }
 0x1b4   : > { %v5350_v45 = vshll.u32 %v8495_v33, 16  ;;  %v8501_v44 = vld [vmem:[%s9553_s13 + $0xd4] sm:$0x1]  ;;  %v4850_v49 = vrot.slane %v4849_v31, 4  ;;  %v5343_v50 = vrot.slane %v5341_v13, 4  ;;  %v5346_v35 = vrot.slane %v5344_v22, 5 }
 0x1b5   : > { %v5383_v37 = vshrl.u32 %v8500_v4, 16  ;;  %v8399_v51 = vld [vmem:[%s9553_s13 + $0xe0] sm:$0xf]  ;;  %v4841_v52 = vsel %vm9582_vm2, %v4836_v48, %v4840_v11  ;;  %v5386_v54 = vshll.u32 %v8500_v4, 16  ;;  %v5392_v32 = vshll.u32 %v8501_v44, 16  ;;  %6000 = vmatpush.bf16.msra.mxu3 %v9214_v7  ;;  %v11154_v21 = vpop.permute.xlu1 %4728  ;;  %v9213_v7 = vld [vmem:[%s12379_s1 + $0x10] sm:$0xff] }
 0x1b6   : > { %4589 = vst.msk [vmem:[#allocation2 + $0x14] sm:$0xf] %vm266_vm3, %v8399_v51  ;;  %v4855_v29 = vsel %vm9582_vm2, %v4850_v49, %v4854_v17  ;;  %v5347_v30 = vor.u32 %v5346_v35, %v5343_v50  ;;  %v5352_v39 = vrot.slane %v5350_v45, 5  ;;  %v8398_v53 = vld [vmem:[%s9553_s13 + $0xd8] sm:$0xf]  ;;  %v11152_v17 = vadd.f32 %v1461_v20, %v1433_v36  ;;  %v11179_v49 = vpop.f32.mrf.mxu1 }
 0x1b7   : > { %4896 = vst.msk [vmem:[#allocation2 + $0x54] sm:$0xf] %vm266_vm3, %v4841_v52  ;;  %v5385_v59 = vrot.slane %v5383_v37, 4  ;;  %v5388_v15 = vrot.slane %v5386_v54, 5  ;;  %v5394_v11 = vrot.slane %v5392_v32, 5 }
 0x1b8   : > { %4897 = vst.msk [vmem:[#allocation2 + $0x68] sm:$0xf] %vm266_vm3, %v4855_v29  ;;  %v7924_v18 = vld [vmem:[#allocation2 + $0x88] sm:$0xf]  ;;  %v5348_v3 = vrot.slane %v5347_v30, 4  ;;  %vm1481_vm6 = vcmp.gt.f32.partialorder %v11152_v17, 0.0 }
 0x1b9   : > { %4749 = vst.msk [vmem:[#allocation2 + $0x14] sm:$0xf] %vm316_vm4, %v11084_v46  ;;  %v9098_v34 = vld [vmem:[#allocation2 + $0x98] sm:$0xf0]  ;;  %v5389_v31 = vor.u32 %v5388_v15, %v5385_v59  ;;  %v8166_v13 = vld [vmem:[%s9553_s13 + $0xc8] sm:$0xf]  ;;  %v11164_v46 = vpop.f32.mrf.mxu0  ;;  %6001 = vmatpush.bf16.msra.mxu3 %v9213_v7 }
 0x1ba   : > { %4588 = vst.msk [vmem:[#allocation2] sm:$0xf] %vm266_vm3, %v8398_v53  ;;  %v7925_v33 = vor.u32 %v9098_v34, %v7924_v18  ;;  %v8167_v22 = vld [vmem:[%s9553_s13 + $0xcc] sm:$0x1]  ;;  %v11169_v20 = vld [vmem:[%s12380_s2] ss:$0 sm:$0xff]  ;;  %v5353_v45 = vsel %vm9582_vm2, %v5348_v3, %v5352_v39 }
 0x1bb   : > { %v1351_v48 = vadd.f32 %v11169_v20, %v11013_v24  ;;  %4748 = vst.msk [vmem:[#allocation2] sm:$0xf] %vm316_vm4, %v11050_v19  ;;  %v8168_v4 = vld [vmem:[%s9553_s13 + $0xd0] sm:$0xf]  ;;  %v8169_v44 = vld [vmem:[%s9553_s13 + $0xd4] sm:$0x1]  ;;  %5404 = vrot.lane.b32.xlu2 %v5353_v45, %s9463_s14 }
 0x1bc   : > { %v5390_v50 = vrot.slane %v5389_v31, 4  ;;  %3713 = vst.msk [vmem:[#allocation2 + $0x1c] sm:$0xf] %vm316_vm4, %v11057_v23  ;;  %8073 = vmatmul.msk.bf16.gmra.mxu1 %vm1323_vm5, %v7925_v33  ;;  %v3887_v24 = vshrl.u32 %v8166_v13, 16  ;;  %v3890_v35 = vshll.u32 %v8166_v13, 16  ;;  %v3896_v37 = vshll.u32 %v8167_v22, 16  ;;  %v11198_v13 = vpop.f32.mrf.mxu2  ;;  %v11200_v22 = vpop.f32.mrf.mxu3 }
 0x1bd   : > { %v3901_v19 = vshrl.u32 %v8168_v4, 16  ;;  %v3904_v51 = vshll.u32 %v8168_v4, 16  ;;  %v3910_v52 = vshll.u32 %v8169_v44, 16  ;;  %v8476_v42 = vld [vmem:[%s9553_s13 + $0x88] sm:$0xf]  ;;  %v9179_v29 = vld [vmem:[%s12379_s1 + $0xc0] sm:$0xff] }
 0x1be   : > { %v5395_v54 = vsel %vm9582_vm2, %v5390_v50, %v5394_v11  ;;  %v3889_v32 = vrot.slane %v3887_v24, 4  ;;  %v3892_v36 = vrot.slane %v3890_v35, 5  ;;  %v3898_v23 = vrot.slane %v3896_v37, 5  ;;  %v8443_v53 = vld [vmem:[%s9553_s13 + $0x78] sm:$0xf]  ;;  %4448 = vmatpush.bf16.msrb.mxu1 %v9179_v29  ;;  %v11203_v35 = vpop.permute.xlu2 %4730 }
 0x1bf   : > { %5410 = vrot.lane.b32.xlu0 %v5395_v54, %s9463_s14  ;;  %v3903_v30 = vrot.slane %v3901_v19, 4  ;;  %v3906_v39 = vrot.slane %v3904_v51, 5  ;;  %v3912_v59 = vrot.slane %v3910_v52, 5  ;;  %v8477_v15 = vld [vmem:[%s9553_s13 + $0x8c] sm:$0x1]  ;;  %v5207_v18 = vshrl.u32 %v8476_v42, 16 }
 0x1c0   : > { %v1380_v11 = vadd.f32 %v11062_v38, %v1351_v48  ;;  %v3893_v3 = vor.u32 %v3892_v36, %v3889_v32  ;;  %v5210_v34 = vshll.u32 %v8476_v42, 16  ;;  %v5216_v7 = vshll.u32 %v8477_v15, 16  ;;  %v8474_v31 = vld [vmem:[%s9553_s13 + $0x80] sm:$0xf]  ;;  %v8475_v33 = vld [vmem:[%s9553_s13 + $0x84] sm:$0x1]  ;;  %v11211_v36 = vpop.permute.xlu1 %3760  ;;  %v11222_v15 = vpop.permute.xlu0 %3758 }
 0x1c1   : > { %v3907_v45 = vor.u32 %v3906_v39, %v3903_v30  ;;  %v5209_v4 = vrot.slane %v5207_v18, 4  ;;  %v5193_v44 = vshrl.u32 %v8474_v31, 16  ;;  %v5196_v50 = vshll.u32 %v8474_v31, 16  ;;  %v8116_v24 = vld [vmem:[%s9553_s13 + $0x60] sm:$0xf]  ;;  %v9212_v38 = vld [vmem:[%s12379_s1 + $0x8] sm:$0xff]  ;;  %v1466_v18 = vpop.f32.mrf.mxu0  ;;  %v11228_v31 = vpop.f32.mrf.mxu1 }
 0x1c2   : > { %v3894_v48 = vrot.slane %v3893_v3, 4  ;;  %v5212_v37 = vrot.slane %v5210_v34, 5  ;;  %v5218_v19 = vrot.slane %v5216_v7, 5  ;;  %v5202_v51 = vshll.u32 %v8475_v33, 16  ;;  %3554 = vst.msk [vmem:[#allocation2 + $0x30] sm:$0xf] %vm266_vm3, %v8116_v24  ;;  %6002 = vmatpush.bf16.msra.mxu3 %v9212_v38 }
 0x1c3   : > { %v3908_v52 = vrot.slane %v3907_v45, 4  ;;  %v5195_v54 = vrot.slane %v5193_v44, 4  ;;  %v5198_v32 = vrot.slane %v5196_v50, 5  ;;  %3714 = vst.msk [vmem:[#allocation2 + $0x30] sm:$0xf] %vm316_vm4, %v11143_v1  ;;  %v9211_v42 = vld [vmem:[%s12379_s1] sm:$0xff]  ;;  %4926 = vrot.lane.b32.xlu2 %v8443_v53, %s9463_s14  ;;  %v1409_v3 = vadd.f32 %v10963_v8, %v1380_v11 }
 0x1c4   : > { %v3899_v29 = vsel %vm9582_vm2, %v3894_v48, %v3898_v23  ;;  %v5213_v30 = vor.u32 %v5212_v37, %v5209_v4  ;;  %v5204_v39 = vrot.slane %v5202_v51, 5  ;;  %3779 = vst.msk [vmem:[#allocation2 + $0x20] sm:$0xf] %vm316_vm4, %v11101_v58  ;;  %v1489_v1 = vmul.f32 0.2, %v11152_v17  ;;  %v2975_v37 = vpop.f32.mrf.mxu2  ;;  %v3004_v51 = vpop.f32.mrf.mxu3 }
 0x1c5   : > { %v3913_v34 = vsel %vm9582_vm2, %v3908_v52, %v3912_v59  ;;  %3928 = vst.msk [vmem:[#allocation2 + $0x88] sm:$0xf] %vm266_vm3, %v3899_v29  ;;  %v5199_v23 = vor.u32 %v5198_v32, %v5195_v54  ;;  %v8232_v53 = vld [vmem:[#allocation2 + $0x78] sm:$0xf]  ;;  %v9152_v7 = vld [vmem:[#allocation2 + $0x88] sm:$0xf0]  ;;  %v2947_v59 = vadd.f32 %v11169_v20, %v11179_v49  ;;  %v1438_v54 = vadd.f32 %v10961_v2, %v1409_v3 }
 0x1c6   : > { %3929 = vst.msk [vmem:[#allocation2 + $0x9c] sm:$0xf] %vm266_vm3, %v3913_v34  ;;  %v5214_v58 = vrot.slane %v5213_v30, 4  ;;  %v1497_v33 = vsel %vm1481_vm6, %v11152_v17, %v1489_v1  ;;  %v8233_v45 = vor.u32 %v9152_v7, %v8232_v53  ;;  %v8404_v8 = vld [vmem:[%s9553_s13 + $0x108] sm:$0xf]  ;;  %6003 = vmatpush.bf16.msra.mxu3 %v9211_v42  ;;  %v3697_v34 = vpop.permute.xlu2 %3696 }
 0x1c7   : > { %v5200_v11 = vrot.slane %v5199_v23, 4  ;;  %3778 = vst.msk [vmem:[#allocation2 + $0xc] sm:$0xf] %vm316_vm4, %v11108_v62  ;;  %v1505_v4 = vpack.c.bf16 %v1497_v33, %v1497_v33  ;;  %v8405_v44 = vld [vmem:[%s9553_s13 + $0x110] sm:$0xf]  ;;  %v2976_v32 = vadd.f32 %v2975_v37, %v2947_v59  ;;  %v1467_v3 = vadd.f32 %v1466_v18, %v1438_v54 }
 0x1c8   : > { %v5219_v50 = vsel %vm9582_vm2, %v5214_v58, %v5218_v19  ;;  %4377 = vmatmul.bf16.gmra.mxu2 %v8233_v45  ;;  %4594 = vst.msk [vmem:[#allocation2 + $0x78] sm:$0xf] %vm266_vm3, %v8404_v8  ;;  %v9150_v17 = vld [vmem:[#allocation2 + $0x7c] sm:$0xf]  ;;  %v8234_v24 = vld [vmem:[#allocation2 + $0x8c] sm:$0xf0]  ;;  %v11258_v59 = vpop.permute.xlu1 %4732 }
 0x1c9   : > { %5234 = vrot.lane.b32.xlu1 %v5219_v50, %s9463_s14  ;;  %v5205_v49 = vsel %vm9582_vm2, %v5200_v11, %v5204_v39  ;;  %1513 = vst.msk [vmem:[#allocation3 + $0x8] sm:$0xf] %vm266_vm3, %v1505_v4  ;;  %v8237_v62 = vor.u32 %v9150_v17, %v8234_v24  ;;  %v8434_v38 = vld [vmem:[%s9553_s13 + $0x108] sm:$0xf]  ;;  %v8435_v48 = vld [vmem:[%s9553_s13 + $0x10c] sm:$0x1]  ;;  %v11255_v33 = vadd.f32 %v3004_v51, %v2976_v32  ;;  %v11262_v24 = vpop.permute.xlu0 %3698  ;;  %v2951_v37 = vpop.f32.mrf.mxu1 }
 0x1ca   : > { %5232 = vrot.lane.b32.xlu0 %v5205_v49, %s9463_s14  ;;  %4595 = vst.msk [vmem:[#allocation2 + $0x8c] sm:$0xf] %vm266_vm3, %v8405_v44  ;;  %v8436_v19 = vld [vmem:[%s9553_s13 + $0x110] sm:$0xf]  ;;  %v8437_v52 = vld [vmem:[%s9553_s13 + $0x114] sm:$0x1]  ;;  %v11264_v49 = vpop.f32.mrf.mxu0 }
 0x1cb   : > { %4406 = vmatmul.bf16.gmra.mxu3 %v8237_v62  ;;  %v4857_v42 = vshrl.u32 %v8434_v38, 16  ;;  %v4860_v29 = vshll.u32 %v8434_v38, 16  ;;  %v4866_v30 = vshll.u32 %v8435_v48, 16  ;;  %v4871_v39 = vshrl.u32 %v8436_v19, 16  ;;  %v8180_v1 = vld [vmem:[#allocation2 + $0x8] sm:$0xf] }
 0x1cc   : > { %v4874_v23 = vshll.u32 %v8436_v19, 16  ;;  %v4880_v53 = vshll.u32 %v8437_v52, 16  ;;  %v9138_v7 = vld [vmem:[#allocation2 + $0x18] sm:$0xf0]  ;;  %v8498_v58 = vld [vmem:[%s9553_s13 + $0xc8] sm:$0xf] }
 0x1cd   : > { %v4859_v45 = vrot.slane %v4857_v42, 4  ;;  %v4862_v8 = vrot.slane %v4860_v29, 5  ;;  %v4873_v11 = vrot.slane %v4871_v39, 4  ;;  %v8499_v2 = vld [vmem:[%s9553_s13 + $0xcc] sm:$0x1]  ;;  %v4868_v4 = vrot.slane %v4866_v30, 5 }
 0x1ce   : > { %v4876_v44 = vrot.slane %v4874_v23, 5  ;;  %v8181_v50 = vor.u32 %v9138_v7, %v8180_v1  ;;  %v5369_v17 = vshrl.u32 %v8498_v58, 16  ;;  %4751 = vst.msk [vmem:[#allocation2 + $0x3c] sm:$0xf] %vm316_vm4, %v11203_v35  ;;  %v5372_v38 = vshll.u32 %v8498_v58, 16  ;;  %v11277_v7 = vpop.f32.mrf.mxu3 }
 0x1cf   : > { %v4863_v62 = vor.u32 %v4862_v8, %v4859_v45  ;;  %v5378_v48 = vshll.u32 %v8499_v2, 16  ;;  %4750 = vst.msk [vmem:[#allocation2 + $0x28] sm:$0xf] %vm316_vm4, %v11154_v21  ;;  %v8117_v18 = vld [vmem:[%s9553_s13 + $0x68] sm:$0xf]  ;;  %v4882_v19 = vrot.slane %v4880_v53, 5  ;;  %v11275_v53 = vpop.f32.mrf.mxu2  ;;  %v11285_v2 = vpop.permute.xlu2 %4734 }
 0x1d0   : > { %v4877_v51 = vor.u32 %v4876_v44, %v4873_v11  ;;  %4420 = vmatmul.bf16.vlgmr.msrb.gmra.mxu0 %v8181_v50  ;;  %v5371_v52 = vrot.slane %v5369_v17, 4  ;;  %3555 = vst.msk [vmem:[#allocation2 + $0x44] sm:$0xf] %vm266_vm3, %v8117_v18  ;;  %v5374_v54 = vrot.slane %v5372_v38, 5  ;;  %v9136_v42 = vld [vmem:[#allocation2 + $0xc] sm:$0xf]  ;;  %v11296_v18 = vpop.permute.xlu1 %3764 }
 0x1d1   : > { %v4864_v35 = vrot.slane %v4863_v62, 4  ;;  %3715 = vst.msk [vmem:[#allocation2 + $0x44] sm:$0xf] %vm316_vm4, %v11162_v6  ;;  %v8182_v29 = vld [vmem:[#allocation2 + $0x1c] sm:$0xf0]  ;;  %vm1483_vm7 = vcmp.gt.f32.partialorder %v1467_v3, 0.0 }
 0x1d2   : > { %v4878_v32 = vrot.slane %v4877_v51, 4  ;;  %v5375_v30 = vor.u32 %v5374_v54, %v5371_v52  ;;  %v5380_v39 = vrot.slane %v5378_v48, 5  ;;  %v8185_v1 = vor.u32 %v9136_v42, %v8182_v29  ;;  %v8118_v23 = vld [vmem:[%s9553_s13 + $0x70] sm:$0xf]  ;;  %v8140_v11 = vld [vmem:[%s9553_s13 + $0xa8] sm:$0xf]  ;;  %v1471_v54 = vpop.f32.mrf.mxu0 }
 0x1d3   : > { %v4869_v21 = vsel %vm9582_vm2, %v4864_v35, %v4868_v4  ;;  %v8141_v58 = vld [vmem:[%s9553_s13 + $0xb0] sm:$0xf]  ;;  %v1491_v45 = vmul.f32 0.2, %v1467_v3  ;;  %3556 = vst.msk [vmem:[#allocation2 + $0x58] sm:$0xf] %vm266_vm3, %v8118_v23  ;;  %v11300_v35 = vpop.permute.xlu0 %3762  ;;  %v2952_v23 = vadd.f32 %v11169_v20, %v2951_v37 }
 0x1d4   : > { %v4883_v6 = vsel %vm9582_vm2, %v4878_v32, %v4882_v19  ;;  %4898 = vst.msk [vmem:[#allocation2 + $0x7c] sm:$0xf] %vm266_vm3, %v4869_v21  ;;  %v5376_v8 = vrot.slane %v5375_v30, 4  ;;  %4449 = vmatmul.bf16.vlgmr.msrb.gmra.mxu1 %v8185_v1  ;;  %v8450_v44 = vld [vmem:[%s9553_s13 + $0x18] sm:$0xf]  ;;  %v11306_v21 = vpop.f32.mrf.mxu1 }
 0x1d5   : > { %4899 = vst.msk [vmem:[#allocation2 + $0x90] sm:$0xf] %vm266_vm3, %v4883_v6  ;;  %v1499_v4 = vsel %vm1483_vm7, %v1467_v3, %v1491_v45  ;;  %v8451_v50 = vld [vmem:[%s9553_s13 + $0x1c] sm:$0x1]  ;;  %v8200_v62 = vld [vmem:[#allocation2 + $0x30] sm:$0xf] }
 0x1d6   : > { %v5381_v17 = vsel %vm9582_vm2, %v5376_v8, %v5380_v39  ;;  %3716 = vst.msk [vmem:[#allocation2 + $0x58] sm:$0xf] %vm316_vm4, %v3697_v34  ;;  %v8452_v38 = vld [vmem:[%s9553_s13 + $0x20] sm:$0xf]  ;;  %v8453_v48 = vld [vmem:[%s9553_s13 + $0x24] sm:$0x1]  ;;  %v1507_v51 = vpack.c.bf16 %v1499_v4, %v1499_v4  ;;  %v1414_v34 = vadd.f32 %v11042_v60, %v10798_v61 }
 0x1d7   : > { %5408 = vrot.lane.b32.xlu2 %v5381_v17, %s9463_s14  ;;  %3732 = vst.msk [vmem:[#allocation2 + $0x48] sm:$0xf] %vm266_vm3, %v8141_v58  ;;  %v4993_v3 = vshrl.u32 %v8450_v44, 16  ;;  %v4996_v52 = vshll.u32 %v8450_v44, 16  ;;  %v5002_v32 = vshll.u32 %v8451_v50, 16  ;;  %v5007_v42 = vshrl.u32 %v8452_v38, 16 }
 0x1d8   : > { %v9143_v19 = vld [vmem:[#allocation2 + $0x40] sm:$0xf0]  ;;  %3781 = vst.msk [vmem:[#allocation2 + $0x48] sm:$0xf] %vm316_vm4, %v11211_v36  ;;  %v5010_v29 = vshll.u32 %v8452_v38, 16  ;;  %v5016_v1 = vshll.u32 %v8453_v48, 16  ;;  %v1443_v4 = vadd.f32 %v11044_v26, %v1414_v34  ;;  %v2980_v38 = vpop.f32.mrf.mxu2  ;;  %v3009_v48 = vpop.f32.mrf.mxu3 }
 0x1d9   : > { %12389 = vst [vmem:[#allocation8_spill] sm:$0xff] %v11306_v21  ;;  %v4995_v30 = vrot.slane %v4993_v3, 4  ;;  %v4998_v39 = vrot.slane %v4996_v52, 5  ;;  %v8445_v6 = vld [vmem:[%s9553_s13 + $0x88] sm:$0xf]  ;;  %v5009_v61 = vrot.slane %v5007_v42, 4  ;;  %v8201_v58 = vor.u32 %v9143_v19, %v8200_v62  ;;  %v11322_v21 = vpop.permute.xlu2 %3700 }
 0x1da   : > { %3731 = vst.msk [vmem:[#allocation2 + $0x34] sm:$0xf] %vm266_vm3, %v8140_v11  ;;  %v5012_v60 = vrot.slane %v5010_v29, 5  ;;  %v9226_v36 = vld [vmem:[%s12379_s1 + $0x78] sm:$0xff]  ;;  %v5004_v8 = vrot.slane %v5002_v32, 5  ;;  %v5018_v11 = vrot.slane %v5016_v1, 5  ;;  %v2981_v62 = vadd.f32 %v2980_v38, %v2952_v23 }
 0x1db   : > { %3780 = vst.msk [vmem:[#allocation2 + $0x34] sm:$0xf] %vm316_vm4, %v11222_v15  ;;  %v4999_v45 = vor.u32 %v4998_v39, %v4995_v30  ;;  %v8188_v37 = vld [vmem:[#allocation2 + $0x10] sm:$0xf]  ;;  %v9139_v50 = vld [vmem:[#allocation2 + $0x20] sm:$0xf0]  ;;  %6025 = vmatpush.bf16.msra.mxu0 %v9226_v36  ;;  %v11340_v38 = vpop.permute.xlu0 %3702 }
 0x1dc   : > { %1515 = vst.msk [vmem:[#allocation3 + $0x30] sm:$0xf] %vm266_vm3, %v1507_v51  ;;  %v5013_v44 = vor.u32 %v5012_v60, %v5009_v61  ;;  %v8502_v15 = vld [vmem:[%s9553_s13 + $0xe0] sm:$0xf]  ;;  %v8503_v17 = vld [vmem:[%s9553_s13 + $0xe4] sm:$0x1]  ;;  %v8189_v52 = vor.u32 %v9139_v50, %v8188_v37  ;;  %v11334_v37 = vpop.permute.xlu1 %4736 }
 0x1dd   : > { %v5000_v3 = vrot.slane %v4999_v45, 4  ;;  %v8504_v42 = vld [vmem:[%s9553_s13 + $0xe8] sm:$0xf]  ;;  %v8505_v51 = vld [vmem:[%s9553_s13 + $0xec] sm:$0x1]  ;;  %v5445_v29 = vshrl.u32 %v8502_v15, 16 }
 0x1de   : > { %v5014_v19 = vrot.slane %v5013_v44, 4  ;;  %v5448_v30 = vshll.u32 %v8502_v15, 16  ;;  %v5454_v32 = vshll.u32 %v8503_v17, 16  ;;  %v5459_v39 = vshrl.u32 %v8504_v42, 16  ;;  %v8520_v1 = vld [vmem:[#allocation2] sm:$0xf]  ;;  %8394 = vmatmul.msk.bf16.vlgmr.msra.gmra.mxu2 %vm1323_vm5, %v8189_v52 }
 0x1df   : > { %4930 = vrot.lane.b32.xlu2 %v8445_v6, %s9463_s14  ;;  %v5005_v26 = vsel %vm9582_vm2, %v5000_v3, %v5004_v8  ;;  %v5447_v34 = vrot.slane %v5445_v29, 4  ;;  %v5462_v61 = vshll.u32 %v8504_v42, 16  ;;  %v5468_v60 = vshll.u32 %v8505_v51, 16  ;;  %v9193_v36 = vld [vmem:[#allocation2 + $0x10] sm:$0xf0]  ;;  %v9224_v3 = vld [vmem:[%s12379_s1 + $0x68] sm:$0xff] }
 0x1e0   : > { %4425 = vmatmul.bf16.gmra.mxu0 %v8201_v58  ;;  %v9225_v23 = vld [vmem:[%s12379_s1 + $0x70] sm:$0xff]  ;;  %v5019_v45 = vsel %vm9582_vm2, %v5014_v19, %v5018_v11  ;;  %5086 = vst.msk [vmem:[#allocation2 + $0x30] sm:$0xf] %vm266_vm3, %v5005_v26  ;;  %v5450_v6 = vrot.slane %v5448_v30, 5  ;;  %v5461_v58 = vrot.slane %v5459_v39, 4  ;;  %v8521_v44 = vor.u32 %v9193_v36, %v8520_v1  ;;  %v11342_v11 = vpop.f32.mrf.mxu0  ;;  %v11360_v39 = vpop.f32.mrf.mxu3 }
 0x1e1   : > { %5087 = vst.msk [vmem:[#allocation2 + $0x44] sm:$0xf] %vm266_vm3, %v5019_v45  ;;  %v5464_v8 = vrot.slane %v5462_v61, 5  ;;  %v8119_v50 = vld [vmem:[%s9553_s13 + $0x78] sm:$0xf]  ;;  %v1472_v15 = vadd.f32 %v1471_v54, %v1443_v4  ;;  %v11338_v17 = vadd.f32 %v3009_v48, %v2981_v62  ;;  %6026 = vmatpush.bf16.msra.mxu0 %v9225_v23  ;;  %v5456_v42 = vrot.slane %v5454_v32, 5  ;;  %v2956_v54 = vpop.f32.mrf.mxu1 }
 0x1e2   : > { %v5451_v52 = vor.u32 %v5450_v6, %v5447_v34  ;;  %v5470_v51 = vrot.slane %v5468_v60, 5  ;;  %4753 = vst.msk [vmem:[#allocation2 + $0x64] sm:$0xf] %vm316_vm4, %v11285_v2  ;;  %v9141_v29 = vld [vmem:[#allocation2 + $0x34] sm:$0xf]  ;;  %6004 = vmatmul.bf16.vlgmr.msra.gmra.mxu3 %v8521_v44  ;;  %v9234_v2 = vld [vmem:[%s12379_s1 + $0xb8] sm:$0xff]  ;;  %v11374_v6 = vpop.permute.xlu2 %4738 }
 0x1e3   : > { %v5465_v4 = vor.u32 %v5464_v8, %v5461_v58  ;;  %4752 = vst.msk [vmem:[#allocation2 + $0x50] sm:$0xf] %vm316_vm4, %v11258_v59  ;;  %v8202_v48 = vld [vmem:[#allocation2 + $0x44] sm:$0xf0]  ;;  %v8480_v62 = vld [vmem:[%s9553_s13 + $0xf0] sm:$0xf]  ;;  %v11358_v59 = vpop.f32.mrf.mxu2  ;;  %6054 = vmatpush.bf16.msra.mxu1 %v9234_v2 }
 0x1e4   : > { %v5452_v19 = vrot.slane %v5451_v52, 4  ;;  %3557 = vst.msk [vmem:[#allocation2 + $0x6c] sm:$0xf] %vm266_vm3, %v8119_v50  ;;  %v8205_v30 = vor.u32 %v9141_v29, %v8202_v48  ;;  %vm1485_vm8 = vcmp.gt.f32.partialorder %v1472_v15, 0.0  ;;  %v8481_v26 = vld [vmem:[%s9553_s13 + $0xf8] sm:$0xf] }
 0x1e5   : > { %v5466_v32 = vrot.slane %v5465_v4, 4  ;;  %3717 = vst.msk [vmem:[#allocation2 + $0x6c] sm:$0xf] %vm316_vm4, %v11262_v24  ;;  %6027 = vmatpush.bf16.msra.mxu0 %v9224_v3  ;;  %v8120_v24 = vld [vmem:[%s9553_s13 + $0x80] sm:$0xf]  ;;  %v1419_v4 = vadd.f32 %v11146_v14, %v10883_v55 }
 0x1e6   : > { %v5457_v1 = vsel %vm9582_vm2, %v5452_v19, %v5456_v42  ;;  %4454 = vmatmul.bf16.gmra.mxu1 %v8205_v30  ;;  %5262 = vst.msk [vmem:[#allocation2 + $0x34] sm:$0xf] %vm266_vm3, %v8480_v62  ;;  %v8143_v61 = vld [vmem:[%s9553_s13 + $0xc0] sm:$0xf]  ;;  %v1493_v60 = vmul.f32 0.2, %v1472_v15  ;;  %v11391_v19 = vpop.permute.xlu0 %3766 }
 0x1e7   : > { %v5471_v34 = vsel %vm9582_vm2, %v5466_v32, %v5470_v51  ;;  %5564 = vst.msk [vmem:[#allocation2 + $0x10] sm:$0xf] %vm266_vm3, %v5457_v1  ;;  %v8220_v36 = vld [vmem:[#allocation2 + $0x58] sm:$0xf]  ;;  %v8454_v23 = vld [vmem:[%s9553_s13 + $0x28] sm:$0xf]  ;;  %v11382_v51 = vpop.permute.xlu1 %3768 }
 0x1e8   : > { %5565 = vst.msk [vmem:[#allocation2 + $0x24] sm:$0xf] %vm266_vm3, %v5471_v34  ;;  %v8455_v45 = vld [vmem:[%s9553_s13 + $0x2c] sm:$0x1]  ;;  %v8142_v58 = vld [vmem:[%s9553_s13 + $0xb8] sm:$0xf]  ;;  %v1501_v8 = vsel %vm1485_vm8, %v1472_v15, %v1493_v60  ;;  %v1476_v30 = vpop.f32.mrf.mxu0 }
 0x1e9   : > { %5263 = vst.msk [vmem:[#allocation2 + $0x48] sm:$0xf] %vm266_vm3, %v8481_v26  ;;  %v8456_v44 = vld [vmem:[%s9553_s13 + $0x30] sm:$0xf]  ;;  %v8457_v50 = vld [vmem:[%s9553_s13 + $0x34] sm:$0x1]  ;;  %v1509_v32 = vpack.c.bf16 %v1501_v8, %v1501_v8  ;;  %v11395_v34 = vpop.f32.mrf.mxu1 }
 0x1ea   : > { %3558 = vst.msk [vmem:[#allocation2 + $0x80] sm:$0xf] %vm266_vm3, %v8120_v24  ;;  %v5021_v3 = vshrl.u32 %v8454_v23, 16  ;;  %v5024_v52 = vshll.u32 %v8454_v23, 16  ;;  %v5030_v42 = vshll.u32 %v8455_v45, 16  ;;  %v9223_v29 = vld [vmem:[%s12379_s1 + $0x60] sm:$0xff]  ;;  %v2957_v24 = vadd.f32 %v11169_v20, %v2956_v54 }
 0x1eb   : > { %3718 = vst.msk [vmem:[#allocation2 + $0x80] sm:$0xf] %vm316_vm4, %v11322_v21  ;;  %v5035_v15 = vshrl.u32 %v8456_v44, 16  ;;  %v5038_v48 = vshll.u32 %v8456_v44, 16  ;;  %v5044_v62 = vshll.u32 %v8457_v50, 16  ;;  %6028 = vmatpush.bf16.msra.mxu0 %v9223_v29  ;;  %v9222_v8 = vld [vmem:[%s12379_s1 + $0x58] sm:$0xff]  ;;  %v2985_v50 = vpop.f32.mrf.mxu2 }
 0x1ec   : > { %3734 = vst.msk [vmem:[#allocation2 + $0x70] sm:$0xf] %vm266_vm3, %v8143_v61  ;;  %v9148_v2 = vld [vmem:[#allocation2 + $0x68] sm:$0xf0]  ;;  %v5023_v1 = vrot.slane %v5021_v3, 4  ;;  %v5026_v26 = vrot.slane %v5024_v52, 5 }
 0x1ed   : > { %12390 = vst [vmem:[#allocation9_spill] sm:$0xff] %v11395_v34  ;;  %v8221_v55 = vor.u32 %v9148_v2, %v8220_v36  ;;  %v5032_v14 = vrot.slane %v5030_v42, 5  ;;  %v5037_v21 = vrot.slane %v5035_v15, 4  ;;  %v5040_v60 = vrot.slane %v5038_v48, 5  ;;  %v9233_v61 = vld [vmem:[%s12379_s1 + $0xb0] sm:$0xff] }
 0x1ee   : > { %3783 = vst.msk [vmem:[#allocation2 + $0x70] sm:$0xf] %vm316_vm4, %v11296_v18  ;;  %v5027_v23 = vor.u32 %v5026_v26, %v5023_v1  ;;  %v5046_v54 = vrot.slane %v5044_v62, 5  ;;  %v8208_v45 = vld [vmem:[#allocation2 + $0x38] sm:$0xf]  ;;  %6055 = vmatpush.bf16.msra.mxu1 %v9233_v61  ;;  %v2986_v15 = vadd.f32 %v2985_v50, %v2957_v24  ;;  %v1448_v48 = vadd.f32 %v11148_v10, %v1419_v4  ;;  %v11417_v61 = vpop.permute.xlu2 %5396  ;;  %v9232_v24 = vld [vmem:[%s12379_s1 + $0xa8] sm:$0xff] }
 0x1ef   : > { %3733 = vst.msk [vmem:[#allocation2 + $0x5c] sm:$0xf] %vm266_vm3, %v8142_v58  ;;  %v5041_v18 = vor.u32 %v5040_v60, %v5037_v21  ;;  %v9144_v36 = vld [vmem:[#allocation2 + $0x48] sm:$0xf0]  ;;  %v8506_v44 = vld [vmem:[%s9553_s13 + $0xf0] sm:$0xf]  ;;  %v3014_v58 = vpop.f32.mrf.mxu3  ;;  %6029 = vmatpush.bf16.msra.mxu0 %v9222_v8  ;;  %v11431_v50 = vpop.permute.xlu1 %4916 }
 0x1f0   : > { %3782 = vst.msk [vmem:[#allocation2 + $0x5c] sm:$0xf] %vm316_vm4, %v11300_v35  ;;  %4430 = vmatmul.bf16.gmra.mxu0 %v8221_v55  ;;  %v5028_v3 = vrot.slane %v5027_v23, 4  ;;  %v8209_v52 = vor.u32 %v9144_v36, %v8208_v45  ;;  %v8507_v42 = vld [vmem:[%s9553_s13 + $0xf4] sm:$0x1]  ;;  %v5473_v29 = vshrl.u32 %v8506_v44, 16  ;;  %v1477_v36 = vadd.f32 %v1476_v30, %v1448_v48 }
 0x1f1   : > { %1517 = vst.msk [vmem:[#allocation3 + $0x58] sm:$0xf] %vm266_vm3, %v1509_v32  ;;  %v5042_v35 = vrot.slane %v5041_v18, 4  ;;  %v8508_v62 = vld [vmem:[%s9553_s13 + $0xf8] sm:$0xf]  ;;  %v5476_v1 = vshll.u32 %v8506_v44, 16  ;;  %v11429_v44 = vadd.f32 %v3014_v58, %v2986_v15  ;;  %v2961_v15 = vpop.f32.mrf.mxu1 }
 0x1f2   : > { %v8509_v2 = vld [vmem:[%s9553_s13 + $0xfc] sm:$0x1]  ;;  %v5033_v26 = vsel %vm9582_vm2, %v5028_v3, %v5032_v14  ;;  %8395 = vmatmul.msk.bf16.gmra.mxu2 %vm1323_vm5, %v8209_v52  ;;  %v5475_v55 = vrot.slane %v5473_v29, 4  ;;  %v5482_v21 = vshll.u32 %v8507_v42, 16  ;;  %v5487_v32 = vshrl.u32 %v8508_v62, 16  ;;  %6056 = vmatpush.bf16.msra.mxu1 %v9232_v24 }
 0x1f3   : > { %v8540_v60 = vld [vmem:[#allocation2 + $0x28] sm:$0xf]  ;;  %v5047_v10 = vsel %vm9582_vm2, %v5042_v35, %v5046_v54  ;;  %5088 = vst.msk [vmem:[#allocation2 + $0x58] sm:$0xf] %vm266_vm3, %v5033_v26  ;;  %v5478_v4 = vrot.slane %v5476_v1, 5  ;;  %v5490_v14 = vshll.u32 %v8508_v62, 16  ;;  %v11436_v35 = vpop.permute.xlu0 %5398  ;;  %v11438_v62 = vpop.f32.mrf.mxu0 }
 0x1f4   : > { %v5496_v23 = vshll.u32 %v8509_v2, 16  ;;  %v9242_v45 = vld [vmem:[%s12379_s1 + $0xf8] sm:$0xff]  ;;  %5089 = vst.msk [vmem:[#allocation2 + $0x6c] sm:$0xf] %vm266_vm3, %v5047_v10  ;;  %v5489_v8 = vrot.slane %v5487_v32, 4  ;;  %v5484_v3 = vrot.slane %v5482_v21, 5 }
 0x1f5   : > { %v9198_v18 = vld [vmem:[#allocation2 + $0x38] sm:$0xf0]  ;;  %v5479_v54 = vor.u32 %v5478_v4, %v5475_v55  ;;  %v5492_v52 = vrot.slane %v5490_v14, 5  ;;  %4755 = vst.msk [vmem:[#allocation2 + $0x8c] sm:$0xf] %vm316_vm4, %v11374_v6  ;;  %6083 = vmatpush.bf16.msrb.mxu2 %v9242_v45  ;;  %v9221_v1 = vld [vmem:[%s12379_s1 + $0x50] sm:$0xff] }
 0x1f6   : > { %v8541_v42 = vor.u32 %v9198_v18, %v8540_v60  ;;  %v8121_v29 = vld [vmem:[%s9553_s13 + $0x88] sm:$0xf]  ;;  %v5498_v30 = vrot.slane %v5496_v23, 5  ;;  %4754 = vst.msk [vmem:[#allocation2 + $0x78] sm:$0xf] %vm316_vm4, %v11334_v37  ;;  %vm1487_vm9 = vcmp.gt.f32.partialorder %v1477_v36, 0.0  ;;  %6030 = vmatpush.bf16.msra.mxu0 %v9221_v1  ;;  %v11453_v60 = vpop.f32.mrf.mxu2 }
 0x1f7   : > { %v9146_v58 = vld [vmem:[#allocation2 + $0x5c] sm:$0xf]  ;;  %v5480_v48 = vrot.slane %v5479_v54, 4  ;;  %v5493_v2 = vor.u32 %v5492_v52, %v5489_v8  ;;  %3559 = vst.msk [vmem:[#allocation2 + $0x94] sm:$0xf] %vm266_vm3, %v8121_v29  ;;  %v11455_v24 = vpop.f32.mrf.mxu3  ;;  %v11467_v54 = vpop.permute.xlu2 %4918 }
 0x1f8   : > { %6009 = vmatmul.bf16.gmra.mxu3 %v8541_v42  ;;  %v8222_v6 = vld [vmem:[#allocation2 + $0x6c] sm:$0xf0]  ;;  %3719 = vst.msk [vmem:[#allocation2 + $0x94] sm:$0xf] %vm316_vm4, %v11340_v38  ;;  %v8482_v55 = vld [vmem:[%s9553_s13 + $0x100] sm:$0xf] }
 0x1f9   : > { %v8225_v26 = vor.u32 %v9146_v58, %v8222_v6  ;;  %v8483_v37 = vld [vmem:[%s9553_s13 + $0x108] sm:$0xf]  ;;  %v5485_v21 = vsel %vm9582_vm2, %v5480_v48, %v5484_v3  ;;  %v5494_v32 = vrot.slane %v5493_v2, 4  ;;  %5264 = vst.msk [vmem:[#allocation2 + $0x5c] sm:$0xf] %vm266_vm3, %v8482_v55  ;;  %v11469_v3 = vpop.permute.xlu1 %5222  ;;  %v9231_v2 = vld [vmem:[%s12379_s1 + $0xa0] sm:$0xff]  ;;  %v11482_v1 = vpop.f32.mrf.mxu1 }
 0x1fa   : > { %12391 = vst [vmem:[#allocation10_spill] sm:$0xff] %v11453_v60  ;;  %v8478_v38 = vld [vmem:[%s9553_s13 + $0xe0] sm:$0xf]  ;;  %v8145_v10 = vld [vmem:[%s9553_s13 + $0xd0] sm:$0xf]  ;;  %6057 = vmatpush.bf16.msra.mxu1 %v9231_v2 }
 0x1fb   : > { %12392 = vst [vmem:[#allocation11_spill] sm:$0xff] %v11455_v24  ;;  %4459 = vmatmul.bf16.gmra.mxu1 %v8225_v26  ;;  %v5499_v4 = vsel %vm9582_vm2, %v5494_v32, %v5498_v30  ;;  %v1495_v14 = vmul.f32 0.2, %v1477_v36  ;;  %v8240_v23 = vld [vmem:[#allocation2 + $0x80] sm:$0xf]  ;;  %v11480_v6 = vpop.permute.xlu0 %5220 }
 0x1fc   : > { %5566 = vst.msk [vmem:[#allocation2 + $0x38] sm:$0xf] %vm266_vm3, %v5485_v21  ;;  %v8144_v45 = vld [vmem:[%s9553_s13 + $0xc8] sm:$0xf]  ;;  %v8458_v8 = vld [vmem:[%s9553_s13 + $0x38] sm:$0xf]  ;;  %v2962_v21 = vadd.f32 %v11169_v20, %v2961_v15 }
 0x1fd   : > { %5265 = vst.msk [vmem:[#allocation2 + $0x70] sm:$0xf] %vm266_vm3, %v8483_v37  ;;  %v8459_v18 = vld [vmem:[%s9553_s13 + $0x3c] sm:$0x1]  ;;  %v1503_v52 = vsel %vm1487_vm9, %v1477_v36, %v1495_v14  ;;  %v8460_v42 = vld [vmem:[%s9553_s13 + $0x40] sm:$0xf] }
 0x1fe   : > { %5567 = vst.msk [vmem:[#allocation2 + $0x4c] sm:$0xf] %vm266_vm3, %v5499_v4  ;;  %v8461_v29 = vld [vmem:[%s9553_s13 + $0x44] sm:$0x1]  ;;  %v5049_v30 = vshrl.u32 %v8458_v8, 16  ;;  %v5052_v58 = vshll.u32 %v8458_v8, 16  ;;  %v1511_v26 = vpack.c.bf16 %v1503_v52, %v1503_v52 }
 0x1ff   : > { %5260 = vst.msk [vmem:[#allocation2 + $0xc] sm:$0xf] %vm266_vm3, %v8478_v38  ;;  %v5058_v48 = vshll.u32 %v8459_v18, 16  ;;  %v9153_v36 = vld [vmem:[#allocation2 + $0x90] sm:$0xf0]  ;;  %v5063_v55 = vshrl.u32 %v8460_v42, 16 }
 0x200   : > { %5420 = vst.msk [vmem:[#allocation2 + $0xc] sm:$0xf] %vm316_vm4, %v11417_v61  ;;  %v5066_v37 = vshll.u32 %v8460_v42, 16  ;;  %v3033_v61 = vpop.f32.mrf.mxu0  ;;  %v8241_v32 = vor.u32 %v9153_v36, %v8240_v23  ;;  %v5051_v38 = vrot.slane %v5049_v30, 4  ;;  %v5054_v4 = vrot.slane %v5052_v58, 5  ;;  %v9241_v8 = vld [vmem:[%s12379_s1 + $0xf0] sm:$0xff] }
 0x201   : > { %3736 = vst.msk [vmem:[#allocation2 + $0x98] sm:$0xf] %vm266_vm3, %v8145_v10  ;;  %v5060_v14 = vrot.slane %v5058_v48, 5  ;;  %v5065_v10 = vrot.slane %v5063_v55, 4  ;;  %v5072_v52 = vshll.u32 %v8461_v29, 16  ;;  %v9220_v20 = vld [vmem:[%s12379_s1 + $0x48] sm:$0xff]  ;;  %6084 = vmatpush.bf16.msrb.mxu2 %v9241_v8  ;;  %v3019_v48 = vpop.f32.mrf.mxu3 }
 0x202   : > { %3785 = vst.msk [vmem:[#allocation2 + $0x98] sm:$0xf] %vm316_vm4, %v11382_v51  ;;  %v5068_v18 = vrot.slane %v5066_v37, 5  ;;  %v3034_v51 = vadd.f32 %v3033_v61, %v11255_v33  ;;  %4435 = vmatmul.bf16.gmra.mxu0 %v8241_v32  ;;  %v5055_v15 = vor.u32 %v5054_v4, %v5051_v38  ;;  %v8228_v23 = vld [vmem:[#allocation2 + $0x60] sm:$0xf]  ;;  %v9230_v33 = vld [vmem:[%s12379_s1 + $0x98] sm:$0xff]  ;;  %v11505_v32 = vpop.permute.xlu1 %4920 }
 0x203   : > { %3735 = vst.msk [vmem:[#allocation2 + $0x84] sm:$0xf] %vm266_vm3, %v8144_v45  ;;  %v9149_v42 = vld [vmem:[#allocation2 + $0x70] sm:$0xf0]  ;;  %v5074_v29 = vrot.slane %v5072_v52, 5  ;;  %6031 = vmatpush.bf16.msra.mxu0 %v9220_v20  ;;  %6058 = vmatpush.bf16.msra.mxu1 %v9230_v33 }
 0x204   : > { %3784 = vst.msk [vmem:[#allocation2 + $0x84] sm:$0xf] %vm316_vm4, %v11391_v19  ;;  %v5069_v45 = vor.u32 %v5068_v18, %v5065_v10  ;;  %v8229_v30 = vor.u32 %v9149_v42, %v8228_v23  ;;  %v8510_v58 = vld [vmem:[%s9553_s13 + $0x100] sm:$0xf]  ;;  %v2990_v19 = vpop.f32.mrf.mxu2  ;;  %v5056_v2 = vrot.slane %v5055_v15, 4  ;;  %v11514_v42 = vpop.permute.xlu2 %5400 }
 0x205   : > { %1519 = vst.msk [vmem:[#allocation3 + $0x80] sm:$0xf] %vm266_vm3, %v1511_v26  ;;  %v8511_v36 = vld [vmem:[%s9553_s13 + $0x104] sm:$0x1]  ;;  %v8512_v55 = vld [vmem:[%s9553_s13 + $0x108] sm:$0xf]  ;;  %v2991_v61 = vadd.f32 %v2990_v19, %v2962_v21 }
 0x206   : > { %v5501_v37 = vshrl.u32 %v8510_v58, 16  ;;  %v5070_v26 = vrot.slane %v5069_v45, 4  ;;  %8396 = vmatmul.msk.bf16.gmra.mxu2 %vm1323_vm5, %v8229_v30  ;;  %v8513_v38 = vld [vmem:[%s9553_s13 + $0x10c] sm:$0x1]  ;;  %v5504_v4 = vshll.u32 %v8510_v58, 16  ;;  %v5510_v8 = vshll.u32 %v8511_v36, 16  ;;  %v3062_v45 = vpop.f32.mrf.mxu1 }
 0x207   : > { %v5515_v10 = vshrl.u32 %v8512_v55, 16  ;;  %v5061_v18 = vsel %vm9582_vm2, %v5056_v2, %v5060_v14  ;;  %v5518_v20 = vshll.u32 %v8512_v55, 16  ;;  %v5524_v15 = vshll.u32 %v8513_v38, 16  ;;  %v8560_v23 = vld [vmem:[#allocation2 + $0x50] sm:$0xf]  ;;  %v9240_v21 = vld [vmem:[%s12379_s1 + $0xe8] sm:$0xff] }
 0x208   : > { %v5503_v52 = vrot.slane %v5501_v37, 4  ;;  %v5075_v30 = vsel %vm9582_vm2, %v5070_v26, %v5074_v29  ;;  %5090 = vst.msk [vmem:[#allocation2 + $0x80] sm:$0xf] %vm266_vm3, %v5061_v18  ;;  %v5506_v58 = vrot.slane %v5504_v4, 5  ;;  %v5512_v14 = vrot.slane %v5510_v8, 5  ;;  %v9219_v19 = vld [vmem:[%s12379_s1 + $0x40] sm:$0xff]  ;;  %v11522_v2 = vpop.f32.mrf.mxu0  ;;  %6085 = vmatpush.bf16.msrb.mxu2 %v9240_v21  ;;  %v11527_v26 = vpop.permute.xlu0 %5402 }
 0x209   : > { %v5517_v33 = vrot.slane %v5515_v10, 4  ;;  %5091 = vst.msk [vmem:[#allocation2 + $0x94] sm:$0xf] %vm266_vm3, %v5075_v30  ;;  %v5520_v36 = vrot.slane %v5518_v20, 5  ;;  %v5526_v55 = vrot.slane %v5524_v15, 5  ;;  %v11525_v37 = vadd.f32 %v3019_v48, %v2991_v61  ;;  %6032 = vmatpush.bf16.msra.mxu0 %v9219_v19  ;;  %v9229_v48 = vld [vmem:[%s12379_s1 + $0x90] sm:$0xff] }
 0x20a   : > { %v9203_v29 = vld [vmem:[#allocation2 + $0x60] sm:$0xf0]  ;;  %v5507_v38 = vor.u32 %v5506_v58, %v5503_v52  ;;  %v8424_v8 = vld [vmem:[%s9553_s13 + $0xe0] sm:$0xf]  ;;  %v8422_v18 = vld [vmem:[%s9553_s13 + $0xd8] sm:$0xf]  ;;  %v11532_v24 = vadd.f32 %v3062_v45, %v3034_v51  ;;  %6059 = vmatpush.bf16.msra.mxu1 %v9229_v48 }
 0x20b   : > { %v8561_v4 = vor.u32 %v9203_v29, %v8560_v23  ;;  %v8425_v10 = vld [vmem:[%s9553_s13 + $0xe4] sm:$0x1]  ;;  %v5521_v60 = vor.u32 %v5520_v36, %v5517_v33  ;;  %v4787_v30 = vshrl.u32 %v8424_v8, 16  ;;  %v4790_v20 = vshll.u32 %v8424_v8, 16  ;;  %v8423_v34 = vld [vmem:[%s9553_s13 + $0xdc] sm:$0x1]  ;;  %v11542_v33 = vpop.f32.mrf.mxu3  ;;  %v11544_v36 = vpop.permute.xlu1 %5226 }
 0x20c   : > { %v4796_v15 = vshll.u32 %v8425_v10, 16  ;;  %v5508_v61 = vrot.slane %v5507_v38, 4  ;;  %v4773_v52 = vshrl.u32 %v8422_v18, 16  ;;  %v4776_v23 = vshll.u32 %v8422_v18, 16  ;;  %v8479_v58 = vld [vmem:[%s9553_s13 + $0xe8] sm:$0xf]  ;;  %v11539_v29 = vpop.f32.mrf.mxu2 }
 0x20d   : > { %6014 = vmatmul.bf16.gmra.mxu3 %v8561_v4  ;;  %v4782_v21 = vshll.u32 %v8423_v34, 16  ;;  %v5522_v19 = vrot.slane %v5521_v60, 4  ;;  %v4789_v51 = vrot.slane %v4787_v30, 4  ;;  %v4792_v45 = vrot.slane %v4790_v20, 5  ;;  %5261 = vst.msk [vmem:[#allocation2 + $0x20] sm:$0xf] %vm266_vm3, %v8479_v58 }
 0x20e   : > { %12393 = vst [vmem:[#allocation12_spill] sm:$0xff] %v11542_v33  ;;  %v5513_v38 = vsel %vm9582_vm2, %v5508_v61, %v5512_v14  ;;  %v4775_v4 = vrot.slane %v4773_v52, 4  ;;  %v4778_v8 = vrot.slane %v4776_v23, 5  ;;  %v9239_v34 = vld [vmem:[%s12379_s1 + $0xe0] sm:$0xff]  ;;  %v4798_v18 = vrot.slane %v4796_v15, 5  ;;  %v11556_v20 = vpop.f32.mrf.mxu1 }
 0x20f   : > { %5421 = vst.msk [vmem:[#allocation2 + $0x20] sm:$0xf] %vm316_vm4, %v11436_v35  ;;  %v5527_v60 = vsel %vm9582_vm2, %v5522_v19, %v5526_v55  ;;  %v4793_v10 = vor.u32 %v4792_v45, %v4789_v51  ;;  %v4784_v30 = vrot.slane %v4782_v21, 5  ;;  %v9151_v14 = vld [vmem:[#allocation2 + $0x84] sm:$0xf]  ;;  %6086 = vmatpush.bf16.msrb.mxu2 %v9239_v34  ;;  %v9228_v19 = vld [vmem:[%s12379_s1 + $0x88] sm:$0xff]  ;;  %v11572_v51 = vpop.permute.xlu2 %4922 }
 0x210   : > { %5568 = vst.msk [vmem:[#allocation2 + $0x60] sm:$0xf] %vm266_vm3, %v5513_v38  ;;  %v11561_v35 = vld [vmem:[%s12380_s2] ss:$0 sm:$0xff]  ;;  %v4779_v55 = vor.u32 %v4778_v8, %v4775_v4  ;;  %v8242_v61 = vld [vmem:[#allocation2 + $0x94] sm:$0xf0]  ;;  %v3038_v15 = vpop.f32.mrf.mxu0  ;;  %6060 = vmatpush.bf16.msra.mxu1 %v9228_v19 }
 0x211   : > { %v1348_v48 = vadd.f32 %v11561_v35, %v10979_v47  ;;  %5569 = vst.msk [vmem:[#allocation2 + $0x74] sm:$0xf] %vm266_vm3, %v5527_v60  ;;  %v8484_v52 = vld [vmem:[%s9553_s13 + $0x110] sm:$0xf]  ;;  %v4794_v23 = vrot.slane %v4793_v10, 4  ;;  %v8245_v21 = vor.u32 %v9151_v14, %v8242_v61  ;;  %v3039_v47 = vadd.f32 %v3038_v15, %v11338_v17  ;;  %v9238_v34 = vld [vmem:[%s12379_s1 + $0xd8] sm:$0xff]  ;;  %v11590_v14 = vpop.permute.xlu0 %5224 }
 0x212   : > { %v8485_v58 = vld [vmem:[%s9553_s13 + $0x118] sm:$0xf]  ;;  %5266 = vst.msk [vmem:[#allocation2 + $0x84] sm:$0xf] %vm266_vm3, %v8484_v52  ;;  %v1358_v45 = vadd.f32 %v11561_v35, %v10774_v25  ;;  %v4780_v4 = vrot.slane %v4779_v55, 4  ;;  %v1353_v60 = vadd.f32 %v11561_v35, %v11059_v40  ;;  %vm3082_vm0 = vcmp.gt.f32.partialorder %v11532_v24, 0.0 }
 0x213   : > { %v1377_v38 = vadd.f32 %v11021_v16, %v1348_v48  ;;  %5267 = vst.msk [vmem:[#allocation2 + $0x98] sm:$0xf] %vm266_vm3, %v8485_v58  ;;  %v8448_v8 = vld [vmem:[%s9553_s13 + $0x10] sm:$0xf]  ;;  %v4799_v17 = vsel %vm9582_vm2, %v4794_v23, %v4798_v18  ;;  %4464 = vmatmul.bf16.gmra.mxu1 %v8245_v21  ;;  %v8449_v25 = vld [vmem:[%s9553_s13 + $0x14] sm:$0x1]  ;;  %6087 = vmatpush.bf16.msrb.mxu2 %v9238_v34 }
 0x214   : > { %5422 = vst.msk [vmem:[#allocation2 + $0x34] sm:$0xf] %vm316_vm4, %v11514_v42  ;;  %v4979_v16 = vshrl.u32 %v8448_v8, 16  ;;  %v4982_v10 = vshll.u32 %v8448_v8, 16  ;;  %v4785_v48 = vsel %vm9582_vm2, %v4780_v4, %v4784_v30  ;;  %v4988_v55 = vshll.u32 %v8449_v25, 16  ;;  %v9246_v18 = vld [vmem:[%s12379_s1 + $0x118] sm:$0xff]  ;;  %v11599_v42 = vpop.f32.mrf.mxu2  ;;  %v11606_v4 = vpop.permute.xlu1 %4924 }
 0x215   : > { %4893 = vst.msk [vmem:[#allocation2 + $0x18] sm:$0xf] %vm266_vm3, %v4799_v17  ;;  %v8446_v40 = vld [vmem:[%s9553_s13 + $0x8] sm:$0xf]  ;;  %v1382_v61 = vadd.f32 %v11114_v9, %v1353_v60  ;;  %v8447_v23 = vld [vmem:[%s9553_s13 + $0xc] sm:$0x1]  ;;  %6116 = vmatpush.bf16.msrb.mxu3 %v9246_v18  ;;  %v1406_v8 = vadd.f32 %v10921_v56, %v1377_v38  ;;  %v1387_v9 = vadd.f32 %v10770_v43, %v1358_v45  ;;  %v11612_v17 = vpop.f32.mrf.mxu3 }
 0x216   : > { %4941 = vst.msk [vmem:[#allocation2 + $0x18] sm:$0xf] %vm316_vm4, %v11467_v54  ;;  %v4981_v52 = vrot.slane %v4979_v16, 4  ;;  %v4984_v15 = vrot.slane %v4982_v10, 5  ;;  %v4990_v30 = vrot.slane %v4988_v55, 5  ;;  %v4965_v21 = vshrl.u32 %v8446_v40, 16  ;;  %v3067_v25 = vpop.f32.mrf.mxu1 }
 0x217   : > { %4892 = vst.msk [vmem:[#allocation2 + $0x4] sm:$0xf] %vm266_vm3, %v4785_v48  ;;  %v4968_v58 = vshll.u32 %v8446_v40, 16  ;;  %v4974_v19 = vshll.u32 %v8447_v23, 16  ;;  %v8248_v34 = vld [vmem:[#allocation2 + $0x88] sm:$0xf] }
 0x218   : > { %4940 = vst.msk [vmem:[#allocation2 + $0x4] sm:$0xf] %vm316_vm4, %v11431_v50  ;;  %v4985_v54 = vor.u32 %v4984_v15, %v4981_v52  ;;  %v9154_v60 = vld [vmem:[#allocation2 + $0x98] sm:$0xf0]  ;;  %v4967_v16 = vrot.slane %v4965_v21, 4  ;;  %v9227_v43 = vld [vmem:[%s12379_s1 + $0x80] sm:$0xff]  ;;  %v11618_v56 = vpop.f32.mrf.mxu0  ;;  %v1411_v50 = vadd.f32 %v11003_v0, %v1382_v61  ;;  %v11623_v15 = vadd.f32 %v3067_v25, %v3039_v47 }
 0x219   : > { %v4970_v10 = vrot.slane %v4968_v58, 5  ;;  %v4976_v48 = vrot.slane %v4974_v19, 5  ;;  %v8249_v55 = vor.u32 %v9154_v60, %v8248_v34  ;;  %v8514_v40 = vld [vmem:[%s9553_s13 + $0x110] sm:$0xf]  ;;  %v8515_v38 = vld [vmem:[%s9553_s13 + $0x114] sm:$0x1]  ;;  %6061 = vmatpush.bf16.msra.mxu1 %v9227_v43 }
 0x21a   : > { %v4986_v45 = vrot.slane %v4985_v54, 4  ;;  %v8516_v18 = vld [vmem:[%s9553_s13 + $0x118] sm:$0xf]  ;;  %v5529_v52 = vshrl.u32 %v8514_v40, 16  ;;  %v8517_v21 = vld [vmem:[%s9553_s13 + $0x11c] sm:$0x1] }
 0x21b   : > { %v4971_v23 = vor.u32 %v4970_v10, %v4967_v16  ;;  %8397 = vmatmul.msk.bf16.gmra.mxu2 %vm1323_vm5, %v8249_v55  ;;  %v5532_v58 = vshll.u32 %v8514_v40, 16  ;;  %v5538_v19 = vshll.u32 %v8515_v38, 16  ;;  %v5543_v34 = vshrl.u32 %v8516_v18, 16  ;;  %v9237_v60 = vld [vmem:[%s12379_s1 + $0xd0] sm:$0xff]  ;;  %v8580_v47 = vld [vmem:[#allocation2 + $0x78] sm:$0xf]  ;;  %v5405_v16 = vpop.permute.xlu2 %5404 }
 0x21c   : > { %v4991_v0 = vsel %vm9582_vm2, %v4986_v45, %v4990_v30  ;;  %v5531_v61 = vrot.slane %v5529_v52, 4  ;;  %v5546_v54 = vshll.u32 %v8516_v18, 16  ;;  %v5552_v33 = vshll.u32 %v8517_v21, 16  ;;  %v9245_v25 = vld [vmem:[%s12379_s1 + $0x110] sm:$0xff]  ;;  %6088 = vmatpush.bf16.msrb.mxu2 %v9237_v60  ;;  %v9208_v52 = vld [vmem:[#allocation2 + $0x88] sm:$0xf0]  ;;  %v11641_v21 = vpop.permute.xlu0 %5406 }
 0x21d   : > { %v1435_v10 = vadd.f32 %v10919_v27, %v1406_v8  ;;  %5085 = vst.msk [vmem:[#allocation2 + $0x1c] sm:$0xf] %vm266_vm3, %v4991_v0  ;;  %v4972_v55 = vrot.slane %v4971_v23, 4  ;;  %v5534_v40 = vrot.slane %v5532_v58, 5  ;;  %v5545_v43 = vrot.slane %v5543_v34, 4  ;;  %6117 = vmatpush.bf16.msrb.mxu3 %v9245_v25  ;;  %v5231_v0 = vpop.permute.xlu1 %5230 }
 0x21e   : > { %v1416_v38 = vadd.f32 %v11094_v57, %v1387_v9  ;;  %v1440_v30 = vadd.f32 %v11001_v28, %v1411_v50  ;;  %5245 = vst.msk [vmem:[#allocation2 + $0x1c] sm:$0xf] %vm316_vm4, %v11469_v3  ;;  %v5540_v45 = vrot.slane %v5538_v19, 5  ;;  %v5548_v18 = vrot.slane %v5546_v54, 5  ;;  %v8522_v57 = vld [vmem:[#allocation2 + $0x14] sm:$0xf0]  ;;  %v11648_v28 = vpop.f32.mrf.mxu2  ;;  %v11654_v19 = vpop.f32.mrf.mxu1 }
 0x21f   : > { %v1464_v27 = vadd.f32 %v11164_v46, %v1435_v10  ;;  %v4977_v8 = vsel %vm9582_vm2, %v4972_v55, %v4976_v48  ;;  %v5535_v23 = vor.u32 %v5534_v40, %v5531_v61  ;;  %v8581_v58 = vor.u32 %v9208_v52, %v8580_v47  ;;  %v9191_v34 = vld [vmem:[#allocation2 + $0x4] sm:$0xf]  ;;  %4943 = vst.msk [vmem:[#allocation2 + $0x40] sm:$0xf] %vm316_vm4, %v11572_v51  ;;  %v9236_v46 = vld [vmem:[%s12379_s1 + $0xc8] sm:$0xff]  ;;  %v11667_v54 = vpop.f32.mrf.mxu3 }
 0x220   : > { %5084 = vst.msk [vmem:[#allocation2 + $0x8] sm:$0xf] %vm266_vm3, %v4977_v8  ;;  %v5549_v3 = vor.u32 %v5548_v18, %v5545_v43  ;;  %v5554_v9 = vrot.slane %v5552_v33, 5  ;;  %v8525_v50 = vor.u32 %v9191_v34, %v8522_v57  ;;  %v1469_v48 = vadd.f32 %v11264_v49, %v1440_v30  ;;  %v9244_v51 = vld [vmem:[%s12379_s1 + $0x108] sm:$0xff]  ;;  %v3043_v33 = vpop.f32.mrf.mxu0  ;;  %6089 = vmatpush.bf16.msrb.mxu2 %v9236_v46  ;;  %v9235_v49 = vld [vmem:[%s12379_s1 + $0xc0] sm:$0xff] }
 0x221   : > { %5244 = vst.msk [vmem:[#allocation2 + $0x8] sm:$0xf] %vm316_vm4, %v11480_v6  ;;  %v5536_v60 = vrot.slane %v5535_v23, 4  ;;  %6019 = vmatmul.bf16.gmra.mxu3 %v8581_v58  ;;  %v3044_v6 = vadd.f32 %v3043_v33, %v11429_v44  ;;  %v1445_v47 = vadd.f32 %v11096_v5, %v1416_v38  ;;  %v1490_v25 = vmul.f32 0.2, %v1464_v27 }
 0x222   : > { %v5550_v61 = vrot.slane %v5549_v3, 4  ;;  %6033 = vmatmul.bf16.vlgmr.msra.gmra.mxu0 %v8525_v50  ;;  %4942 = vst.msk [vmem:[#allocation2 + $0x2c] sm:$0xf] %vm316_vm4, %v11505_v32  ;;  %6118 = vmatpush.bf16.msrb.mxu3 %v9244_v51  ;;  %v9243_v32 = vld [vmem:[%s12379_s1 + $0x100] sm:$0xff]  ;;  %v9192_v44 = vld [vmem:[#allocation2 + $0xc] sm:$0xf]  ;;  %v1363_v30 = vadd.f32 %v11561_v35, %v10855_v63 }
 0x223   : > { %v5541_v10 = vsel %vm9582_vm2, %v5536_v60, %v5540_v45  ;;  %5423 = vst.msk [vmem:[#allocation2 + $0x48] sm:$0xf] %vm316_vm4, %v11527_v26  ;;  %v8530_v40 = vld [vmem:[#allocation2 + $0x1c] sm:$0xf0]  ;;  %vm1482_vm10 = vcmp.gt.f32.partialorder %v1464_v27, 0.0  ;;  %v1474_v43 = vadd.f32 %v11342_v11, %v1445_v47  ;;  %vm1484_vm11 = vcmp.gt.f32.partialorder %v1469_v48, 0.0  ;;  %v4927_v38 = vpop.permute.xlu2 %4926 }
 0x224   : > { %v5555_v55 = vsel %vm9582_vm2, %v5550_v61, %v5554_v9  ;;  %5570 = vst.msk [vmem:[#allocation2 + $0x88] sm:$0xf] %vm266_vm3, %v5541_v10  ;;  %v1492_v5 = vmul.f32 0.2, %v1469_v48  ;;  %6090 = vmatpush.bf16.msrb.mxu2 %v9235_v49  ;;  %v8533_v41 = vor.u32 %v9192_v44, %v8530_v40  ;;  %v5229_v11 = vpop.permute.xlu0 %5228  ;;  %v1498_v52 = vsel %vm1482_vm10, %v1464_v27, %v1490_v25  ;;  %v8536_v34 = vld [vmem:[#allocation2 + $0x10] sm:$0xf] }
 0x225   : > { %5571 = vst.msk [vmem:[#allocation2 + $0x9c] sm:$0xf] %vm266_vm3, %v5555_v55  ;;  %v9194_v26 = vld [vmem:[#allocation2 + $0x18] sm:$0xf0]  ;;  %v1494_v8 = vmul.f32 0.2, %v1474_v43  ;;  %v4929_v3 = vpop.permute.xlu1 %4928  ;;  %v1506_v9 = vpack.c.bf16 %v1498_v52, %v1498_v52  ;;  %v1392_v50 = vadd.f32 %v10850_v12, %v1363_v30 }
 0x226   : > { %5424 = vst.msk [vmem:[#allocation2 + $0x5c] sm:$0xf] %vm316_vm4, %v5405_v16  ;;  %6119 = vmatpush.bf16.msrb.mxu3 %v9243_v32  ;;  %v3072_v18 = vpop.f32.mrf.mxu1  ;;  %v11692_v23 = vpop.f32.mrf.mxu2  ;;  %v1500_v63 = vsel %vm1484_vm11, %v1469_v48, %v1492_v5  ;;  %v9195_v57 = vld [vmem:[#allocation2 + $0x20] sm:$0xf0]  ;;  %v8542_v27 = vld [vmem:[#allocation2 + $0x3c] sm:$0xf0] }
 0x227   : > { %5247 = vst.msk [vmem:[#allocation2 + $0x44] sm:$0xf] %vm316_vm4, %v11544_v36  ;;  %v11696_v58 = vadd.f32 %v3072_v18, %v3044_v6  ;;  %vm1486_vm12 = vcmp.gt.f32.partialorder %v1474_v43, 0.0  ;;  %v11705_v46 = vpop.f32.mrf.mxu3  ;;  %v1508_v48 = vpack.c.bf16 %v1500_v63, %v1500_v63  ;;  %v8537_v60 = vor.u32 %v9195_v57, %v8536_v34  ;;  %v9197_v47 = vld [vmem:[#allocation2 + $0x34] sm:$0xf] }
 0x228   : > { %v8528_v45 = vld [vmem:[#allocation2 + $0x8] sm:$0xf]  ;;  %5246 = vst.msk [vmem:[#allocation2 + $0x30] sm:$0xf] %vm316_vm4, %v11590_v14  ;;  %v11694_v36 = vpop.f32.mrf.mxu0  ;;  %vm3084_vm6 = vcmp.gt.f32.partialorder %v11623_v15, 0.0 }
 0x229   : > { %v8529_v16 = vor.u32 %v9194_v26, %v8528_v45  ;;  %4945 = vst.msk [vmem:[#allocation2 + $0x68] sm:$0xf] %vm316_vm4, %v4927_v38  ;;  %v9196_v14 = vld [vmem:[#allocation2 + $0x2c] sm:$0xf]  ;;  %vm3086_vm11 = vcmp.gt.f32.partialorder %v11696_v58, 0.0 }
 0x22a   : > { %4944 = vst.msk [vmem:[#allocation2 + $0x54] sm:$0xf] %vm316_vm4, %v11606_v4  ;;  %v1421_v4 = vadd.f32 %v11198_v13, %v1392_v50  ;;  %v8545_v51 = vor.u32 %v9196_v14, %v8542_v27  ;;  %v8550_v25 = vld [vmem:[#allocation2 + $0x44] sm:$0xf0]  ;;  %v9200_v26 = vld [vmem:[#allocation2 + $0x48] sm:$0xf0] }
 0x22b   : > { %6062 = vmatmul.bf16.vlgmr.msra.gmra.mxu1 %v8529_v16  ;;  %6091 = vmatmul.bf16.vlgmr.msrb.gmra.mxu2 %v8533_v41  ;;  %5425 = vst.msk [vmem:[#allocation2 + $0x70] sm:$0xf] %vm316_vm4, %v11641_v21  ;;  %v1502_v21 = vsel %vm1486_vm12, %v1474_v43, %v1494_v8  ;;  %v8556_v43 = vld [vmem:[#allocation2 + $0x38] sm:$0xf] }
 0x22c   : > { %5249 = vst.msk [vmem:[#allocation2 + $0x6c] sm:$0xf] %vm316_vm4, %v5231_v0  ;;  %v1450_v0 = vadd.f32 %v11200_v22, %v1421_v4  ;;  %v1510_v13 = vpack.c.bf16 %v1502_v21, %v1502_v21  ;;  %v8557_v52 = vor.u32 %v9200_v26, %v8556_v43  ;;  %v9205_v21 = vld [vmem:[#allocation2 + $0x70] sm:$0xf0] }
 0x22d   : > { %5248 = vst.msk [vmem:[#allocation2 + $0x58] sm:$0xf] %vm316_vm4, %v5229_v11  ;;  %v9202_v14 = vld [vmem:[#allocation2 + $0x5c] sm:$0xf] }
 0x22e   : > { %4946 = vst.msk [vmem:[#allocation2 + $0x7c] sm:$0xf] %vm316_vm4, %v4929_v3  ;;  %v11711_v33 = vpop.f32.mrf.mxu1  ;;  %v11718_v10 = vpop.f32.mrf.mxu2  ;;  %v1479_v32 = vadd.f32 %v11438_v62, %v1450_v0  ;;  %v9199_v44 = vld [vmem:[#allocation2 + $0x40] sm:$0xf0] }
 0x22f   : > { %1514 = vst.msk [vmem:[#allocation3 + $0x1c] sm:$0xf] %vm266_vm3, %v1506_v9  ;;  %v8548_v55 = vld [vmem:[#allocation2 + $0x30] sm:$0xf]  ;;  %v11722_v40 = vpop.f32.mrf.mxu3 }
 0x230   : > { %1516 = vst.msk [vmem:[#allocation3 + $0x44] sm:$0xf] %vm266_vm3, %v1508_v48  ;;  %v3048_v12 = vpop.f32.mrf.mxu0  ;;  %v8549_v22 = vor.u32 %v9199_v44, %v8548_v55  ;;  %v1496_v5 = vmul.f32 0.2, %v1479_v32  ;;  %vm1488_vm13 = vcmp.gt.f32.partialorder %v1479_v32, 0.0 }
 0x231   : > { %8742 = vmatmul.msk.bf16.vlgmr.msrb.gmra.mxu3 %vm1323_vm5, %v8537_v60  ;;  %v5411_v61 = vpop.permute.xlu0 %5410  ;;  %v3049_v49 = vadd.f32 %v3048_v12, %v11525_v37  ;;  %v5409_v6 = vpop.permute.xlu2 %5408  ;;  %1518 = vst.msk [vmem:[#allocation3 + $0x6c] sm:$0xf] %vm266_vm3, %v1510_v13  ;;  %v8553_v37 = vor.u32 %v9197_v47, %v8550_v25  ;;  %v9201_v41 = vld [vmem:[#allocation2 + $0x54] sm:$0xf]  ;;  %v8562_v30 = vld [vmem:[#allocation2 + $0x64] sm:$0xf0] }
 0x232   : > { %6038 = vmatmul.bf16.gmra.mxu0 %v8545_v51  ;;  %5427 = vst.msk [vmem:[#allocation2 + $0x98] sm:$0xf] %vm316_vm4, %v5411_v61  ;;  %v1504_v18 = vsel %vm1488_vm13, %v1479_v32, %v1496_v5  ;;  %v8565_v34 = vor.u32 %v9201_v41, %v8562_v30  ;;  %v8570_v9 = vld [vmem:[#allocation2 + $0x6c] sm:$0xf0]  ;;  %v8576_v51 = vld [vmem:[#allocation2 + $0x60] sm:$0xf] }
 0x233   : > { %5426 = vst.msk [vmem:[#allocation2 + $0x84] sm:$0xf] %vm316_vm4, %v5409_v6  ;;  %v1512_v63 = vpack.c.bf16 %v1504_v18, %v1504_v18  ;;  %v9204_v3 = vld [vmem:[#allocation2 + $0x68] sm:$0xf0]  ;;  %v8573_v60 = vor.u32 %v9202_v14, %v8570_v9  ;;  %v8596_v41 = vld [vmem:[#allocation2 + $0x88] sm:$0xf] }
 0x234   : > { %v8568_v27 = vld [vmem:[#allocation2 + $0x58] sm:$0xf]  ;;  %v9210_v30 = vld [vmem:[#allocation2 + $0x98] sm:$0xf0] }
 0x235   : > { %1520 = vst.msk [vmem:[#allocation3 + $0x94] sm:$0xf] %vm266_vm3, %v1512_v63  ;;  %v8569_v48 = vor.u32 %v9204_v3, %v8568_v27  ;;  %v9206_v0 = vld [vmem:[#allocation2 + $0x7c] sm:$0xf]  ;;  %v8597_v18 = vor.u32 %v9210_v30, %v8596_v41  ;;  %v4366_v27 = vadd.f32 %v11561_v35, %v11648_v28 }
 0x236   : > { %v11729_v16 = vpop.f32.mrf.mxu2 }
 0x237   : > { %v11733_v57 = vpop.f32.mrf.mxu3 }
 0x238   : > { %v11736_v50 = vpop.f32.mrf.mxu0 }
 0x239   : > { %v3077_v38 = vpop.f32.mrf.mxu1  ;;  %v4931_v62 = vpop.permute.xlu2 %4930 }
 0x23a   : > { %v11725_v45 = vadd.f32 %v3077_v38, %v3049_v49  ;;  %4947 = vst.msk [vmem:[#allocation2 + $0x90] sm:$0xf] %vm316_vm4, %v4931_v62  ;;  %v8577_v49 = vor.u32 %v9205_v21, %v8576_v51  ;;  %v9207_v32 = vld [vmem:[#allocation2 + $0x84] sm:$0xf] }
 0x23b   : > { %6067 = vmatmul.bf16.gmra.mxu1 %v8549_v22  ;;  %6096 = vmatmul.bf16.gmra.mxu2 %v8553_v37  ;;  %v5235_v11 = vpop.permute.xlu1 %5234  ;;  %v8590_v22 = vld [vmem:[#allocation2 + $0x94] sm:$0xf0] }
 0x23c   : > { %5251 = vst.msk [vmem:[#allocation2 + $0x94] sm:$0xf] %vm316_vm4, %v5235_v11  ;;  %v5233_v8 = vpop.permute.xlu0 %5232  ;;  %v8593_v43 = vor.u32 %v9207_v32, %v8590_v22  ;;  %v4364_v11 = vadd.f32 %v11561_v35, %v11599_v42 }
 0x23d   : > { %5250 = vst.msk [vmem:[#allocation2 + $0x80] sm:$0xf] %vm316_vm4, %v5233_v8 }
 0x23e   : > { %v11738_v4 = vpop.f32.mrf.mxu2  ;;  %v4393_v8 = vadd.f32 %v11612_v17, %v4364_v11 }
 0x23f   : > { %v11740_v12 = vpop.f32.mrf.mxu3 }
 0x241   : > { %8743 = vmatmul.msk.bf16.gmra.mxu3 %vm1323_vm5, %v8557_v52  ;;  %v8582_v61 = vld [vmem:[#allocation2 + $0x8c] sm:$0xf0]  ;;  %v11742_v6 = vpop.f32.mrf.mxu1 }
 0x242   : > { %6043 = vmatmul.bf16.gmra.mxu0 %v8565_v34  ;;  %v8585_v13 = vor.u32 %v9206_v0, %v8582_v61  ;;  %v2949_v61 = vadd.f32 %v11561_v35, %v11228_v31 }
 0x243   : > { %v9209_v44 = vld [vmem:[#allocation2 + $0x90] sm:$0xf0] }
 0x244   : > { %v8588_v55 = vld [vmem:[#allocation2 + $0x80] sm:$0xf]  ;;  %v2978_v28 = vadd.f32 %v11275_v53, %v2949_v61 }
 0x245   : > { %v8589_v5 = vor.u32 %v9209_v44, %v8588_v55 }
 0x246   : > { %v3007_v22 = vadd.f32 %v11277_v7, %v2978_v28  ;;  %v4371_v7 = vadd.f32 %v11561_v35, %v11718_v10 }
 0x248   : > { %v3036_v53 = vadd.f32 %v11522_v2, %v3007_v22  ;;  %v4400_v2 = vadd.f32 %v11722_v40, %v4371_v7 }
 0x24a   : > { %v3065_v30 = vadd.f32 %v11556_v20, %v3036_v53 }
 0x24b   : > { %6072 = vmatmul.bf16.gmra.mxu1 %v8569_v48  ;;  %6101 = vmatmul.bf16.gmra.mxu2 %v8573_v60  ;;  %v11745_v25 = vpop.f32.mrf.mxu2  ;;  %v4395_v60 = vadd.f32 %v11667_v54, %v4366_v27  ;;  %v4369_v54 = vadd.f32 %v11561_v35, %v11692_v23 }
 0x24c   : > { %v3091_v27 = vmul.f32 0.2, %v3065_v30  ;;  %vm3083_vm2 = vcmp.gt.f32.partialorder %v3065_v30, 0.0 }
 0x24d   : > { %v4421_v47 = vpop.f32.mrf.mxu0  ;;  %v4398_v31 = vadd.f32 %v11705_v46, %v4369_v54 }
 0x24e   : > { %v11747_v37 = vpop.f32.mrf.mxu3  ;;  %v4422_v63 = vadd.f32 %v4421_v47, %v4393_v8 }
 0x251   : > { %8744 = vmatmul.msk.bf16.gmra.mxu3 %vm1323_vm5, %v8577_v49  ;;  %v4450_v26 = vpop.f32.mrf.mxu1 }
 0x252   : > { %6048 = vmatmul.bf16.gmra.mxu0 %v8585_v13  ;;  %v4451_v3 = vadd.f32 %v4450_v26, %v4422_v63 }
 0x253   : > { %v11749_v62 = vpop.f32.mrf.mxu2 }
 0x255   : > { %v4423_v38 = vpop.f32.mrf.mxu0 }
 0x256   : > { %v11753_v52 = vpop.f32.mrf.mxu3  ;;  %v4424_v21 = vadd.f32 %v4423_v38, %v4395_v60 }
 0x259   : > { %v4452_v34 = vpop.f32.mrf.mxu1 }
 0x25a   : > { %v4453_v49 = vadd.f32 %v4452_v34, %v4424_v21 }
 0x25b   : > { %6077 = vmatmul.bf16.gmra.mxu1 %v8589_v5  ;;  %6106 = vmatmul.bf16.gmra.mxu2 %v8593_v43  ;;  %v3090_v5 = vmul.f32 0.2, %v11532_v24 }
 0x25d   : > { %v4426_v14 = vpop.f32.mrf.mxu0  ;;  %v3098_v23 = vsel %vm3082_vm0, %v11532_v24, %v3090_v5 }
 0x25e   : > { %v4427_v41 = vadd.f32 %v4426_v14, %v4398_v31  ;;  %v11780_v34 = vpack.c.bf16 %v3098_v23, %v3098_v23 }
 0x260   : > { %v3115_v10 = vshrl.u32 %v11780_v34, 16 }
 0x261   : > { %8745 = vmatmul.msk.bf16.gmra.mxu3 %vm1323_vm5, %v8597_v18  ;;  %v4479_v9 = vpop.f32.mrf.mxu2 }
 0x262   : > { %v4480_v48 = vadd.f32 %v4479_v9, %v4451_v3  ;;  %v3117_v28 = vrot.slane %v3115_v10, 7 }
 0x263   : > { %v4455_v13 = vpop.f32.mrf.mxu1 }
 0x264   : > { %vm4499_vm14 = vcmp.gt.f32.partialorder %v4480_v48, 0.0  ;;  %v4507_v42 = vmul.f32 0.2, %v4480_v48  ;;  %v4456_v11 = vadd.f32 %v4455_v13, %v4427_v41 }
 0x265   : > { %v11760_v51 = vpop.f32.mrf.mxu3  ;;  %v4428_v47 = vpop.f32.mrf.mxu0 }
 0x266   : > { %v4515_v0 = vsel %vm4499_vm14, %v4480_v48, %v4507_v42  ;;  %v4429_v3 = vadd.f32 %v4428_v47, %v4400_v2  ;;  %v12394_v48 = vld [vmem:[#allocation8_spill] sm:$0xff]  ;;  %v3099_v42 = vsel %vm3083_vm2, %v3065_v30, %v3091_v27  ;;  %v4374_v47 = vadd.f32 %v11561_v35, %v11729_v16 }
 0x267   : > { %v4523_v17 = vpack.c.bf16 %v4515_v0, %v4515_v0  ;;  %v2954_v60 = vadd.f32 %v11561_v35, %v12394_v48  ;;  %v11791_v13 = vpack.c.bf16 %v3099_v42, %v3099_v42  ;;  %v12395_v42 = vld [vmem:[#allocation9_spill] sm:$0xff] }
 0x268   : > { %v4403_v5 = vadd.f32 %v11733_v57, %v4374_v47 }
 0x269   : > { %v4481_v32 = vpop.f32.mrf.mxu2  ;;  %4538 = vrot.lane.b32.xlu2 %v4523_v17, %s9463_s14  ;;  %v2983_v40 = vadd.f32 %v11358_v59, %v2954_v60  ;;  %v3092_v17 = vmul.f32 0.2, %v11623_v15 }
 0x26a   : > { %v4482_v55 = vadd.f32 %v4481_v32, %v4453_v49 }
 0x26b   : > { %v4457_v46 = vpop.f32.mrf.mxu1  ;;  %v3100_v59 = vsel %vm3084_vm6, %v11623_v15, %v3092_v17  ;;  %v4376_v15 = vadd.f32 %v11561_v35, %v11738_v4 }
 0x26c   : > { %vm4500_vm15 = vcmp.gt.f32.partialorder %v4482_v55, 0.0  ;;  %v4508_v44 = vmul.f32 0.2, %v4482_v55  ;;  %v4458_v21 = vadd.f32 %v4457_v46, %v4429_v3  ;;  %v11806_v23 = vpack.c.bf16 %v3100_v59, %v3100_v59 }
 0x26d   : > { %v11771_v43 = vpop.f32.mrf.mxu3  ;;  %v4431_v18 = vpop.f32.mrf.mxu0  ;;  %v4405_v2 = vadd.f32 %v11740_v12, %v4376_v15  ;;  %v12396_v12 = vld [vmem:[#allocation12_spill] sm:$0xff] }
 0x26e   : > { %v4516_v26 = vsel %vm4500_vm15, %v4482_v55, %v4508_v44  ;;  %v3118_v55 = vshll.u32 %v11780_v34, 16  ;;  %v3012_v44 = vadd.f32 %v11360_v39, %v2983_v40  ;;  %v4432_v41 = vadd.f32 %v4431_v18, %v4403_v5 }
 0x26f   : > { %v4524_v38 = vpack.c.bf16 %v4516_v26, %v4516_v26  ;;  %v2964_v18 = vadd.f32 %v11561_v35, %v11482_v1  ;;  %v3129_v27 = vshrl.u32 %v11806_v23, 16  ;;  %v3132_v17 = vshll.u32 %v11806_v23, 16 }
 0x270   : > { %v3120_v26 = vor.u32 %v3118_v55, %v3117_v28  ;;  %v3041_v53 = vadd.f32 %v11618_v56, %v3012_v44  ;;  %v4379_v55 = vadd.f32 %v11561_v35, %v11745_v25  ;;  %vm3088_vm15 = vcmp.gt.f32.partialorder %v11725_v45, 0.0 }
 0x271   : > { %4540 = vrot.lane.b32.xlu0 %v4524_v38, %s9463_s14  ;;  %v3122_v38 = vshrl.u32 %v11791_v13, 16  ;;  %v2993_v4 = vadd.f32 %v11539_v29, %v2964_v18  ;;  %v3131_v60 = vrot.slane %v3129_v27, 7 }
 0x272   : > { %v3070_v39 = vadd.f32 %v11654_v19, %v3041_v53  ;;  %v12398_v53 = vld [vmem:[#allocation11_spill] sm:$0xff]  ;;  %v4408_v25 = vadd.f32 %v11747_v37, %v4379_v55 }
 0x273   : > { %v3124_v30 = vrot.slane %v3122_v38, 7 }
 0x274   : > { %vm3085_vm9 = vcmp.gt.f32.partialorder %v3070_v39, 0.0 }
 0x275   : > { %v4484_v8 = vpop.f32.mrf.mxu2  ;;  %v4433_v32 = vpop.f32.mrf.mxu0 }
 0x276   : > { %v4485_v63 = vadd.f32 %v4484_v8, %v4456_v11  ;;  %v3125_v8 = vshll.u32 %v11791_v13, 16  ;;  %v4434_v3 = vadd.f32 %v4433_v32, %v4405_v2  ;;  %v3094_v32 = vmul.f32 0.2, %v11696_v58 }
 0x278   : > { %vm4501_vm1 = vcmp.gt.f32.partialorder %v4485_v63, 0.0  ;;  %v4509_v14 = vmul.f32 0.2, %v4485_v63  ;;  %v4460_v61 = vpop.f32.mrf.mxu1 }
 0x279   : > { %v4461_v57 = vadd.f32 %v4460_v61, %v4432_v41  ;;  %v12397_v61 = vld [vmem:[#allocation10_spill] sm:$0xff]  ;;  %v3102_v41 = vsel %vm3086_vm11, %v11696_v58, %v3094_v32  ;;  %vm6253_vm11 = vcmask 516096  }
 0x27a   : > { %v4517_v20 = vsel %vm4501_vm1, %v4485_v63, %v4509_v14  ;;  %v3093_v63 = vmul.f32 0.2, %v3070_v39  ;;  %v3127_v14 = vor.u32 %v3125_v8, %v3124_v30  ;;  %v11843_v30 = vpack.c.bf16 %v3102_v41, %v3102_v41 }
 0x27b   : > { %v11783_v24 = vpop.f32.mrf.mxu3  ;;  %v4525_v9 = vpack.c.bf16 %v4517_v20, %v4517_v20 }
 0x27c   : > { %v3101_v48 = vsel %vm3085_vm9, %v3070_v39, %v3093_v63  ;;  %v3143_v2 = vshrl.u32 %v11843_v30, 16 }
 0x27d   : > { %v4486_v0 = vpop.f32.mrf.mxu2  ;;  %4542 = vrot.lane.b32.xlu1 %v4525_v9, %s9463_s14  ;;  %v11826_v47 = vpack.c.bf16 %v3101_v48, %v3101_v48 }
 0x27e   : > { %v4487_v49 = vadd.f32 %v4486_v0, %v4458_v21  ;;  %v2959_v21 = vadd.f32 %v11561_v35, %v12395_v42  ;;  %v3022_v0 = vadd.f32 %v12396_v12, %v2993_v4  ;;  %v3146_v42 = vshll.u32 %v11843_v30, 16 }
 0x27f   : > { %v4436_v46 = vpop.f32.mrf.mxu0  ;;  %v3136_v38 = vshrl.u32 %v11826_v47, 16  ;;  %v3139_v37 = vshll.u32 %v11826_v47, 16 }
 0x280   : > { %vm4502_vm7 = vcmp.gt.f32.partialorder %v4487_v49, 0.0  ;;  %v4510_v54 = vmul.f32 0.2, %v4487_v49  ;;  %v4462_v7 = vpop.f32.mrf.mxu1  ;;  %v3051_v28 = vadd.f32 %v11736_v50, %v3022_v0 }
 0x281   : > { %v4463_v1 = vadd.f32 %v4462_v7, %v4434_v3  ;;  %v3138_v7 = vrot.slane %v3136_v38, 7 }
 0x282   : > { %v4518_v22 = vsel %vm4502_vm7, %v4487_v49, %v4510_v54  ;;  %v2988_v49 = vadd.f32 %v12397_v61, %v2959_v21  ;;  %v3080_v5 = vadd.f32 %v11742_v6, %v3051_v28  ;;  %v4437_v6 = vadd.f32 %v4436_v46, %v4408_v25 }
 0x283   : > { %v4526_v31 = vpack.c.bf16 %v4518_v22, %v4518_v22  ;;  %v11802_v16 = vpop.f32.mrf.mxu3  ;;  %v3134_v22 = vor.u32 %v3132_v17, %v3131_v60  ;;  %v3141_v46 = vor.u32 %v3139_v37, %v3138_v7  ;;  %v6008_v25 = vadd.f32 %v11561_v35, %v11771_v43 }
 0x284   : > { %v3017_v50 = vadd.f32 %v12398_v53, %v2988_v49  ;;  %v3097_v39 = vmul.f32 0.2, %v3080_v5  ;;  %vm3089_vm12 = vcmp.gt.f32.partialorder %v3080_v5, 0.0  ;;  %v6006_v49 = vadd.f32 %v11561_v35, %v11760_v51 }
 0x285   : > { %4544 = vrot.lane.b32.xlu2 %v4526_v31, %s9463_s14  ;;  %3170 = vrot.lane.b32.xlu1 %v3120_v26, %s9463_s14  ;;  %vm3195_vm7 = vsmask.f32 7938 }
 0x286   : > { %v3105_v8 = vsel %vm3089_vm12, %v3080_v5, %v3097_v39 }
 0x287   : > { %v4438_v44 = vpop.f32.mrf.mxu0 }
 0x289   : > { %v4489_v11 = vpop.f32.mrf.mxu2 }
 0x28a   : > { %v4490_v56 = vadd.f32 %v4489_v11, %v4461_v57  ;;  %v3046_v57 = vadd.f32 %v11694_v36, %v3017_v50  ;;  %v4381_v36 = vadd.f32 %v11561_v35, %v11749_v62 }
 0x28c   : > { %vm4503_vm8 = vcmp.gt.f32.partialorder %v4490_v56, 0.0  ;;  %v4511_v19 = vmul.f32 0.2, %v4490_v56  ;;  %v3075_v11 = vadd.f32 %v11711_v33, %v3046_v57  ;;  %v4410_v3 = vadd.f32 %v11753_v52, %v4381_v36 }
 0x28d   : > { %3172 = vrot.lane.b32.xlu2 %v3127_v14, %s9463_s14  ;;  %v11852_v14 = vpack.c.bf16 %v3105_v8, %v3105_v8 }
 0x28e   : > { %v4519_v20 = vsel %vm4503_vm8, %v4490_v56, %v4511_v19  ;;  %v3095_v19 = vmul.f32 0.2, %v3075_v11  ;;  %vm3087_vm14 = vcmp.gt.f32.partialorder %v3075_v11, 0.0  ;;  %vm11941_vm8 = vmand %vm266_vm3, %vm3195_vm7 }
 0x28f   : > { %v4527_v10 = vpack.c.bf16 %v4519_v20, %v4519_v20  ;;  %v3164_v62 = vshrl.u32 %v11852_v14, 16  ;;  %v3167_v32 = vshll.u32 %v11852_v14, 16 }
 0x290   : > { %v11818_v9 = vpop.f32.mrf.mxu3  ;;  %v4465_v54 = vpop.f32.mrf.mxu1  ;;  %v3103_v48 = vsel %vm3087_vm14, %v3075_v11, %v3095_v19 }
 0x291   : > { %v4491_v40 = vpop.f32.mrf.mxu2  ;;  %4546 = vrot.lane.b32.xlu0 %v4527_v10, %s9463_s14  ;;  %v4466_v56 = vadd.f32 %v4465_v54, %v4437_v6  ;;  %v3145_v10 = vrot.slane %v3143_v2, 7  ;;  %v11863_v12 = vpack.c.bf16 %v3103_v48, %v3103_v48  ;;  %v3166_v17 = vrot.slane %v3164_v62, 7  ;;  %v9274_v54 = vld [vmem:[%s12381_s3 + $0x38] sm:$0xff]  ;;  %v9273_v6 = vld [vmem:[%s12381_s3 + $0x30] sm:$0xff] }
 0x292   : > { %v4492_v29 = vadd.f32 %v4491_v40, %v4463_v1  ;;  %v4439_v1 = vadd.f32 %v4438_v44, %v4410_v3  ;;  %6775 = vmatpush.bf16.msrb.mxu0 %v9274_v54  ;;  %v6011_v2 = vadd.f32 %v11561_v35, %v11783_v24 }
 0x293   : > { %v3148_v40 = vor.u32 %v3146_v42, %v3145_v10  ;;  %v11912_v42 = vld [vmem:[%s12380_s2] ss:$0 sm:$0xff] }
 0x294   : > { %vm4504_vm10 = vcmp.gt.f32.partialorder %v4492_v29, 0.0  ;;  %v4512_v59 = vmul.f32 0.2, %v4492_v29 }
 0x295   : > { %3174 = vrot.lane.b32.xlu2 %v3134_v22, %s9463_s14 }
 0x296   : > { %v4520_v31 = vsel %vm4504_vm10, %v4492_v29, %v4512_v59  ;;  %v3096_v29 = vmul.f32 0.2, %v11725_v45  ;;  %v3169_v59 = vor.u32 %v3167_v32, %v3166_v17  ;;  %6776 = vmatpush.bf16.msrb.mxu0 %v9273_v6  ;;  %vm3222_vm10 = vsmask.f32 256 }
 0x297   : > { %v4528_v26 = vpack.c.bf16 %v4520_v31, %v4520_v31  ;;  %vm11965_vm12 = vmand %vm6253_vm11, %vm3222_vm10 }
 0x298   : > { %v11839_v15 = vpop.f32.mrf.mxu3  ;;  %v4467_v18 = vpop.f32.mrf.mxu1  ;;  %v3104_v55 = vsel %vm3088_vm15, %v11725_v45, %v3096_v29  ;;  %v3153_v45 = vshll.u32 %v11863_v12, 16 }
 0x299   : > { %4548 = vrot.lane.b32.xlu0 %v4528_v26, %s9463_s14  ;;  %v4468_v52 = vadd.f32 %v4467_v18, %v4439_v1  ;;  %v3112_v31 = vpack.c.bf16 %v3104_v55, %v3104_v55 }
 0x29b   : > { %v3157_v57 = vshrl.u32 %v3112_v31, 16 }
 0x29d   : > { %3258 = vrot.lane.b32.xlu2 %v11791_v13, %s9463_s14 }
 0x29e   : > { %v4494_v58 = vpop.f32.mrf.mxu2 }
 0x29f   : > { %v6034_v63 = vpop.f32.mrf.mxu0  ;;  %v4495_v27 = vadd.f32 %v4494_v58, %v4466_v56  ;;  %v3159_v58 = vrot.slane %v3157_v57, 7 }
 0x2a0   : > { %v6035_v44 = vadd.f32 %v6034_v63, %v6006_v49 }
 0x2a1   : > { %vm4505_vm13 = vcmp.gt.f32.partialorder %v4495_v27, 0.0  ;;  %v4513_v33 = vmul.f32 0.2, %v4495_v27  ;;  %3176 = vrot.lane.b32.xlu0 %v3141_v46, %s9463_s14  ;;  %v3160_v46 = vshll.u32 %v3112_v31, 16 }
 0x2a3   : > { %v4521_v4 = vsel %vm4505_vm13, %v4495_v27, %v4513_v33  ;;  %v3162_v33 = vor.u32 %v3160_v46, %v3159_v58 }
 0x2a4   : > { %v11856_v20 = vpop.f32.mrf.mxu3  ;;  %v4529_v13 = vpack.c.bf16 %v4521_v4, %v4521_v4 }
 0x2a5   : > { %3260 = vrot.lane.b32.xlu2 %v11806_v23, %s9463_s14  ;;  %v3150_v23 = vshrl.u32 %v11863_v12, 16 }
 0x2a6   : > { %v4496_v60 = vpop.f32.mrf.mxu2  ;;  %4550 = vrot.lane.b32.xlu1 %v4529_v13, %s9463_s14  ;;  %v9272_v13 = vld [vmem:[%s12381_s3 + $0x28] sm:$0xff] }
 0x2a7   : > { %v6036_v21 = vpop.f32.mrf.mxu0  ;;  %v4497_v61 = vadd.f32 %v4496_v60, %v4468_v52  ;;  %v3152_v53 = vrot.slane %v3150_v23, 7  ;;  %6777 = vmatpush.bf16.msrb.mxu0 %v9272_v13  ;;  %v9271_v60 = vld [vmem:[%s12381_s3 + $0x20] sm:$0xff] }
 0x2a8   : > { %v6063_v0 = vpop.f32.mrf.mxu1  ;;  %v6037_v7 = vadd.f32 %v6036_v21, %v6008_v25  ;;  %v6013_v21 = vadd.f32 %v11912_v42, %v11802_v16 }
 0x2a9   : > { %3178 = vrot.lane.b32.xlu0 %v3148_v40, %s9463_s14  ;;  %v4514_v22 = vmul.f32 0.2, %v4497_v61  ;;  %v6064_v51 = vadd.f32 %v6063_v0, %v6035_v44  ;;  %vm4506_vm0 = vcmp.gt.f32.partialorder %v4497_v61, 0.0  ;;  %v3155_v39 = vor.u32 %v3153_v45, %v3152_v53  ;;  %v9270_v40 = vld [vmem:[%s12381_s3 + $0x18] sm:$0xff] }
 0x2ab   : > { %v4522_v41 = vsel %vm4506_vm0, %v4497_v61, %v4514_v22  ;;  %6778 = vmatpush.bf16.msrb.mxu0 %v9271_v60  ;;  %v9297_v60 = vld [vmem:[%s12381_s3 + $0xf0] sm:$0xff]  ;;  %vm12017_vm0 = vmand %vm316_vm4, %vm3195_vm7 }
 0x2ac   : > { %v11871_v28 = vpop.f32.mrf.mxu3  ;;  %v4530_v11 = vpack.c.bf16 %v4522_v41, %v4522_v41 }
 0x2ad   : > { %3184 = vrot.lane.b32.xlu2 %v3169_v59, %s9463_s14 }
 0x2ae   : > { %v6092_v5 = vpop.f32.mrf.mxu2  ;;  %3256 = vrot.lane.b32.xlu1 %v11780_v34, %s9463_s14 }
 0x2af   : > { %v6039_v26 = vpop.f32.mrf.mxu0  ;;  %v6093_v50 = vadd.f32 %v6092_v5, %v6064_v51  ;;  %6779 = vmatpush.bf16.msrb.mxu0 %v9270_v40  ;;  %v6016_v5 = vadd.f32 %v11912_v42, %v11818_v9  ;;  %v9464_v9 = vmov 0   ;;  %v9296_v40 = vld [vmem:[%s12381_s3 + $0xe8] sm:$0xff] }
 0x2b0   : > { %v6065_v38 = vpop.f32.mrf.mxu1  ;;  %v6040_v4 = vadd.f32 %v6039_v26, %v6011_v2  ;;  %v9268_v26 = vld [vmem:[%s12381_s3 + $0x8] sm:$0xff]  ;;  %4567 = vst.msk [vmem:[#allocation3] sm:$0xf] %vm316_vm4, %v9464_v9  ;;  %v9282_v2 = vld [vmem:[%s12381_s3 + $0x78] sm:$0xff] }
 0x2b1   : > { %3262 = vrot.lane.b32.xlu0 %v11826_v47, %s9463_s14  ;;  %v6066_v47 = vadd.f32 %v6065_v38, %v6037_v7  ;;  %6252 = vst.msk [vmem:[#allocation3] sm:$0xf] %vm266_vm3, %v9464_v9  ;;  %6804 = vmatpush.bf16.msrb.mxu1 %v9282_v2 }
 0x2b4   : > { %v6121_v34 = vpop.f32.mrf.mxu3 }
 0x2b5   : > { %v6122_v56 = vadd.f32 %v6121_v34, %v6093_v50  ;;  %4569 = vrot.lane.b32.xlu2 %v4530_v11, %s9463_s14 }
 0x2b6   : > { %v6094_v8 = vpop.f32.mrf.mxu2  ;;  %3180 = vrot.lane.b32.xlu1 %v3155_v39, %s9463_s14 }
 0x2b7   : > { %vm6141_vm1 = vcmp.gt.f32.partialorder %v6122_v56, 0.0  ;;  %v6149_v18 = vmul.f32 0.2, %v6122_v56  ;;  %v6095_v63 = vadd.f32 %v6094_v8, %v6066_v47  ;;  %v6041_v27 = vpop.f32.mrf.mxu0 }
 0x2b8   : > { %v6068_v43 = vpop.f32.mrf.mxu1  ;;  %v6042_v29 = vadd.f32 %v6041_v27, %v6013_v21  ;;  %v6021_v21 = vadd.f32 %v11912_v42, %v11856_v20 }
 0x2b9   : > { %v6157_v37 = vsel %vm6141_vm1, %v6122_v56, %v6149_v18  ;;  %3264 = vrot.lane.b32.xlu0 %v11843_v30, %s9463_s14  ;;  %v6069_v48 = vadd.f32 %v6068_v43, %v6040_v4  ;;  %v9267_v18 = vld [vmem:[%s12381_s3] sm:$0xff]  ;;  %v6018_v43 = vadd.f32 %v11912_v42, %v11839_v15  ;;  %v9298_v15 = vld [vmem:[%s12381_s3 + $0xf8] sm:$0xff] }
 0x2ba   : > { %v11891_v36 = vpack.c.bf16 %v6157_v37, %v6157_v37  ;;  %6862 = vmatpush.bf16.msra.mxu3 %v9298_v15 }
 0x2bc   : > { %6340 = vst.msk [vmem:[#allocation3 + $0x10] sm:$0xf] %vm266_vm3, %v11891_v36  ;;  %v6123_v19 = vpop.f32.mrf.mxu3  ;;  %v6174_v49 = vshrl.u32 %v11891_v36, 16 }
 0x2bd   : > { %v6124_v3 = vadd.f32 %v6123_v19, %v6095_v63 }
 0x2be   : > { %v6097_v10 = vpop.f32.mrf.mxu2  ;;  %3182 = vrot.lane.b32.xlu1 %v3162_v33, %s9463_s14  ;;  %v6176_v22 = vrot.slane %v6174_v49, 7  ;;  %6863 = vmatpush.bf16.msra.mxu3 %v9297_v60 }
 0x2bf   : > { %vm6142_vm2 = vcmp.gt.f32.partialorder %v6124_v3, 0.0  ;;  %v6150_v30 = vmul.f32 0.2, %v6124_v3  ;;  %v6098_v24 = vadd.f32 %v6097_v10, %v6069_v48  ;;  %v6044_v52 = vpop.f32.mrf.mxu0 }
 0x2c0   : > { %v6070_v62 = vpop.f32.mrf.mxu1  ;;  %v6045_v38 = vadd.f32 %v6044_v52, %v6016_v5  ;;  %v9281_v52 = vld [vmem:[%s12381_s3 + $0x70] sm:$0xff] }
 0x2c1   : > { %v6158_v35 = vsel %vm6142_vm2, %v6124_v3, %v6150_v30  ;;  %3268 = vrot.lane.b32.xlu0 %v3112_v31, %s9463_s14  ;;  %v6071_v32 = vadd.f32 %v6070_v62, %v6042_v29  ;;  %v6177_v31 = vshll.u32 %v11891_v36, 16  ;;  %6805 = vmatpush.bf16.msrb.mxu1 %v9281_v52  ;;  %vm3221_vm2 = vcmask 1040896  }
 0x2c2   : > { %v11903_v1 = vpack.c.bf16 %v6158_v35, %v6158_v35  ;;  %6864 = vmatpush.bf16.msra.mxu3 %v9296_v40 }
 0x2c3   : > { %v4539_v23 = vpop.permute.xlu2 %4538  ;;  %v6179_v25 = vor.u32 %v6177_v31, %v6176_v22  ;;  %v6023_v31 = vadd.f32 %v11912_v42, %v11871_v28  ;;  %v9294_v28 = vld [vmem:[%s12381_s3 + $0xd8] sm:$0xff] }
 0x2c4   : > { %6341 = vst.msk [vmem:[#allocation3 + $0x24] sm:$0xf] %vm266_vm3, %v11903_v1  ;;  %v6126_v0 = vpop.f32.mrf.mxu3 }
 0x2c5   : > { %v6127_v17 = vadd.f32 %v6126_v0, %v6098_v24  ;;  %4560 = vst.msk [vmem:[#allocation3 + $0x14] sm:$0xf] %vm316_vm4, %v4539_v23 }
 0x2c6   : > { %v6099_v61 = vpop.f32.mrf.mxu2  ;;  %3266 = vrot.lane.b32.xlu1 %v11863_v12, %s9463_s14  ;;  %4572 = vst.msk [vmem:[#allocation3 + $0xc] sm:$0xf] %vm316_vm4, %v4539_v23  ;;  %v9269_v12 = vld [vmem:[%s12381_s3 + $0x10] sm:$0xff] }
 0x2c7   : > { %vm6143_vm6 = vcmp.gt.f32.partialorder %v6127_v17, 0.0  ;;  %v6151_v16 = vmul.f32 0.2, %v6127_v17  ;;  %v6100_v44 = vadd.f32 %v6099_v61, %v6071_v32  ;;  %6780 = vmatpush.bf16.msrb.mxu0 %v9269_v12  ;;  %v6046_v41 = vpop.f32.mrf.mxu0  ;;  %v8748_v32 = vld [vmem:[#allocation3] sm:$0xf] }
 0x2c8   : > { %v6073_v54 = vpop.f32.mrf.mxu1  ;;  %v6047_v37 = vadd.f32 %v6046_v41, %v6018_v43 }
 0x2c9   : > { %v6159_v55 = vsel %vm6143_vm6, %v6127_v17, %v6151_v16  ;;  %v6074_v34 = vadd.f32 %v6073_v54, %v6045_v38  ;;  %vm12064_vm6 = vmand %vm3221_vm2, %vm3222_vm10 }
 0x2ca   : > { %v11926_v59 = vpack.c.bf16 %v6159_v55, %v6159_v55 }
 0x2cb   : > { %6781 = vmatpush.bf16.msrb.mxu0 %v9268_v26 }
 0x2cc   : > { %6342 = vst.msk [vmem:[#allocation3 + $0x38] sm:$0xf] %vm266_vm3, %v11926_v59  ;;  %v6128_v51 = vpop.f32.mrf.mxu3  ;;  %v6231_v57 = vld [vmem:[#allocation3 + $0x14] sm:$0xf] }
 0x2cd   : > { %v6129_v53 = vadd.f32 %v6128_v51, %v6100_v44  ;;  %v6232_v7 = vsel %vm11941_vm8, %v6179_v25, %v6231_v57  ;;  %v6292_v11 = vld [vmem:[#allocation3 + $0xc] sm:$0xf]  ;;  %v9295_v51 = vld [vmem:[%s12381_s3 + $0xe0] sm:$0xff] }
 0x2ce   : > { %v6102_v45 = vpop.f32.mrf.mxu2  ;;  %3270 = vrot.lane.b32.xlu1 %v11852_v14, %s9463_s14  ;;  %6233 = vst [vmem:[#allocation3 + $0x14] sm:$0xf] %v6232_v7  ;;  %v6293_v14 = vsel %vm11941_vm8, %v6179_v25, %v6292_v11  ;;  %6865 = vmatpush.bf16.msra.mxu3 %v9295_v51  ;;  %v9280_v7 = vld [vmem:[%s12381_s3 + $0x68] sm:$0xff] }
 0x2cf   : > { %vm6144_vm9 = vcmp.gt.f32.partialorder %v6129_v53, 0.0  ;;  %v6152_v39 = vmul.f32 0.2, %v6129_v53  ;;  %v6103_v8 = vadd.f32 %v6102_v45, %v6074_v34  ;;  %6294 = vst [vmem:[#allocation3 + $0xc] sm:$0xf] %v6293_v14  ;;  %6782 = vmatpush.bf16.msrb.mxu0 %v9267_v18  ;;  %v6049_v4 = vpop.f32.mrf.mxu0  ;;  %6806 = vmatpush.bf16.msrb.mxu1 %v9280_v7 }
 0x2d0   : > { %v6075_v6 = vpop.f32.mrf.mxu1  ;;  %v6050_v29 = vadd.f32 %v6049_v4, %v6021_v21  ;;  %v9279_v4 = vld [vmem:[%s12381_s3 + $0x60] sm:$0xff]  ;;  %v9292_v21 = vld [vmem:[%s12381_s3 + $0xc8] sm:$0xff] }
 0x2d1   : > { %v6160_v56 = vsel %vm6144_vm9, %v6129_v53, %v6152_v39  ;;  %v6076_v19 = vadd.f32 %v6075_v6, %v6047_v37  ;;  %v6181_v39 = vshrl.u32 %v11903_v1, 16 }
 0x2d2   : > { %v11955_v47 = vpack.c.bf16 %v6160_v56, %v6160_v56  ;;  %6866 = vmatpush.bf16.msra.mxu3 %v9294_v28 }
 0x2d3   : > { %v6183_v2 = vrot.slane %v6181_v39, 7  ;;  %6807 = vmatpush.bf16.msrb.mxu1 %v9279_v4 }
 0x2d4   : > { %6343 = vst.msk [vmem:[#allocation3 + $0x4c] sm:$0xf] %vm266_vm3, %v11955_v47  ;;  %v6131_v58 = vpop.f32.mrf.mxu3  ;;  %v6195_v16 = vshrl.u32 %v11955_v47, 16  ;;  %v6198_v34 = vshll.u32 %v11955_v47, 16 }
 0x2d5   : > { %v6132_v63 = vadd.f32 %v6131_v58, %v6103_v8  ;;  %v6255_v3 = vld [vmem:[#allocation3 + $0x14] sm:$0x1]  ;;  %v3200_v8 = vld [vmem:[#allocation3 + $0x18] sm:$0xf] }
 0x2d6   : > { %v6104_v46 = vpop.f32.mrf.mxu2  ;;  %v6256_v10 = vsel %vm11965_vm12, 0, %v6255_v3  ;;  %v6316_v48 = vld [vmem:[#allocation3 + $0xc] sm:$0x1]  ;;  %v6197_v53 = vrot.slane %v6195_v16, 7 }
 0x2d7   : > { %vm6145_vm13 = vcmp.gt.f32.partialorder %v6132_v63, 0.0  ;;  %v6153_v33 = vmul.f32 0.2, %v6132_v63  ;;  %v6105_v30 = vadd.f32 %v6104_v46, %v6076_v19  ;;  %6257 = vst [vmem:[#allocation3 + $0x14] sm:$0x1] %v6256_v10  ;;  %v6317_v24 = vsel %vm11965_vm12, 0, %v6316_v48  ;;  %v6051_v22 = vpop.f32.mrf.mxu0 }
 0x2d8   : > { %v6078_v62 = vpop.f32.mrf.mxu1  ;;  %6318 = vst [vmem:[#allocation3 + $0xc] sm:$0x1] %v6317_v24  ;;  %v6052_v41 = vadd.f32 %v6051_v22, %v6023_v31  ;;  %v6200_v11 = vor.u32 %v6198_v34, %v6197_v53  ;;  %v9293_v10 = vld [vmem:[%s12381_s3 + $0xd0] sm:$0xff]  ;;  %v9302_v48 = vld [vmem:[%s12381_s3 + $0x118] sm:$0xff] }
 0x2d9   : > { %v6161_v13 = vsel %vm6145_vm13, %v6132_v63, %v6153_v33  ;;  %v6079_v49 = vadd.f32 %v6078_v62, %v6050_v29  ;;  %v9290_v33 = vld [vmem:[%s12381_s3 + $0xb8] sm:$0xff]  ;;  %v9289_v62 = vld [vmem:[%s12381_s3 + $0xb0] sm:$0xff]  ;;  %6867 = vmatpush.bf16.msra.mxu3 %v9293_v10  ;;  %6895 = vmatpush.bf16.msra.mxu0 %v9302_v48  ;;  %v9275_v48 = vld [vmem:[%s12381_s3 + $0x40] sm:$0xff] }
 0x2da   : > { %v11977_v35 = vpack.c.bf16 %v6161_v13, %v6161_v13  ;;  %v6184_v13 = vshll.u32 %v11903_v1, 16  ;;  %6833 = vmatpush.bf16.msra.mxu2 %v9290_v33  ;;  %v9278_v24 = vld [vmem:[%s12381_s3 + $0x58] sm:$0xff] }
 0x2db   : > { %6808 = vmatpush.bf16.msrb.mxu1 %v9278_v24 }
 0x2dc   : > { %6344 = vst.msk [vmem:[#allocation3 + $0x60] sm:$0xf] %vm266_vm3, %v11977_v35  ;;  %v6133_v0 = vpop.f32.mrf.mxu3  ;;  %v6186_v60 = vor.u32 %v6184_v13, %v6183_v2  ;;  %v9301_v2 = vld [vmem:[%s12381_s3 + $0x110] sm:$0xff] }
 0x2dd   : > { %v6134_v17 = vadd.f32 %v6133_v0, %v6105_v30  ;;  %6868 = vmatpush.bf16.msra.mxu3 %v9292_v21  ;;  %6896 = vmatpush.bf16.msra.mxu0 %v9301_v2 }
 0x2de   : > { %v6107_v61 = vpop.f32.mrf.mxu2  ;;  %v9249_v44 = vld [vmem:[#allocation3 + $0x10] sm:$0xf0]  ;;  %6834 = vmatpush.bf16.msra.mxu2 %v9289_v62 }
 0x2df   : > { %vm6146_vm14 = vcmp.gt.f32.partialorder %v6134_v17, 0.0  ;;  %v6154_v20 = vmul.f32 0.2, %v6134_v17  ;;  %v6108_v54 = vadd.f32 %v6107_v61, %v6079_v49  ;;  %v4545_v55 = vpop.permute.xlu2 %4544  ;;  %v8749_v5 = vor.u32 %v9249_v44, %v8748_v32 }
 0x2e0   : > { %4563 = vst.msk [vmem:[#allocation3 + $0x50] sm:$0xf] %vm316_vm4, %v4545_v55  ;;  %v6080_v26 = vpop.f32.mrf.mxu1  ;;  %v6188_v49 = vshrl.u32 %v11926_v59, 16 }
 0x2e1   : > { %v6162_v23 = vsel %vm6146_vm14, %v6134_v17, %v6154_v20  ;;  %4575 = vst.msk [vmem:[#allocation3 + $0x48] sm:$0xf] %vm316_vm4, %v4545_v55  ;;  %6783 = vmatmul.bf16.vlgmr.msrb.gmra.mxu0 %v8749_v5  ;;  %v6081_v42 = vadd.f32 %v6080_v26, %v6052_v41  ;;  %v6191_v26 = vshll.u32 %v11926_v59, 16  ;;  %v3197_v41 = vld [vmem:[#allocation3 + $0x4] sm:$0xf] }
 0x2e2   : > { %v11995_v12 = vpack.c.bf16 %v6162_v23, %v6162_v23  ;;  %v6190_v51 = vrot.slane %v6188_v49, 7  ;;  %v9251_v55 = vld [vmem:[#allocation3 + $0x20] sm:$0xf0] }
 0x2e3   : > { %v4541_v6 = vpop.permute.xlu0 %4540 }
 0x2e4   : > { %6345 = vst.msk [vmem:[#allocation3 + $0x74] sm:$0xf] %vm266_vm3, %v11995_v12  ;;  %v6136_v38 = vpop.f32.mrf.mxu3  ;;  %v6193_v34 = vor.u32 %v6191_v26, %v6190_v51 }
 0x2e5   : > { %v6137_v45 = vadd.f32 %v6136_v38, %v6108_v54  ;;  %4561 = vst.msk [vmem:[#allocation3 + $0x28] sm:$0xf] %vm316_vm4, %v4541_v6  ;;  %v3203_v38 = vld [vmem:[#allocation3 + $0x2c] sm:$0xf] }
 0x2e6   : > { %v6109_v25 = vpop.f32.mrf.mxu2  ;;  %4573 = vst.msk [vmem:[#allocation3 + $0x20] sm:$0xf] %vm316_vm4, %v4541_v6 }
 0x2e7   : > { %vm6147_vm15 = vcmp.gt.f32.partialorder %v6137_v45, 0.0  ;;  %v6155_v57 = vmul.f32 0.2, %v6137_v45  ;;  %v6110_v18 = vadd.f32 %v6109_v25, %v6081_v42  ;;  %v6240_v43 = vld [vmem:[#allocation3 + $0x50] sm:$0xf]  ;;  %v3173_v58 = vpop.permute.xlu2 %3172 }
 0x2e8   : > { %v6241_v63 = vsel %vm11941_vm8, %v6200_v11, %v6240_v43  ;;  %v6301_v46 = vld [vmem:[#allocation3 + $0x48] sm:$0xf]  ;;  %v3201_v19 = vsel %vm12017_vm0, %v3173_v58, %v3200_v8  ;;  %v9277_v8 = vld [vmem:[%s12381_s3 + $0x50] sm:$0xff] }
 0x2e9   : > { %v6163_v14 = vsel %vm6147_vm15, %v6137_v45, %v6155_v57  ;;  %6242 = vst [vmem:[#allocation3 + $0x50] sm:$0xf] %v6241_v63  ;;  %v6302_v15 = vsel %vm11941_vm8, %v6200_v11, %v6301_v46  ;;  %v9291_v11 = vld [vmem:[%s12381_s3 + $0xc0] sm:$0xff]  ;;  %6809 = vmatpush.bf16.msrb.mxu1 %v9277_v8  ;;  %v9276_v43 = vld [vmem:[%s12381_s3 + $0x48] sm:$0xff] }
 0x2ea   : > { %v12022_v37 = vpack.c.bf16 %v6163_v14, %v6163_v14  ;;  %6303 = vst [vmem:[#allocation3 + $0x48] sm:$0xf] %v6302_v15  ;;  %v9288_v14 = vld [vmem:[%s12381_s3 + $0xa8] sm:$0xff]  ;;  %6869 = vmatpush.bf16.msra.mxu3 %v9291_v11  ;;  %v9287_v46 = vld [vmem:[%s12381_s3 + $0xa0] sm:$0xff] }
 0x2eb   : > { %3202 = vst [vmem:[#allocation3 + $0x18] sm:$0xf] %v3201_v19  ;;  %6835 = vmatpush.bf16.msra.mxu2 %v9288_v14  ;;  %v9248_v15 = vld [vmem:[#allocation3 + $0xc] sm:$0xf]  ;;  %v9285_v14 = vld [vmem:[%s12381_s3 + $0x90] sm:$0xff] }
 0x2ec   : > { %6346 = vst.msk [vmem:[#allocation3 + $0x88] sm:$0xf] %vm266_vm3, %v12022_v37  ;;  %v6138_v3 = vpop.f32.mrf.mxu3  ;;  %v6234_v0 = vld [vmem:[#allocation3 + $0x28] sm:$0xf] }
 0x2ed   : > { %v6139_v30 = vadd.f32 %v6138_v3, %v6110_v18  ;;  %v6235_v40 = vsel %vm11941_vm8, %v6186_v60, %v6234_v0  ;;  %v6295_v29 = vld [vmem:[#allocation3 + $0x20] sm:$0xf]  ;;  %6810 = vmatpush.bf16.msrb.mxu1 %v9276_v43 }
 0x2ee   : > { %6236 = vst [vmem:[#allocation3 + $0x28] sm:$0xf] %v6235_v40  ;;  %v6296_v61 = vsel %vm11941_vm8, %v6186_v60, %v6295_v29  ;;  %v6202_v60 = vshrl.u32 %v11977_v35, 16  ;;  %v6209_v29 = vshrl.u32 %v11995_v12, 16 }
 0x2ef   : > { %vm6148_vm1 = vcmp.gt.f32.partialorder %v6139_v30, 0.0  ;;  %v6156_v52 = vmul.f32 0.2, %v6139_v30  ;;  %v4543_v20 = vpop.permute.xlu1 %4542  ;;  %v3175_v32 = vpop.permute.xlu2 %3174  ;;  %6297 = vst [vmem:[#allocation3 + $0x20] sm:$0xf] %v6296_v61  ;;  %6836 = vmatpush.bf16.msra.mxu2 %v9287_v46 }
 0x2f0   : > { %v6264_v23 = vld [vmem:[#allocation3 + $0x50] sm:$0x1]  ;;  %4562 = vst.msk [vmem:[#allocation3 + $0x3c] sm:$0xf] %vm316_vm4, %v4543_v20  ;;  %v3204_v6 = vsel %vm12017_vm0, %v3175_v32, %v3203_v38  ;;  %v6205_v32 = vshll.u32 %v11977_v35, 16 }
 0x2f1   : > { %v6164_v17 = vsel %vm6148_vm1, %v6139_v30, %v6156_v52  ;;  %v6265_v54 = vsel %vm11965_vm12, 0, %v6264_v23  ;;  %v6325_v44 = vld [vmem:[#allocation3 + $0x48] sm:$0x1]  ;;  %4574 = vst.msk [vmem:[#allocation3 + $0x34] sm:$0xf] %vm316_vm4, %v4543_v20  ;;  %6811 = vmatpush.bf16.msrb.mxu1 %v9275_v48  ;;  %v6216_v48 = vshrl.u32 %v12022_v37, 16 }
 0x2f2   : > { %v12059_v16 = vpack.c.bf16 %v6164_v17, %v6164_v17  ;;  %6266 = vst [vmem:[#allocation3 + $0x50] sm:$0x1] %v6265_v54  ;;  %v6326_v22 = vsel %vm11965_vm12, 0, %v6325_v44  ;;  %v3227_v5 = vld [vmem:[#allocation3 + $0x18] sm:$0x1]  ;;  %v6211_v54 = vrot.slane %v6209_v29, 7 }
 0x2f3   : > { %6327 = vst [vmem:[#allocation3 + $0x48] sm:$0x1] %v6326_v22  ;;  %v3228_v31 = vsel %vm12064_vm6, 0, %v3227_v5  ;;  %v3218_v52 = vld [vmem:[#allocation3 + $0x90] sm:$0xf] }
 0x2f4   : > { %6347 = vst.msk [vmem:[#allocation3 + $0x9c] sm:$0xf] %vm266_vm3, %v12059_v16  ;;  %v6285_v23 = vshrl.u32 %v12059_v16, 16 }
 0x2f5   : > { %3229 = vst [vmem:[#allocation3 + $0x18] sm:$0x1] %v3228_v31  ;;  %v6258_v53 = vld [vmem:[#allocation3 + $0x28] sm:$0x1]  ;;  %v6212_v31 = vshll.u32 %v11995_v12, 16 }
 0x2f6   : > { %6276 = vst.msk [vmem:[#allocation3 + $0x18] sm:$0xf] %vm266_vm3, %v11891_v36  ;;  %v6259_v45 = vsel %vm11965_vm12, 0, %v6258_v53  ;;  %v6319_v25 = vld [vmem:[#allocation3 + $0x20] sm:$0x1] }
 0x2f7   : > { %v3259_v39 = vpop.permute.xlu2 %3258  ;;  %v3171_v28 = vpop.permute.xlu1 %3170  ;;  %6260 = vst [vmem:[#allocation3 + $0x28] sm:$0x1] %v6259_v45  ;;  %v6320_v42 = vsel %vm11965_vm12, 0, %v6319_v25  ;;  %v6237_v57 = vld [vmem:[#allocation3 + $0x3c] sm:$0xf]  ;;  %v6287_v45 = vrot.slane %v6285_v23, 7 }
 0x2f8   : > { %6321 = vst [vmem:[#allocation3 + $0x20] sm:$0x1] %v6320_v42  ;;  %v6238_v36 = vsel %vm11941_vm8, %v6193_v34, %v6237_v57  ;;  %v3198_v7 = vsel %vm12017_vm0, %v3171_v28, %v3197_v41  ;;  %v6298_v18 = vld [vmem:[#allocation3 + $0x34] sm:$0xf]  ;;  %v3206_v41 = vld [vmem:[#allocation3 + $0x40] sm:$0xf] }
 0x2f9   : > { %6239 = vst [vmem:[#allocation3 + $0x3c] sm:$0xf] %v6238_v36  ;;  %v6299_v58 = vsel %vm11941_vm8, %v6193_v34, %v6298_v18  ;;  %v6214_v34 = vor.u32 %v6212_v31, %v6211_v54  ;;  %v6288_v18 = vshll.u32 %v12059_v16, 16  ;;  %v8788_v23 = vld [vmem:[#allocation3 + $0x50] sm:$0xf] }
 0x2fa   : > { %3205 = vst [vmem:[#allocation3 + $0x2c] sm:$0xf] %v3204_v6  ;;  %v8778_v36 = vld [vmem:[#allocation3 + $0x44] sm:$0xf0] }
 0x2fb   : > { %3281 = vst.msk [vmem:[#allocation3 + $0x1c] sm:$0xf] %vm316_vm4, %v3259_v39  ;;  %v9286_v39 = vld [vmem:[%s12381_s3 + $0x98] sm:$0xff] }
 0x2fc   : > { %3199 = vst [vmem:[#allocation3 + $0x4] sm:$0xf] %v3198_v7  ;;  %6837 = vmatpush.bf16.msra.mxu2 %v9286_v39 }
 0x2fd   : > { %6300 = vst [vmem:[#allocation3 + $0x34] sm:$0xf] %v6299_v58  ;;  %v8750_v5 = vld [vmem:[#allocation3 + $0x14] sm:$0xf0] }
 0x2fe   : > { %v8768_v49 = vld [vmem:[#allocation3 + $0x28] sm:$0xf] }
 0x2ff   : > { %v3261_v63 = vpop.permute.xlu2 %3260  ;;  %v8758_v19 = vld [vmem:[#allocation3 + $0x1c] sm:$0xf0] }
 0x300   : > { %v6261_v33 = vld [vmem:[#allocation3 + $0x3c] sm:$0x1]  ;;  %3282 = vst.msk [vmem:[#allocation3 + $0x30] sm:$0xf] %vm316_vm4, %v3261_v63  ;;  %v8761_v4 = vor.u32 %v9248_v15, %v8758_v19  ;;  %v9300_v63 = vld [vmem:[%s12381_s3 + $0x108] sm:$0xff]  ;;  %v6290_v15 = vor.u32 %v6288_v18, %v6287_v45  ;;  %6838 = vmatpush.bf16.msra.mxu2 %v9285_v14 }
 0x301   : > { %v6262_v3 = vsel %vm11965_vm12, 0, %v6261_v33  ;;  %v3230_v13 = vld [vmem:[#allocation3 + $0x2c] sm:$0x1]  ;;  %6897 = vmatpush.bf16.msra.mxu0 %v9300_v63  ;;  %v9310_v19 = vld [vmem:[%s12383_s5 + $0x18] sm:$0xff] }
 0x302   : > { %6263 = vst [vmem:[#allocation3 + $0x3c] sm:$0x1] %v6262_v3  ;;  %v3231_v30 = vsel %vm12064_vm6, 0, %v3230_v13  ;;  %6870 = vmatmul.bf16.vlgmr.msra.gmra.mxu3 %v8761_v4  ;;  %v9284_v4 = vld [vmem:[%s12381_s3 + $0x88] sm:$0xff]  ;;  %6996 = vmatpush.bf16.msra.mxu1 %v9310_v19  ;;  %v9250_v50 = vld [vmem:[#allocation3 + $0x18] sm:$0xf0] }
 0x303   : > { %v4547_v10 = vpop.permute.xlu0 %4546  ;;  %3232 = vst [vmem:[#allocation3 + $0x2c] sm:$0x1] %v3231_v30  ;;  %v3224_v62 = vld [vmem:[#allocation3 + $0x4] sm:$0x1]  ;;  %v3209_v30 = vld [vmem:[#allocation3 + $0x54] sm:$0xf] }
 0x304   : > { %6277 = vst.msk [vmem:[#allocation3 + $0x2c] sm:$0xf] %vm266_vm3, %v11903_v1  ;;  %v3225_v24 = vsel %vm12064_vm6, 0, %v3224_v62  ;;  %v6322_v21 = vld [vmem:[#allocation3 + $0x34] sm:$0x1]  ;;  %v6204_v1 = vrot.slane %v6202_v60, 7  ;;  %6839 = vmatpush.bf16.msra.mxu2 %v9284_v4 }
 0x305   : > { %3226 = vst [vmem:[#allocation3 + $0x4] sm:$0x1] %v3225_v24  ;;  %v6323_v40 = vsel %vm11965_vm12, 0, %v6322_v21  ;;  %v9299_v60 = vld [vmem:[%s12381_s3 + $0x100] sm:$0xff]  ;;  %v9309_v21 = vld [vmem:[%s12383_s5 + $0x10] sm:$0xff] }
 0x306   : > { %6283 = vst.msk [vmem:[#allocation3 + $0x4] sm:$0xf] %vm266_vm3, %v9464_v9  ;;  %v6207_v44 = vor.u32 %v6205_v32, %v6204_v1  ;;  %6898 = vmatpush.bf16.msra.mxu0 %v9299_v60  ;;  %6997 = vmatpush.bf16.msra.mxu1 %v9309_v21  ;;  %v3215_v18 = vld [vmem:[#allocation3 + $0x7c] sm:$0xf] }
 0x307   : > { %v3185_v0 = vpop.permute.xlu2 %3184  ;;  %4564 = vst.msk [vmem:[#allocation3 + $0x64] sm:$0xf] %vm316_vm4, %v4547_v10  ;;  %v8776_v60 = vld [vmem:[#allocation3 + $0x30] sm:$0xf] }
 0x308   : > { %6324 = vst [vmem:[#allocation3 + $0x34] sm:$0x1] %v6323_v40  ;;  %v3219_v61 = vsel %vm12017_vm0, %v3185_v0, %v3218_v52  ;;  %v9283_v40 = vld [vmem:[%s12381_s3 + $0x80] sm:$0xff] }
 0x309   : > { %4576 = vst.msk [vmem:[#allocation3 + $0x5c] sm:$0xf] %vm316_vm4, %v4547_v10  ;;  %v9254_v20 = vld [vmem:[#allocation3 + $0x38] sm:$0xf0]  ;;  %6840 = vmatpush.bf16.msra.mxu2 %v9283_v40 }
 0x30a   : > { %v8769_v9 = vor.u32 %v9254_v20, %v8768_v49  ;;  %3220 = vst [vmem:[#allocation3 + $0x90] sm:$0xf] %v3219_v61  ;;  %v6218_v61 = vrot.slane %v6216_v48, 7  ;;  %v6219_v20 = vshll.u32 %v12022_v37, 16  ;;  %v9307_v48 = vld [vmem:[%s12383_s5] sm:$0xff] }
 0x30b   : > { %v4549_v17 = vpop.permute.xlu0 %4548 }
 0x30c   : > { %4565 = vst.msk [vmem:[#allocation3 + $0x78] sm:$0xf] %vm316_vm4, %v4549_v17  ;;  %6788 = vmatmul.bf16.gmra.mxu0 %v8769_v9 }
 0x30d   : > { %4577 = vst.msk [vmem:[#allocation3 + $0x70] sm:$0xf] %vm316_vm4, %v4549_v17  ;;  %v9247_v22 = vld [vmem:[#allocation3 + $0x4] sm:$0xf] }
 0x30e   : > { %v6243_v51 = vld [vmem:[#allocation3 + $0x64] sm:$0xf]  ;;  %v8753_v26 = vor.u32 %v9247_v22, %v8750_v5  ;;  %v6221_v5 = vor.u32 %v6219_v20, %v6218_v61 }
 0x30f   : > { %v4570_v38 = vpop.permute.xlu2 %4569  ;;  %v6244_v53 = vsel %vm11941_vm8, %v6207_v44, %v6243_v51  ;;  %v9253_v6 = vld [vmem:[#allocation3 + $0x34] sm:$0xf] }
 0x310   : > { %4579 = vst.msk [vmem:[#allocation3 + $0x98] sm:$0xf] %vm316_vm4, %v4570_v38  ;;  %v6304_v25 = vld [vmem:[#allocation3 + $0x5c] sm:$0xf]  ;;  %6812 = vmatmul.bf16.vlgmr.msrb.gmra.mxu1 %v8753_v26  ;;  %v8781_v8 = vor.u32 %v9253_v6, %v8778_v36  ;;  %v9252_v36 = vld [vmem:[#allocation3 + $0x2c] sm:$0xf] }
 0x311   : > { %6245 = vst [vmem:[#allocation3 + $0x64] sm:$0xf] %v6244_v53  ;;  %v6305_v28 = vsel %vm11941_vm8, %v6207_v44, %v6304_v25  ;;  %v3245_v58 = vld [vmem:[#allocation3 + $0x90] sm:$0x1]  ;;  %v3212_v53 = vld [vmem:[#allocation3 + $0x68] sm:$0xf] }
 0x312   : > { %6306 = vst [vmem:[#allocation3 + $0x5c] sm:$0xf] %v6305_v28  ;;  %v3246_v46 = vsel %vm12064_vm6, 0, %v3245_v58  ;;  %6875 = vmatmul.bf16.gmra.mxu3 %v8781_v8 }
 0x313   : > { %v6246_v42 = vld [vmem:[#allocation3 + $0x78] sm:$0xf]  ;;  %v3177_v57 = vpop.permute.xlu0 %3176  ;;  %3247 = vst [vmem:[#allocation3 + $0x90] sm:$0x1] %v3246_v46 }
 0x314   : > { %v6247_v7 = vsel %vm11941_vm8, %v6214_v34, %v6246_v42  ;;  %v6307_v11 = vld [vmem:[#allocation3 + $0x70] sm:$0xf]  ;;  %v3207_v2 = vsel %vm12017_vm0, %v3177_v57, %v3206_v41  ;;  %6282 = vst.msk [vmem:[#allocation3 + $0x90] sm:$0xf] %vm266_vm3, %v12022_v37  ;;  %v9308_v42 = vld [vmem:[%s12383_s5 + $0x8] sm:$0xff] }
 0x315   : > { %6248 = vst [vmem:[#allocation3 + $0x78] sm:$0xf] %v6247_v7  ;;  %v6308_v43 = vsel %vm11941_vm8, %v6214_v34, %v6307_v11  ;;  %6998 = vmatpush.bf16.msra.mxu1 %v9308_v42  ;;  %v8992_v42 = vld [vmem:[%s9553_s13 + $0xf8] sm:$0xf] }
 0x316   : > { %6309 = vst [vmem:[#allocation3 + $0x70] sm:$0xf] %v6308_v43 }
 0x317   : > { %v6313_v33 = vld [vmem:[#allocation3 + $0x98] sm:$0xf]  ;;  %3208 = vst [vmem:[#allocation3 + $0x40] sm:$0xf] %v3207_v2 }
 0x318   : > { %v4551_v16 = vpop.permute.xlu1 %4550  ;;  %v6267_v3 = vld [vmem:[#allocation3 + $0x64] sm:$0x1]  ;;  %v6314_v13 = vsel %vm11941_vm8, %v6290_v15, %v6313_v33 }
 0x319   : > { %v6268_v10 = vsel %vm11965_vm12, 0, %v6267_v3  ;;  %6315 = vst [vmem:[#allocation3 + $0x98] sm:$0xf] %v6314_v13  ;;  %v6328_v62 = vld [vmem:[#allocation3 + $0x5c] sm:$0x1]  ;;  %6999 = vmatpush.bf16.msra.mxu1 %v9307_v48 }
 0x31a   : > { %6269 = vst [vmem:[#allocation3 + $0x64] sm:$0x1] %v6268_v10  ;;  %v6329_v52 = vsel %vm11965_vm12, 0, %v6328_v62 }
 0x31b   : > { %v3179_v24 = vpop.permute.xlu0 %3178  ;;  %4566 = vst.msk [vmem:[#allocation3 + $0x8c] sm:$0xf] %vm316_vm4, %v4551_v16  ;;  %v8810_v20 = vld [vmem:[#allocation3 + $0x8c] sm:$0xf0] }
 0x31c   : > { %v6270_v0 = vld [vmem:[#allocation3 + $0x78] sm:$0x1]  ;;  %6330 = vst [vmem:[#allocation3 + $0x5c] sm:$0x1] %v6329_v52  ;;  %v3210_v49 = vsel %vm12017_vm0, %v3179_v24, %v3209_v30 }
 0x31d   : > { %v6271_v1 = vsel %vm11965_vm12, 0, %v6270_v0  ;;  %v6331_v29 = vld [vmem:[#allocation3 + $0x70] sm:$0x1]  ;;  %4578 = vst.msk [vmem:[#allocation3 + $0x84] sm:$0xf] %vm316_vm4, %v4551_v16 }
 0x31e   : > { %6272 = vst [vmem:[#allocation3 + $0x78] sm:$0x1] %v6271_v1  ;;  %v6332_v17 = vsel %vm11965_vm12, 0, %v6331_v29  ;;  %v3233_v32 = vld [vmem:[#allocation3 + $0x40] sm:$0x1] }
 0x31f   : > { %6333 = vst [vmem:[#allocation3 + $0x70] sm:$0x1] %v6332_v17  ;;  %v3234_v54 = vsel %vm12064_vm6, 0, %v3233_v32  ;;  %v8764_v29 = vld [vmem:[#allocation3 + $0x10] sm:$0xf] }
 0x320   : > { %v3257_v9 = vpop.permute.xlu1 %3256  ;;  %v6337_v44 = vld [vmem:[#allocation3 + $0x98] sm:$0x1]  ;;  %3211 = vst [vmem:[#allocation3 + $0x54] sm:$0xf] %v3210_v49  ;;  %v8765_v17 = vor.u32 %v9251_v55, %v8764_v29 }
 0x321   : > { %3235 = vst [vmem:[#allocation3 + $0x40] sm:$0x1] %v3234_v54  ;;  %v6338_v22 = vsel %vm11965_vm12, 0, %v6337_v44  ;;  %v9259_v51 = vld [vmem:[#allocation3 + $0x60] sm:$0xf0] }
 0x322   : > { %6278 = vst.msk [vmem:[#allocation3 + $0x40] sm:$0xf] %vm266_vm3, %v11926_v59  ;;  %v6249_v37 = vld [vmem:[#allocation3 + $0x8c] sm:$0xf]  ;;  %v8789_v31 = vor.u32 %v9259_v51, %v8788_v23  ;;  %v8784_v54 = vld [vmem:[#allocation3 + $0x38] sm:$0xf] }
 0x323   : > { %v3263_v26 = vpop.permute.xlu0 %3262  ;;  %6339 = vst [vmem:[#allocation3 + $0x98] sm:$0x1] %v6338_v22  ;;  %v6250_v38 = vsel %vm11941_vm8, %v6221_v5, %v6249_v37  ;;  %v9258_v41 = vld [vmem:[#allocation3 + $0x5c] sm:$0xf]  ;;  %v9256_v23 = vld [vmem:[#allocation3 + $0x48] sm:$0xf0] }
 0x324   : > { %6251 = vst [vmem:[#allocation3 + $0x8c] sm:$0xf] %v6250_v38  ;;  %6793 = vmatmul.bf16.gmra.mxu0 %v8789_v31  ;;  %v6310_v25 = vld [vmem:[#allocation3 + $0x84] sm:$0xf]  ;;  %v8785_v44 = vor.u32 %v9256_v23, %v8784_v54  ;;  %v8984_v22 = vld [vmem:[%s9553_s13 + $0xd8] sm:$0xf] }
 0x325   : > { %3280 = vst.msk [vmem:[#allocation3 + $0x8] sm:$0xf] %vm316_vm4, %v3257_v9  ;;  %v6311_v59 = vsel %vm11941_vm8, %v6221_v5, %v6310_v25  ;;  %v8808_v4 = vld [vmem:[#allocation3 + $0x78] sm:$0xf]  ;;  %v9303_v5 = vld [vmem:[%s9553_s13 + $0xdc] sm:$0xf0] }
 0x326   : > { %v8798_v45 = vld [vmem:[#allocation3 + $0x6c] sm:$0xf0]  ;;  %3283 = vst.msk [vmem:[#allocation3 + $0x44] sm:$0xf] %vm316_vm4, %v3263_v26  ;;  %v8985_v37 = vor.u32 %v9303_v5, %v8984_v22  ;;  %v9261_v38 = vld [vmem:[#allocation3 + $0x70] sm:$0xf0] }
 0x327   : > { %v8801_v39 = vor.u32 %v9258_v41, %v8798_v45  ;;  %v3236_v28 = vld [vmem:[#allocation3 + $0x54] sm:$0x1]  ;;  %6312 = vst [vmem:[#allocation3 + $0x84] sm:$0xf] %v6311_v59  ;;  %v8988_v45 = vld [vmem:[%s9553_s13 + $0xe8] sm:$0xf] }
 0x328   : > { %v3181_v34 = vpop.permute.xlu1 %3180  ;;  %v3237_v57 = vsel %vm12064_vm6, 0, %v3236_v28  ;;  %v9304_v25 = vld [vmem:[%s9553_s13 + $0xec] sm:$0xf0]  ;;  %v8824_v59 = vld [vmem:[#allocation3 + $0x88] sm:$0xf] }
 0x329   : > { %v3213_v6 = vsel %vm12017_vm0, %v3181_v34, %v3212_v53  ;;  %6880 = vmatmul.bf16.gmra.mxu3 %v8801_v39  ;;  %3238 = vst [vmem:[#allocation3 + $0x54] sm:$0x1] %v3237_v57  ;;  %v8770_v7 = vld [vmem:[#allocation3 + $0x3c] sm:$0xf0]  ;;  %v8989_v34 = vor.u32 %v9304_v25, %v8988_v45  ;;  %v9266_v39 = vld [vmem:[#allocation3 + $0x98] sm:$0xf0] }
 0x32a   : > { %6279 = vst.msk [vmem:[#allocation3 + $0x54] sm:$0xf] %vm266_vm3, %v11955_v47  ;;  %v8773_v11 = vor.u32 %v9252_v36, %v8770_v7  ;;  %v8818_v10 = vld [vmem:[#allocation3 + $0x94] sm:$0xf0]  ;;  %v8804_v53 = vld [vmem:[#allocation3 + $0x60] sm:$0xf]  ;;  %v8825_v28 = vor.u32 %v9266_v39, %v8824_v59 }
 0x32b   : > { %v3265_v8 = vpop.permute.xlu0 %3264  ;;  %v6273_v14 = vld [vmem:[#allocation3 + $0x8c] sm:$0x1]  ;;  %3214 = vst [vmem:[#allocation3 + $0x68] sm:$0xf] %v3213_v6  ;;  %v8805_v41 = vor.u32 %v9261_v38, %v8804_v53  ;;  %v9305_v57 = vld [vmem:[%s9553_s13 + $0xfc] sm:$0xf0] }
 0x32c   : > { %v6274_v43 = vsel %vm11965_vm12, 0, %v6273_v14  ;;  %v8756_v58 = vld [vmem:[#allocation3 + $0x8] sm:$0xf]  ;;  %6817 = vmatmul.bf16.gmra.mxu1 %v8773_v11  ;;  %3284 = vst.msk [vmem:[#allocation3 + $0x58] sm:$0xf] %vm316_vm4, %v3265_v8  ;;  %v8993_v36 = vor.u32 %v9305_v57, %v8992_v42 }
 0x32d   : > { %6275 = vst [vmem:[#allocation3 + $0x8c] sm:$0x1] %v6274_v43  ;;  %v8757_v63 = vor.u32 %v9250_v50, %v8756_v58  ;;  %v8996_v50 = vld [vmem:[%s9553_s13 + $0x108] sm:$0xf]  ;;  %v9306_v11 = vld [vmem:[%s9553_s13 + $0x10c] sm:$0xf0] }
 0x32e   : > { %v6334_v2 = vld [vmem:[#allocation3 + $0x84] sm:$0x1]  ;;  %v8997_v8 = vor.u32 %v9306_v11, %v8996_v50  ;;  %s245_s13 = sand.u32 1, %s9453_s22  }
 0x32f   : > { %6841 = vmatmul.bf16.vlgmr.msra.gmra.mxu2 %v8757_v63  ;;  %v6335_v15 = vsel %vm11965_vm12, 0, %v6334_v2  ;;  %s12305_s16 = sshll.u32 %s245_s13, 5  ;;  %s7358_s25 = scalar_lea.sflag [#allocation6], %s245_s13 }
 0x330   : > { %v3183_v46 = vpop.permute.xlu1 %3182  ;;  %6336 = vst [vmem:[#allocation3 + $0x84] sm:$0x1] %v6335_v15  ;;  %s12317_s17 = scalar_lea.vmem [#allocation5], %s12305_s16 }
 0x331   : > { %v3216_v47 = vsel %vm12017_vm0, %v3183_v46, %v3215_v18  ;;  %v9257_v21 = vld [vmem:[#allocation3 + $0x54] sm:$0xf]  ;;  %s7370_s28 = sshll.u32 %s12317_s17, 4  ;;  %s7371_s28 = int_to_ptr.vmem [resolvable:$true] %s7370_s28 }
 0x332   : > { %3217 = vst [vmem:[#allocation3 + $0x7c] sm:$0xf] %v3216_v47  ;;  %v3239_v16 = vld [vmem:[#allocation3 + $0x68] sm:$0x1] }
 0x333   : > { %v3269_v19 = vpop.permute.xlu0 %3268  ;;  %v3240_v33 = vsel %vm12064_vm6, 0, %v3239_v16  ;;  %v8796_v49 = vld [vmem:[#allocation3 + $0x58] sm:$0xf] }
 0x334   : > { %3286 = vst.msk [vmem:[#allocation3 + $0x80] sm:$0xf] %vm316_vm4, %v3269_v19  ;;  %v9264_v3 = vld [vmem:[#allocation3 + $0x88] sm:$0xf0] }
 0x335   : > { %3241 = vst [vmem:[#allocation3 + $0x68] sm:$0x1] %v3240_v33  ;;  %v8809_v56 = vor.u32 %v9264_v3, %v8808_v4  ;;  %v12258_v33 = vld [vmem:[%s12382_s4] ss:$0 sm:$0xff] }
 0x336   : > { %6280 = vst.msk [vmem:[#allocation3 + $0x68] sm:$0xf] %vm266_vm3, %v11977_v35  ;;  %v9255_v35 = vld [vmem:[#allocation3 + $0x40] sm:$0xf0] }
 0x337   : > { %6798 = vmatmul.bf16.gmra.mxu0 %v8809_v56  ;;  %v9263_v62 = vld [vmem:[#allocation3 + $0x84] sm:$0xf]  ;;  %v8777_v0 = vor.u32 %v9255_v35, %v8776_v60 }
 0x338   : > { %v3267_v13 = vpop.permute.xlu1 %3266  ;;  %v8821_v24 = vor.u32 %v9263_v62, %v8818_v10 }
 0x339   : > { %v3242_v27 = vld [vmem:[#allocation3 + $0x7c] sm:$0x1]  ;;  %3285 = vst.msk [vmem:[#allocation3 + $0x6c] sm:$0xf] %vm316_vm4, %v3267_v13 }
 0x33a   : > { %v3243_v30 = vsel %vm12064_vm6, 0, %v3242_v27  ;;  %6885 = vmatmul.bf16.gmra.mxu3 %v8821_v24 }
 0x33b   : > { %3244 = vst [vmem:[#allocation3 + $0x7c] sm:$0x1] %v3243_v30  ;;  %v8816_v31 = vld [vmem:[#allocation3 + $0x80] sm:$0xf] }
 0x33c   : > { %6281 = vst.msk [vmem:[#allocation3 + $0x7c] sm:$0xf] %vm266_vm3, %v11995_v12  ;;  %vm7143_vm3 = vcmask 1046528  }
 0x33d   : > { %v8790_v52 = vld [vmem:[#allocation3 + $0x64] sm:$0xf0] }
 0x33e   : > { %v8793_v40 = vor.u32 %v9257_v21, %v8790_v52 }
 0x33f   : > { %6846 = vmatmul.bf16.gmra.mxu2 %v8777_v0 }
 0x340   : > { %v3271_v1 = vpop.permute.xlu1 %3270  ;;  %6822 = vmatmul.bf16.gmra.mxu1 %v8793_v40  ;;  %v9260_v12 = vld [vmem:[#allocation3 + $0x68] sm:$0xf0] }
 0x341   : > { %3287 = vst.msk [vmem:[#allocation3 + $0x94] sm:$0xf] %vm316_vm4, %v3271_v1  ;;  %v8797_v9 = vor.u32 %v9260_v12, %v8796_v49  ;;  %vm7224_vm4 = vcmask 1045504  }
 0x343   : > { %v9262_v61 = vld [vmem:[#allocation3 + $0x7c] sm:$0xf] }
 0x344   : > { %v8813_v32 = vor.u32 %v9262_v61, %v8810_v20 }
 0x347   : > { %8970 = vmatmul.msk.bf16.vlgmr.msra.gmra.mxu0 %vm1323_vm5, %v8765_v17 }
 0x348   : > { %v9265_v51 = vld [vmem:[#allocation3 + $0x90] sm:$0xf0] }
 0x349   : > { %v8817_v26 = vor.u32 %v9265_v51, %v8816_v31 }
 0x34f   : > { %6851 = vmatmul.bf16.gmra.mxu2 %v8797_v9 }
 0x350   : > { %6827 = vmatmul.bf16.gmra.mxu1 %v8813_v32 }
 0x357   : > { %8971 = vmatmul.msk.bf16.gmra.mxu0 %vm1323_vm5, %v8785_v44 }
 0x35e   : > { %v6784_v6 = vpop.f32.mrf.mxu0 }
 0x35f   : > { %6856 = vmatmul.bf16.gmra.mxu2 %v8817_v26  ;;  %v6785_v3 = vadd.f32 %v12258_v33, %v6784_v6 }
 0x360   : > { %9014 = vmatmul.msk.bf16.vlgmr.msra.gmra.mxu1 %vm1323_vm5, %v8985_v37 }
 0x366   : > { %v6786_v7 = vpop.f32.mrf.mxu0 }
 0x367   : > { %8972 = vmatmul.msk.bf16.gmra.mxu0 %vm1323_vm5, %v8805_v41  ;;  %v6787_v62 = vadd.f32 %v12258_v33, %v6786_v7 }
 0x370   : > { %9015 = vmatmul.msk.bf16.gmra.mxu1 %vm1323_vm5, %v8989_v34 }
 0x377   : > { %8973 = vmatmul.msk.bf16.gmra.mxu0 %vm1323_vm5, %v8825_v28 }
 0x380   : > { %9016 = vmatmul.msk.bf16.gmra.mxu1 %vm1323_vm5, %v8993_v36 }
 0x385   : > { %v6871_v16 = vpop.f32.mrf.mxu3 }
 0x389   : > { %v6789_v14 = vpop.f32.mrf.mxu0 }
 0x38a   : > { %v6790_v1 = vadd.f32 %v12258_v33, %v6789_v14 }
 0x38d   : > { %v6813_v18 = vpop.f32.mrf.mxu1  ;;  %v6873_v27 = vpop.f32.mrf.mxu3 }
 0x38e   : > { %v6814_v10 = vadd.f32 %v6813_v18, %v6785_v3 }
 0x390   : > { %9017 = vmatmul.msk.bf16.gmra.mxu1 %vm1323_vm5, %v8997_v8 }
 0x391   : > { %v6791_v43 = vpop.f32.mrf.mxu0 }
 0x392   : > { %v6792_v54 = vadd.f32 %v12258_v33, %v6791_v43 }
 0x395   : > { %v6815_v58 = vpop.f32.mrf.mxu1  ;;  %v6876_v0 = vpop.f32.mrf.mxu3 }
 0x396   : > { %v6816_v21 = vadd.f32 %v6815_v58, %v6787_v62 }
 0x39d   : > { %v6878_v23 = vpop.f32.mrf.mxu3 }
 0x3a1   : > { %v6794_v63 = vpop.f32.mrf.mxu0 }
 0x3a2   : > { %v6795_v59 = vadd.f32 %v12258_v33, %v6794_v63 }
 0x3a9   : > { %v6818_v46 = vpop.f32.mrf.mxu1  ;;  %v12251_v2 = vpop.f32.mrf.mxu0 }
 0x3aa   : > { %v6819_v61 = vadd.f32 %v6818_v46, %v6790_v1  ;;  %v6797_v46 = vadd.f32 %v12258_v33, %v12251_v2 }
 0x3ac   : > { %v6881_v42 = vpop.f32.mrf.mxu3 }
 0x3b1   : > { %v6820_v15 = vpop.f32.mrf.mxu1 }
 0x3b2   : > { %v6842_v47 = vpop.f32.mrf.mxu2  ;;  %v6821_v51 = vadd.f32 %v6820_v15, %v6792_v54 }
 0x3b3   : > { %v6843_v48 = vadd.f32 %v6842_v47, %v6814_v10 }
 0x3b4   : > { %v12253_v19 = vpop.f32.mrf.mxu0 }
 0x3b5   : > { %v6872_v24 = vadd.f32 %v6871_v16, %v6843_v48 }
 0x3ba   : > { %v6844_v4 = vpop.f32.mrf.mxu2 }
 0x3bb   : > { %v6845_v40 = vadd.f32 %v6844_v4, %v6816_v21 }
 0x3bc   : > { %v12261_v56 = vpop.f32.mrf.mxu0 }
 0x3bd   : > { %v6823_v13 = vpop.f32.mrf.mxu1  ;;  %v6874_v29 = vadd.f32 %v6873_v27, %v6845_v40 }
 0x3be   : > { %v6824_v6 = vadd.f32 %v6823_v13, %v6795_v59 }
 0x3c2   : > { %v6847_v30 = vpop.f32.mrf.mxu2 }
 0x3c3   : > { %v6848_v32 = vadd.f32 %v6847_v30, %v6819_v61 }
 0x3c4   : > { %v6900_v35 = vpop.f32.mrf.mxu0 }
 0x3c5   : > { %v12264_v60 = vpop.f32.mrf.mxu1  ;;  %v6901_v52 = vadd.f32 %v6900_v35, %v6872_v24  ;;  %v6877_v44 = vadd.f32 %v6876_v0, %v6848_v32 }
 0x3c6   : > { %v6826_v10 = vadd.f32 %v12264_v60, %v6797_v46  ;;  %v6883_v60 = vpop.f32.mrf.mxu3 }
 0x3c7   : > { %7022 = vst [vmem:[#allocation4 + $0x11] sm:$0xff] %v6901_v52 }
 0x3ca   : > { %v6849_v55 = vpop.f32.mrf.mxu2 }
 0x3cb   : > { %v6850_v38 = vadd.f32 %v6849_v55, %v6821_v51 }
 0x3cc   : > { %v6902_v17 = vpop.f32.mrf.mxu0 }
 0x3cd   : > { %v12267_v12 = vpop.f32.mrf.mxu1  ;;  %v6903_v49 = vadd.f32 %v6902_v17, %v6874_v29  ;;  %v6879_v57 = vadd.f32 %v6878_v23, %v6850_v38 }
 0x3ce   : > { %v7034_v20 = vld [vmem:[#allocation4 + $0x12] sm:$0x1]  ;;  %v7054_v9 = vld [vmem:[#allocation4 + $0x17] sm:$0x1] }
 0x3cf   : > { %7044 = vst [vmem:[#allocation4 + $0x10] sm:$0x1] %v7034_v20 }
 0x3d0   : > { %7064 = vst [vmem:[#allocation4 + $0x19] sm:$0x1] %v7054_v9 }
 0x3d1   : > { %7023 = vst [vmem:[#allocation4 + $0x21] sm:$0xff] %v6903_v49 }
 0x3d2   : > { %7030 = vst [vmem:[#allocation4 + $0x1] sm:$0xff] %v6903_v49  ;;  %v6852_v31 = vpop.f32.mrf.mxu2 }
 0x3d3   : > { %v6853_v14 = vadd.f32 %v6852_v31, %v6824_v6  ;;  %v6800_v6 = vadd.f32 %v12258_v33, %v12253_v19 }
 0x3d4   : > { %v6905_v22 = vpop.f32.mrf.mxu0 }
 0x3d5   : > { %v12270_v5 = vpop.f32.mrf.mxu1  ;;  %v6906_v37 = vadd.f32 %v6905_v22, %v6877_v44  ;;  %v6882_v62 = vadd.f32 %v6881_v42, %v6853_v14 }
 0x3d6   : > { %v7075_v26 = vld [vmem:[#allocation4 + $0x10] sm:$0xff] }
 0x3d7   : > { %7024 = vst [vmem:[#allocation4 + $0x31] sm:$0xff] %v6906_v37  ;;  %v7076_v53 = vld [vmem:[#allocation4 + $0x18] sm:$0x3]  ;;  %v7105_v25 = vmul.f32 0.45186275, %v7075_v26 }
 0x3d8   : > { %v7035_v41 = vld [vmem:[#allocation4 + $0x22] sm:$0x1]  ;;  %v7055_v45 = vld [vmem:[#allocation4 + $0x27] sm:$0x1]  ;;  %v7106_v28 = vmul.f32 0.45186275, %v7076_v53 }
 0x3d9   : > { %v7033_v34 = vld [vmem:[#allocation4 + $0x2] sm:$0x1]  ;;  %7045 = vst [vmem:[#allocation4 + $0x20] sm:$0x1] %v7035_v41  ;;  %v7053_v39 = vld [vmem:[#allocation4 + $0x7] sm:$0x1] }
 0x3da   : > { %7043 = vst [vmem:[#allocation4] sm:$0x1] %v7033_v34  ;;  %v7147_v50 = vrot.slane %v7105_v25, 1  ;;  %v7148_v11 = vrot.slane %v7106_v28, 1  ;;  %v7094_v58 = vmul.f32 0.27406862, %v7075_v26  ;;  %v6854_v47 = vpop.f32.mrf.mxu2 }
 0x3db   : > { %7063 = vst [vmem:[#allocation4 + $0x9] sm:$0x1] %v7053_v39  ;;  %v7195_v63 = vmul.f32 0.27406862, %v7076_v53  ;;  %v6855_v32 = vadd.f32 %v6854_v47, %v6826_v10 }
 0x3dc   : > { %7065 = vst [vmem:[#allocation4 + $0x29] sm:$0x1] %v7055_v45  ;;  %v6907_v36 = vpop.f32.mrf.mxu0  ;;  %v7149_v16 = vsel %vm7143_vm3, %v7147_v50, %v7148_v11  ;;  %v7228_v2 = vrot.slane %v7094_v58, 2 }
 0x3dd   : > { %v12273_v7 = vpop.f32.mrf.mxu1  ;;  %v6908_v8 = vadd.f32 %v6907_v36, %v6879_v57  ;;  %v7185_v21 = vadd.f32 %v7149_v16, %v7094_v58  ;;  %v7229_v52 = vrot.slane %v7195_v63, 2  ;;  %v6884_v47 = vadd.f32 %v6883_v60, %v6855_v32 }
 0x3de   : > { %v7036_v18 = vld [vmem:[#allocation4 + $0x32] sm:$0x1]  ;;  %v7056_v43 = vld [vmem:[#allocation4 + $0x37] sm:$0x1]  ;;  %v6829_v16 = vadd.f32 %v12267_v12, %v6800_v6 }
 0x3df   : > { %7046 = vst [vmem:[#allocation4 + $0x30] sm:$0x1] %v7036_v18  ;;  %v7230_v37 = vsel %vm7224_vm4, %v7228_v2, %v7229_v52 }
 0x3e0   : > { %7066 = vst [vmem:[#allocation4 + $0x39] sm:$0x1] %v7056_v43  ;;  %v7077_v15 = vld [vmem:[#allocation4 + $0x20] sm:$0xff]  ;;  %v7266_v34 = vadd.f32 %v7230_v37, %v7185_v21 }
 0x3e1   : > { %7025 = vst [vmem:[#allocation4 + $0x41] sm:$0xff] %v6908_v8  ;;  %v7073_v4 = vld [vmem:[#allocation4] sm:$0xff]  ;;  %v7095_v3 = vmul.f32 0.27406862, %v7077_v15  ;;  %v7107_v13 = vmul.f32 0.45186275, %v7077_v15 }
 0x3e2   : > { %v7074_v27 = vld [vmem:[#allocation4 + $0x8] sm:$0x3]  ;;  %v7093_v48 = vmul.f32 0.27406862, %v7073_v4  ;;  %v7103_v30 = vmul.f32 0.45186275, %v7073_v4  ;;  %v6857_v36 = vpop.f32.mrf.mxu2 }
 0x3e3   : > { %v7078_v24 = vld [vmem:[#allocation4 + $0x28] sm:$0x3]  ;;  %v7104_v35 = vmul.f32 0.45186275, %v7074_v27  ;;  %v7150_v1 = vrot.slane %v7107_v13, 1  ;;  %v7231_v44 = vrot.slane %v7095_v3, 2  ;;  %v6858_v21 = vadd.f32 %v6857_v36, %v6829_v16 }
 0x3e4   : > { %v7108_v0 = vmul.f32 0.45186275, %v7078_v24  ;;  %v7144_v40 = vrot.slane %v7103_v30, 1  ;;  %v7194_v55 = vmul.f32 0.27406862, %v7074_v27  ;;  %v6910_v29 = vpop.f32.mrf.mxu0  ;;  %v7225_v49 = vrot.slane %v7093_v48, 2 }
 0x3e5   : > { %v7145_v17 = vrot.slane %v7104_v35, 1  ;;  %v7196_v61 = vmul.f32 0.27406862, %v7078_v24  ;;  %v6911_v20 = vadd.f32 %v6910_v29, %v6882_v62  ;;  %v12279_v9 = vpop.f32.mrf.mxu1  ;;  %v7283_v46 = vmul.f32 0.31951523, %v7266_v34  ;;  %v6886_v35 = vpop.f32.mrf.mxu3 }
 0x3e6   : > { %v7151_v23 = vrot.slane %v7108_v0, 1  ;;  %v7226_v54 = vrot.slane %v7194_v55, 2  ;;  %v7079_v22 = vld [vmem:[#allocation4 + $0x30] sm:$0xff]  ;;  %v7276_v52 = vmul.f32 0.19379579, %v7266_v34 }
 0x3e7   : > { %v7146_v51 = vsel %vm7143_vm3, %v7144_v40, %v7145_v17  ;;  %v7232_v31 = vrot.slane %v7196_v61, 2  ;;  %7026 = vst [vmem:[#allocation4 + $0x51] sm:$0xff] %v6911_v20  ;;  %v7080_v26 = vld [vmem:[#allocation4 + $0x38] sm:$0x3]  ;;  %v7096_v38 = vmul.f32 0.27406862, %v7079_v22  ;;  %v6802_v40 = vadd.f32 %v12258_v33, %v12261_v56 }
 0x3e8   : > { %v7037_v53 = vld [vmem:[#allocation4 + $0x42] sm:$0x1]  ;;  %v7057_v41 = vld [vmem:[#allocation4 + $0x47] sm:$0x1]  ;;  %v7152_v45 = vsel %vm7143_vm3, %v7150_v1, %v7151_v23  ;;  %v7184_v25 = vadd.f32 %v7146_v51, %v7093_v48  ;;  %v7109_v39 = vmul.f32 0.45186275, %v7079_v22  ;;  %v7227_v28 = vsel %vm7224_vm4, %v7225_v49, %v7226_v54 }
 0x3e9   : > { %7047 = vst [vmem:[#allocation4 + $0x40] sm:$0x1] %v7037_v53  ;;  %v7186_v59 = vadd.f32 %v7152_v45, %v7095_v3  ;;  %v7110_v42 = vmul.f32 0.45186275, %v7080_v26  ;;  %v7197_v57 = vmul.f32 0.27406862, %v7080_v26  ;;  %v7233_v50 = vsel %vm7224_vm4, %v7231_v44, %v7232_v31 }
 0x3ea   : > { %7067 = vst [vmem:[#allocation4 + $0x49] sm:$0x1] %v7057_v41  ;;  %v7265_v11 = vadd.f32 %v7227_v28, %v7184_v25  ;;  %v7153_v8 = vrot.slane %v7109_v39, 1  ;;  %v7234_v43 = vrot.slane %v7096_v38, 2  ;;  %v6831_v32 = vadd.f32 %v12270_v5, %v6802_v40  ;;  %v6859_v54 = vpop.f32.mrf.mxu2 }
 0x3eb   : > { %v7267_v14 = vadd.f32 %v7233_v50, %v7186_v59  ;;  %v7154_v18 = vrot.slane %v7110_v42, 1  ;;  %v7235_v58 = vrot.slane %v7197_v57, 2  ;;  %v6887_v33 = vadd.f32 %v6886_v35, %v6858_v21 }
 0x3ec   : > { %v7275_v63 = vmul.f32 0.19379579, %v7265_v11  ;;  %v6912_v15 = vpop.f32.mrf.mxu0  ;;  %v6860_v45 = vadd.f32 %v6859_v54, %v6831_v32 }
 0x3ed   : > { %v12289_v4 = vmul.f32 0.19379579, %v7267_v14  ;;  %v7155_v19 = vsel %vm7143_vm3, %v7153_v8, %v7154_v18  ;;  %v7284_v48 = vmul.f32 0.31951523, %v7267_v14  ;;  %v6913_v30 = vadd.f32 %v6912_v15, %v6884_v47  ;;  %v12293_v24 = vpop.f32.mrf.mxu1  ;;  %v6888_v18 = vpop.f32.mrf.mxu3 }
 0x3ee   : > { %v7291_v3 = vadd.f32 %v7283_v46, %v7275_v63  ;;  %v7038_v13 = vld [vmem:[#allocation4 + $0x52] sm:$0x1]  ;;  %v7058_v10 = vld [vmem:[#allocation4 + $0x57] sm:$0x1]  ;;  %v7187_v27 = vadd.f32 %v7155_v19, %v7096_v38  ;;  %v7236_v62 = vsel %vm7224_vm4, %v7234_v43, %v7235_v58  ;;  %v6889_v47 = vadd.f32 %v6888_v18, %v6860_v45 }
 0x3ef   : > { %7048 = vst [vmem:[#allocation4 + $0x50] sm:$0x1] %v7038_v13  ;;  %v7292_v61 = vadd.f32 %v7284_v48, %v7276_v52 }
 0x3f0   : > { %v7301_v12 = vadd.f32 %v7291_v3, %v12289_v4  ;;  %7068 = vst [vmem:[#allocation4 + $0x59] sm:$0x1] %v7058_v10  ;;  %v7268_v2 = vadd.f32 %v7236_v62, %v7187_v27  ;;  %v7081_v0 = vld [vmem:[#allocation4 + $0x40] sm:$0xff] }
 0x3f1   : > { %7027 = vst [vmem:[#allocation4 + $0x61] sm:$0xff] %v6913_v30  ;;  %v7082_v1 = vld [vmem:[#allocation4 + $0x48] sm:$0x3]  ;;  %v7097_v55 = vmul.f32 0.27406862, %v7081_v0 }
 0x3f2   : > { %vm7309_vm5 = vcmp.gt.f32.partialorder %v7301_v12, 0.0  ;;  %v7317_v29 = vmul.f32 0.2, %v7301_v12  ;;  %v12299_v17 = vmul.f32 0.19379579, %v7268_v2 }
 0x3f3   : > { %v7111_v49 = vmul.f32 0.45186275, %v7081_v0  ;;  %v7112_v20 = vmul.f32 0.45186275, %v7082_v1  ;;  %v7198_v60 = vmul.f32 0.27406862, %v7082_v1 }
 0x3f4   : > { %v7325_v23 = vsel %vm7309_vm5, %v7301_v12, %v7317_v29  ;;  %v7302_v44 = vadd.f32 %v7292_v61, %v12299_v17  ;;  %v6915_v56 = vpop.f32.mrf.mxu0  ;;  %v7237_v37 = vrot.slane %v7097_v55, 2  ;;  %v7285_v38 = vmul.f32 0.31951523, %v7268_v2 }
 0x3f5   : > { %v7156_v22 = vrot.slane %v7111_v49, 1  ;;  %v7157_v51 = vrot.slane %v7112_v20, 1  ;;  %v7238_v31 = vrot.slane %v7198_v60, 2  ;;  %v6916_v53 = vadd.f32 %v6915_v56, %v6887_v33  ;;  %v12311_v11 = vpop.f32.mrf.mxu1 }
 0x3f6   : > { %vm7310_vm7 = vcmp.gt.f32.partialorder %v7302_v44, 0.0  ;;  %v7318_v26 = vmul.f32 0.2, %v7302_v44  ;;  %v7083_v41 = vld [vmem:[#allocation4 + $0x50] sm:$0xff]  ;;  %v7333_v59 = vadd.f32 %v7325_v23, %v12273_v7 }
 0x3f7   : > { %v7158_v5 = vsel %vm7143_vm3, %v7156_v22, %v7157_v51  ;;  %v7084_v25 = vld [vmem:[#allocation4 + $0x58] sm:$0x3]  ;;  %v7098_v34 = vmul.f32 0.27406862, %v7083_v41  ;;  %v7113_v39 = vmul.f32 0.45186275, %v7083_v41  ;;  %v7239_v50 = vsel %vm7224_vm4, %v7237_v37, %v7238_v31 }
 0x3f8   : > { %v7326_v28 = vsel %vm7310_vm7, %v7302_v44, %v7318_v26  ;;  %v7039_v42 = vld [vmem:[#allocation4 + $0x62] sm:$0x1]  ;;  %v7059_v57 = vld [vmem:[#allocation4 + $0x67] sm:$0x1]  ;;  %v7188_v6 = vadd.f32 %v7158_v5, %v7097_v55  ;;  %7028 = vst [vmem:[#allocation4 + $0x71] sm:$0xff] %v6916_v53 }
 0x3f9   : > { %v7334_v36 = vadd.f32 %v7326_v28, %v12279_v9  ;;  %7049 = vst [vmem:[#allocation4 + $0x60] sm:$0x1] %v7039_v42  ;;  %v7114_v8 = vmul.f32 0.45186275, %v7084_v25  ;;  %v7159_v14 = vrot.slane %v7113_v39, 1  ;;  %v7240_v46 = vrot.slane %v7098_v34, 2 }
 0x3fa   : > { %7069 = vst [vmem:[#allocation4 + $0x69] sm:$0x1] %v7059_v57  ;;  %v7269_v43 = vadd.f32 %v7239_v50, %v7188_v6  ;;  %v7199_v58 = vmul.f32 0.27406862, %v7084_v25  ;;  %v7293_v9 = vadd.f32 %v7285_v38, %v12289_v4 }
 0x3fb   : > { %v9315_v7 = vpack.c.bf16 %v7334_v36, %v7333_v59  ;;  %7032 = vst [vmem:[#allocation4 + $0x91] sm:$0xff] %v6916_v53  ;;  %v7160_v63 = vrot.slane %v7114_v8, 1 }
 0x3fc   : > { %v12313_v15 = vmul.f32 0.19379579, %v7269_v43  ;;  %v7241_v16 = vrot.slane %v7199_v58, 2  ;;  %v6917_v19 = vpop.f32.mrf.mxu0  ;;  %v7286_v48 = vmul.f32 0.31951523, %v7269_v43 }
 0x3fd   : > { %9316 = vst [vmem:[%s12317_s17] sm:$0xff] %v9315_v7   ;;  %v7161_v3 = vsel %vm7143_vm3, %v7159_v14, %v7160_v63  ;;  %v6918_v13 = vadd.f32 %v6917_v19, %v6889_v47  ;;  %v12324_v29 = vpop.f32.mrf.mxu1 }
 0x3fe   : > { %v7303_v10 = vadd.f32 %v7293_v9, %v12313_v15  ;;  %v7189_v27 = vadd.f32 %v7161_v3, %v7098_v34  ;;  %v7242_v35 = vsel %vm7224_vm4, %v7240_v46, %v7241_v16  ;;  %v7294_v55 = vadd.f32 %v7286_v48, %v12299_v17 }
 0x3ff   : > { %v7040_v30 = vld [vmem:[#allocation4 + $0x72] sm:$0x1]  ;;  %v7060_v62 = vld [vmem:[#allocation4 + $0x77] sm:$0x1]  ;;  %7029 = vst [vmem:[#allocation4 + $0x81] sm:$0xff] %v6918_v13 }
 0x400   : > { %vm7311_vm8 = vcmp.gt.f32.partialorder %v7303_v10, 0.0  ;;  %v7319_v4 = vmul.f32 0.2, %v7303_v10  ;;  %7050 = vst [vmem:[#allocation4 + $0x70] sm:$0x1] %v7040_v30  ;;  %v7270_v21 = vadd.f32 %v7242_v35, %v7189_v27  ;;  %v7085_v12 = vld [vmem:[#allocation4 + $0x60] sm:$0xff] }
 0x401   : > { %7070 = vst [vmem:[#allocation4 + $0x79] sm:$0x1] %v7060_v62  ;;  %v7086_v2 = vld [vmem:[#allocation4 + $0x68] sm:$0x3]  ;;  %v7099_v52 = vmul.f32 0.27406862, %v7085_v12 }
 0x402   : > { %v7042_v0 = vld [vmem:[#allocation4 + $0x92] sm:$0x1]  ;;  %v7062_v40 = vld [vmem:[#allocation4 + $0x97] sm:$0x1]  ;;  %v7280_v1 = vmul.f32 0.19379579, %v7270_v21  ;;  %v7327_v20 = vsel %vm7311_vm8, %v7303_v10, %v7319_v4 }
 0x403   : > { %7052 = vst [vmem:[#allocation4 + $0x90] sm:$0x1] %v7042_v0  ;;  %v7115_v61 = vmul.f32 0.45186275, %v7085_v12  ;;  %v7116_v49 = vmul.f32 0.45186275, %v7086_v2  ;;  %v7335_v17 = vadd.f32 %v7327_v20, %v12293_v24 }
 0x404   : > { %7072 = vst [vmem:[#allocation4 + $0x99] sm:$0x1] %v7062_v40  ;;  %v7304_v60 = vadd.f32 %v7294_v55, %v7280_v1  ;;  %v7200_v32 = vmul.f32 0.27406862, %v7086_v2  ;;  %v7243_v23 = vrot.slane %v7099_v52, 2 }
 0x405   : > { %v7162_v54 = vrot.slane %v7115_v61, 1  ;;  %v7163_v44 = vrot.slane %v7116_v49, 1  ;;  %v7287_v33 = vmul.f32 0.31951523, %v7270_v21  ;;  %v7013_v58 = vpop.f32.mrf.mxu1 }
 0x406   : > { %vm7312_vm9 = vcmp.gt.f32.partialorder %v7304_v60, 0.0  ;;  %v7320_v56 = vmul.f32 0.2, %v7304_v60  ;;  %v7041_v22 = vld [vmem:[#allocation4 + $0x82] sm:$0x1]  ;;  %v7244_v51 = vrot.slane %v7200_v32, 2 }
 0x407   : > { %7051 = vst [vmem:[#allocation4 + $0x80] sm:$0x1] %v7041_v22  ;;  %v7061_v37 = vld [vmem:[#allocation4 + $0x87] sm:$0x1]  ;;  %v7164_v31 = vsel %vm7143_vm3, %v7162_v54, %v7163_v44  ;;  %v7087_v26 = vld [vmem:[#allocation4 + $0x70] sm:$0xff]  ;;  %v7295_v18 = vadd.f32 %v7287_v33, %v12313_v15 }
 0x408   : > { %v7328_v38 = vsel %vm7312_vm9, %v7304_v60, %v7320_v56  ;;  %7071 = vst [vmem:[#allocation4 + $0x89] sm:$0x1] %v7061_v37  ;;  %v7190_v53 = vadd.f32 %v7164_v31, %v7099_v52  ;;  %v7245_v41 = vsel %vm7224_vm4, %v7243_v23, %v7244_v51  ;;  %v7088_v45 = vld [vmem:[#allocation4 + $0x78] sm:$0x3]  ;;  %v7100_v5 = vmul.f32 0.27406862, %v7087_v26 }
 0x409   : > { %v7336_v25 = vadd.f32 %v7328_v38, %v12311_v11  ;;  %v7117_v34 = vmul.f32 0.45186275, %v7087_v26  ;;  %v7118_v39 = vmul.f32 0.45186275, %v7088_v45  ;;  %v7201_v59 = vmul.f32 0.27406862, %v7088_v45 }
 0x40a   : > { %v7271_v28 = vadd.f32 %v7245_v41, %v7190_v53  ;;  %v7246_v24 = vrot.slane %v7100_v5, 2  ;;  %v7091_v42 = vld [vmem:[#allocation4 + $0x90] sm:$0xff] }
 0x40b   : > { %v9320_v57 = vpack.c.bf16 %v7336_v25, %v7335_v17  ;;  %v7165_v6 = vrot.slane %v7117_v34, 1  ;;  %v7166_v36 = vrot.slane %v7118_v39, 1  ;;  %v7247_v50 = vrot.slane %v7201_v59, 2  ;;  %v7092_v8 = vld [vmem:[#allocation4 + $0x98] sm:$0x3] }
 0x40c   : > { %v7281_v14 = vmul.f32 0.19379579, %v7271_v28  ;;  %v7288_v43 = vmul.f32 0.31951523, %v7271_v28  ;;  %v7121_v11 = vmul.f32 0.45186275, %v7091_v42 }
 0x40d   : > { %9332 = vst [vmem:[%s12317_s17 + $0x8] sm:$0xff] %v9320_v57   ;;  %v7167_v7 = vsel %vm7143_vm3, %v7165_v6, %v7166_v36  ;;  %v7102_v9 = vmul.f32 0.27406862, %v7091_v42  ;;  %v7122_v16 = vmul.f32 0.45186275, %v7092_v8  ;;  %v7248_v19 = vsel %vm7224_vm4, %v7246_v24, %v7247_v50  ;;  %v7016_v56 = vpop.f32.mrf.mxu1 }
 0x40e   : > { %v7305_v63 = vadd.f32 %v7295_v18, %v7281_v14  ;;  %v7191_v46 = vadd.f32 %v7167_v7, %v7100_v5  ;;  %v7089_v47 = vld [vmem:[#allocation4 + $0x80] sm:$0xff]  ;;  %v7296_v48 = vadd.f32 %v7288_v43, %v7280_v1  ;;  %v7203_v15 = vmul.f32 0.27406862, %v7092_v8 }
 0x40f   : > { %v7090_v3 = vld [vmem:[#allocation4 + $0x88] sm:$0x3]  ;;  %v7101_v13 = vmul.f32 0.27406862, %v7089_v47  ;;  %v7119_v10 = vmul.f32 0.45186275, %v7089_v47 }
 0x410   : > { %v7272_v27 = vadd.f32 %v7248_v19, %v7191_v46  ;;  %v7120_v30 = vmul.f32 0.45186275, %v7090_v3  ;;  %v7321_v62 = vmul.f32 0.2, %v7305_v63  ;;  %v7202_v4 = vmul.f32 0.27406862, %v7090_v3 }
 0x411   : > { %v7168_v35 = vrot.slane %v7119_v10, 1  ;;  %v7171_v21 = vrot.slane %v7121_v11, 1  ;;  %vm7313_vm10 = vcmp.gt.f32.partialorder %v7305_v63, 0.0  ;;  %v7249_v52 = vrot.slane %v7101_v13, 2 }
 0x412   : > { %v7282_v12 = vmul.f32 0.19379579, %v7272_v27  ;;  %v7169_v2 = vrot.slane %v7120_v30, 1  ;;  %v7250_v0 = vrot.slane %v7202_v4, 2  ;;  %v7172_v40 = vrot.slane %v7122_v16, 1 }
 0x413   : > { %v7252_v55 = vrot.slane %v7102_v9, 2  ;;  %v7253_v20 = vrot.slane %v7203_v15, 2  ;;  %v7329_v60 = vsel %vm7313_vm10, %v7305_v63, %v7321_v62  ;;  %v7289_v1 = vmul.f32 0.31951523, %v7272_v27 }
 0x414   : > { %v7306_v61 = vadd.f32 %v7296_v48, %v7282_v12  ;;  %v7170_v49 = vsel %vm7143_vm3, %v7168_v35, %v7169_v2  ;;  %v7173_v23 = vsel %vm7143_vm3, %v7171_v21, %v7172_v40  ;;  %v7251_v44 = vsel %vm7224_vm4, %v7249_v52, %v7250_v0 }
 0x415   : > { %v7192_v32 = vadd.f32 %v7170_v49, %v7101_v13  ;;  %v7193_v33 = vadd.f32 %v7173_v23, %v7102_v9  ;;  %v7254_v51 = vsel %vm7224_vm4, %v7252_v55, %v7253_v20  ;;  %v7337_v17 = vadd.f32 %v7329_v60, %v12324_v29  ;;  %v7018_v24 = vpop.f32.mrf.mxu1 }
 0x416   : > { %vm7314_vm11 = vcmp.gt.f32.partialorder %v7306_v61, 0.0  ;;  %v7322_v54 = vmul.f32 0.2, %v7306_v61  ;;  %v7297_v38 = vadd.f32 %v7289_v1, %v7281_v14 }
 0x417   : > { %v7273_v22 = vadd.f32 %v7251_v44, %v7192_v32  ;;  %v7274_v31 = vadd.f32 %v7254_v51, %v7193_v33 }
 0x418   : > { %v7330_v37 = vsel %vm7314_vm11, %v7306_v61, %v7322_v54 }
 0x419   : > { %v7338_v26 = vadd.f32 %v7330_v37, %v7013_v58  ;;  %v7299_v53 = vmul.f32 0.19379579, %v7273_v22  ;;  %v7290_v41 = vmul.f32 0.31951523, %v7273_v22  ;;  %v7300_v34 = vmul.f32 0.19379579, %v7274_v31 }
 0x41b   : > { %v9325_v45 = vpack.c.bf16 %v7338_v26, %v7337_v17  ;;  %v7307_v5 = vadd.f32 %v7299_v53, %v7297_v38  ;;  %v7298_v25 = vadd.f32 %v7290_v41, %v7282_v12 }
 0x41d   : > { %9333 = vst [vmem:[%s12317_s17 + $0x10] sm:$0xff] %v9325_v45   ;;  %vm7315_vm12 = vcmp.gt.f32.partialorder %v7307_v5, 0.0  ;;  %v7323_v39 = vmul.f32 0.2, %v7307_v5  ;;  %v7308_v59 = vadd.f32 %v7300_v34, %v7298_v25 }
 0x41f   : > { %v7331_v29 = vsel %vm7315_vm12, %v7307_v5, %v7323_v39  ;;  %vm7316_vm13 = vcmp.gt.f32.partialorder %v7308_v59, 0.0  ;;  %v7324_v28 = vmul.f32 0.2, %v7308_v59 }
 0x420   : > { %v7339_v57 = vadd.f32 %v7331_v29, %v7016_v56 }
 0x421   : > { %v7332_v42 = vsel %vm7316_vm13, %v7308_v59, %v7324_v28 }
 0x422   : > { %v7340_v6 = vadd.f32 %v7332_v42, %v7018_v24 }
 0x424   : > { %v9330_v36 = vpack.c.bf16 %v7340_v6, %v7339_v57 }
 0x426   : > { %9334 = vst [vmem:[%s12317_s17 + $0x18] sm:$0xff] %v9330_v36  }
 0x427   : > { %9426 = shalt.err (!%p9423_p3)
}
 0x428   : > { %s9465_s13 = smov 4  }
 0x429   : > { %9352 = dma.vmem_to_hbm [thread:$0]  (%p9539_p5), %s7371_s28, 512, %s7373_s29, %s7358_s25, %s9463_s14, %s9463_s14, %s9465_s13  }
 0x42a PF: > { %p9358_p4 = scmp.ge.s32.totalorder %s9461_s24, 2  ;;  %s7387_s17 = sand.u32 1, %s9449_s21  }
 0x42b   : > { %s7388_s19 = scalar_lea.sflag [#allocation6], %s7387_s17 }
 0x42c   : > { %p9355_p7 = pnand %p9358_p4, %p9543_p6 }
 0x42e   : > { %p9356_p8 = pneg %p9355_p7 }
 0x430   : > { %9444 = dma.done.wait (%p9356_p8), %s7388_s19, 512  }
 0x431   : > { %9446 = vsyncadd (%p9356_p8), %s7388_s19, 4294966784  ;;  %p16_p9 = scmp.ge.s32.totalorder %s9526_s27, 4   ;;  %s12407_s21 = smov %s9453_s22 }
 0x432   : > { %s12408_s22 = smov %s9457_s23  ;;  %s12409_s23 = smov %s9537_s30 }
 0x433   : > { %s12410_s24 = smov %s9526_s27  ;;  %18 = sbr.rel (!%p16_p9) target bundleno = 3 (0x3), region = 89 }
 0x438   :  { %7394 = vsyncpa [#allocation6], 1 }
 0x439   :  { %7396 = vsyncpa [#allocation6 + $0x1], 1 }

</bundles_post_ra>
